<compile_context>
chip_gen: v7x
topology: tpu7x:2x2x1
jax: 0.10.0
libtpu: 0.0.40
codegen_flags: <defaults>
</compile_context>

<pallas_src>
import jax
import jax.numpy as jnp
from jax.experimental import pallas as pl
from jax.experimental.pallas import tpu as pltpu


def _round_up(n, m):
    return (n + m - 1) // m * m


# ---------------------------------------------------------------------------
# Kernel A: conv1 (1->64, 3x3) + bias + tanh + 2x2 maxpool, fused.
# ---------------------------------------------------------------------------
def _conv1_pool_kernel(p_ref, w_ref, b_ref, o_ref):
    # p_ref: (1, 4, 225, 9)  3x3 patches for the 4 corners of each pool window
    # w_ref: (9, 64)   b_ref: (1, 64)   o_ref: (1, 225, 64)
    w = w_ref[...]
    z = jnp.dot(p_ref[0, 0], w, preferred_element_type=jnp.float32)
    for k in range(1, 4):
        z = jnp.maximum(
            z, jnp.dot(p_ref[0, k], w, preferred_element_type=jnp.float32))
    # tanh is monotone and the bias is shared by all corners -> apply once.
    o_ref[0] = jnp.tanh(z + b_ref[...])


def conv1_tanh_pool(x_img, w1m, b1):
    """x_img: (B, 32, 32) -> pooled conv1 activations (B, 225, 64) (=15x15x64)."""
    B = x_img.shape[0]
    # Corner-grouped im2col (tiny: ~32 KB/image):
    # p1[b, dh*2+dw, ph*15+pw, i*3+j] = x[b, 2*ph+dh+i, 2*pw+dw+j]
    corners = []
    for dh in range(2):
        for dw in range(2):
            taps = [
                x_img[:, dh + i:dh + i + 29:2, dw + j:dw + j + 29:2]
                for i in range(3) for j in range(3)
            ]
            corners.append(jnp.stack(taps, axis=-1).reshape(B, 225, 9))
    p1 = jnp.stack(corners, axis=1)  # (B, 4, 225, 9)

    return pl.pallas_call(
        _conv1_pool_kernel,
        out_shape=jax.ShapeDtypeStruct((B, 225, 64), jnp.float32),
        grid=(B,),
        in_specs=[
            pl.BlockSpec((1, 4, 225, 9), lambda b: (b, 0, 0, 0)),
            pl.BlockSpec((9, 64), lambda b: (0, 0)),
            pl.BlockSpec((1, 64), lambda b: (0, 0)),
        ],
        out_specs=pl.BlockSpec((1, 225, 64), lambda b: (b, 0, 0)),
        compiler_params=pltpu.CompilerParams(
            dimension_semantics=("parallel",),
            vmem_limit_bytes=32 * 1024 * 1024),
    )(p1, w1m, b1)


# ---------------------------------------------------------------------------
# Kernel B: conv2 (64->16, 7x7) + bias + tanh + 2x2 maxpool, fused.
# Patches are built on-chip (no HBM im2col blow-up).
# ---------------------------------------------------------------------------
def _conv2_pool_kernel(y_ref, w_ref, b_ref, o_ref, rall_ref):
    # y_ref:    (1, 225, 64)  pooled conv1 activations, row = r*15 + col
    # w_ref:    (7, 448, 16)  w_ref[i, j*64+c, co] = conv2 weight[co, c, i, j]
    # b_ref:    (1, 16)
    # o_ref:    (1, 4, 4, 16)
    # rall_ref: (135, 448) VMEM scratch: rall[r*9+ow, j*64+c] = y1[r, ow+j, c]
    for r in range(15):
        row = y_ref[0, r * 15:(r + 1) * 15, :]               # (15, 64)
        for j in range(7):
            rall_ref[r * 9:(r + 1) * 9, j * 64:(j + 1) * 64] = row[j:j + 9, :]

    # conv2 as 7 accumulated MXU matmuls over the row-im2col scratch.
    acc = jnp.zeros((81, 16), jnp.float32)                   # row = oh*9 + ow
    for i in range(7):
        acc = acc + jnp.dot(rall_ref[i * 9:i * 9 + 81, :], w_ref[i],
                            preferred_element_type=jnp.float32)

    b = b_ref[...]                                            # (1, 16)
    for ph in range(4):
        top = acc[(2 * ph) * 9:(2 * ph) * 9 + 9]              # conv row 2*ph
        bot = acc[(2 * ph + 1) * 9:(2 * ph + 1) * 9 + 9]      # conv row 2*ph+1
        v = jnp.maximum(top, bot)                             # (9, 16)
        for pw in range(4):
            m = jnp.maximum(v[2 * pw:2 * pw + 1, :],
                            v[2 * pw + 1:2 * pw + 2, :])      # (1, 16)
            o_ref[0, ph, pw:pw + 1, :] = jnp.tanh(m + b)


def conv2_tanh_pool(y1, w2r, b2):
    """y1: (B, 225, 64) -> pooled conv2 activations (B, 4, 4, 16) (NHWC)."""
    B = y1.shape[0]
    return pl.pallas_call(
        _conv2_pool_kernel,
        out_shape=jax.ShapeDtypeStruct((B, 4, 4, 16), jnp.float32),
        grid=(B,),
        in_specs=[
            pl.BlockSpec((1, 225, 64), lambda b: (b, 0, 0)),
            pl.BlockSpec((7, 448, 16), lambda b: (0, 0, 0)),
            pl.BlockSpec((1, 16), lambda b: (0, 0)),
        ],
        out_specs=pl.BlockSpec((1, 4, 4, 16), lambda b: (b, 0, 0, 0)),
        scratch_shapes=[pltpu.VMEM((135, 448), jnp.float32)],
        compiler_params=pltpu.CompilerParams(
            dimension_semantics=("parallel",),
            vmem_limit_bytes=32 * 1024 * 1024),
    )(y1, w2r, b2)


# ---------------------------------------------------------------------------
# Kernel C: fc1 + tanh + fc2 + log_softmax, fused and M-tiled.
# ---------------------------------------------------------------------------
def _head_kernel(x_ref, w1_ref, b1_ref, w2_ref, b2_ref, o_ref):
    h = jnp.tanh(
        jnp.dot(x_ref[...], w1_ref[...], preferred_element_type=jnp.float32)
        + b1_ref[...])
    z = jnp.dot(h, w2_ref[...], preferred_element_type=jnp.float32) + b2_ref[...]
    m = jnp.max(z, axis=-1, keepdims=True)
    lse = jnp.log(jnp.sum(jnp.exp(z - m), axis=-1, keepdims=True)) + m
    o_ref[...] = z - lse


def fc_head(feat, fc1_wt, fc1_b, fc2_wt, fc2_b, *, tile_m=256):
    B, K = feat.shape
    tm = min(tile_m, _round_up(B, 8))
    Bp = _round_up(B, tm)
    if Bp != B:
        feat = jnp.pad(feat, ((0, Bp - B), (0, 0)))
    out = pl.pallas_call(
        _head_kernel,
        out_shape=jax.ShapeDtypeStruct((Bp, 10), jnp.float32),
        grid=(Bp // tm,),
        in_specs=[
            pl.BlockSpec((tm, K), lambda i: (i, 0)),
            pl.BlockSpec((K, 200), lambda i: (0, 0)),
            pl.BlockSpec((1, 200), lambda i: (0, 0)),
            pl.BlockSpec((200, 10), lambda i: (0, 0)),
            pl.BlockSpec((1, 10), lambda i: (0, 0)),
        ],
        out_specs=pl.BlockSpec((tm, 10), lambda i: (i, 0)),
        compiler_params=pltpu.CompilerParams(
            dimension_semantics=("parallel",),
            vmem_limit_bytes=32 * 1024 * 1024),
    )(feat, fc1_wt, fc1_b, fc2_wt, fc2_b)
    return out[:B]


# ---------------------------------------------------------------------------
# Forward pass
# ---------------------------------------------------------------------------
def prepare_params(params):
    """One-time weight re-layouts (done outside the forward pass)."""
    w1m = jnp.transpose(params["w1"], (2, 3, 1, 0)).reshape(9, 64)         # (kh*kw, 64)
    w2r = jnp.transpose(params["w2"], (2, 3, 1, 0)).reshape(7, 7 * 64, 16)  # (i, j*64+c, co)
    return {
        "w1m": w1m.astype(jnp.float32),
        "b1": params["b1"].reshape(1, 64).astype(jnp.float32),
        "w2r": w2r.astype(jnp.float32),
        "b2": params["b2"].reshape(1, 16).astype(jnp.float32),
        "fc1_wt": params["fc1_w"].T.astype(jnp.float32),                    # (256, 200)
        "fc1_b": params["fc1_b"].reshape(1, 200).astype(jnp.float32),
        "fc2_wt": params["fc2_w"].T.astype(jnp.float32),                    # (200, 10)
        "fc2_b": params["fc2_b"].reshape(1, 10).astype(jnp.float32),
    }


@jax.jit
def cnn_net_forward(x, prep):
    x = x.reshape(-1, 1, 32, 32).astype(jnp.float32)      # x.view(-1, 1, 32, 32)
    B = x.shape[0]
    img = x[:, 0, :, :]                                   # (B, 32, 32)

    y1 = conv1_tanh_pool(img, prep["w1m"], prep["b1"])    # (B, 225, 64) = (B, 15*15, 64)
    y2 = conv2_tanh_pool(y1, prep["w2r"], prep["b2"])     # (B, 4, 4, 16) NHWC

    # flatten exactly like torch .view(-1, 4*4*16) on an NCHW tensor
    feat = jnp.transpose(y2, (0, 3, 1, 2)).reshape(B, 16 * 4 * 4)

    return fc_head(feat, prep["fc1_wt"], prep["fc1_b"],
                   prep["fc2_wt"], prep["fc2_b"])


# ---------------------------------------------------------------------------
# Parameters (deterministic, PyTorch-convention shapes)
# ---------------------------------------------------------------------------
def init_params(key):
    ks = jax.random.split(key, 8)

    def nrm(k, shape, scale):
        return (scale * jax.random.normal(k, shape)).astype(jnp.float32)

    return {
        "w1": nrm(ks[0], (64, 1, 3, 3), 0.1),     # Conv2d(1, 64, 3)  OIHW
        "b1": nrm(ks[1], (64,), 0.1),
        "w2": nrm(ks[2], (16, 64, 7, 7), 0.05),   # Conv2d(64, 16, 7) OIHW
        "b2": nrm(ks[3], (16,), 0.05),
        "fc1_w": nrm(ks[4], (200, 256), 0.05),    # Linear(256, 200)  (out, in)
        "fc1_b": nrm(ks[5], (200,), 0.05),
        "fc2_w": nrm(ks[6], (10, 200), 0.05),     # Linear(200, 10)
        "fc2_b": nrm(ks[7], (10,), 0.05),
    }


# Pure-JAX reference of the same forward pass (for correctness check only).
def reference_forward(x, params):
    x = x.reshape(-1, 1, 32, 32).astype(jnp.float32)
    dn = ("NCHW", "OIHW", "NCHW")
    y = jax.lax.conv_general_dilated(x, params["w1"], (1, 1), "VALID",
                                     dimension_numbers=dn)
    y = jnp.tanh(y + params["b1"][None, :, None, None])
    y = jax.lax.reduce_window(y, -jnp.inf, jax.lax.max,
                              (1, 1, 2, 2), (1, 1, 2, 2), "VALID")
    y = jax.lax.conv_general_dilated(y, params["w2"], (1, 1), "VALID",
                                     dimension_numbers=dn)
    y = jnp.tanh(y + params["b2"][None, :, None, None])
    y = jax.lax.reduce_window(y, -jnp.inf, jax.lax.max,
                              (1, 1, 2, 2), (1, 1, 2, 2), "VALID")
    y = y.reshape(y.shape[0], -1)
    y = jnp.tanh(y @ params["fc1_w"].T + params["fc1_b"])
    y = y @ params["fc2_w"].T + params["fc2_b"]
    return jax.nn.log_softmax(y, axis=1)


if __name__ == "__main__":
    key = jax.random.PRNGKey(0)
    pkey, xkey = jax.random.split(key)
    params = init_params(pkey)
    prep = prepare_params(params)
    x = jax.random.normal(xkey, (2, 1, 32, 32), dtype=jnp.float32)

    out = jax.block_until_ready(cnn_net_forward(x, prep))
    ref = jax.block_until_ready(reference_forward(x, params))

    assert out.shape == (2, 10), out.shape
    assert bool(jnp.all(jnp.isfinite(out)))
    # log_softmax rows must normalize
    assert bool(jnp.allclose(jnp.sum(jnp.exp(out), axis=1), 1.0, atol=1e-4))
    assert bool(jnp.allclose(out, ref, atol=1e-3, rtol=1e-3)), float(
        jnp.max(jnp.abs(out - ref)))
    print("KERNEL_OK")
</pallas_src>

<mosaic_0001>
module attributes {stable_mosaic.version = 11 : i64} {
  func.func @_conv1_pool_kernel(%arg0: i32, %arg1: memref<1x4x225x9xf32, #tpu.memory_space<vmem>>, %arg2: memref<9x64xf32, #tpu.memory_space<vmem>>, %arg3: memref<1x64xf32, #tpu.memory_space<vmem>>, %arg4: memref<1x225x64xf32, #tpu.memory_space<vmem>>) attributes {dimension_semantics = [#tpu.dimension_semantics<parallel>], iteration_bounds = array<i64: 2>, scalar_prefetch = 0 : i64, scratch_operands = 0 : i64, tpu.core_type = #tpu.core_type<tc>, window_params = [{transform_indices = @transform_0, window_bounds = array<i64: 1, 4, 225, 9>}, {pipeline_mode = #tpu.pipeline_mode<synchronous>, transform_indices = @transform_1, window_bounds = array<i64: 9, 64>}, {pipeline_mode = #tpu.pipeline_mode<synchronous>, transform_indices = @transform_2, window_bounds = array<i64: 1, 64>}, {transform_indices = @transform_3, window_bounds = array<i64: 1, 225, 64>}]} {
    %c0 = arith.constant 0 : index
    %c0_0 = arith.constant 0 : index
    %0 = vector.load %arg2[%c0, %c0_0] : memref<9x64xf32, #tpu.memory_space<vmem>>, vector<9x64xf32>
    %c0_1 = arith.constant 0 : index
    %c0_2 = arith.constant 0 : index
    %c0_3 = arith.constant 0 : index
    %c0_4 = arith.constant 0 : index
    %1 = vector.load %arg1[%c0_1, %c0_2, %c0_3, %c0_4] : memref<1x4x225x9xf32, #tpu.memory_space<vmem>>, vector<1x1x225x9xf32>
    %2 = vector.shape_cast %1 : vector<1x1x225x9xf32> to vector<225x9xf32>
    %cst = arith.constant dense<0.000000e+00> : vector<225x64xf32>
    %3 = tpu.matmul %2, %0, %cst {dimension_numbers = #tpu.dot_dimension_numbers<[1], [0], [0], [1], [0, 0, 1, 1], [], []>} : vector<225x9xf32>, vector<9x64xf32>, vector<225x64xf32> -> vector<225x64xf32>
    %c0_5 = arith.constant 0 : index
    %c1 = arith.constant 1 : index
    %c0_6 = arith.constant 0 : index
    %c0_7 = arith.constant 0 : index
    %4 = vector.load %arg1[%c0_5, %c1, %c0_6, %c0_7] : memref<1x4x225x9xf32, #tpu.memory_space<vmem>>, vector<1x1x225x9xf32>
    %5 = vector.shape_cast %4 : vector<1x1x225x9xf32> to vector<225x9xf32>
    %cst_8 = arith.constant dense<0.000000e+00> : vector<225x64xf32>
    %6 = tpu.matmul %5, %0, %cst_8 {dimension_numbers = #tpu.dot_dimension_numbers<[1], [0], [0], [1], [0, 0, 1, 1], [], []>} : vector<225x9xf32>, vector<9x64xf32>, vector<225x64xf32> -> vector<225x64xf32>
    %7 = arith.maximumf %3, %6 : vector<225x64xf32>
    %c0_9 = arith.constant 0 : index
    %c2 = arith.constant 2 : index
    %c0_10 = arith.constant 0 : index
    %c0_11 = arith.constant 0 : index
    %8 = vector.load %arg1[%c0_9, %c2, %c0_10, %c0_11] : memref<1x4x225x9xf32, #tpu.memory_space<vmem>>, vector<1x1x225x9xf32>
    %9 = vector.shape_cast %8 : vector<1x1x225x9xf32> to vector<225x9xf32>
    %cst_12 = arith.constant dense<0.000000e+00> : vector<225x64xf32>
    %10 = tpu.matmul %9, %0, %cst_12 {dimension_numbers = #tpu.dot_dimension_numbers<[1], [0], [0], [1], [0, 0, 1, 1], [], []>} : vector<225x9xf32>, vector<9x64xf32>, vector<225x64xf32> -> vector<225x64xf32>
    %11 = arith.maximumf %7, %10 : vector<225x64xf32>
    %c0_13 = arith.constant 0 : index
    %c3 = arith.constant 3 : index
    %c0_14 = arith.constant 0 : index
    %c0_15 = arith.constant 0 : index
    %12 = vector.load %arg1[%c0_13, %c3, %c0_14, %c0_15] : memref<1x4x225x9xf32, #tpu.memory_space<vmem>>, vector<1x1x225x9xf32>
    %13 = vector.shape_cast %12 : vector<1x1x225x9xf32> to vector<225x9xf32>
    %cst_16 = arith.constant dense<0.000000e+00> : vector<225x64xf32>
    %14 = tpu.matmul %13, %0, %cst_16 {dimension_numbers = #tpu.dot_dimension_numbers<[1], [0], [0], [1], [0, 0, 1, 1], [], []>} : vector<225x9xf32>, vector<9x64xf32>, vector<225x64xf32> -> vector<225x64xf32>
    %15 = arith.maximumf %11, %14 : vector<225x64xf32>
    %c0_17 = arith.constant 0 : index
    %c0_18 = arith.constant 0 : index
    %16 = vector.load %arg3[%c0_17, %c0_18] : memref<1x64xf32, #tpu.memory_space<vmem>>, vector<1x64xf32>
    %17 = vector.broadcast %16 : vector<1x64xf32> to vector<225x64xf32>
    %18 = arith.addf %15, %17 : vector<225x64xf32>
    %19 = math.tanh %18 : vector<225x64xf32>
    %c0_19 = arith.constant 0 : index
    %c0_20 = arith.constant 0 : index
    %c0_21 = arith.constant 0 : index
    %20 = vector.load %arg4[%c0_19, %c0_20, %c0_21] : memref<1x225x64xf32, #tpu.memory_space<vmem>>, vector<1x225x64xf32>
    %21 = vector.shape_cast %20 : vector<1x225x64xf32> to vector<225x64xf32>
    %22 = vector.shape_cast %19 : vector<225x64xf32> to vector<1x225x64xf32>
    tpu.vector_store %arg4[%c0_19, %c0_20, %c0_21], %22 {strides = array<i32>} : memref<1x225x64xf32, #tpu.memory_space<vmem>>, vector<1x225x64xf32>,
    return
  }
  func.func @transform_0(%arg0: i32) -> (i32, i32, i32, i32) {
    %c0_i32 = arith.constant 0 : i32
    %c0_i32_0 = arith.constant 0 : i32
    %c0_i32_1 = arith.constant 0 : i32
    %c0_i32_2 = arith.constant 0 : i32
    return %arg0, %c0_i32, %c0_i32_0, %c0_i32_1 : i32, i32, i32, i32
  }
  func.func @transform_1(%arg0: i32) -> (i32, i32) {
    %c0_i32 = arith.constant 0 : i32
    %c0_i32_0 = arith.constant 0 : i32
    %c0_i32_1 = arith.constant 0 : i32
    return %c0_i32, %c0_i32_0 : i32, i32
  }
  func.func @transform_2(%arg0: i32) -> (i32, i32) {
    %c0_i32 = arith.constant 0 : i32
    %c0_i32_0 = arith.constant 0 : i32
    %c0_i32_1 = arith.constant 0 : i32
    return %c0_i32, %c0_i32_0 : i32, i32
  }
  func.func @transform_3(%arg0: i32) -> (i32, i32, i32) {
    %c0_i32 = arith.constant 0 : i32
    %c0_i32_0 = arith.constant 0 : i32
    %c0_i32_1 = arith.constant 0 : i32
    return %arg0, %c0_i32, %c0_i32_0 : i32, i32, i32
  }
}

module attributes {stable_mosaic.version = 11 : i64} {
  func.func @_conv2_pool_kernel(%arg0: i32, %arg1: memref<1x225x64xf32, #tpu.memory_space<vmem>>, %arg2: memref<7x448x16xf32, #tpu.memory_space<vmem>>, %arg3: memref<1x16xf32, #tpu.memory_space<vmem>>, %arg4: memref<1x4x4x16xf32, #tpu.memory_space<vmem>>, %arg5: memref<135x448xf32, #tpu.memory_space<vmem>>) attributes {dimension_semantics = [#tpu.dimension_semantics<parallel>], iteration_bounds = array<i64: 2>, scalar_prefetch = 0 : i64, scratch_operands = 1 : i64, tpu.core_type = #tpu.core_type<tc>, window_params = [{transform_indices = @transform_0, window_bounds = array<i64: 1, 225, 64>}, {pipeline_mode = #tpu.pipeline_mode<synchronous>, transform_indices = @transform_1, window_bounds = array<i64: 7, 448, 16>}, {pipeline_mode = #tpu.pipeline_mode<synchronous>, transform_indices = @transform_2, window_bounds = array<i64: 1, 16>}, {transform_indices = @transform_3, window_bounds = array<i64: 1, 4, 4, 16>}]} {
    %c0 = arith.constant 0 : index
    %c0_0 = arith.constant 0 : index
    %c0_1 = arith.constant 0 : index
    %0 = vector.load %arg1[%c0, %c0_0, %c0_1] : memref<1x225x64xf32, #tpu.memory_space<vmem>>, vector<1x15x64xf32>
    %1 = vector.shape_cast %0 : vector<1x15x64xf32> to vector<15x64xf32>
    %2 = vector.extract_strided_slice %1 {offsets = [0, 0], sizes = [9, 64], strides = [1, 1]} : vector<15x64xf32> to vector<9x64xf32>
    %c0_2 = arith.constant 0 : index
    %c0_3 = arith.constant 0 : index
    %3 = vector.load %arg5[%c0_2, %c0_3] : memref<135x448xf32, #tpu.memory_space<vmem>>, vector<9x64xf32>
    tpu.vector_store %arg5[%c0_2, %c0_3], %2 {strides = array<i32>} : memref<135x448xf32, #tpu.memory_space<vmem>>, vector<9x64xf32>,
    %4 = vector.extract_strided_slice %1 {offsets = [1, 0], sizes = [9, 64], strides = [1, 1]} : vector<15x64xf32> to vector<9x64xf32>
    %c0_4 = arith.constant 0 : index
    %c64 = arith.constant 64 : index
    %5 = vector.load %arg5[%c0_4, %c64] : memref<135x448xf32, #tpu.memory_space<vmem>>, vector<9x64xf32>
    tpu.vector_store %arg5[%c0_4, %c64], %4 {strides = array<i32>} : memref<135x448xf32, #tpu.memory_space<vmem>>, vector<9x64xf32>,
    %6 = vector.extract_strided_slice %1 {offsets = [2, 0], sizes = [9, 64], strides = [1, 1]} : vector<15x64xf32> to vector<9x64xf32>
    %c0_5 = arith.constant 0 : index
    %c128 = arith.constant 128 : index
    %7 = vector.load %arg5[%c0_5, %c128] : memref<135x448xf32, #tpu.memory_space<vmem>>, vector<9x64xf32>
    tpu.vector_store %arg5[%c0_5, %c128], %6 {strides = array<i32>} : memref<135x448xf32, #tpu.memory_space<vmem>>, vector<9x64xf32>,
    %8 = vector.extract_strided_slice %1 {offsets = [3, 0], sizes = [9, 64], strides = [1, 1]} : vector<15x64xf32> to vector<9x64xf32>
    %c0_6 = arith.constant 0 : index
    %c192 = arith.constant 192 : index
    %9 = vector.load %arg5[%c0_6, %c192] : memref<135x448xf32, #tpu.memory_space<vmem>>, vector<9x64xf32>
    tpu.vector_store %arg5[%c0_6, %c192], %8 {strides = array<i32>} : memref<135x448xf32, #tpu.memory_space<vmem>>, vector<9x64xf32>,
    %10 = vector.extract_strided_slice %1 {offsets = [4, 0], sizes = [9, 64], strides = [1, 1]} : vector<15x64xf32> to vector<9x64xf32>
    %c0_7 = arith.constant 0 : index
    %c256 = arith.constant 256 : index
    %11 = vector.load %arg5[%c0_7, %c256] : memref<135x448xf32, #tpu.memory_space<vmem>>, vector<9x64xf32>
    tpu.vector_store %arg5[%c0_7, %c256], %10 {strides = array<i32>} : memref<135x448xf32, #tpu.memory_space<vmem>>, vector<9x64xf32>,
    %12 = vector.extract_strided_slice %1 {offsets = [5, 0], sizes = [9, 64], strides = [1, 1]} : vector<15x64xf32> to vector<9x64xf32>
    %c0_8 = arith.constant 0 : index
    %c320 = arith.constant 320 : index
    %13 = vector.load %arg5[%c0_8, %c320] : memref<135x448xf32, #tpu.memory_space<vmem>>, vector<9x64xf32>
    tpu.vector_store %arg5[%c0_8, %c320], %12 {strides = array<i32>} : memref<135x448xf32, #tpu.memory_space<vmem>>, vector<9x64xf32>,
    %14 = vector.extract_strided_slice %1 {offsets = [6, 0], sizes = [9, 64], strides = [1, 1]} : vector<15x64xf32> to vector<9x64xf32>
    %c0_9 = arith.constant 0 : index
    %c384 = arith.constant 384 : index
    %15 = vector.load %arg5[%c0_9, %c384] : memref<135x448xf32, #tpu.memory_space<vmem>>, vector<9x64xf32>
    tpu.vector_store %arg5[%c0_9, %c384], %14 {strides = array<i32>} : memref<135x448xf32, #tpu.memory_space<vmem>>, vector<9x64xf32>,
    %c0_10 = arith.constant 0 : index
    %c15 = arith.constant 15 : index
    %c0_11 = arith.constant 0 : index
    %16 = vector.load %arg1[%c0_10, %c15, %c0_11] : memref<1x225x64xf32, #tpu.memory_space<vmem>>, vector<1x15x64xf32>
    %17 = vector.shape_cast %16 : vector<1x15x64xf32> to vector<15x64xf32>
    %18 = vector.extract_strided_slice %17 {offsets = [0, 0], sizes = [9, 64], strides = [1, 1]} : vector<15x64xf32> to vector<9x64xf32>
    %c9 = arith.constant 9 : index
    %c0_12 = arith.constant 0 : index
    %19 = vector.load %arg5[%c9, %c0_12] : memref<135x448xf32, #tpu.memory_space<vmem>>, vector<9x64xf32>
    tpu.vector_store %arg5[%c9, %c0_12], %18 {strides = array<i32>} : memref<135x448xf32, #tpu.memory_space<vmem>>, vector<9x64xf32>,
    %20 = vector.extract_strided_slice %17 {offsets = [1, 0], sizes = [9, 64], strides = [1, 1]} : vector<15x64xf32> to vector<9x64xf32>
    %c9_13 = arith.constant 9 : index
    %c64_14 = arith.constant 64 : index
    %21 = vector.load %arg5[%c9_13, %c64_14] : memref<135x448xf32, #tpu.memory_space<vmem>>, vector<9x64xf32>
    tpu.vector_store %arg5[%c9_13, %c64_14], %20 {strides = array<i32>} : memref<135x448xf32, #tpu.memory_space<vmem>>, vector<9x64xf32>,
    %22 = vector.extract_strided_slice %17 {offsets = [2, 0], sizes = [9, 64], strides = [1, 1]} : vector<15x64xf32> to vector<9x64xf32>
    %c9_15 = arith.constant 9 : index
    %c128_16 = arith.constant 128 : index
    %23 = vector.load %arg5[%c9_15, %c128_16] : memref<135x448xf32, #tpu.memory_space<vmem>>, vector<9x64xf32>
    tpu.vector_store %arg5[%c9_15, %c128_16], %22 {strides = array<i32>} : memref<135x448xf32, #tpu.memory_space<vmem>>, vector<9x64xf32>,
    %24 = vector.extract_strided_slice %17 {offsets = [3, 0], sizes = [9, 64], strides = [1, 1]} : vector<15x64xf32> to vector<9x64xf32>
    %c9_17 = arith.constant 9 : index
    %c192_18 = arith.constant 192 : index
    %25 = vector.load %arg5[%c9_17, %c192_18] : memref<135x448xf32, #tpu.memory_space<vmem>>, vector<9x64xf32>
    tpu.vector_store %arg5[%c9_17, %c192_18], %24 {strides = array<i32>} : memref<135x448xf32, #tpu.memory_space<vmem>>, vector<9x64xf32>,
    %26 = vector.extract_strided_slice %17 {offsets = [4, 0], sizes = [9, 64], strides = [1, 1]} : vector<15x64xf32> to vector<9x64xf32>
    %c9_19 = arith.constant 9 : index
    %c256_20 = arith.constant 256 : index
    %27 = vector.load %arg5[%c9_19, %c256_20] : memref<135x448xf32, #tpu.memory_space<vmem>>, vector<9x64xf32>
    tpu.vector_store %arg5[%c9_19, %c256_20], %26 {strides = array<i32>} : memref<135x448xf32, #tpu.memory_space<vmem>>, vector<9x64xf32>,
    %28 = vector.extract_strided_slice %17 {offsets = [5, 0], sizes = [9, 64], strides = [1, 1]} : vector<15x64xf32> to vector<9x64xf32>
    %c9_21 = arith.constant 9 : index
    %c320_22 = arith.constant 320 : index
    %29 = vector.load %arg5[%c9_21, %c320_22] : memref<135x448xf32, #tpu.memory_space<vmem>>, vector<9x64xf32>
    tpu.vector_store %arg5[%c9_21, %c320_22], %28 {strides = array<i32>} : memref<135x448xf32, #tpu.memory_space<vmem>>, vector<9x64xf32>,
    %30 = vector.extract_strided_slice %17 {offsets = [6, 0], sizes = [9, 64], strides = [1, 1]} : vector<15x64xf32> to vector<9x64xf32>
    %c9_23 = arith.constant 9 : index
    %c384_24 = arith.constant 384 : index
    %31 = vector.load %arg5[%c9_23, %c384_24] : memref<135x448xf32, #tpu.memory_space<vmem>>, vector<9x64xf32>
    tpu.vector_store %arg5[%c9_23, %c384_24], %30 {strides = array<i32>} : memref<135x448xf32, #tpu.memory_space<vmem>>, vector<9x64xf32>,
    %c0_25 = arith.constant 0 : index
    %c30 = arith.constant 30 : index
    %c0_26 = arith.constant 0 : index
    %32 = vector.load %arg1[%c0_25, %c30, %c0_26] : memref<1x225x64xf32, #tpu.memory_space<vmem>>, vector<1x15x64xf32>
    %33 = vector.shape_cast %32 : vector<1x15x64xf32> to vector<15x64xf32>
    %34 = vector.extract_strided_slice %33 {offsets = [0, 0], sizes = [9, 64], strides = [1, 1]} : vector<15x64xf32> to vector<9x64xf32>
    %c18 = arith.constant 18 : index
    %c0_27 = arith.constant 0 : index
    %35 = vector.load %arg5[%c18, %c0_27] : memref<135x448xf32, #tpu.memory_space<vmem>>, vector<9x64xf32>
    tpu.vector_store %arg5[%c18, %c0_27], %34 {strides = array<i32>} : memref<135x448xf32, #tpu.memory_space<vmem>>, vector<9x64xf32>,
    %36 = vector.extract_strided_slice %33 {offsets = [1, 0], sizes = [9, 64], strides = [1, 1]} : vector<15x64xf32> to vector<9x64xf32>
    %c18_28 = arith.constant 18 : index
    %c64_29 = arith.constant 64 : index
    %37 = vector.load %arg5[%c18_28, %c64_29] : memref<135x448xf32, #tpu.memory_space<vmem>>, vector<9x64xf32>
    tpu.vector_store %arg5[%c18_28, %c64_29], %36 {strides = array<i32>} : memref<135x448xf32, #tpu.memory_space<vmem>>, vector<9x64xf32>,
    %38 = vector.extract_strided_slice %33 {offsets = [2, 0], sizes = [9, 64], strides = [1, 1]} : vector<15x64xf32> to vector<9x64xf32>
    %c18_30 = arith.constant 18 : index
    %c128_31 = arith.constant 128 : index
    %39 = vector.load %arg5[%c18_30, %c128_31] : memref<135x448xf32, #tpu.memory_space<vmem>>, vector<9x64xf32>
    tpu.vector_store %arg5[%c18_30, %c128_31], %38 {strides = array<i32>} : memref<135x448xf32, #tpu.memory_space<vmem>>, vector<9x64xf32>,
    %40 = vector.extract_strided_slice %33 {offsets = [3, 0], sizes = [9, 64], strides = [1, 1]} : vector<15x64xf32> to vector<9x64xf32>
    %c18_32 = arith.constant 18 : index
    %c192_33 = arith.constant 192 : index
    %41 = vector.load %arg5[%c18_32, %c192_33] : memref<135x448xf32, #tpu.memory_space<vmem>>, vector<9x64xf32>
    tpu.vector_store %arg5[%c18_32, %c192_33], %40 {strides = array<i32>} : memref<135x448xf32, #tpu.memory_space<vmem>>, vector<9x64xf32>,
    %42 = vector.extract_strided_slice %33 {offsets = [4, 0], sizes = [9, 64], strides = [1, 1]} : vector<15x64xf32> to vector<9x64xf32>
    %c18_34 = arith.constant 18 : index
    %c256_35 = arith.constant 256 : index
    %43 = vector.load %arg5[%c18_34, %c256_35] : memref<135x448xf32, #tpu.memory_space<vmem>>, vector<9x64xf32>
    tpu.vector_store %arg5[%c18_34, %c256_35], %42 {strides = array<i32>} : memref<135x448xf32, #tpu.memory_space<vmem>>, vector<9x64xf32>,
    %44 = vector.extract_strided_slice %33 {offsets = [5, 0], sizes = [9, 64], strides = [1, 1]} : vector<15x64xf32> to vector<9x64xf32>
    %c18_36 = arith.constant 18 : index
    %c320_37 = arith.constant 320 : index
    %45 = vector.load %arg5[%c18_36, %c320_37] : memref<135x448xf32, #tpu.memory_space<vmem>>, vector<9x64xf32>
    tpu.vector_store %arg5[%c18_36, %c320_37], %44 {strides = array<i32>} : memref<135x448xf32, #tpu.memory_space<vmem>>, vector<9x64xf32>,
    %46 = vector.extract_strided_slice %33 {offsets = [6, 0], sizes = [9, 64], strides = [1, 1]} : vector<15x64xf32> to vector<9x64xf32>
    %c18_38 = arith.constant 18 : index
    %c384_39 = arith.constant 384 : index
    %47 = vector.load %arg5[%c18_38, %c384_39] : memref<135x448xf32, #tpu.memory_space<vmem>>, vector<9x64xf32>
    tpu.vector_store %arg5[%c18_38, %c384_39], %46 {strides = array<i32>} : memref<135x448xf32, #tpu.memory_space<vmem>>, vector<9x64xf32>,
    %c0_40 = arith.constant 0 : index
    %c45 = arith.constant 45 : index
    %c0_41 = arith.constant 0 : index
    %48 = vector.load %arg1[%c0_40, %c45, %c0_41] : memref<1x225x64xf32, #tpu.memory_space<vmem>>, vector<1x15x64xf32>
    %49 = vector.shape_cast %48 : vector<1x15x64xf32> to vector<15x64xf32>
    %50 = vector.extract_strided_slice %49 {offsets = [0, 0], sizes = [9, 64], strides = [1, 1]} : vector<15x64xf32> to vector<9x64xf32>
    %c27 = arith.constant 27 : index
    %c0_42 = arith.constant 0 : index
    %51 = vector.load %arg5[%c27, %c0_42] : memref<135x448xf32, #tpu.memory_space<vmem>>, vector<9x64xf32>
    tpu.vector_store %arg5[%c27, %c0_42], %50 {strides = array<i32>} : memref<135x448xf32, #tpu.memory_space<vmem>>, vector<9x64xf32>,
    %52 = vector.extract_strided_slice %49 {offsets = [1, 0], sizes = [9, 64], strides = [1, 1]} : vector<15x64xf32> to vector<9x64xf32>
    %c27_43 = arith.constant 27 : index
    %c64_44 = arith.constant 64 : index
    %53 = vector.load %arg5[%c27_43, %c64_44] : memref<135x448xf32, #tpu.memory_space<vmem>>, vector<9x64xf32>
    tpu.vector_store %arg5[%c27_43, %c64_44], %52 {strides = array<i32>} : memref<135x448xf32, #tpu.memory_space<vmem>>, vector<9x64xf32>,
    %54 = vector.extract_strided_slice %49 {offsets = [2, 0], sizes = [9, 64], strides = [1, 1]} : vector<15x64xf32> to vector<9x64xf32>
    %c27_45 = arith.constant 27 : index
    %c128_46 = arith.constant 128 : index
    %55 = vector.load %arg5[%c27_45, %c128_46] : memref<135x448xf32, #tpu.memory_space<vmem>>, vector<9x64xf32>
    tpu.vector_store %arg5[%c27_45, %c128_46], %54 {strides = array<i32>} : memref<135x448xf32, #tpu.memory_space<vmem>>, vector<9x64xf32>,
    %56 = vector.extract_strided_slice %49 {offsets = [3, 0], sizes = [9, 64], strides = [1, 1]} : vector<15x64xf32> to vector<9x64xf32>
    %c27_47 = arith.constant 27 : index
    %c192_48 = arith.constant 192 : index
    %57 = vector.load %arg5[%c27_47, %c192_48] : memref<135x448xf32, #tpu.memory_space<vmem>>, vector<9x64xf32>
    tpu.vector_store %arg5[%c27_47, %c192_48], %56 {strides = array<i32>} : memref<135x448xf32, #tpu.memory_space<vmem>>, vector<9x64xf32>,
    %58 = vector.extract_strided_slice %49 {offsets = [4, 0], sizes = [9, 64], strides = [1, 1]} : vector<15x64xf32> to vector<9x64xf32>
    %c27_49 = arith.constant 27 : index
    %c256_50 = arith.constant 256 : index
    %59 = vector.load %arg5[%c27_49, %c256_50] : memref<135x448xf32, #tpu.memory_space<vmem>>, vector<9x64xf32>
    tpu.vector_store %arg5[%c27_49, %c256_50], %58 {strides = array<i32>} : memref<135x448xf32, #tpu.memory_space<vmem>>, vector<9x64xf32>,
    %60 = vector.extract_strided_slice %49 {offsets = [5, 0], sizes = [9, 64], strides = [1, 1]} : vector<15x64xf32> to vector<9x64xf32>
    %c27_51 = arith.constant 27 : index
    %c320_52 = arith.constant 320 : index
    %61 = vector.load %arg5[%c27_51, %c320_52] : memref<135x448xf32, #tpu.memory_space<vmem>>, vector<9x64xf32>
    tpu.vector_store %arg5[%c27_51, %c320_52], %60 {strides = array<i32>} : memref<135x448xf32, #tpu.memory_space<vmem>>, vector<9x64xf32>,
    %62 = vector.extract_strided_slice %49 {offsets = [6, 0], sizes = [9, 64], strides = [1, 1]} : vector<15x64xf32> to vector<9x64xf32>
    %c27_53 = arith.constant 27 : index
    %c384_54 = arith.constant 384 : index
    %63 = vector.load %arg5[%c27_53, %c384_54] : memref<135x448xf32, #tpu.memory_space<vmem>>, vector<9x64xf32>
    tpu.vector_store %arg5[%c27_53, %c384_54], %62 {strides = array<i32>} : memref<135x448xf32, #tpu.memory_space<vmem>>, vector<9x64xf32>,
    %c0_55 = arith.constant 0 : index
    %c60 = arith.constant 60 : index
    %c0_56 = arith.constant 0 : index
    %64 = vector.load %arg1[%c0_55, %c60, %c0_56] : memref<1x225x64xf32, #tpu.memory_space<vmem>>, vector<1x15x64xf32>
    %65 = vector.shape_cast %64 : vector<1x15x64xf32> to vector<15x64xf32>
    %66 = vector.extract_strided_slice %65 {offsets = [0, 0], sizes = [9, 64], strides = [1, 1]} : vector<15x64xf32> to vector<9x64xf32>
    %c36 = arith.constant 36 : index
    %c0_57 = arith.constant 0 : index
    %67 = vector.load %arg5[%c36, %c0_57] : memref<135x448xf32, #tpu.memory_space<vmem>>, vector<9x64xf32>
    tpu.vector_store %arg5[%c36, %c0_57], %66 {strides = array<i32>} : memref<135x448xf32, #tpu.memory_space<vmem>>, vector<9x64xf32>,
    %68 = vector.extract_strided_slice %65 {offsets = [1, 0], sizes = [9, 64], strides = [1, 1]} : vector<15x64xf32> to vector<9x64xf32>
    %c36_58 = arith.constant 36 : index
    %c64_59 = arith.constant 64 : index
    %69 = vector.load %arg5[%c36_58, %c64_59] : memref<135x448xf32, #tpu.memory_space<vmem>>, vector<9x64xf32>
    tpu.vector_store %arg5[%c36_58, %c64_59], %68 {strides = array<i32>} : memref<135x448xf32, #tpu.memory_space<vmem>>, vector<9x64xf32>,
    %70 = vector.extract_strided_slice %65 {offsets = [2, 0], sizes = [9, 64], strides = [1, 1]} : vector<15x64xf32> to vector<9x64xf32>
    %c36_60 = arith.constant 36 : index
    %c128_61 = arith.constant 128 : index
    %71 = vector.load %arg5[%c36_60, %c128_61] : memref<135x448xf32, #tpu.memory_space<vmem>>, vector<9x64xf32>
    tpu.vector_store %arg5[%c36_60, %c128_61], %70 {strides = array<i32>} : memref<135x448xf32, #tpu.memory_space<vmem>>, vector<9x64xf32>,
    %72 = vector.extract_strided_slice %65 {offsets = [3, 0], sizes = [9, 64], strides = [1, 1]} : vector<15x64xf32> to vector<9x64xf32>
    %c36_62 = arith.constant 36 : index
    %c192_63 = arith.constant 192 : index
    %73 = vector.load %arg5[%c36_62, %c192_63] : memref<135x448xf32, #tpu.memory_space<vmem>>, vector<9x64xf32>
    tpu.vector_store %arg5[%c36_62, %c192_63], %72 {strides = array<i32>} : memref<135x448xf32, #tpu.memory_space<vmem>>, vector<9x64xf32>,
    %74 = vector.extract_strided_slice %65 {offsets = [4, 0], sizes = [9, 64], strides = [1, 1]} : vector<15x64xf32> to vector<9x64xf32>
    %c36_64 = arith.constant 36 : index
    %c256_65 = arith.constant 256 : index
    %75 = vector.load %arg5[%c36_64, %c256_65] : memref<135x448xf32, #tpu.memory_space<vmem>>, vector<9x64xf32>
    tpu.vector_store %arg5[%c36_64, %c256_65], %74 {strides = array<i32>} : memref<135x448xf32, #tpu.memory_space<vmem>>, vector<9x64xf32>,
    %76 = vector.extract_strided_slice %65 {offsets = [5, 0], sizes = [9, 64], strides = [1, 1]} : vector<15x64xf32> to vector<9x64xf32>
    %c36_66 = arith.constant 36 : index
    %c320_67 = arith.constant 320 : index
    %77 = vector.load %arg5[%c36_66, %c320_67] : memref<135x448xf32, #tpu.memory_space<vmem>>, vector<9x64xf32>
    tpu.vector_store %arg5[%c36_66, %c320_67], %76 {strides = array<i32>} : memref<135x448xf32, #tpu.memory_space<vmem>>, vector<9x64xf32>,
    %78 = vector.extract_strided_slice %65 {offsets = [6, 0], sizes = [9, 64], strides = [1, 1]} : vector<15x64xf32> to vector<9x64xf32>
    %c36_68 = arith.constant 36 : index
    %c384_69 = arith.constant 384 : index
    %79 = vector.load %arg5[%c36_68, %c384_69] : memref<135x448xf32, #tpu.memory_space<vmem>>, vector<9x64xf32>
    tpu.vector_store %arg5[%c36_68, %c384_69], %78 {strides = array<i32>} : memref<135x448xf32, #tpu.memory_space<vmem>>, vector<9x64xf32>,
    %c0_70 = arith.constant 0 : index
    %c75 = arith.constant 75 : index
    %c0_71 = arith.constant 0 : index
    %80 = vector.load %arg1[%c0_70, %c75, %c0_71] : memref<1x225x64xf32, #tpu.memory_space<vmem>>, vector<1x15x64xf32>
    %81 = vector.shape_cast %80 : vector<1x15x64xf32> to vector<15x64xf32>
    %82 = vector.extract_strided_slice %81 {offsets = [0, 0], sizes = [9, 64], strides = [1, 1]} : vector<15x64xf32> to vector<9x64xf32>
    %c45_72 = arith.constant 45 : index
    %c0_73 = arith.constant 0 : index
    %83 = vector.load %arg5[%c45_72, %c0_73] : memref<135x448xf32, #tpu.memory_space<vmem>>, vector<9x64xf32>
    tpu.vector_store %arg5[%c45_72, %c0_73], %82 {strides = array<i32>} : memref<135x448xf32, #tpu.memory_space<vmem>>, vector<9x64xf32>,
    %84 = vector.extract_strided_slice %81 {offsets = [1, 0], sizes = [9, 64], strides = [1, 1]} : vector<15x64xf32> to vector<9x64xf32>
    %c45_74 = arith.constant 45 : index
    %c64_75 = arith.constant 64 : index
    %85 = vector.load %arg5[%c45_74, %c64_75] : memref<135x448xf32, #tpu.memory_space<vmem>>, vector<9x64xf32>
    tpu.vector_store %arg5[%c45_74, %c64_75], %84 {strides = array<i32>} : memref<135x448xf32, #tpu.memory_space<vmem>>, vector<9x64xf32>,
    %86 = vector.extract_strided_slice %81 {offsets = [2, 0], sizes = [9, 64], strides = [1, 1]} : vector<15x64xf32> to vector<9x64xf32>
    %c45_76 = arith.constant 45 : index
    %c128_77 = arith.constant 128 : index
    %87 = vector.load %arg5[%c45_76, %c128_77] : memref<135x448xf32, #tpu.memory_space<vmem>>, vector<9x64xf32>
    tpu.vector_store %arg5[%c45_76, %c128_77], %86 {strides = array<i32>} : memref<135x448xf32, #tpu.memory_space<vmem>>, vector<9x64xf32>,
    %88 = vector.extract_strided_slice %81 {offsets = [3, 0], sizes = [9, 64], strides = [1, 1]} : vector<15x64xf32> to vector<9x64xf32>
    %c45_78 = arith.constant 45 : index
    %c192_79 = arith.constant 192 : index
    %89 = vector.load %arg5[%c45_78, %c192_79] : memref<135x448xf32, #tpu.memory_space<vmem>>, vector<9x64xf32>
    tpu.vector_store %arg5[%c45_78, %c192_79], %88 {strides = array<i32>} : memref<135x448xf32, #tpu.memory_space<vmem>>, vector<9x64xf32>,
    %90 = vector.extract_strided_slice %81 {offsets = [4, 0], sizes = [9, 64], strides = [1, 1]} : vector<15x64xf32> to vector<9x64xf32>
    %c45_80 = arith.constant 45 : index
    %c256_81 = arith.constant 256 : index
    %91 = vector.load %arg5[%c45_80, %c256_81] : memref<135x448xf32, #tpu.memory_space<vmem>>, vector<9x64xf32>
    tpu.vector_store %arg5[%c45_80, %c256_81], %90 {strides = array<i32>} : memref<135x448xf32, #tpu.memory_space<vmem>>, vector<9x64xf32>,
    %92 = vector.extract_strided_slice %81 {offsets = [5, 0], sizes = [9, 64], strides = [1, 1]} : vector<15x64xf32> to vector<9x64xf32>
    %c45_82 = arith.constant 45 : index
    %c320_83 = arith.constant 320 : index
    %93 = vector.load %arg5[%c45_82, %c320_83] : memref<135x448xf32, #tpu.memory_space<vmem>>, vector<9x64xf32>
    tpu.vector_store %arg5[%c45_82, %c320_83], %92 {strides = array<i32>} : memref<135x448xf32, #tpu.memory_space<vmem>>, vector<9x64xf32>,
    %94 = vector.extract_strided_slice %81 {offsets = [6, 0], sizes = [9, 64], strides = [1, 1]} : vector<15x64xf32> to vector<9x64xf32>
    %c45_84 = arith.constant 45 : index
    %c384_85 = arith.constant 384 : index
    %95 = vector.load %arg5[%c45_84, %c384_85] : memref<135x448xf32, #tpu.memory_space<vmem>>, vector<9x64xf32>
    tpu.vector_store %arg5[%c45_84, %c384_85], %94 {strides = array<i32>} : memref<135x448xf32, #tpu.memory_space<vmem>>, vector<9x64xf32>,
    %c0_86 = arith.constant 0 : index
    %c90 = arith.constant 90 : index
    %c0_87 = arith.constant 0 : index
    %96 = vector.load %arg1[%c0_86, %c90, %c0_87] : memref<1x225x64xf32, #tpu.memory_space<vmem>>, vector<1x15x64xf32>
    %97 = vector.shape_cast %96 : vector<1x15x64xf32> to vector<15x64xf32>
    %98 = vector.extract_strided_slice %97 {offsets = [0, 0], sizes = [9, 64], strides = [1, 1]} : vector<15x64xf32> to vector<9x64xf32>
    %c54 = arith.constant 54 : index
    %c0_88 = arith.constant 0 : index
    %99 = vector.load %arg5[%c54, %c0_88] : memref<135x448xf32, #tpu.memory_space<vmem>>, vector<9x64xf32>
    tpu.vector_store %arg5[%c54, %c0_88], %98 {strides = array<i32>} : memref<135x448xf32, #tpu.memory_space<vmem>>, vector<9x64xf32>,
    %100 = vector.extract_strided_slice %97 {offsets = [1, 0], sizes = [9, 64], strides = [1, 1]} : vector<15x64xf32> to vector<9x64xf32>
    %c54_89 = arith.constant 54 : index
    %c64_90 = arith.constant 64 : index
    %101 = vector.load %arg5[%c54_89, %c64_90] : memref<135x448xf32, #tpu.memory_space<vmem>>, vector<9x64xf32>
    tpu.vector_store %arg5[%c54_89, %c64_90], %100 {strides = array<i32>} : memref<135x448xf32, #tpu.memory_space<vmem>>, vector<9x64xf32>,
    %102 = vector.extract_strided_slice %97 {offsets = [2, 0], sizes = [9, 64], strides = [1, 1]} : vector<15x64xf32> to vector<9x64xf32>
    %c54_91 = arith.constant 54 : index
    %c128_92 = arith.constant 128 : index
    %103 = vector.load %arg5[%c54_91, %c128_92] : memref<135x448xf32, #tpu.memory_space<vmem>>, vector<9x64xf32>
    tpu.vector_store %arg5[%c54_91, %c128_92], %102 {strides = array<i32>} : memref<135x448xf32, #tpu.memory_space<vmem>>, vector<9x64xf32>,
    %104 = vector.extract_strided_slice %97 {offsets = [3, 0], sizes = [9, 64], strides = [1, 1]} : vector<15x64xf32> to vector<9x64xf32>
    %c54_93 = arith.constant 54 : index
    %c192_94 = arith.constant 192 : index
    %105 = vector.load %arg5[%c54_93, %c192_94] : memref<135x448xf32, #tpu.memory_space<vmem>>, vector<9x64xf32>
    tpu.vector_store %arg5[%c54_93, %c192_94], %104 {strides = array<i32>} : memref<135x448xf32, #tpu.memory_space<vmem>>, vector<9x64xf32>,
    %106 = vector.extract_strided_slice %97 {offsets = [4, 0], sizes = [9, 64], strides = [1, 1]} : vector<15x64xf32> to vector<9x64xf32>
    %c54_95 = arith.constant 54 : index
    %c256_96 = arith.constant 256 : index
    %107 = vector.load %arg5[%c54_95, %c256_96] : memref<135x448xf32, #tpu.memory_space<vmem>>, vector<9x64xf32>
    tpu.vector_store %arg5[%c54_95, %c256_96], %106 {strides = array<i32>} : memref<135x448xf32, #tpu.memory_space<vmem>>, vector<9x64xf32>,
    %108 = vector.extract_strided_slice %97 {offsets = [5, 0], sizes = [9, 64], strides = [1, 1]} : vector<15x64xf32> to vector<9x64xf32>
    %c54_97 = arith.constant 54 : index
    %c320_98 = arith.constant 320 : index
    %109 = vector.load %arg5[%c54_97, %c320_98] : memref<135x448xf32, #tpu.memory_space<vmem>>, vector<9x64xf32>
    tpu.vector_store %arg5[%c54_97, %c320_98], %108 {strides = array<i32>} : memref<135x448xf32, #tpu.memory_space<vmem>>, vector<9x64xf32>,
    %110 = vector.extract_strided_slice %97 {offsets = [6, 0], sizes = [9, 64], strides = [1, 1]} : vector<15x64xf32> to vector<9x64xf32>
    %c54_99 = arith.constant 54 : index
    %c384_100 = arith.constant 384 : index
    %111 = vector.load %arg5[%c54_99, %c384_100] : memref<135x448xf32, #tpu.memory_space<vmem>>, vector<9x64xf32>
    tpu.vector_store %arg5[%c54_99, %c384_100], %110 {strides = array<i32>} : memref<135x448xf32, #tpu.memory_space<vmem>>, vector<9x64xf32>,
    %c0_101 = arith.constant 0 : index
    %c105 = arith.constant 105 : index
    %c0_102 = arith.constant 0 : index
    %112 = vector.load %arg1[%c0_101, %c105, %c0_102] : memref<1x225x64xf32, #tpu.memory_space<vmem>>, vector<1x15x64xf32>
    %113 = vector.shape_cast %112 : vector<1x15x64xf32> to vector<15x64xf32>
    %114 = vector.extract_strided_slice %113 {offsets = [0, 0], sizes = [9, 64], strides = [1, 1]} : vector<15x64xf32> to vector<9x64xf32>
    %c63 = arith.constant 63 : index
    %c0_103 = arith.constant 0 : index
    %115 = vector.load %arg5[%c63, %c0_103] : memref<135x448xf32, #tpu.memory_space<vmem>>, vector<9x64xf32>
    tpu.vector_store %arg5[%c63, %c0_103], %114 {strides = array<i32>} : memref<135x448xf32, #tpu.memory_space<vmem>>, vector<9x64xf32>,
    %116 = vector.extract_strided_slice %113 {offsets = [1, 0], sizes = [9, 64], strides = [1, 1]} : vector<15x64xf32> to vector<9x64xf32>
    %c63_104 = arith.constant 63 : index
    %c64_105 = arith.constant 64 : index
    %117 = vector.load %arg5[%c63_104, %c64_105] : memref<135x448xf32, #tpu.memory_space<vmem>>, vector<9x64xf32>
    tpu.vector_store %arg5[%c63_104, %c64_105], %116 {strides = array<i32>} : memref<135x448xf32, #tpu.memory_space<vmem>>, vector<9x64xf32>,
    %118 = vector.extract_strided_slice %113 {offsets = [2, 0], sizes = [9, 64], strides = [1, 1]} : vector<15x64xf32> to vector<9x64xf32>
    %c63_106 = arith.constant 63 : index
    %c128_107 = arith.constant 128 : index
    %119 = vector.load %arg5[%c63_106, %c128_107] : memref<135x448xf32, #tpu.memory_space<vmem>>, vector<9x64xf32>
    tpu.vector_store %arg5[%c63_106, %c128_107], %118 {strides = array<i32>} : memref<135x448xf32, #tpu.memory_space<vmem>>, vector<9x64xf32>,
    %120 = vector.extract_strided_slice %113 {offsets = [3, 0], sizes = [9, 64], strides = [1, 1]} : vector<15x64xf32> to vector<9x64xf32>
    %c63_108 = arith.constant 63 : index
    %c192_109 = arith.constant 192 : index
    %121 = vector.load %arg5[%c63_108, %c192_109] : memref<135x448xf32, #tpu.memory_space<vmem>>, vector<9x64xf32>
    tpu.vector_store %arg5[%c63_108, %c192_109], %120 {strides = array<i32>} : memref<135x448xf32, #tpu.memory_space<vmem>>, vector<9x64xf32>,
    %122 = vector.extract_strided_slice %113 {offsets = [4, 0], sizes = [9, 64], strides = [1, 1]} : vector<15x64xf32> to vector<9x64xf32>
    %c63_110 = arith.constant 63 : index
    %c256_111 = arith.constant 256 : index
    %123 = vector.load %arg5[%c63_110, %c256_111] : memref<135x448xf32, #tpu.memory_space<vmem>>, vector<9x64xf32>
    tpu.vector_store %arg5[%c63_110, %c256_111], %122 {strides = array<i32>} : memref<135x448xf32, #tpu.memory_space<vmem>>, vector<9x64xf32>,
    %124 = vector.extract_strided_slice %113 {offsets = [5, 0], sizes = [9, 64], strides = [1, 1]} : vector<15x64xf32> to vector<9x64xf32>
    %c63_112 = arith.constant 63 : index
    %c320_113 = arith.constant 320 : index
    %125 = vector.load %arg5[%c63_112, %c320_113] : memref<135x448xf32, #tpu.memory_space<vmem>>, vector<9x64xf32>
    tpu.vector_store %arg5[%c63_112, %c320_113], %124 {strides = array<i32>} : memref<135x448xf32, #tpu.memory_space<vmem>>, vector<9x64xf32>,
    %126 = vector.extract_strided_slice %113 {offsets = [6, 0], sizes = [9, 64], strides = [1, 1]} : vector<15x64xf32> to vector<9x64xf32>
    %c63_114 = arith.constant 63 : index
    %c384_115 = arith.constant 384 : index
    %127 = vector.load %arg5[%c63_114, %c384_115] : memref<135x448xf32, #tpu.memory_space<vmem>>, vector<9x64xf32>
    tpu.vector_store %arg5[%c63_114, %c384_115], %126 {strides = array<i32>} : memref<135x448xf32, #tpu.memory_space<vmem>>, vector<9x64xf32>,
    %c0_116 = arith.constant 0 : index
    %c120 = arith.constant 120 : index
    %c0_117 = arith.constant 0 : index
    %128 = vector.load %arg1[%c0_116, %c120, %c0_117] : memref<1x225x64xf32, #tpu.memory_space<vmem>>, vector<1x15x64xf32>
    %129 = vector.shape_cast %128 : vector<1x15x64xf32> to vector<15x64xf32>
    %130 = vector.extract_strided_slice %129 {offsets = [0, 0], sizes = [9, 64], strides = [1, 1]} : vector<15x64xf32> to vector<9x64xf32>
    %c72 = arith.constant 72 : index
    %c0_118 = arith.constant 0 : index
    %131 = vector.load %arg5[%c72, %c0_118] : memref<135x448xf32, #tpu.memory_space<vmem>>, vector<9x64xf32>
    tpu.vector_store %arg5[%c72, %c0_118], %130 {strides = array<i32>} : memref<135x448xf32, #tpu.memory_space<vmem>>, vector<9x64xf32>,
    %132 = vector.extract_strided_slice %129 {offsets = [1, 0], sizes = [9, 64], strides = [1, 1]} : vector<15x64xf32> to vector<9x64xf32>
    %c72_119 = arith.constant 72 : index
    %c64_120 = arith.constant 64 : index
    %133 = vector.load %arg5[%c72_119, %c64_120] : memref<135x448xf32, #tpu.memory_space<vmem>>, vector<9x64xf32>
    tpu.vector_store %arg5[%c72_119, %c64_120], %132 {strides = array<i32>} : memref<135x448xf32, #tpu.memory_space<vmem>>, vector<9x64xf32>,
    %134 = vector.extract_strided_slice %129 {offsets = [2, 0], sizes = [9, 64], strides = [1, 1]} : vector<15x64xf32> to vector<9x64xf32>
    %c72_121 = arith.constant 72 : index
    %c128_122 = arith.constant 128 : index
    %135 = vector.load %arg5[%c72_121, %c128_122] : memref<135x448xf32, #tpu.memory_space<vmem>>, vector<9x64xf32>
    tpu.vector_store %arg5[%c72_121, %c128_122], %134 {strides = array<i32>} : memref<135x448xf32, #tpu.memory_space<vmem>>, vector<9x64xf32>,
    %136 = vector.extract_strided_slice %129 {offsets = [3, 0], sizes = [9, 64], strides = [1, 1]} : vector<15x64xf32> to vector<9x64xf32>
    %c72_123 = arith.constant 72 : index
    %c192_124 = arith.constant 192 : index
    %137 = vector.load %arg5[%c72_123, %c192_124] : memref<135x448xf32, #tpu.memory_space<vmem>>, vector<9x64xf32>
    tpu.vector_store %arg5[%c72_123, %c192_124], %136 {strides = array<i32>} : memref<135x448xf32, #tpu.memory_space<vmem>>, vector<9x64xf32>,
    %138 = vector.extract_strided_slice %129 {offsets = [4, 0], sizes = [9, 64], strides = [1, 1]} : vector<15x64xf32> to vector<9x64xf32>
    %c72_125 = arith.constant 72 : index
    %c256_126 = arith.constant 256 : index
    %139 = vector.load %arg5[%c72_125, %c256_126] : memref<135x448xf32, #tpu.memory_space<vmem>>, vector<9x64xf32>
    tpu.vector_store %arg5[%c72_125, %c256_126], %138 {strides = array<i32>} : memref<135x448xf32, #tpu.memory_space<vmem>>, vector<9x64xf32>,
    %140 = vector.extract_strided_slice %129 {offsets = [5, 0], sizes = [9, 64], strides = [1, 1]} : vector<15x64xf32> to vector<9x64xf32>
    %c72_127 = arith.constant 72 : index
    %c320_128 = arith.constant 320 : index
    %141 = vector.load %arg5[%c72_127, %c320_128] : memref<135x448xf32, #tpu.memory_space<vmem>>, vector<9x64xf32>
    tpu.vector_store %arg5[%c72_127, %c320_128], %140 {strides = array<i32>} : memref<135x448xf32, #tpu.memory_space<vmem>>, vector<9x64xf32>,
    %142 = vector.extract_strided_slice %129 {offsets = [6, 0], sizes = [9, 64], strides = [1, 1]} : vector<15x64xf32> to vector<9x64xf32>
    %c72_129 = arith.constant 72 : index
    %c384_130 = arith.constant 384 : index
    %143 = vector.load %arg5[%c72_129, %c384_130] : memref<135x448xf32, #tpu.memory_space<vmem>>, vector<9x64xf32>
    tpu.vector_store %arg5[%c72_129, %c384_130], %142 {strides = array<i32>} : memref<135x448xf32, #tpu.memory_space<vmem>>, vector<9x64xf32>,
    %c0_131 = arith.constant 0 : index
    %c135 = arith.constant 135 : index
    %c0_132 = arith.constant 0 : index
    %144 = vector.load %arg1[%c0_131, %c135, %c0_132] : memref<1x225x64xf32, #tpu.memory_space<vmem>>, vector<1x15x64xf32>
    %145 = vector.shape_cast %144 : vector<1x15x64xf32> to vector<15x64xf32>
    %146 = vector.extract_strided_slice %145 {offsets = [0, 0], sizes = [9, 64], strides = [1, 1]} : vector<15x64xf32> to vector<9x64xf32>
    %c81 = arith.constant 81 : index
    %c0_133 = arith.constant 0 : index
    %147 = vector.load %arg5[%c81, %c0_133] : memref<135x448xf32, #tpu.memory_space<vmem>>, vector<9x64xf32>
    tpu.vector_store %arg5[%c81, %c0_133], %146 {strides = array<i32>} : memref<135x448xf32, #tpu.memory_space<vmem>>, vector<9x64xf32>,
    %148 = vector.extract_strided_slice %145 {offsets = [1, 0], sizes = [9, 64], strides = [1, 1]} : vector<15x64xf32> to vector<9x64xf32>
    %c81_134 = arith.constant 81 : index
    %c64_135 = arith.constant 64 : index
    %149 = vector.load %arg5[%c81_134, %c64_135] : memref<135x448xf32, #tpu.memory_space<vmem>>, vector<9x64xf32>
    tpu.vector_store %arg5[%c81_134, %c64_135], %148 {strides = array<i32>} : memref<135x448xf32, #tpu.memory_space<vmem>>, vector<9x64xf32>,
    %150 = vector.extract_strided_slice %145 {offsets = [2, 0], sizes = [9, 64], strides = [1, 1]} : vector<15x64xf32> to vector<9x64xf32>
    %c81_136 = arith.constant 81 : index
    %c128_137 = arith.constant 128 : index
    %151 = vector.load %arg5[%c81_136, %c128_137] : memref<135x448xf32, #tpu.memory_space<vmem>>, vector<9x64xf32>
    tpu.vector_store %arg5[%c81_136, %c128_137], %150 {strides = array<i32>} : memref<135x448xf32, #tpu.memory_space<vmem>>, vector<9x64xf32>,
    %152 = vector.extract_strided_slice %145 {offsets = [3, 0], sizes = [9, 64], strides = [1, 1]} : vector<15x64xf32> to vector<9x64xf32>
    %c81_138 = arith.constant 81 : index
    %c192_139 = arith.constant 192 : index
    %153 = vector.load %arg5[%c81_138, %c192_139] : memref<135x448xf32, #tpu.memory_space<vmem>>, vector<9x64xf32>
    tpu.vector_store %arg5[%c81_138, %c192_139], %152 {strides = array<i32>} : memref<135x448xf32, #tpu.memory_space<vmem>>, vector<9x64xf32>,
    %154 = vector.extract_strided_slice %145 {offsets = [4, 0], sizes = [9, 64], strides = [1, 1]} : vector<15x64xf32> to vector<9x64xf32>
    %c81_140 = arith.constant 81 : index
    %c256_141 = arith.constant 256 : index
    %155 = vector.load %arg5[%c81_140, %c256_141] : memref<135x448xf32, #tpu.memory_space<vmem>>, vector<9x64xf32>
    tpu.vector_store %arg5[%c81_140, %c256_141], %154 {strides = array<i32>} : memref<135x448xf32, #tpu.memory_space<vmem>>, vector<9x64xf32>,
    %156 = vector.extract_strided_slice %145 {offsets = [5, 0], sizes = [9, 64], strides = [1, 1]} : vector<15x64xf32> to vector<9x64xf32>
    %c81_142 = arith.constant 81 : index
    %c320_143 = arith.constant 320 : index
    %157 = vector.load %arg5[%c81_142, %c320_143] : memref<135x448xf32, #tpu.memory_space<vmem>>, vector<9x64xf32>
    tpu.vector_store %arg5[%c81_142, %c320_143], %156 {strides = array<i32>} : memref<135x448xf32, #tpu.memory_space<vmem>>, vector<9x64xf32>,
    %158 = vector.extract_strided_slice %145 {offsets = [6, 0], sizes = [9, 64], strides = [1, 1]} : vector<15x64xf32> to vector<9x64xf32>
    %c81_144 = arith.constant 81 : index
    %c384_145 = arith.constant 384 : index
    %159 = vector.load %arg5[%c81_144, %c384_145] : memref<135x448xf32, #tpu.memory_space<vmem>>, vector<9x64xf32>
    tpu.vector_store %arg5[%c81_144, %c384_145], %158 {strides = array<i32>} : memref<135x448xf32, #tpu.memory_space<vmem>>, vector<9x64xf32>,
    %c0_146 = arith.constant 0 : index
    %c150 = arith.constant 150 : index
    %c0_147 = arith.constant 0 : index
    %160 = vector.load %arg1[%c0_146, %c150, %c0_147] : memref<1x225x64xf32, #tpu.memory_space<vmem>>, vector<1x15x64xf32>
    %161 = vector.shape_cast %160 : vector<1x15x64xf32> to vector<15x64xf32>
    %162 = vector.extract_strided_slice %161 {offsets = [0, 0], sizes = [9, 64], strides = [1, 1]} : vector<15x64xf32> to vector<9x64xf32>
    %c90_148 = arith.constant 90 : index
    %c0_149 = arith.constant 0 : index
    %163 = vector.load %arg5[%c90_148, %c0_149] : memref<135x448xf32, #tpu.memory_space<vmem>>, vector<9x64xf32>
    tpu.vector_store %arg5[%c90_148, %c0_149], %162 {strides = array<i32>} : memref<135x448xf32, #tpu.memory_space<vmem>>, vector<9x64xf32>,
    %164 = vector.extract_strided_slice %161 {offsets = [1, 0], sizes = [9, 64], strides = [1, 1]} : vector<15x64xf32> to vector<9x64xf32>
    %c90_150 = arith.constant 90 : index
    %c64_151 = arith.constant 64 : index
    %165 = vector.load %arg5[%c90_150, %c64_151] : memref<135x448xf32, #tpu.memory_space<vmem>>, vector<9x64xf32>
    tpu.vector_store %arg5[%c90_150, %c64_151], %164 {strides = array<i32>} : memref<135x448xf32, #tpu.memory_space<vmem>>, vector<9x64xf32>,
    %166 = vector.extract_strided_slice %161 {offsets = [2, 0], sizes = [9, 64], strides = [1, 1]} : vector<15x64xf32> to vector<9x64xf32>
    %c90_152 = arith.constant 90 : index
    %c128_153 = arith.constant 128 : index
    %167 = vector.load %arg5[%c90_152, %c128_153] : memref<135x448xf32, #tpu.memory_space<vmem>>, vector<9x64xf32>
    tpu.vector_store %arg5[%c90_152, %c128_153], %166 {strides = array<i32>} : memref<135x448xf32, #tpu.memory_space<vmem>>, vector<9x64xf32>,
    %168 = vector.extract_strided_slice %161 {offsets = [3, 0], sizes = [9, 64], strides = [1, 1]} : vector<15x64xf32> to vector<9x64xf32>
    %c90_154 = arith.constant 90 : index
    %c192_155 = arith.constant 192 : index
    %169 = vector.load %arg5[%c90_154, %c192_155] : memref<135x448xf32, #tpu.memory_space<vmem>>, vector<9x64xf32>
    tpu.vector_store %arg5[%c90_154, %c192_155], %168 {strides = array<i32>} : memref<135x448xf32, #tpu.memory_space<vmem>>, vector<9x64xf32>,
    %170 = vector.extract_strided_slice %161 {offsets = [4, 0], sizes = [9, 64], strides = [1, 1]} : vector<15x64xf32> to vector<9x64xf32>
    %c90_156 = arith.constant 90 : index
    %c256_157 = arith.constant 256 : index
    %171 = vector.load %arg5[%c90_156, %c256_157] : memref<135x448xf32, #tpu.memory_space<vmem>>, vector<9x64xf32>
    tpu.vector_store %arg5[%c90_156, %c256_157], %170 {strides = array<i32>} : memref<135x448xf32, #tpu.memory_space<vmem>>, vector<9x64xf32>,
    %172 = vector.extract_strided_slice %161 {offsets = [5, 0], sizes = [9, 64], strides = [1, 1]} : vector<15x64xf32> to vector<9x64xf32>
    %c90_158 = arith.constant 90 : index
    %c320_159 = arith.constant 320 : index
    %173 = vector.load %arg5[%c90_158, %c320_159] : memref<135x448xf32, #tpu.memory_space<vmem>>, vector<9x64xf32>
    tpu.vector_store %arg5[%c90_158, %c320_159], %172 {strides = array<i32>} : memref<135x448xf32, #tpu.memory_space<vmem>>, vector<9x64xf32>,
    %174 = vector.extract_strided_slice %161 {offsets = [6, 0], sizes = [9, 64], strides = [1, 1]} : vector<15x64xf32> to vector<9x64xf32>
    %c90_160 = arith.constant 90 : index
    %c384_161 = arith.constant 384 : index
    %175 = vector.load %arg5[%c90_160, %c384_161] : memref<135x448xf32, #tpu.memory_space<vmem>>, vector<9x64xf32>
    tpu.vector_store %arg5[%c90_160, %c384_161], %174 {strides = array<i32>} : memref<135x448xf32, #tpu.memory_space<vmem>>, vector<9x64xf32>,
    %c0_162 = arith.constant 0 : index
    %c165 = arith.constant 165 : index
    %c0_163 = arith.constant 0 : index
    %176 = vector.load %arg1[%c0_162, %c165, %c0_163] : memref<1x225x64xf32, #tpu.memory_space<vmem>>, vector<1x15x64xf32>
    %177 = vector.shape_cast %176 : vector<1x15x64xf32> to vector<15x64xf32>
    %178 = vector.extract_strided_slice %177 {offsets = [0, 0], sizes = [9, 64], strides = [1, 1]} : vector<15x64xf32> to vector<9x64xf32>
    %c99 = arith.constant 99 : index
    %c0_164 = arith.constant 0 : index
    %179 = vector.load %arg5[%c99, %c0_164] : memref<135x448xf32, #tpu.memory_space<vmem>>, vector<9x64xf32>
    tpu.vector_store %arg5[%c99, %c0_164], %178 {strides = array<i32>} : memref<135x448xf32, #tpu.memory_space<vmem>>, vector<9x64xf32>,
    %180 = vector.extract_strided_slice %177 {offsets = [1, 0], sizes = [9, 64], strides = [1, 1]} : vector<15x64xf32> to vector<9x64xf32>
    %c99_165 = arith.constant 99 : index
    %c64_166 = arith.constant 64 : index
    %181 = vector.load %arg5[%c99_165, %c64_166] : memref<135x448xf32, #tpu.memory_space<vmem>>, vector<9x64xf32>
    tpu.vector_store %arg5[%c99_165, %c64_166], %180 {strides = array<i32>} : memref<135x448xf32, #tpu.memory_space<vmem>>, vector<9x64xf32>,
    %182 = vector.extract_strided_slice %177 {offsets = [2, 0], sizes = [9, 64], strides = [1, 1]} : vector<15x64xf32> to vector<9x64xf32>
    %c99_167 = arith.constant 99 : index
    %c128_168 = arith.constant 128 : index
    %183 = vector.load %arg5[%c99_167, %c128_168] : memref<135x448xf32, #tpu.memory_space<vmem>>, vector<9x64xf32>
    tpu.vector_store %arg5[%c99_167, %c128_168], %182 {strides = array<i32>} : memref<135x448xf32, #tpu.memory_space<vmem>>, vector<9x64xf32>,
    %184 = vector.extract_strided_slice %177 {offsets = [3, 0], sizes = [9, 64], strides = [1, 1]} : vector<15x64xf32> to vector<9x64xf32>
    %c99_169 = arith.constant 99 : index
    %c192_170 = arith.constant 192 : index
    %185 = vector.load %arg5[%c99_169, %c192_170] : memref<135x448xf32, #tpu.memory_space<vmem>>, vector<9x64xf32>
    tpu.vector_store %arg5[%c99_169, %c192_170], %184 {strides = array<i32>} : memref<135x448xf32, #tpu.memory_space<vmem>>, vector<9x64xf32>,
    %186 = vector.extract_strided_slice %177 {offsets = [4, 0], sizes = [9, 64], strides = [1, 1]} : vector<15x64xf32> to vector<9x64xf32>
    %c99_171 = arith.constant 99 : index
    %c256_172 = arith.constant 256 : index
    %187 = vector.load %arg5[%c99_171, %c256_172] : memref<135x448xf32, #tpu.memory_space<vmem>>, vector<9x64xf32>
    tpu.vector_store %arg5[%c99_171, %c256_172], %186 {strides = array<i32>} : memref<135x448xf32, #tpu.memory_space<vmem>>, vector<9x64xf32>,
    %188 = vector.extract_strided_slice %177 {offsets = [5, 0], sizes = [9, 64], strides = [1, 1]} : vector<15x64xf32> to vector<9x64xf32>
    %c99_173 = arith.constant 99 : index
    %c320_174 = arith.constant 320 : index
    %189 = vector.load %arg5[%c99_173, %c320_174] : memref<135x448xf32, #tpu.memory_space<vmem>>, vector<9x64xf32>
    tpu.vector_store %arg5[%c99_173, %c320_174], %188 {strides = array<i32>} : memref<135x448xf32, #tpu.memory_space<vmem>>, vector<9x64xf32>,
    %190 = vector.extract_strided_slice %177 {offsets = [6, 0], sizes = [9, 64], strides = [1, 1]} : vector<15x64xf32> to vector<9x64xf32>
    %c99_175 = arith.constant 99 : index
    %c384_176 = arith.constant 384 : index
    %191 = vector.load %arg5[%c99_175, %c384_176] : memref<135x448xf32, #tpu.memory_space<vmem>>, vector<9x64xf32>
    tpu.vector_store %arg5[%c99_175, %c384_176], %190 {strides = array<i32>} : memref<135x448xf32, #tpu.memory_space<vmem>>, vector<9x64xf32>,
    %c0_177 = arith.constant 0 : index
    %c180 = arith.constant 180 : index
    %c0_178 = arith.constant 0 : index
    %192 = vector.load %arg1[%c0_177, %c180, %c0_178] : memref<1x225x64xf32, #tpu.memory_space<vmem>>, vector<1x15x64xf32>
    %193 = vector.shape_cast %192 : vector<1x15x64xf32> to vector<15x64xf32>
    %194 = vector.extract_strided_slice %193 {offsets = [0, 0], sizes = [9, 64], strides = [1, 1]} : vector<15x64xf32> to vector<9x64xf32>
    %c108 = arith.constant 108 : index
    %c0_179 = arith.constant 0 : index
    %195 = vector.load %arg5[%c108, %c0_179] : memref<135x448xf32, #tpu.memory_space<vmem>>, vector<9x64xf32>
    tpu.vector_store %arg5[%c108, %c0_179], %194 {strides = array<i32>} : memref<135x448xf32, #tpu.memory_space<vmem>>, vector<9x64xf32>,
    %196 = vector.extract_strided_slice %193 {offsets = [1, 0], sizes = [9, 64], strides = [1, 1]} : vector<15x64xf32> to vector<9x64xf32>
    %c108_180 = arith.constant 108 : index
    %c64_181 = arith.constant 64 : index
    %197 = vector.load %arg5[%c108_180, %c64_181] : memref<135x448xf32, #tpu.memory_space<vmem>>, vector<9x64xf32>
    tpu.vector_store %arg5[%c108_180, %c64_181], %196 {strides = array<i32>} : memref<135x448xf32, #tpu.memory_space<vmem>>, vector<9x64xf32>,
    %198 = vector.extract_strided_slice %193 {offsets = [2, 0], sizes = [9, 64], strides = [1, 1]} : vector<15x64xf32> to vector<9x64xf32>
    %c108_182 = arith.constant 108 : index
    %c128_183 = arith.constant 128 : index
    %199 = vector.load %arg5[%c108_182, %c128_183] : memref<135x448xf32, #tpu.memory_space<vmem>>, vector<9x64xf32>
    tpu.vector_store %arg5[%c108_182, %c128_183], %198 {strides = array<i32>} : memref<135x448xf32, #tpu.memory_space<vmem>>, vector<9x64xf32>,
    %200 = vector.extract_strided_slice %193 {offsets = [3, 0], sizes = [9, 64], strides = [1, 1]} : vector<15x64xf32> to vector<9x64xf32>
    %c108_184 = arith.constant 108 : index
    %c192_185 = arith.constant 192 : index
    %201 = vector.load %arg5[%c108_184, %c192_185] : memref<135x448xf32, #tpu.memory_space<vmem>>, vector<9x64xf32>
    tpu.vector_store %arg5[%c108_184, %c192_185], %200 {strides = array<i32>} : memref<135x448xf32, #tpu.memory_space<vmem>>, vector<9x64xf32>,
    %202 = vector.extract_strided_slice %193 {offsets = [4, 0], sizes = [9, 64], strides = [1, 1]} : vector<15x64xf32> to vector<9x64xf32>
    %c108_186 = arith.constant 108 : index
    %c256_187 = arith.constant 256 : index
    %203 = vector.load %arg5[%c108_186, %c256_187] : memref<135x448xf32, #tpu.memory_space<vmem>>, vector<9x64xf32>
    tpu.vector_store %arg5[%c108_186, %c256_187], %202 {strides = array<i32>} : memref<135x448xf32, #tpu.memory_space<vmem>>, vector<9x64xf32>,
    %204 = vector.extract_strided_slice %193 {offsets = [5, 0], sizes = [9, 64], strides = [1, 1]} : vector<15x64xf32> to vector<9x64xf32>
    %c108_188 = arith.constant 108 : index
    %c320_189 = arith.constant 320 : index
    %205 = vector.load %arg5[%c108_188, %c320_189] : memref<135x448xf32, #tpu.memory_space<vmem>>, vector<9x64xf32>
    tpu.vector_store %arg5[%c108_188, %c320_189], %204 {strides = array<i32>} : memref<135x448xf32, #tpu.memory_space<vmem>>, vector<9x64xf32>,
    %206 = vector.extract_strided_slice %193 {offsets = [6, 0], sizes = [9, 64], strides = [1, 1]} : vector<15x64xf32> to vector<9x64xf32>
    %c108_190 = arith.constant 108 : index
    %c384_191 = arith.constant 384 : index
    %207 = vector.load %arg5[%c108_190, %c384_191] : memref<135x448xf32, #tpu.memory_space<vmem>>, vector<9x64xf32>
    tpu.vector_store %arg5[%c108_190, %c384_191], %206 {strides = array<i32>} : memref<135x448xf32, #tpu.memory_space<vmem>>, vector<9x64xf32>,
    %c0_192 = arith.constant 0 : index
    %c195 = arith.constant 195 : index
    %c0_193 = arith.constant 0 : index
    %208 = vector.load %arg1[%c0_192, %c195, %c0_193] : memref<1x225x64xf32, #tpu.memory_space<vmem>>, vector<1x15x64xf32>
    %209 = vector.shape_cast %208 : vector<1x15x64xf32> to vector<15x64xf32>
    %210 = vector.extract_strided_slice %209 {offsets = [0, 0], sizes = [9, 64], strides = [1, 1]} : vector<15x64xf32> to vector<9x64xf32>
    %c117 = arith.constant 117 : index
    %c0_194 = arith.constant 0 : index
    %211 = vector.load %arg5[%c117, %c0_194] : memref<135x448xf32, #tpu.memory_space<vmem>>, vector<9x64xf32>
    tpu.vector_store %arg5[%c117, %c0_194], %210 {strides = array<i32>} : memref<135x448xf32, #tpu.memory_space<vmem>>, vector<9x64xf32>,
    %212 = vector.extract_strided_slice %209 {offsets = [1, 0], sizes = [9, 64], strides = [1, 1]} : vector<15x64xf32> to vector<9x64xf32>
    %c117_195 = arith.constant 117 : index
    %c64_196 = arith.constant 64 : index
    %213 = vector.load %arg5[%c117_195, %c64_196] : memref<135x448xf32, #tpu.memory_space<vmem>>, vector<9x64xf32>
    tpu.vector_store %arg5[%c117_195, %c64_196], %212 {strides = array<i32>} : memref<135x448xf32, #tpu.memory_space<vmem>>, vector<9x64xf32>,
    %214 = vector.extract_strided_slice %209 {offsets = [2, 0], sizes = [9, 64], strides = [1, 1]} : vector<15x64xf32> to vector<9x64xf32>
    %c117_197 = arith.constant 117 : index
    %c128_198 = arith.constant 128 : index
    %215 = vector.load %arg5[%c117_197, %c128_198] : memref<135x448xf32, #tpu.memory_space<vmem>>, vector<9x64xf32>
    tpu.vector_store %arg5[%c117_197, %c128_198], %214 {strides = array<i32>} : memref<135x448xf32, #tpu.memory_space<vmem>>, vector<9x64xf32>,
    %216 = vector.extract_strided_slice %209 {offsets = [3, 0], sizes = [9, 64], strides = [1, 1]} : vector<15x64xf32> to vector<9x64xf32>
    %c117_199 = arith.constant 117 : index
    %c192_200 = arith.constant 192 : index
    %217 = vector.load %arg5[%c117_199, %c192_200] : memref<135x448xf32, #tpu.memory_space<vmem>>, vector<9x64xf32>
    tpu.vector_store %arg5[%c117_199, %c192_200], %216 {strides = array<i32>} : memref<135x448xf32, #tpu.memory_space<vmem>>, vector<9x64xf32>,
    %218 = vector.extract_strided_slice %209 {offsets = [4, 0], sizes = [9, 64], strides = [1, 1]} : vector<15x64xf32> to vector<9x64xf32>
    %c117_201 = arith.constant 117 : index
    %c256_202 = arith.constant 256 : index
    %219 = vector.load %arg5[%c117_201, %c256_202] : memref<135x448xf32, #tpu.memory_space<vmem>>, vector<9x64xf32>
    tpu.vector_store %arg5[%c117_201, %c256_202], %218 {strides = array<i32>} : memref<135x448xf32, #tpu.memory_space<vmem>>, vector<9x64xf32>,
    %220 = vector.extract_strided_slice %209 {offsets = [5, 0], sizes = [9, 64], strides = [1, 1]} : vector<15x64xf32> to vector<9x64xf32>
    %c117_203 = arith.constant 117 : index
    %c320_204 = arith.constant 320 : index
    %221 = vector.load %arg5[%c117_203, %c320_204] : memref<135x448xf32, #tpu.memory_space<vmem>>, vector<9x64xf32>
    tpu.vector_store %arg5[%c117_203, %c320_204], %220 {strides = array<i32>} : memref<135x448xf32, #tpu.memory_space<vmem>>, vector<9x64xf32>,
    %222 = vector.extract_strided_slice %209 {offsets = [6, 0], sizes = [9, 64], strides = [1, 1]} : vector<15x64xf32> to vector<9x64xf32>
    %c117_205 = arith.constant 117 : index
    %c384_206 = arith.constant 384 : index
    %223 = vector.load %arg5[%c117_205, %c384_206] : memref<135x448xf32, #tpu.memory_space<vmem>>, vector<9x64xf32>
    tpu.vector_store %arg5[%c117_205, %c384_206], %222 {strides = array<i32>} : memref<135x448xf32, #tpu.memory_space<vmem>>, vector<9x64xf32>,
    %c0_207 = arith.constant 0 : index
    %c210 = arith.constant 210 : index
    %c0_208 = arith.constant 0 : index
    %224 = vector.load %arg1[%c0_207, %c210, %c0_208] : memref<1x225x64xf32, #tpu.memory_space<vmem>>, vector<1x15x64xf32>
    %225 = vector.shape_cast %224 : vector<1x15x64xf32> to vector<15x64xf32>
    %226 = vector.extract_strided_slice %225 {offsets = [0, 0], sizes = [9, 64], strides = [1, 1]} : vector<15x64xf32> to vector<9x64xf32>
    %c126 = arith.constant 126 : index
    %c0_209 = arith.constant 0 : index
    %227 = vector.load %arg5[%c126, %c0_209] : memref<135x448xf32, #tpu.memory_space<vmem>>, vector<9x64xf32>
    tpu.vector_store %arg5[%c126, %c0_209], %226 {strides = array<i32>} : memref<135x448xf32, #tpu.memory_space<vmem>>, vector<9x64xf32>,
    %228 = vector.extract_strided_slice %225 {offsets = [1, 0], sizes = [9, 64], strides = [1, 1]} : vector<15x64xf32> to vector<9x64xf32>
    %c126_210 = arith.constant 126 : index
    %c64_211 = arith.constant 64 : index
    %229 = vector.load %arg5[%c126_210, %c64_211] : memref<135x448xf32, #tpu.memory_space<vmem>>, vector<9x64xf32>
    tpu.vector_store %arg5[%c126_210, %c64_211], %228 {strides = array<i32>} : memref<135x448xf32, #tpu.memory_space<vmem>>, vector<9x64xf32>,
    %230 = vector.extract_strided_slice %225 {offsets = [2, 0], sizes = [9, 64], strides = [1, 1]} : vector<15x64xf32> to vector<9x64xf32>
    %c126_212 = arith.constant 126 : index
    %c128_213 = arith.constant 128 : index
    %231 = vector.load %arg5[%c126_212, %c128_213] : memref<135x448xf32, #tpu.memory_space<vmem>>, vector<9x64xf32>
    tpu.vector_store %arg5[%c126_212, %c128_213], %230 {strides = array<i32>} : memref<135x448xf32, #tpu.memory_space<vmem>>, vector<9x64xf32>,
    %232 = vector.extract_strided_slice %225 {offsets = [3, 0], sizes = [9, 64], strides = [1, 1]} : vector<15x64xf32> to vector<9x64xf32>
    %c126_214 = arith.constant 126 : index
    %c192_215 = arith.constant 192 : index
    %233 = vector.load %arg5[%c126_214, %c192_215] : memref<135x448xf32, #tpu.memory_space<vmem>>, vector<9x64xf32>
    tpu.vector_store %arg5[%c126_214, %c192_215], %232 {strides = array<i32>} : memref<135x448xf32, #tpu.memory_space<vmem>>, vector<9x64xf32>,
    %234 = vector.extract_strided_slice %225 {offsets = [4, 0], sizes = [9, 64], strides = [1, 1]} : vector<15x64xf32> to vector<9x64xf32>
    %c126_216 = arith.constant 126 : index
    %c256_217 = arith.constant 256 : index
    %235 = vector.load %arg5[%c126_216, %c256_217] : memref<135x448xf32, #tpu.memory_space<vmem>>, vector<9x64xf32>
    tpu.vector_store %arg5[%c126_216, %c256_217], %234 {strides = array<i32>} : memref<135x448xf32, #tpu.memory_space<vmem>>, vector<9x64xf32>,
    %236 = vector.extract_strided_slice %225 {offsets = [5, 0], sizes = [9, 64], strides = [1, 1]} : vector<15x64xf32> to vector<9x64xf32>
    %c126_218 = arith.constant 126 : index
    %c320_219 = arith.constant 320 : index
    %237 = vector.load %arg5[%c126_218, %c320_219] : memref<135x448xf32, #tpu.memory_space<vmem>>, vector<9x64xf32>
    tpu.vector_store %arg5[%c126_218, %c320_219], %236 {strides = array<i32>} : memref<135x448xf32, #tpu.memory_space<vmem>>, vector<9x64xf32>,
    %238 = vector.extract_strided_slice %225 {offsets = [6, 0], sizes = [9, 64], strides = [1, 1]} : vector<15x64xf32> to vector<9x64xf32>
    %c126_220 = arith.constant 126 : index
    %c384_221 = arith.constant 384 : index
    %239 = vector.load %arg5[%c126_220, %c384_221] : memref<135x448xf32, #tpu.memory_space<vmem>>, vector<9x64xf32>
    tpu.vector_store %arg5[%c126_220, %c384_221], %238 {strides = array<i32>} : memref<135x448xf32, #tpu.memory_space<vmem>>, vector<9x64xf32>,
    %cst = arith.constant 0.000000e+00 : f32
    %240 = vector.broadcast %cst : f32 to vector<81x16xf32>
    %c0_222 = arith.constant 0 : index
    %c0_223 = arith.constant 0 : index
    %241 = vector.load %arg5[%c0_222, %c0_223] : memref<135x448xf32, #tpu.memory_space<vmem>>, vector<81x448xf32>
    %c0_224 = arith.constant 0 : index
    %c0_225 = arith.constant 0 : index
    %c0_226 = arith.constant 0 : index
    %242 = vector.load %arg2[%c0_224, %c0_225, %c0_226] : memref<7x448x16xf32, #tpu.memory_space<vmem>>, vector<1x448x16xf32>
    %243 = vector.shape_cast %242 : vector<1x448x16xf32> to vector<448x16xf32>
    %cst_227 = arith.constant dense<0.000000e+00> : vector<81x16xf32>
    %244 = tpu.matmul %241, %243, %cst_227 {dimension_numbers = #tpu.dot_dimension_numbers<[1], [0], [0], [1], [0, 0, 1, 1], [], []>} : vector<81x448xf32>, vector<448x16xf32>, vector<81x16xf32> -> vector<81x16xf32>
    %245 = arith.addf %240, %244 : vector<81x16xf32>
    %c9_228 = arith.constant 9 : index
    %c0_229 = arith.constant 0 : index
    %246 = vector.load %arg5[%c9_228, %c0_229] : memref<135x448xf32, #tpu.memory_space<vmem>>, vector<81x448xf32>
    %c1 = arith.constant 1 : index
    %c0_230 = arith.constant 0 : index
    %c0_231 = arith.constant 0 : index
    %247 = vector.load %arg2[%c1, %c0_230, %c0_231] : memref<7x448x16xf32, #tpu.memory_space<vmem>>, vector<1x448x16xf32>
    %248 = vector.shape_cast %247 : vector<1x448x16xf32> to vector<448x16xf32>
    %cst_232 = arith.constant dense<0.000000e+00> : vector<81x16xf32>
    %249 = tpu.matmul %246, %248, %cst_232 {dimension_numbers = #tpu.dot_dimension_numbers<[1], [0], [0], [1], [0, 0, 1, 1], [], []>} : vector<81x448xf32>, vector<448x16xf32>, vector<81x16xf32> -> vector<81x16xf32>
    %250 = arith.addf %245, %249 : vector<81x16xf32>
    %c18_233 = arith.constant 18 : index
    %c0_234 = arith.constant 0 : index
    %251 = vector.load %arg5[%c18_233, %c0_234] : memref<135x448xf32, #tpu.memory_space<vmem>>, vector<81x448xf32>
    %c2 = arith.constant 2 : index
    %c0_235 = arith.constant 0 : index
    %c0_236 = arith.constant 0 : index
    %252 = vector.load %arg2[%c2, %c0_235, %c0_236] : memref<7x448x16xf32, #tpu.memory_space<vmem>>, vector<1x448x16xf32>
    %253 = vector.shape_cast %252 : vector<1x448x16xf32> to vector<448x16xf32>
    %cst_237 = arith.constant dense<0.000000e+00> : vector<81x16xf32>
    %254 = tpu.matmul %251, %253, %cst_237 {dimension_numbers = #tpu.dot_dimension_numbers<[1], [0], [0], [1], [0, 0, 1, 1], [], []>} : vector<81x448xf32>, vector<448x16xf32>, vector<81x16xf32> -> vector<81x16xf32>
    %255 = arith.addf %250, %254 : vector<81x16xf32>
    %c27_238 = arith.constant 27 : index
    %c0_239 = arith.constant 0 : index
    %256 = vector.load %arg5[%c27_238, %c0_239] : memref<135x448xf32, #tpu.memory_space<vmem>>, vector<81x448xf32>
    %c3 = arith.constant 3 : index
    %c0_240 = arith.constant 0 : index
    %c0_241 = arith.constant 0 : index
    %257 = vector.load %arg2[%c3, %c0_240, %c0_241] : memref<7x448x16xf32, #tpu.memory_space<vmem>>, vector<1x448x16xf32>
    %258 = vector.shape_cast %257 : vector<1x448x16xf32> to vector<448x16xf32>
    %cst_242 = arith.constant dense<0.000000e+00> : vector<81x16xf32>
    %259 = tpu.matmul %256, %258, %cst_242 {dimension_numbers = #tpu.dot_dimension_numbers<[1], [0], [0], [1], [0, 0, 1, 1], [], []>} : vector<81x448xf32>, vector<448x16xf32>, vector<81x16xf32> -> vector<81x16xf32>
    %260 = arith.addf %255, %259 : vector<81x16xf32>
    %c36_243 = arith.constant 36 : index
    %c0_244 = arith.constant 0 : index
    %261 = vector.load %arg5[%c36_243, %c0_244] : memref<135x448xf32, #tpu.memory_space<vmem>>, vector<81x448xf32>
    %c4 = arith.constant 4 : index
    %c0_245 = arith.constant 0 : index
    %c0_246 = arith.constant 0 : index
    %262 = vector.load %arg2[%c4, %c0_245, %c0_246] : memref<7x448x16xf32, #tpu.memory_space<vmem>>, vector<1x448x16xf32>
    %263 = vector.shape_cast %262 : vector<1x448x16xf32> to vector<448x16xf32>
    %cst_247 = arith.constant dense<0.000000e+00> : vector<81x16xf32>
    %264 = tpu.matmul %261, %263, %cst_247 {dimension_numbers = #tpu.dot_dimension_numbers<[1], [0], [0], [1], [0, 0, 1, 1], [], []>} : vector<81x448xf32>, vector<448x16xf32>, vector<81x16xf32> -> vector<81x16xf32>
    %265 = arith.addf %260, %264 : vector<81x16xf32>
    %c45_248 = arith.constant 45 : index
    %c0_249 = arith.constant 0 : index
    %266 = vector.load %arg5[%c45_248, %c0_249] : memref<135x448xf32, #tpu.memory_space<vmem>>, vector<81x448xf32>
    %c5 = arith.constant 5 : index
    %c0_250 = arith.constant 0 : index
    %c0_251 = arith.constant 0 : index
    %267 = vector.load %arg2[%c5, %c0_250, %c0_251] : memref<7x448x16xf32, #tpu.memory_space<vmem>>, vector<1x448x16xf32>
    %268 = vector.shape_cast %267 : vector<1x448x16xf32> to vector<448x16xf32>
    %cst_252 = arith.constant dense<0.000000e+00> : vector<81x16xf32>
    %269 = tpu.matmul %266, %268, %cst_252 {dimension_numbers = #tpu.dot_dimension_numbers<[1], [0], [0], [1], [0, 0, 1, 1], [], []>} : vector<81x448xf32>, vector<448x16xf32>, vector<81x16xf32> -> vector<81x16xf32>
    %270 = arith.addf %265, %269 : vector<81x16xf32>
    %c54_253 = arith.constant 54 : index
    %c0_254 = arith.constant 0 : index
    %271 = vector.load %arg5[%c54_253, %c0_254] : memref<135x448xf32, #tpu.memory_space<vmem>>, vector<81x448xf32>
    %c6 = arith.constant 6 : index
    %c0_255 = arith.constant 0 : index
    %c0_256 = arith.constant 0 : index
    %272 = vector.load %arg2[%c6, %c0_255, %c0_256] : memref<7x448x16xf32, #tpu.memory_space<vmem>>, vector<1x448x16xf32>
    %273 = vector.shape_cast %272 : vector<1x448x16xf32> to vector<448x16xf32>
    %cst_257 = arith.constant dense<0.000000e+00> : vector<81x16xf32>
    %274 = tpu.matmul %271, %273, %cst_257 {dimension_numbers = #tpu.dot_dimension_numbers<[1], [0], [0], [1], [0, 0, 1, 1], [], []>} : vector<81x448xf32>, vector<448x16xf32>, vector<81x16xf32> -> vector<81x16xf32>
    %275 = arith.addf %270, %274 : vector<81x16xf32>
    %c0_258 = arith.constant 0 : index
    %c0_259 = arith.constant 0 : index
    %276 = vector.load %arg3[%c0_258, %c0_259] : memref<1x16xf32, #tpu.memory_space<vmem>>, vector<1x16xf32>
    %277 = vector.extract_strided_slice %275 {offsets = [0, 0], sizes = [9, 16], strides = [1, 1]} : vector<81x16xf32> to vector<9x16xf32>
    %278 = vector.extract_strided_slice %275 {offsets = [9, 0], sizes = [9, 16], strides = [1, 1]} : vector<81x16xf32> to vector<9x16xf32>
    %279 = arith.maximumf %277, %278 : vector<9x16xf32>
    %280 = vector.extract_strided_slice %279 {offsets = [0, 0], sizes = [1, 16], strides = [1, 1]} : vector<9x16xf32> to vector<1x16xf32>
    %281 = vector.extract_strided_slice %279 {offsets = [1, 0], sizes = [1, 16], strides = [1, 1]} : vector<9x16xf32> to vector<1x16xf32>
    %282 = arith.maximumf %280, %281 : vector<1x16xf32>
    %283 = arith.addf %282, %276 : vector<1x16xf32>
    %284 = math.tanh %283 : vector<1x16xf32>
    %c0_260 = arith.constant 0 : index
    %c0_261 = arith.constant 0 : index
    %c0_262 = arith.constant 0 : index
    %c0_263 = arith.constant 0 : index
    %285 = vector.load %arg4[%c0_260, %c0_261, %c0_262, %c0_263] : memref<1x4x4x16xf32, #tpu.memory_space<vmem>>, vector<1x1x1x16xf32>
    %286 = vector.shape_cast %285 : vector<1x1x1x16xf32> to vector<1x16xf32>
    %287 = vector.shape_cast %284 : vector<1x16xf32> to vector<1x1x1x16xf32>
    tpu.vector_store %arg4[%c0_260, %c0_261, %c0_262, %c0_263], %287 {strides = array<i32>} : memref<1x4x4x16xf32, #tpu.memory_space<vmem>>, vector<1x1x1x16xf32>,
    %288 = vector.extract_strided_slice %279 {offsets = [2, 0], sizes = [1, 16], strides = [1, 1]} : vector<9x16xf32> to vector<1x16xf32>
    %289 = vector.extract_strided_slice %279 {offsets = [3, 0], sizes = [1, 16], strides = [1, 1]} : vector<9x16xf32> to vector<1x16xf32>
    %290 = arith.maximumf %288, %289 : vector<1x16xf32>
    %291 = arith.addf %290, %276 : vector<1x16xf32>
    %292 = math.tanh %291 : vector<1x16xf32>
    %c0_264 = arith.constant 0 : index
    %c0_265 = arith.constant 0 : index
    %c1_266 = arith.constant 1 : index
    %c0_267 = arith.constant 0 : index
    %293 = vector.load %arg4[%c0_264, %c0_265, %c1_266, %c0_267] : memref<1x4x4x16xf32, #tpu.memory_space<vmem>>, vector<1x1x1x16xf32>
    %294 = vector.shape_cast %293 : vector<1x1x1x16xf32> to vector<1x16xf32>
    %295 = vector.shape_cast %292 : vector<1x16xf32> to vector<1x1x1x16xf32>
    tpu.vector_store %arg4[%c0_264, %c0_265, %c1_266, %c0_267], %295 {strides = array<i32>} : memref<1x4x4x16xf32, #tpu.memory_space<vmem>>, vector<1x1x1x16xf32>,
    %296 = vector.extract_strided_slice %279 {offsets = [4, 0], sizes = [1, 16], strides = [1, 1]} : vector<9x16xf32> to vector<1x16xf32>
    %297 = vector.extract_strided_slice %279 {offsets = [5, 0], sizes = [1, 16], strides = [1, 1]} : vector<9x16xf32> to vector<1x16xf32>
    %298 = arith.maximumf %296, %297 : vector<1x16xf32>
    %299 = arith.addf %298, %276 : vector<1x16xf32>
    %300 = math.tanh %299 : vector<1x16xf32>
    %c0_268 = arith.constant 0 : index
    %c0_269 = arith.constant 0 : index
    %c2_270 = arith.constant 2 : index
    %c0_271 = arith.constant 0 : index
    %301 = vector.load %arg4[%c0_268, %c0_269, %c2_270, %c0_271] : memref<1x4x4x16xf32, #tpu.memory_space<vmem>>, vector<1x1x1x16xf32>
    %302 = vector.shape_cast %301 : vector<1x1x1x16xf32> to vector<1x16xf32>
    %303 = vector.shape_cast %300 : vector<1x16xf32> to vector<1x1x1x16xf32>
    tpu.vector_store %arg4[%c0_268, %c0_269, %c2_270, %c0_271], %303 {strides = array<i32>} : memref<1x4x4x16xf32, #tpu.memory_space<vmem>>, vector<1x1x1x16xf32>,
    %304 = vector.extract_strided_slice %279 {offsets = [6, 0], sizes = [1, 16], strides = [1, 1]} : vector<9x16xf32> to vector<1x16xf32>
    %305 = vector.extract_strided_slice %279 {offsets = [7, 0], sizes = [1, 16], strides = [1, 1]} : vector<9x16xf32> to vector<1x16xf32>
    %306 = arith.maximumf %304, %305 : vector<1x16xf32>
    %307 = arith.addf %306, %276 : vector<1x16xf32>
    %308 = math.tanh %307 : vector<1x16xf32>
    %c0_272 = arith.constant 0 : index
    %c0_273 = arith.constant 0 : index
    %c3_274 = arith.constant 3 : index
    %c0_275 = arith.constant 0 : index
    %309 = vector.load %arg4[%c0_272, %c0_273, %c3_274, %c0_275] : memref<1x4x4x16xf32, #tpu.memory_space<vmem>>, vector<1x1x1x16xf32>
    %310 = vector.shape_cast %309 : vector<1x1x1x16xf32> to vector<1x16xf32>
    %311 = vector.shape_cast %308 : vector<1x16xf32> to vector<1x1x1x16xf32>
    tpu.vector_store %arg4[%c0_272, %c0_273, %c3_274, %c0_275], %311 {strides = array<i32>} : memref<1x4x4x16xf32, #tpu.memory_space<vmem>>, vector<1x1x1x16xf32>,
    %312 = vector.extract_strided_slice %275 {offsets = [18, 0], sizes = [9, 16], strides = [1, 1]} : vector<81x16xf32> to vector<9x16xf32>
    %313 = vector.extract_strided_slice %275 {offsets = [27, 0], sizes = [9, 16], strides = [1, 1]} : vector<81x16xf32> to vector<9x16xf32>
    %314 = arith.maximumf %312, %313 : vector<9x16xf32>
    %315 = vector.extract_strided_slice %314 {offsets = [0, 0], sizes = [1, 16], strides = [1, 1]} : vector<9x16xf32> to vector<1x16xf32>
    %316 = vector.extract_strided_slice %314 {offsets = [1, 0], sizes = [1, 16], strides = [1, 1]} : vector<9x16xf32> to vector<1x16xf32>
    %317 = arith.maximumf %315, %316 : vector<1x16xf32>
    %318 = arith.addf %317, %276 : vector<1x16xf32>
    %319 = math.tanh %318 : vector<1x16xf32>
    %c0_276 = arith.constant 0 : index
    %c1_277 = arith.constant 1 : index
    %c0_278 = arith.constant 0 : index
    %c0_279 = arith.constant 0 : index
    %320 = vector.load %arg4[%c0_276, %c1_277, %c0_278, %c0_279] : memref<1x4x4x16xf32, #tpu.memory_space<vmem>>, vector<1x1x1x16xf32>
    %321 = vector.shape_cast %320 : vector<1x1x1x16xf32> to vector<1x16xf32>
    %322 = vector.shape_cast %319 : vector<1x16xf32> to vector<1x1x1x16xf32>
    tpu.vector_store %arg4[%c0_276, %c1_277, %c0_278, %c0_279], %322 {strides = array<i32>} : memref<1x4x4x16xf32, #tpu.memory_space<vmem>>, vector<1x1x1x16xf32>,
    %323 = vector.extract_strided_slice %314 {offsets = [2, 0], sizes = [1, 16], strides = [1, 1]} : vector<9x16xf32> to vector<1x16xf32>
    %324 = vector.extract_strided_slice %314 {offsets = [3, 0], sizes = [1, 16], strides = [1, 1]} : vector<9x16xf32> to vector<1x16xf32>
    %325 = arith.maximumf %323, %324 : vector<1x16xf32>
    %326 = arith.addf %325, %276 : vector<1x16xf32>
    %327 = math.tanh %326 : vector<1x16xf32>
    %c0_280 = arith.constant 0 : index
    %c1_281 = arith.constant 1 : index
    %c1_282 = arith.constant 1 : index
    %c0_283 = arith.constant 0 : index
    %328 = vector.load %arg4[%c0_280, %c1_281, %c1_282, %c0_283] : memref<1x4x4x16xf32, #tpu.memory_space<vmem>>, vector<1x1x1x16xf32>
    %329 = vector.shape_cast %328 : vector<1x1x1x16xf32> to vector<1x16xf32>
    %330 = vector.shape_cast %327 : vector<1x16xf32> to vector<1x1x1x16xf32>
    tpu.vector_store %arg4[%c0_280, %c1_281, %c1_282, %c0_283], %330 {strides = array<i32>} : memref<1x4x4x16xf32, #tpu.memory_space<vmem>>, vector<1x1x1x16xf32>,
    %331 = vector.extract_strided_slice %314 {offsets = [4, 0], sizes = [1, 16], strides = [1, 1]} : vector<9x16xf32> to vector<1x16xf32>
    %332 = vector.extract_strided_slice %314 {offsets = [5, 0], sizes = [1, 16], strides = [1, 1]} : vector<9x16xf32> to vector<1x16xf32>
    %333 = arith.maximumf %331, %332 : vector<1x16xf32>
    %334 = arith.addf %333, %276 : vector<1x16xf32>
    %335 = math.tanh %334 : vector<1x16xf32>
    %c0_284 = arith.constant 0 : index
    %c1_285 = arith.constant 1 : index
    %c2_286 = arith.constant 2 : index
    %c0_287 = arith.constant 0 : index
    %336 = vector.load %arg4[%c0_284, %c1_285, %c2_286, %c0_287] : memref<1x4x4x16xf32, #tpu.memory_space<vmem>>, vector<1x1x1x16xf32>
    %337 = vector.shape_cast %336 : vector<1x1x1x16xf32> to vector<1x16xf32>
    %338 = vector.shape_cast %335 : vector<1x16xf32> to vector<1x1x1x16xf32>
    tpu.vector_store %arg4[%c0_284, %c1_285, %c2_286, %c0_287], %338 {strides = array<i32>} : memref<1x4x4x16xf32, #tpu.memory_space<vmem>>, vector<1x1x1x16xf32>,
    %339 = vector.extract_strided_slice %314 {offsets = [6, 0], sizes = [1, 16], strides = [1, 1]} : vector<9x16xf32> to vector<1x16xf32>
    %340 = vector.extract_strided_slice %314 {offsets = [7, 0], sizes = [1, 16], strides = [1, 1]} : vector<9x16xf32> to vector<1x16xf32>
    %341 = arith.maximumf %339, %340 : vector<1x16xf32>
    %342 = arith.addf %341, %276 : vector<1x16xf32>
    %343 = math.tanh %342 : vector<1x16xf32>
    %c0_288 = arith.constant 0 : index
    %c1_289 = arith.constant 1 : index
    %c3_290 = arith.constant 3 : index
    %c0_291 = arith.constant 0 : index
    %344 = vector.load %arg4[%c0_288, %c1_289, %c3_290, %c0_291] : memref<1x4x4x16xf32, #tpu.memory_space<vmem>>, vector<1x1x1x16xf32>
    %345 = vector.shape_cast %344 : vector<1x1x1x16xf32> to vector<1x16xf32>
    %346 = vector.shape_cast %343 : vector<1x16xf32> to vector<1x1x1x16xf32>
    tpu.vector_store %arg4[%c0_288, %c1_289, %c3_290, %c0_291], %346 {strides = array<i32>} : memref<1x4x4x16xf32, #tpu.memory_space<vmem>>, vector<1x1x1x16xf32>,
    %347 = vector.extract_strided_slice %275 {offsets = [36, 0], sizes = [9, 16], strides = [1, 1]} : vector<81x16xf32> to vector<9x16xf32>
    %348 = vector.extract_strided_slice %275 {offsets = [45, 0], sizes = [9, 16], strides = [1, 1]} : vector<81x16xf32> to vector<9x16xf32>
    %349 = arith.maximumf %347, %348 : vector<9x16xf32>
    %350 = vector.extract_strided_slice %349 {offsets = [0, 0], sizes = [1, 16], strides = [1, 1]} : vector<9x16xf32> to vector<1x16xf32>
    %351 = vector.extract_strided_slice %349 {offsets = [1, 0], sizes = [1, 16], strides = [1, 1]} : vector<9x16xf32> to vector<1x16xf32>
    %352 = arith.maximumf %350, %351 : vector<1x16xf32>
    %353 = arith.addf %352, %276 : vector<1x16xf32>
    %354 = math.tanh %353 : vector<1x16xf32>
    %c0_292 = arith.constant 0 : index
    %c2_293 = arith.constant 2 : index
    %c0_294 = arith.constant 0 : index
    %c0_295 = arith.constant 0 : index
    %355 = vector.load %arg4[%c0_292, %c2_293, %c0_294, %c0_295] : memref<1x4x4x16xf32, #tpu.memory_space<vmem>>, vector<1x1x1x16xf32>
    %356 = vector.shape_cast %355 : vector<1x1x1x16xf32> to vector<1x16xf32>
    %357 = vector.shape_cast %354 : vector<1x16xf32> to vector<1x1x1x16xf32>
    tpu.vector_store %arg4[%c0_292, %c2_293, %c0_294, %c0_295], %357 {strides = array<i32>} : memref<1x4x4x16xf32, #tpu.memory_space<vmem>>, vector<1x1x1x16xf32>,
    %358 = vector.extract_strided_slice %349 {offsets = [2, 0], sizes = [1, 16], strides = [1, 1]} : vector<9x16xf32> to vector<1x16xf32>
    %359 = vector.extract_strided_slice %349 {offsets = [3, 0], sizes = [1, 16], strides = [1, 1]} : vector<9x16xf32> to vector<1x16xf32>
    %360 = arith.maximumf %358, %359 : vector<1x16xf32>
    %361 = arith.addf %360, %276 : vector<1x16xf32>
    %362 = math.tanh %361 : vector<1x16xf32>
    %c0_296 = arith.constant 0 : index
    %c2_297 = arith.constant 2 : index
    %c1_298 = arith.constant 1 : index
    %c0_299 = arith.constant 0 : index
    %363 = vector.load %arg4[%c0_296, %c2_297, %c1_298, %c0_299] : memref<1x4x4x16xf32, #tpu.memory_space<vmem>>, vector<1x1x1x16xf32>
    %364 = vector.shape_cast %363 : vector<1x1x1x16xf32> to vector<1x16xf32>
    %365 = vector.shape_cast %362 : vector<1x16xf32> to vector<1x1x1x16xf32>
    tpu.vector_store %arg4[%c0_296, %c2_297, %c1_298, %c0_299], %365 {strides = array<i32>} : memref<1x4x4x16xf32, #tpu.memory_space<vmem>>, vector<1x1x1x16xf32>,
    %366 = vector.extract_strided_slice %349 {offsets = [4, 0], sizes = [1, 16], strides = [1, 1]} : vector<9x16xf32> to vector<1x16xf32>
    %367 = vector.extract_strided_slice %349 {offsets = [5, 0], sizes = [1, 16], strides = [1, 1]} : vector<9x16xf32> to vector<1x16xf32>
    %368 = arith.maximumf %366, %367 : vector<1x16xf32>
    %369 = arith.addf %368, %276 : vector<1x16xf32>
    %370 = math.tanh %369 : vector<1x16xf32>
    %c0_300 = arith.constant 0 : index
    %c2_301 = arith.constant 2 : index
    %c2_302 = arith.constant 2 : index
    %c0_303 = arith.constant 0 : index
    %371 = vector.load %arg4[%c0_300, %c2_301, %c2_302, %c0_303] : memref<1x4x4x16xf32, #tpu.memory_space<vmem>>, vector<1x1x1x16xf32>
    %372 = vector.shape_cast %371 : vector<1x1x1x16xf32> to vector<1x16xf32>
    %373 = vector.shape_cast %370 : vector<1x16xf32> to vector<1x1x1x16xf32>
    tpu.vector_store %arg4[%c0_300, %c2_301, %c2_302, %c0_303], %373 {strides = array<i32>} : memref<1x4x4x16xf32, #tpu.memory_space<vmem>>, vector<1x1x1x16xf32>,
    %374 = vector.extract_strided_slice %349 {offsets = [6, 0], sizes = [1, 16], strides = [1, 1]} : vector<9x16xf32> to vector<1x16xf32>
    %375 = vector.extract_strided_slice %349 {offsets = [7, 0], sizes = [1, 16], strides = [1, 1]} : vector<9x16xf32> to vector<1x16xf32>
    %376 = arith.maximumf %374, %375 : vector<1x16xf32>
    %377 = arith.addf %376, %276 : vector<1x16xf32>
    %378 = math.tanh %377 : vector<1x16xf32>
    %c0_304 = arith.constant 0 : index
    %c2_305 = arith.constant 2 : index
    %c3_306 = arith.constant 3 : index
    %c0_307 = arith.constant 0 : index
    %379 = vector.load %arg4[%c0_304, %c2_305, %c3_306, %c0_307] : memref<1x4x4x16xf32, #tpu.memory_space<vmem>>, vector<1x1x1x16xf32>
    %380 = vector.shape_cast %379 : vector<1x1x1x16xf32> to vector<1x16xf32>
    %381 = vector.shape_cast %378 : vector<1x16xf32> to vector<1x1x1x16xf32>
    tpu.vector_store %arg4[%c0_304, %c2_305, %c3_306, %c0_307], %381 {strides = array<i32>} : memref<1x4x4x16xf32, #tpu.memory_space<vmem>>, vector<1x1x1x16xf32>,
    %382 = vector.extract_strided_slice %275 {offsets = [54, 0], sizes = [9, 16], strides = [1, 1]} : vector<81x16xf32> to vector<9x16xf32>
    %383 = vector.extract_strided_slice %275 {offsets = [63, 0], sizes = [9, 16], strides = [1, 1]} : vector<81x16xf32> to vector<9x16xf32>
    %384 = arith.maximumf %382, %383 : vector<9x16xf32>
    %385 = vector.extract_strided_slice %384 {offsets = [0, 0], sizes = [1, 16], strides = [1, 1]} : vector<9x16xf32> to vector<1x16xf32>
    %386 = vector.extract_strided_slice %384 {offsets = [1, 0], sizes = [1, 16], strides = [1, 1]} : vector<9x16xf32> to vector<1x16xf32>
    %387 = arith.maximumf %385, %386 : vector<1x16xf32>
    %388 = arith.addf %387, %276 : vector<1x16xf32>
    %389 = math.tanh %388 : vector<1x16xf32>
    %c0_308 = arith.constant 0 : index
    %c3_309 = arith.constant 3 : index
    %c0_310 = arith.constant 0 : index
    %c0_311 = arith.constant 0 : index
    %390 = vector.load %arg4[%c0_308, %c3_309, %c0_310, %c0_311] : memref<1x4x4x16xf32, #tpu.memory_space<vmem>>, vector<1x1x1x16xf32>
    %391 = vector.shape_cast %390 : vector<1x1x1x16xf32> to vector<1x16xf32>
    %392 = vector.shape_cast %389 : vector<1x16xf32> to vector<1x1x1x16xf32>
    tpu.vector_store %arg4[%c0_308, %c3_309, %c0_310, %c0_311], %392 {strides = array<i32>} : memref<1x4x4x16xf32, #tpu.memory_space<vmem>>, vector<1x1x1x16xf32>,
    %393 = vector.extract_strided_slice %384 {offsets = [2, 0], sizes = [1, 16], strides = [1, 1]} : vector<9x16xf32> to vector<1x16xf32>
    %394 = vector.extract_strided_slice %384 {offsets = [3, 0], sizes = [1, 16], strides = [1, 1]} : vector<9x16xf32> to vector<1x16xf32>
    %395 = arith.maximumf %393, %394 : vector<1x16xf32>
    %396 = arith.addf %395, %276 : vector<1x16xf32>
    %397 = math.tanh %396 : vector<1x16xf32>
    %c0_312 = arith.constant 0 : index
    %c3_313 = arith.constant 3 : index
    %c1_314 = arith.constant 1 : index
    %c0_315 = arith.constant 0 : index
    %398 = vector.load %arg4[%c0_312, %c3_313, %c1_314, %c0_315] : memref<1x4x4x16xf32, #tpu.memory_space<vmem>>, vector<1x1x1x16xf32>
    %399 = vector.shape_cast %398 : vector<1x1x1x16xf32> to vector<1x16xf32>
    %400 = vector.shape_cast %397 : vector<1x16xf32> to vector<1x1x1x16xf32>
    tpu.vector_store %arg4[%c0_312, %c3_313, %c1_314, %c0_315], %400 {strides = array<i32>} : memref<1x4x4x16xf32, #tpu.memory_space<vmem>>, vector<1x1x1x16xf32>,
    %401 = vector.extract_strided_slice %384 {offsets = [4, 0], sizes = [1, 16], strides = [1, 1]} : vector<9x16xf32> to vector<1x16xf32>
    %402 = vector.extract_strided_slice %384 {offsets = [5, 0], sizes = [1, 16], strides = [1, 1]} : vector<9x16xf32> to vector<1x16xf32>
    %403 = arith.maximumf %401, %402 : vector<1x16xf32>
    %404 = arith.addf %403, %276 : vector<1x16xf32>
    %405 = math.tanh %404 : vector<1x16xf32>
    %c0_316 = arith.constant 0 : index
    %c3_317 = arith.constant 3 : index
    %c2_318 = arith.constant 2 : index
    %c0_319 = arith.constant 0 : index
    %406 = vector.load %arg4[%c0_316, %c3_317, %c2_318, %c0_319] : memref<1x4x4x16xf32, #tpu.memory_space<vmem>>, vector<1x1x1x16xf32>
    %407 = vector.shape_cast %406 : vector<1x1x1x16xf32> to vector<1x16xf32>
    %408 = vector.shape_cast %405 : vector<1x16xf32> to vector<1x1x1x16xf32>
    tpu.vector_store %arg4[%c0_316, %c3_317, %c2_318, %c0_319], %408 {strides = array<i32>} : memref<1x4x4x16xf32, #tpu.memory_space<vmem>>, vector<1x1x1x16xf32>,
    %409 = vector.extract_strided_slice %384 {offsets = [6, 0], sizes = [1, 16], strides = [1, 1]} : vector<9x16xf32> to vector<1x16xf32>
    %410 = vector.extract_strided_slice %384 {offsets = [7, 0], sizes = [1, 16], strides = [1, 1]} : vector<9x16xf32> to vector<1x16xf32>
    %411 = arith.maximumf %409, %410 : vector<1x16xf32>
    %412 = arith.addf %411, %276 : vector<1x16xf32>
    %413 = math.tanh %412 : vector<1x16xf32>
    %c0_320 = arith.constant 0 : index
    %c3_321 = arith.constant 3 : index
    %c3_322 = arith.constant 3 : index
    %c0_323 = arith.constant 0 : index
    %414 = vector.load %arg4[%c0_320, %c3_321, %c3_322, %c0_323] : memref<1x4x4x16xf32, #tpu.memory_space<vmem>>, vector<1x1x1x16xf32>
    %415 = vector.shape_cast %414 : vector<1x1x1x16xf32> to vector<1x16xf32>
    %416 = vector.shape_cast %413 : vector<1x16xf32> to vector<1x1x1x16xf32>
    tpu.vector_store %arg4[%c0_320, %c3_321, %c3_322, %c0_323], %416 {strides = array<i32>} : memref<1x4x4x16xf32, #tpu.memory_space<vmem>>, vector<1x1x1x16xf32>,
    return
  }
  func.func @transform_0(%arg0: i32) -> (i32, i32, i32) {
    %c0_i32 = arith.constant 0 : i32
    %c0_i32_0 = arith.constant 0 : i32
    %c0_i32_1 = arith.constant 0 : i32
    return %arg0, %c0_i32, %c0_i32_0 : i32, i32, i32
  }
  func.func @transform_1(%arg0: i32) -> (i32, i32, i32) {
    %c0_i32 = arith.constant 0 : i32
    %c0_i32_0 = arith.constant 0 : i32
    %c0_i32_1 = arith.constant 0 : i32
    %c0_i32_2 = arith.constant 0 : i32
    return %c0_i32, %c0_i32_0, %c0_i32_1 : i32, i32, i32
  }
  func.func @transform_2(%arg0: i32) -> (i32, i32) {
    %c0_i32 = arith.constant 0 : i32
    %c0_i32_0 = arith.constant 0 : i32
    %c0_i32_1 = arith.constant 0 : i32
    return %c0_i32, %c0_i32_0 : i32, i32
  }
  func.func @transform_3(%arg0: i32) -> (i32, i32, i32, i32) {
    %c0_i32 = arith.constant 0 : i32
    %c0_i32_0 = arith.constant 0 : i32
    %c0_i32_1 = arith.constant 0 : i32
    %c0_i32_2 = arith.constant 0 : i32
    return %arg0, %c0_i32, %c0_i32_0, %c0_i32_1 : i32, i32, i32, i32
  }
}

module attributes {stable_mosaic.version = 11 : i64} {
  func.func @_head_kernel(%arg0: i32, %arg1: memref<8x256xf32, #tpu.memory_space<vmem>>, %arg2: memref<256x200xf32, #tpu.memory_space<vmem>>, %arg3: memref<1x200xf32, #tpu.memory_space<vmem>>, %arg4: memref<200x10xf32, #tpu.memory_space<vmem>>, %arg5: memref<1x10xf32, #tpu.memory_space<vmem>>, %arg6: memref<8x10xf32, #tpu.memory_space<vmem>>) attributes {dimension_semantics = [#tpu.dimension_semantics<parallel>], iteration_bounds = array<i64: 1>, scalar_prefetch = 0 : i64, scratch_operands = 0 : i64, tpu.core_type = #tpu.core_type<tc>, window_params = [{transform_indices = @transform_0, window_bounds = array<i64: 8, 256>}, {pipeline_mode = #tpu.pipeline_mode<synchronous>, transform_indices = @transform_1, window_bounds = array<i64: 256, 200>}, {pipeline_mode = #tpu.pipeline_mode<synchronous>, transform_indices = @transform_2, window_bounds = array<i64: 1, 200>}, {pipeline_mode = #tpu.pipeline_mode<synchronous>, transform_indices = @transform_3, window_bounds = array<i64: 200, 10>}, {pipeline_mode = #tpu.pipeline_mode<synchronous>, transform_indices = @transform_4, window_bounds = array<i64: 1, 10>}, {transform_indices = @transform_5, window_bounds = array<i64: 8, 10>}]} {
    %c0 = arith.constant 0 : index
    %c0_0 = arith.constant 0 : index
    %0 = vector.load %arg1[%c0, %c0_0] : memref<8x256xf32, #tpu.memory_space<vmem>>, vector<8x256xf32>
    %c0_1 = arith.constant 0 : index
    %c0_2 = arith.constant 0 : index
    %1 = vector.load %arg2[%c0_1, %c0_2] : memref<256x200xf32, #tpu.memory_space<vmem>>, vector<256x200xf32>
    %cst = arith.constant dense<0.000000e+00> : vector<8x200xf32>
    %2 = tpu.matmul %0, %1, %cst {dimension_numbers = #tpu.dot_dimension_numbers<[1], [0], [0], [1], [0, 0, 1, 1], [], []>} : vector<8x256xf32>, vector<256x200xf32>, vector<8x200xf32> -> vector<8x200xf32>
    %c0_3 = arith.constant 0 : index
    %c0_4 = arith.constant 0 : index
    %3 = vector.load %arg3[%c0_3, %c0_4] : memref<1x200xf32, #tpu.memory_space<vmem>>, vector<1x200xf32>
    %4 = vector.broadcast %3 : vector<1x200xf32> to vector<8x200xf32>
    %5 = arith.addf %2, %4 : vector<8x200xf32>
    %6 = math.tanh %5 : vector<8x200xf32>
    %c0_5 = arith.constant 0 : index
    %c0_6 = arith.constant 0 : index
    %7 = vector.load %arg4[%c0_5, %c0_6] : memref<200x10xf32, #tpu.memory_space<vmem>>, vector<200x10xf32>
    %cst_7 = arith.constant dense<0.000000e+00> : vector<8x10xf32>
    %8 = tpu.matmul %6, %7, %cst_7 {dimension_numbers = #tpu.dot_dimension_numbers<[1], [0], [0], [1], [0, 0, 1, 1], [], []>} : vector<8x200xf32>, vector<200x10xf32>, vector<8x10xf32> -> vector<8x10xf32>
    %c0_8 = arith.constant 0 : index
    %c0_9 = arith.constant 0 : index
    %9 = vector.load %arg5[%c0_8, %c0_9] : memref<1x10xf32, #tpu.memory_space<vmem>>, vector<1x10xf32>
    %10 = vector.broadcast %9 : vector<1x10xf32> to vector<8x10xf32>
    %11 = arith.addf %8, %10 : vector<8x10xf32>
    %cst_10 = arith.constant dense<0xFF800000> : vector<8xf32>
    %12 = vector.multi_reduction <maximumf>, %11, %cst_10 [1] : vector<8x10xf32> to vector<8xf32>
    %13 = vector.shape_cast %12 : vector<8xf32> to vector<8x1xf32>
    %14 = vector.broadcast %13 : vector<8x1xf32> to vector<8x10xf32>
    %15 = arith.subf %11, %14 : vector<8x10xf32>
    %16 = math.exp %15 : vector<8x10xf32>
    %cst_11 = arith.constant dense<0.000000e+00> : vector<8xf32>
    %17 = vector.multi_reduction <add>, %16, %cst_11 [1] : vector<8x10xf32> to vector<8xf32>
    %18 = vector.shape_cast %17 : vector<8xf32> to vector<8x1xf32>
    %19 = math.log %18 : vector<8x1xf32>
    %20 = arith.addf %19, %13 : vector<8x1xf32>
    %21 = vector.broadcast %20 : vector<8x1xf32> to vector<8x10xf32>
    %22 = arith.subf %11, %21 : vector<8x10xf32>
    %c0_12 = arith.constant 0 : index
    %c0_13 = arith.constant 0 : index
    %23 = vector.load %arg6[%c0_12, %c0_13] : memref<8x10xf32, #tpu.memory_space<vmem>>, vector<8x10xf32>
    tpu.vector_store %arg6[%c0_12, %c0_13], %22 {strides = array<i32>} : memref<8x10xf32, #tpu.memory_space<vmem>>, vector<8x10xf32>,
    return
  }
  func.func @transform_0(%arg0: i32) -> (i32, i32) {
    %c0_i32 = arith.constant 0 : i32
    %c0_i32_0 = arith.constant 0 : i32
    return %arg0, %c0_i32 : i32, i32
  }
  func.func @transform_1(%arg0: i32) -> (i32, i32) {
    %c0_i32 = arith.constant 0 : i32
    %c0_i32_0 = arith.constant 0 : i32
    %c0_i32_1 = arith.constant 0 : i32
    return %c0_i32, %c0_i32_0 : i32, i32
  }
  func.func @transform_2(%arg0: i32) -> (i32, i32) {
    %c0_i32 = arith.constant 0 : i32
    %c0_i32_0 = arith.constant 0 : i32
    %c0_i32_1 = arith.constant 0 : i32
    return %c0_i32, %c0_i32_0 : i32, i32
  }
  func.func @transform_3(%arg0: i32) -> (i32, i32) {
    %c0_i32 = arith.constant 0 : i32
    %c0_i32_0 = arith.constant 0 : i32
    %c0_i32_1 = arith.constant 0 : i32
    return %c0_i32, %c0_i32_0 : i32, i32
  }
  func.func @transform_4(%arg0: i32) -> (i32, i32) {
    %c0_i32 = arith.constant 0 : i32
    %c0_i32_0 = arith.constant 0 : i32
    %c0_i32_1 = arith.constant 0 : i32
    return %c0_i32, %c0_i32_0 : i32, i32
  }
  func.func @transform_5(%arg0: i32) -> (i32, i32) {
    %c0_i32 = arith.constant 0 : i32
    %c0_i32_0 = arith.constant 0 : i32
    return %arg0, %c0_i32 : i32, i32
  }
}

</mosaic_0001>

<bundles_post_ra>
// kernel: cnn_net_forward.3
= control target key start
LH: loop header
LB: loop body
LE: loop exit
PB: predicated region body
PF: predicated region fallthrough
CT: control target
= control target key end

     0   :  { %s2548_s12 = smov 0   ;;  %s3407_s0 = inlined_call_operand.vmem [shape: f32[2,4,225,9], index: 0, kind: input, shape index: {}]   ;;  %s3408_s1 = inlined_call_operand.vmem [shape: f32[9,64], index: 1, kind: input, shape index: {}]   ;;  %s3409_s2 = inlined_call_operand.vmem [shape: f32[1,64], index: 2, kind: input, shape index: {}]   ;;  %s3410_s3 = inlined_call_operand.vmem [shape: f32[2,225,64], index: 3, kind: output, shape index: {}]  }
   0x1 LB: > { %s1723_s13 = sadd.s32 4294967295, %s2522_s12   ;;  %p1727_p0 = scmp.ge.s32.totalorder %s2522_s12, 1  ;;  %s2522_s12 = sphi %s2548_s12, %s13_s12  }
   0x2   : > { %p137_p1 = scmp.lt.s32.totalorder %s2522_s12, 3 }
   0x4   : > { %p138_p2 = pnand %p1727_p0, %p137_p1 }
   0x6   : > { %141 = sbr.rel (%p138_p2) target bundleno = 479 (0x1df), region = 32 }
   0xd   : > { %v171_v0 = vld [vmem:[%s3408_s1] sm:$0xff]  ;;  %v172_v1 = vld [vmem:[%s3408_s1 + $0x8] sm:$0x1]  ;;  %vm290_vm0 = vcmask 1040384   ;;  %v2524_v2 = vmov 0.0|0.0   ;;  %vm2525_vm1 = vmmov 1  }
   0xe   : > { %2428 = vmatprep.subr.bf16.mxu0 %v2524_v2  ;;  %v2429_v3 = vpack.c.bf16 %v172_v1, %v171_v0  ;;  %vm2562_vm2 = vmpackc.low %vm290_vm0, %vm2525_vm1  ;;  %2432 = vmatprep.subr.bf16.mxu1 %v2524_v2  ;;  %p161_p3 = scmp.lt.s32.totalorder %s1723_s13, 1  ;;  %vm2526_vm3 = vmmov 0   ;;  %v2527_v5 = vmov 0.0   ;;  %vm202_vm4 = vcmask 72704  }
   0xf   : > { %2068 = vmatprep.mubr.msk.f32.mxu0 %vm2526_vm3, %v2527_v5  ;;  %2159 = vmatprep.mubr.msk.f32.mxu1 %vm2526_vm3, %v2527_v5  ;;  %vm1637_vm5 = vcmask 523264   ;;  %vm1666_vm6 = vcmask 516096  }
  0x10   : > { %2431 = vmatpush3.bf16.msk.msra.mxu0 %vm2562_vm2, %v2429_v3  ;;  %2435 = vmatpush3.bf16.msk.msra.mxu1 %vm2562_vm2, %v2429_v3  ;;  %s3473_s13 = smov (!%p161_p3, %s1723_s13), 1 }
  0x11   : > { %2436 = vmatprep.subr.bf16.mxu0 %v2524_v2  ;;  %2440 = vmatprep.subr.bf16.mxu1 %v2524_v2  ;;  %s2444_s18 = smul.u32 928, %s3473_s13 }
  0x12   : > { %s2445_s24 = smul.u32 232, %s3473_s13 }
  0x13   : > { %s2580_s21 = scalar_lea.vmem %s3407_s0, %s2444_s18 }
  0x14   : > { %v173_v6 = vld [vmem:[%s2580_s21] sm:$0xff]  ;;  %v1760_v7 = vld [vmem:[%s2580_s21 + $0xe8] sm:$0xff]  ;;  %v1761_v9 = vld [vmem:[%s2580_s21 + $0xf0] sm:$0xff]  ;;  %s3244_s27 = scalar_lea.vmem %s3410_s3, %s2445_s24 }
  0x15   : > { %2069 = vmatmul.mubr.msk.f32.vlgmr.msra.gmra.mrb[0].mxu0 %vm202_vm4, %v173_v6  ;;  %2160 = vmatmul.mubr.msk.f32.vlgmr.msra.gmra.mrb[0].mxu1 %vm202_vm4, %v1760_v7  ;;  %v174_v8 = vld [vmem:[%s2580_s21 + $0x8] sm:$0xff]  ;;  %v175_v10 = vld [vmem:[%s2580_s21 + $0x10] sm:$0xff]  ;;  %v1762_v11 = vld [vmem:[%s2580_s21 + $0xf8] sm:$0xff] }
  0x16   : > { %2439 = vmatpush3.bf16.msk.msra.mxu0 %vm2562_vm2, %v2429_v3  ;;  %2443 = vmatpush3.bf16.msk.msra.mxu1 %vm2562_vm2, %v2429_v3  ;;  %v176_v12 = vld [vmem:[%s2580_s21 + $0x18] sm:$0xff]  ;;  %v1763_v13 = vld [vmem:[%s2580_s21 + $0x100] sm:$0xff]  ;;  %v1764_v15 = vld [vmem:[%s2580_s21 + $0x108] sm:$0xff] }
  0x17   : > { %2071 = vmatprep.mubr.msk.f32.mxu0 %vm2526_vm3, %v2527_v5  ;;  %2162 = vmatprep.mubr.msk.f32.mxu1 %vm2526_vm3, %v2527_v5  ;;  %v177_v14 = vld [vmem:[%s2580_s21 + $0x20] sm:$0xff]  ;;  %v178_v16 = vld [vmem:[%s2580_s21 + $0x28] sm:$0xff]  ;;  %v1765_v17 = vld [vmem:[%s2580_s21 + $0x110] sm:$0xff] }
  0x18   : > { %v179_v18 = vld [vmem:[%s2580_s21 + $0x30] sm:$0xff]  ;;  %v1766_v19 = vld [vmem:[%s2580_s21 + $0x118] sm:$0xff]  ;;  %v1767_v21 = vld [vmem:[%s2580_s21 + $0x120] sm:$0xff] }
  0x19   : > { %2072 = vmatmul.mubr.msk.f32.gmra.mrb[2].mxu0 %vm202_vm4, %v174_v8  ;;  %2163 = vmatmul.mubr.msk.f32.gmra.mrb[2].mxu1 %vm202_vm4, %v1761_v9  ;;  %v180_v20 = vld [vmem:[%s2580_s21 + $0x38] sm:$0xff]  ;;  %v181_v22 = vld [vmem:[%s2580_s21 + $0x40] sm:$0xff]  ;;  %v1768_v23 = vld [vmem:[%s2580_s21 + $0x128] sm:$0xff] }
  0x1a   : > { %2074 = vmatprep.mubr.msk.f32.mxu0 %vm2526_vm3, %v2527_v5  ;;  %2165 = vmatprep.mubr.msk.f32.mxu1 %vm2526_vm3, %v2527_v5  ;;  %v182_v24 = vld [vmem:[%s2580_s21 + $0x48] sm:$0xff]  ;;  %v1769_v25 = vld [vmem:[%s2580_s21 + $0x130] sm:$0xff]  ;;  %v1770_v27 = vld [vmem:[%s2580_s21 + $0x138] sm:$0xff] }
  0x1b   : > { %v183_v26 = vld [vmem:[%s2580_s21 + $0x50] sm:$0xff]  ;;  %v184_v28 = vld [vmem:[%s2580_s21 + $0x58] sm:$0xff]  ;;  %v1771_v29 = vld [vmem:[%s2580_s21 + $0x140] sm:$0xff] }
  0x1c   : > { %v185_v30 = vld [vmem:[%s2580_s21 + $0x60] sm:$0xff]  ;;  %v1772_v31 = vld [vmem:[%s2580_s21 + $0x148] sm:$0xff]  ;;  %v1773_v33 = vld [vmem:[%s2580_s21 + $0x150] sm:$0xff] }
  0x1d   : > { %2075 = vmatmul.mubr.msk.f32.gmra.mrb[4].mxu0 %vm202_vm4, %v175_v10  ;;  %2166 = vmatmul.mubr.msk.f32.gmra.mrb[4].mxu1 %vm202_vm4, %v1762_v11  ;;  %v186_v32 = vld [vmem:[%s2580_s21 + $0x68] sm:$0xff]  ;;  %v187_v34 = vld [vmem:[%s2580_s21 + $0x70] sm:$0xff]  ;;  %v1774_v35 = vld [vmem:[%s2580_s21 + $0x158] sm:$0xff] }
  0x1e   : > { %2077 = vmatprep.mubr.msk.f32.mxu0 %vm2526_vm3, %v2527_v5  ;;  %2168 = vmatprep.mubr.msk.f32.mxu1 %vm2526_vm3, %v2527_v5  ;;  %v188_v36 = vld [vmem:[%s2580_s21 + $0x78] sm:$0xff]  ;;  %v1775_v37 = vld [vmem:[%s2580_s21 + $0x160] sm:$0xff]  ;;  %v1776_v39 = vld [vmem:[%s2580_s21 + $0x168] sm:$0xff] }
  0x1f   : > { %v189_v38 = vld [vmem:[%s2580_s21 + $0x80] sm:$0xff]  ;;  %v190_v40 = vld [vmem:[%s2580_s21 + $0x88] sm:$0xff]  ;;  %v1777_v41 = vld [vmem:[%s2580_s21 + $0x170] sm:$0xff] }
  0x20   : > { %v191_v42 = vld [vmem:[%s2580_s21 + $0x90] sm:$0xff]  ;;  %v1778_v43 = vld [vmem:[%s2580_s21 + $0x178] sm:$0xff]  ;;  %v1779_v45 = vld [vmem:[%s2580_s21 + $0x180] sm:$0xff] }
  0x21   : > { %2078 = vmatmul.mubr.msk.f32.gmra.mrb[6].mxu0 %vm202_vm4, %v176_v12  ;;  %2169 = vmatmul.mubr.msk.f32.gmra.mrb[6].mxu1 %vm202_vm4, %v1763_v13  ;;  %v192_v44 = vld [vmem:[%s2580_s21 + $0x98] sm:$0xff]  ;;  %v193_v46 = vld [vmem:[%s2580_s21 + $0xa0] sm:$0xff]  ;;  %v1780_v47 = vld [vmem:[%s2580_s21 + $0x188] sm:$0xff] }
  0x22   : > { %2080 = vmatprep.mubr.msk.f32.mxu0 %vm2526_vm3, %v2527_v5  ;;  %2171 = vmatprep.mubr.msk.f32.mxu1 %vm2526_vm3, %v2527_v5  ;;  %v194_v48 = vld [vmem:[%s2580_s21 + $0xa8] sm:$0xff]  ;;  %v1781_v49 = vld [vmem:[%s2580_s21 + $0x190] sm:$0xff]  ;;  %v1782_v51 = vld [vmem:[%s2580_s21 + $0x198] sm:$0xff] }
  0x23   : > { %v195_v50 = vld [vmem:[%s2580_s21 + $0xb0] sm:$0xff]  ;;  %v196_v52 = vld [vmem:[%s2580_s21 + $0xb8] sm:$0xff]  ;;  %v1783_v53 = vld [vmem:[%s2580_s21 + $0x1a0] sm:$0xff] }
  0x24   : > { %v197_v54 = vld [vmem:[%s2580_s21 + $0xc0] sm:$0xff]  ;;  %v1784_v55 = vld [vmem:[%s2580_s21 + $0x1a8] sm:$0xff]  ;;  %v1785_v57 = vld [vmem:[%s2580_s21 + $0x1b0] sm:$0xff] }
  0x25   : > { %2081 = vmatmul.mubr.msk.f32.gmra.mrb[8].mxu0 %vm202_vm4, %v177_v14  ;;  %2172 = vmatmul.mubr.msk.f32.gmra.mrb[8].mxu1 %vm202_vm4, %v1764_v15  ;;  %v198_v56 = vld [vmem:[%s2580_s21 + $0xc8] sm:$0xff]  ;;  %v199_v58 = vld [vmem:[%s2580_s21 + $0xd0] sm:$0xff]  ;;  %v1786_v59 = vld [vmem:[%s2580_s21 + $0x1b8] sm:$0xff] }
  0x26   : > { %2083 = vmatprep.mubr.msk.f32.mxu0 %vm2526_vm3, %v2527_v5  ;;  %2174 = vmatprep.mubr.msk.f32.mxu1 %vm2526_vm3, %v2527_v5  ;;  %v200_v60 = vld [vmem:[%s2580_s21 + $0xd8] sm:$0xff]  ;;  %v1787_v61 = vld [vmem:[%s2580_s21 + $0x1c0] sm:$0xff]  ;;  %v1788_v63 = vld [vmem:[%s2580_s21 + $0x1c8] sm:$0x1] }
  0x27   : > { %v201_v62 = vld [vmem:[%s2580_s21 + $0xe0] sm:$0x1]  ;;  %v1819_v0 = vld [vmem:[%s2580_s21 + $0x1d0] sm:$0xff]  ;;  %v1878_v1 = vld [vmem:[%s2580_s21 + $0x2b8] sm:$0xff] }
  0x28   : > { %v1820_v2 = vld [vmem:[%s2580_s21 + $0x1d8] sm:$0xff]  ;;  %v1879_v3 = vld [vmem:[%s2580_s21 + $0x2c0] sm:$0xff]  ;;  %v1880_v6 = vld [vmem:[%s2580_s21 + $0x2c8] sm:$0xff] }
  0x29   : > { %2084 = vmatmul.mubr.msk.f32.gmra.mrb[10].mxu0 %vm202_vm4, %v178_v16  ;;  %2175 = vmatmul.mubr.msk.f32.gmra.mrb[10].mxu1 %vm202_vm4, %v1765_v17  ;;  %v1821_v4 = vld [vmem:[%s2580_s21 + $0x1e0] sm:$0xff]  ;;  %v1822_v7 = vld [vmem:[%s2580_s21 + $0x1e8] sm:$0xff]  ;;  %v1881_v8 = vld [vmem:[%s2580_s21 + $0x2d0] sm:$0xff] }
  0x2a   : > { %2086 = vmatprep.mubr.msk.f32.mxu0 %vm2526_vm3, %v2527_v5  ;;  %2177 = vmatprep.mubr.msk.f32.mxu1 %vm2526_vm3, %v2527_v5  ;;  %v1823_v9 = vld [vmem:[%s2580_s21 + $0x1f0] sm:$0xff]  ;;  %v1882_v10 = vld [vmem:[%s2580_s21 + $0x2d8] sm:$0xff]  ;;  %v1883_v12 = vld [vmem:[%s2580_s21 + $0x2e0] sm:$0xff] }
  0x2b   : > { %v1824_v11 = vld [vmem:[%s2580_s21 + $0x1f8] sm:$0xff]  ;;  %v1825_v13 = vld [vmem:[%s2580_s21 + $0x200] sm:$0xff]  ;;  %v1884_v14 = vld [vmem:[%s2580_s21 + $0x2e8] sm:$0xff] }
  0x2c   : > { %v1826_v15 = vld [vmem:[%s2580_s21 + $0x208] sm:$0xff]  ;;  %v1885_v16 = vld [vmem:[%s2580_s21 + $0x2f0] sm:$0xff] }
  0x2d   : > { %2087 = vmatmul.mubr.msk.f32.gmra.mrb[12].mxu0 %vm202_vm4, %v179_v18  ;;  %2178 = vmatmul.mubr.msk.f32.gmra.mrb[12].mxu1 %vm202_vm4, %v1766_v19  ;;  %v1827_v17 = vld [vmem:[%s2580_s21 + $0x210] sm:$0xff]  ;;  %v1886_v18 = vld [vmem:[%s2580_s21 + $0x2f8] sm:$0xff] }
  0x2e   : > { %2089 = vmatprep.mubr.msk.f32.mxu0 %vm2526_vm3, %v2527_v5  ;;  %2180 = vmatprep.mubr.msk.f32.mxu1 %vm2526_vm3, %v2527_v5  ;;  %v1828_v19 = vld [vmem:[%s2580_s21 + $0x218] sm:$0xff] }
  0x31   : > { %2090 = vmatmul.mubr.msk.f32.gmra.mrb[14].mxu0 %vm202_vm4, %v180_v20  ;;  %2181 = vmatmul.mubr.msk.f32.gmra.mrb[14].mxu1 %vm202_vm4, %v1767_v21  ;;  %v1887_v20 = vld [vmem:[%s2580_s21 + $0x300] sm:$0xff] }
  0x32   : > { %2092 = vmatprep.mubr.msk.f32.mxu0 %vm2526_vm3, %v2527_v5  ;;  %2183 = vmatprep.mubr.msk.f32.mxu1 %vm2526_vm3, %v2527_v5  ;;  %v1829_v21 = vld [vmem:[%s2580_s21 + $0x220] sm:$0xff] }
  0x35   : > { %2093 = vmatmul.mubr.msk.f32.gmra.mrb[16].mxu0 %vm202_vm4, %v181_v22  ;;  %2184 = vmatmul.mubr.msk.f32.gmra.mrb[16].mxu1 %vm202_vm4, %v1768_v23  ;;  %v1888_v22 = vld [vmem:[%s2580_s21 + $0x308] sm:$0xff] }
  0x36   : > { %2095 = vmatprep.mubr.msk.f32.mxu0 %vm2526_vm3, %v2527_v5  ;;  %2186 = vmatprep.mubr.msk.f32.mxu1 %vm2526_vm3, %v2527_v5  ;;  %v1830_v23 = vld [vmem:[%s2580_s21 + $0x228] sm:$0xff] }
  0x39   : > { %2096 = vmatmul.mubr.msk.f32.gmra.mrb[18].mxu0 %vm202_vm4, %v182_v24  ;;  %2187 = vmatmul.mubr.msk.f32.gmra.mrb[18].mxu1 %vm202_vm4, %v1769_v25  ;;  %v1889_v24 = vld [vmem:[%s2580_s21 + $0x310] sm:$0xff] }
  0x3a   : > { %2098 = vmatprep.mubr.msk.f32.mxu0 %vm2526_vm3, %v2527_v5  ;;  %2189 = vmatprep.mubr.msk.f32.mxu1 %vm2526_vm3, %v2527_v5  ;;  %v1831_v25 = vld [vmem:[%s2580_s21 + $0x230] sm:$0xff] }
  0x3d   : > { %2099 = vmatmul.mubr.msk.f32.gmra.mrb[20].mxu0 %vm202_vm4, %v183_v26  ;;  %2190 = vmatmul.mubr.msk.f32.gmra.mrb[20].mxu1 %vm202_vm4, %v1770_v27  ;;  %v1890_v26 = vld [vmem:[%s2580_s21 + $0x318] sm:$0xff] }
  0x3e   : > { %2101 = vmatprep.mubr.msk.f32.mxu0 %vm2526_vm3, %v2527_v5  ;;  %2192 = vmatprep.mubr.msk.f32.mxu1 %vm2526_vm3, %v2527_v5  ;;  %v1832_v27 = vld [vmem:[%s2580_s21 + $0x238] sm:$0xff] }
  0x41   : > { %2102 = vmatmul.mubr.msk.f32.gmra.mrb[22].mxu0 %vm202_vm4, %v184_v28  ;;  %2193 = vmatmul.mubr.msk.f32.gmra.mrb[22].mxu1 %vm202_vm4, %v1771_v29  ;;  %v1891_v28 = vld [vmem:[%s2580_s21 + $0x320] sm:$0xff] }
  0x42   : > { %2104 = vmatprep.mubr.msk.f32.mxu0 %vm2526_vm3, %v2527_v5  ;;  %2195 = vmatprep.mubr.msk.f32.mxu1 %vm2526_vm3, %v2527_v5  ;;  %v1833_v29 = vld [vmem:[%s2580_s21 + $0x240] sm:$0xff] }
  0x45   : > { %2105 = vmatmul.mubr.msk.f32.gmra.mrb[24].mxu0 %vm202_vm4, %v185_v30  ;;  %2196 = vmatmul.mubr.msk.f32.gmra.mrb[24].mxu1 %vm202_vm4, %v1772_v31  ;;  %v1892_v30 = vld [vmem:[%s2580_s21 + $0x328] sm:$0xff] }
  0x46   : > { %2107 = vmatprep.mubr.msk.f32.mxu0 %vm2526_vm3, %v2527_v5  ;;  %2198 = vmatprep.mubr.msk.f32.mxu1 %vm2526_vm3, %v2527_v5  ;;  %v1834_v31 = vld [vmem:[%s2580_s21 + $0x248] sm:$0xff] }
  0x49   : > { %2108 = vmatmul.mubr.msk.f32.gmra.mrb[26].mxu0 %vm202_vm4, %v186_v32  ;;  %2199 = vmatmul.mubr.msk.f32.gmra.mrb[26].mxu1 %vm202_vm4, %v1773_v33  ;;  %v1893_v32 = vld [vmem:[%s2580_s21 + $0x330] sm:$0xff] }
  0x4a   : > { %2110 = vmatprep.mubr.msk.f32.mxu0 %vm2526_vm3, %v2527_v5  ;;  %2201 = vmatprep.mubr.msk.f32.mxu1 %vm2526_vm3, %v2527_v5  ;;  %v1835_v33 = vld [vmem:[%s2580_s21 + $0x250] sm:$0xff] }
  0x4d   : > { %2111 = vmatmul.mubr.msk.f32.gmra.mrb[28].mxu0 %vm202_vm4, %v187_v34  ;;  %2202 = vmatmul.mubr.msk.f32.gmra.mrb[28].mxu1 %vm202_vm4, %v1774_v35  ;;  %v1894_v34 = vld [vmem:[%s2580_s21 + $0x338] sm:$0xff] }
  0x4e   : > { %2113 = vmatprep.mubr.msk.f32.mxu0 %vm2526_vm3, %v2527_v5  ;;  %2204 = vmatprep.mubr.msk.f32.mxu1 %vm2526_vm3, %v2527_v5  ;;  %v1836_v35 = vld [vmem:[%s2580_s21 + $0x258] sm:$0xff] }
  0x51   : > { %2114 = vmatmul.mubr.msk.f32.gmra.mrb[30].mxu0 %vm202_vm4, %v188_v36  ;;  %2205 = vmatmul.mubr.msk.f32.gmra.mrb[30].mxu1 %vm202_vm4, %v1775_v37  ;;  %v1895_v36 = vld [vmem:[%s2580_s21 + $0x340] sm:$0xff] }
  0x52   : > { %2116 = vmatprep.mubr.msk.f32.mxu0 %vm2526_vm3, %v2527_v5  ;;  %2207 = vmatprep.mubr.msk.f32.mxu1 %vm2526_vm3, %v2527_v5  ;;  %v1837_v37 = vld [vmem:[%s2580_s21 + $0x260] sm:$0xff] }
  0x55   : > { %2117 = vmatmul.mubr.msk.f32.gmra.mrb[32].mxu0 %vm202_vm4, %v189_v38  ;;  %2208 = vmatmul.mubr.msk.f32.gmra.mrb[32].mxu1 %vm202_vm4, %v1776_v39  ;;  %v1896_v38 = vld [vmem:[%s2580_s21 + $0x348] sm:$0xff] }
  0x56   : > { %2119 = vmatprep.mubr.msk.f32.mxu0 %vm2526_vm3, %v2527_v5  ;;  %2210 = vmatprep.mubr.msk.f32.mxu1 %vm2526_vm3, %v2527_v5  ;;  %v1838_v39 = vld [vmem:[%s2580_s21 + $0x268] sm:$0xff] }
  0x59   : > { %2120 = vmatmul.mubr.msk.f32.gmra.mrb[34].mxu0 %vm202_vm4, %v190_v40  ;;  %2211 = vmatmul.mubr.msk.f32.gmra.mrb[34].mxu1 %vm202_vm4, %v1777_v41  ;;  %v1897_v40 = vld [vmem:[%s2580_s21 + $0x350] sm:$0xff] }
  0x5a   : > { %2122 = vmatprep.mubr.msk.f32.mxu0 %vm2526_vm3, %v2527_v5  ;;  %2213 = vmatprep.mubr.msk.f32.mxu1 %vm2526_vm3, %v2527_v5  ;;  %v1839_v41 = vld [vmem:[%s2580_s21 + $0x270] sm:$0xff] }
  0x5d   : > { %2123 = vmatmul.mubr.msk.f32.gmra.mrb[36].mxu0 %vm202_vm4, %v191_v42  ;;  %2214 = vmatmul.mubr.msk.f32.gmra.mrb[36].mxu1 %vm202_vm4, %v1778_v43  ;;  %v1898_v42 = vld [vmem:[%s2580_s21 + $0x358] sm:$0xff] }
  0x5e   : > { %2125 = vmatprep.mubr.msk.f32.mxu0 %vm2526_vm3, %v2527_v5  ;;  %2216 = vmatprep.mubr.msk.f32.mxu1 %vm2526_vm3, %v2527_v5  ;;  %v1840_v43 = vld [vmem:[%s2580_s21 + $0x278] sm:$0xff] }
  0x61   : > { %2126 = vmatmul.mubr.msk.f32.gmra.mrb[38].mxu0 %vm202_vm4, %v192_v44  ;;  %2217 = vmatmul.mubr.msk.f32.gmra.mrb[38].mxu1 %vm202_vm4, %v1779_v45  ;;  %v1899_v44 = vld [vmem:[%s2580_s21 + $0x360] sm:$0xff] }
  0x62   : > { %2128 = vmatprep.mubr.msk.f32.mxu0 %vm2526_vm3, %v2527_v5  ;;  %2219 = vmatprep.mubr.msk.f32.mxu1 %vm2526_vm3, %v2527_v5  ;;  %v1841_v45 = vld [vmem:[%s2580_s21 + $0x280] sm:$0xff] }
  0x65   : > { %2129 = vmatmul.mubr.msk.f32.gmra.mrb[40].mxu0 %vm202_vm4, %v193_v46  ;;  %2220 = vmatmul.mubr.msk.f32.gmra.mrb[40].mxu1 %vm202_vm4, %v1780_v47  ;;  %v1900_v46 = vld [vmem:[%s2580_s21 + $0x368] sm:$0xff] }
  0x66   : > { %2131 = vmatprep.mubr.msk.f32.mxu0 %vm2526_vm3, %v2527_v5  ;;  %2222 = vmatprep.mubr.msk.f32.mxu1 %vm2526_vm3, %v2527_v5  ;;  %v1842_v47 = vld [vmem:[%s2580_s21 + $0x288] sm:$0xff] }
  0x69   : > { %2132 = vmatmul.mubr.msk.f32.gmra.mrb[42].mxu0 %vm202_vm4, %v194_v48  ;;  %2223 = vmatmul.mubr.msk.f32.gmra.mrb[42].mxu1 %vm202_vm4, %v1781_v49  ;;  %v1901_v48 = vld [vmem:[%s2580_s21 + $0x370] sm:$0xff] }
  0x6a   : > { %2134 = vmatprep.mubr.msk.f32.mxu0 %vm2526_vm3, %v2527_v5  ;;  %2225 = vmatprep.mubr.msk.f32.mxu1 %vm2526_vm3, %v2527_v5  ;;  %v1843_v49 = vld [vmem:[%s2580_s21 + $0x290] sm:$0xff] }
  0x6d   : > { %2135 = vmatmul.mubr.msk.f32.gmra.mrb[44].mxu0 %vm202_vm4, %v195_v50  ;;  %2226 = vmatmul.mubr.msk.f32.gmra.mrb[44].mxu1 %vm202_vm4, %v1782_v51  ;;  %v1902_v50 = vld [vmem:[%s2580_s21 + $0x378] sm:$0xff] }
  0x6e   : > { %2137 = vmatprep.mubr.msk.f32.mxu0 %vm2526_vm3, %v2527_v5  ;;  %2228 = vmatprep.mubr.msk.f32.mxu1 %vm2526_vm3, %v2527_v5 }
  0x71   : > { %2138 = vmatmul.mubr.msk.f32.gmra.mrb[46].mxu0 %vm202_vm4, %v196_v52  ;;  %2229 = vmatmul.mubr.msk.f32.gmra.mrb[46].mxu1 %vm202_vm4, %v1783_v53 }
  0x72   : > { %2140 = vmatprep.mubr.msk.f32.mxu0 %vm2526_vm3, %v2527_v5  ;;  %2231 = vmatprep.mubr.msk.f32.mxu1 %vm2526_vm3, %v2527_v5 }
  0x75   : > { %2141 = vmatmul.mubr.msk.f32.gmra.mrb[48].mxu0 %vm202_vm4, %v197_v54  ;;  %2232 = vmatmul.mubr.msk.f32.gmra.mrb[48].mxu1 %vm202_vm4, %v1784_v55 }
  0x76   : > { %2143 = vmatprep.mubr.msk.f32.mxu0 %vm2526_vm3, %v2527_v5  ;;  %2234 = vmatprep.mubr.msk.f32.mxu1 %vm2526_vm3, %v2527_v5 }
  0x79   : > { %2144 = vmatmul.mubr.msk.f32.gmra.mrb[50].mxu0 %vm202_vm4, %v198_v56  ;;  %2235 = vmatmul.mubr.msk.f32.gmra.mrb[50].mxu1 %vm202_vm4, %v1785_v57  ;;  %v1844_v56 = vld [vmem:[%s2580_s21 + $0x298] sm:$0xff]  ;;  %v1903_v57 = vld [vmem:[%s2580_s21 + $0x380] sm:$0xff] }
  0x7a   : > { %2146 = vmatprep.mubr.msk.f32.mxu0 %vm2526_vm3, %v2527_v5  ;;  %2237 = vmatprep.mubr.msk.f32.mxu1 %vm2526_vm3, %v2527_v5 }
  0x7d   : > { %2147 = vmatmul.mubr.msk.f32.gmra.mrb[52].mxu0 %vm202_vm4, %v199_v58  ;;  %2238 = vmatmul.mubr.msk.f32.gmra.mrb[52].mxu1 %vm202_vm4, %v1786_v59 }
  0x7e   : > { %2149 = vmatprep.mubr.msk.f32.mxu0 %vm2526_vm3, %v2527_v5  ;;  %2240 = vmatprep.mubr.msk.f32.mxu1 %vm2526_vm3, %v2527_v5 }
  0x81   : > { %2150 = vmatmul.mubr.msk.f32.gmra.mrb[54].mxu0 %vm202_vm4, %v200_v60  ;;  %2241 = vmatmul.mubr.msk.f32.gmra.mrb[54].mxu1 %vm202_vm4, %v1787_v61 }
  0x82   : > { %2152 = vmatprep.mubr.msk.f32.mxu0 %vm2526_vm3, %v2527_v5  ;;  %2243 = vmatprep.mubr.msk.f32.mxu1 %vm2526_vm3, %v2527_v5 }
  0x85   : > { %2153 = vmatmul.mubr.msk.f32.gmra.mrb[56].mxu0 %vm202_vm4, %v201_v62  ;;  %2244 = vmatmul.mubr.msk.f32.gmra.mrb[56].mxu1 %vm202_vm4, %v1788_v63  ;;  %v1845_v63 = vld [vmem:[%s2580_s21 + $0x2a0] sm:$0xff] }
  0x86   : > { %2250 = vmatprep.mubr.msk.f32.mxu0 %vm2526_vm3, %v2527_v5  ;;  %2341 = vmatprep.mubr.msk.f32.mxu1 %vm2526_vm3, %v2527_v5 }
  0x89   : > { %2251 = vmatmul.mubr.msk.f32.vlgmr.msra.gmra.mrb[58].mxu0 %vm202_vm4, %v1819_v0  ;;  %2342 = vmatmul.mubr.msk.f32.vlgmr.msra.gmra.mrb[58].mxu1 %vm202_vm4, %v1878_v1  ;;  %v1904_v0 = vld [vmem:[%s2580_s21 + $0x388] sm:$0xff] }
  0x8a   : > { %2253 = vmatprep.mubr.msk.f32.mxu0 %vm2526_vm3, %v2527_v5  ;;  %2344 = vmatprep.mubr.msk.f32.mxu1 %vm2526_vm3, %v2527_v5 }
  0x8d   : > { %2254 = vmatmul.mubr.msk.f32.gmra.mrb[60].mxu0 %vm202_vm4, %v1820_v2  ;;  %2345 = vmatmul.mubr.msk.f32.gmra.mrb[60].mxu1 %vm202_vm4, %v1879_v3 }
  0x8e   : > { %2256 = vmatprep.mubr.msk.f32.mxu0 %vm2526_vm3, %v2527_v5  ;;  %2347 = vmatprep.mubr.msk.f32.mxu1 %vm2526_vm3, %v2527_v5 }
  0x91   : > { %2257 = vmatmul.mubr.msk.f32.gmra.mrb[62].mxu0 %vm202_vm4, %v1821_v4  ;;  %2348 = vmatmul.mubr.msk.f32.gmra.mrb[62].mxu1 %vm202_vm4, %v1880_v6 }
  0x92   : > { %2259 = vmatprep.mubr.msk.f32.mxu0 %vm2526_vm3, %v2527_v5  ;;  %2350 = vmatprep.mubr.msk.f32.mxu1 %vm2526_vm3, %v2527_v5 }
  0x95   : > { %2260 = vmatmul.mubr.msk.f32.gmra.mrb[64].mxu0 %vm202_vm4, %v1822_v7  ;;  %2351 = vmatmul.mubr.msk.f32.gmra.mrb[64].mxu1 %vm202_vm4, %v1881_v8  ;;  %v1846_v7 = vld [vmem:[%s2580_s21 + $0x2a8] sm:$0xff]  ;;  %v1905_v8 = vld [vmem:[%s2580_s21 + $0x390] sm:$0xff] }
  0x96   : > { %2262 = vmatprep.mubr.msk.f32.mxu0 %vm2526_vm3, %v2527_v5  ;;  %2353 = vmatprep.mubr.msk.f32.mxu1 %vm2526_vm3, %v2527_v5 }
  0x99   : > { %2263 = vmatmul.mubr.msk.f32.gmra.mrb[66].mxu0 %vm202_vm4, %v1823_v9  ;;  %2354 = vmatmul.mubr.msk.f32.gmra.mrb[66].mxu1 %vm202_vm4, %v1882_v10 }
  0x9a   : > { %2265 = vmatprep.mubr.msk.f32.mxu0 %vm2526_vm3, %v2527_v5  ;;  %2356 = vmatprep.mubr.msk.f32.mxu1 %vm2526_vm3, %v2527_v5 }
  0x9d   : > { %2266 = vmatmul.mubr.msk.f32.gmra.mrb[68].mxu0 %vm202_vm4, %v1824_v11  ;;  %2357 = vmatmul.mubr.msk.f32.gmra.mrb[68].mxu1 %vm202_vm4, %v1883_v12 }
  0x9e   : > { %2268 = vmatprep.mubr.msk.f32.mxu0 %vm2526_vm3, %v2527_v5  ;;  %2359 = vmatprep.mubr.msk.f32.mxu1 %vm2526_vm3, %v2527_v5 }
  0xa1   : > { %2269 = vmatmul.mubr.msk.f32.gmra.mrb[70].mxu0 %vm202_vm4, %v1825_v13  ;;  %2360 = vmatmul.mubr.msk.f32.gmra.mrb[70].mxu1 %vm202_vm4, %v1884_v14  ;;  %v1847_v14 = vld [vmem:[%s2580_s21 + $0x2b0] sm:$0x1] }
  0xa2   : > { %2271 = vmatprep.mubr.msk.f32.mxu0 %vm2526_vm3, %v2527_v5  ;;  %2362 = vmatprep.mubr.msk.f32.mxu1 %vm2526_vm3, %v2527_v5 }
  0xa5   : > { %2272 = vmatmul.mubr.msk.f32.gmra.mrb[72].mxu0 %vm202_vm4, %v1826_v15  ;;  %2363 = vmatmul.mubr.msk.f32.gmra.mrb[72].mxu1 %vm202_vm4, %v1885_v16  ;;  %v1906_v15 = vld [vmem:[%s2580_s21 + $0x398] sm:$0x1] }
  0xa6   : > { %2274 = vmatprep.mubr.msk.f32.mxu0 %vm2526_vm3, %v2527_v5  ;;  %2365 = vmatprep.mubr.msk.f32.mxu1 %vm2526_vm3, %v2527_v5 }
  0xa9   : > { %2275 = vmatmul.mubr.msk.f32.gmra.mrb[74].mxu0 %vm202_vm4, %v1827_v17  ;;  %2366 = vmatmul.mubr.msk.f32.gmra.mrb[74].mxu1 %vm202_vm4, %v1886_v18 }
  0xaa   : > { %2277 = vmatprep.mubr.msk.f32.mxu0 %vm2526_vm3, %v2527_v5  ;;  %2368 = vmatprep.mubr.msk.f32.mxu1 %vm2526_vm3, %v2527_v5 }
  0xad   : > { %2278 = vmatmul.mubr.msk.f32.gmra.mrb[76].mxu0 %vm202_vm4, %v1828_v19  ;;  %2369 = vmatmul.mubr.msk.f32.gmra.mrb[76].mxu1 %vm202_vm4, %v1887_v20 }
  0xae   : > { %2280 = vmatprep.mubr.msk.f32.mxu0 %vm2526_vm3, %v2527_v5  ;;  %2371 = vmatprep.mubr.msk.f32.mxu1 %vm2526_vm3, %v2527_v5 }
  0xb1   : > { %2281 = vmatmul.mubr.msk.f32.gmra.mrb[78].mxu0 %vm202_vm4, %v1829_v21  ;;  %2372 = vmatmul.mubr.msk.f32.gmra.mrb[78].mxu1 %vm202_vm4, %v1888_v22 }
  0xb2   : > { %2283 = vmatprep.mubr.msk.f32.mxu0 %vm2526_vm3, %v2527_v5  ;;  %2374 = vmatprep.mubr.msk.f32.mxu1 %vm2526_vm3, %v2527_v5 }
  0xb5   : > { %2284 = vmatmul.mubr.msk.f32.gmra.mrb[80].mxu0 %vm202_vm4, %v1830_v23  ;;  %2375 = vmatmul.mubr.msk.f32.gmra.mrb[80].mxu1 %vm202_vm4, %v1889_v24 }
  0xb6   : > { %2286 = vmatprep.mubr.msk.f32.mxu0 %vm2526_vm3, %v2527_v5  ;;  %2377 = vmatprep.mubr.msk.f32.mxu1 %vm2526_vm3, %v2527_v5 }
  0xb9   : > { %2287 = vmatmul.mubr.msk.f32.gmra.mrb[82].mxu0 %vm202_vm4, %v1831_v25  ;;  %2378 = vmatmul.mubr.msk.f32.gmra.mrb[82].mxu1 %vm202_vm4, %v1890_v26 }
  0xba   : > { %2289 = vmatprep.mubr.msk.f32.mxu0 %vm2526_vm3, %v2527_v5  ;;  %2380 = vmatprep.mubr.msk.f32.mxu1 %vm2526_vm3, %v2527_v5 }
  0xbd   : > { %2290 = vmatmul.mubr.msk.f32.gmra.mrb[84].mxu0 %vm202_vm4, %v1832_v27  ;;  %2381 = vmatmul.mubr.msk.f32.gmra.mrb[84].mxu1 %vm202_vm4, %v1891_v28 }
  0xbe   : > { %2292 = vmatprep.mubr.msk.f32.mxu0 %vm2526_vm3, %v2527_v5  ;;  %2383 = vmatprep.mubr.msk.f32.mxu1 %vm2526_vm3, %v2527_v5 }
  0xc1   : > { %2293 = vmatmul.mubr.msk.f32.gmra.mrb[86].mxu0 %vm202_vm4, %v1833_v29  ;;  %2384 = vmatmul.mubr.msk.f32.gmra.mrb[86].mxu1 %vm202_vm4, %v1892_v30 }
  0xc2   : > { %2295 = vmatprep.mubr.msk.f32.mxu0 %vm2526_vm3, %v2527_v5  ;;  %2386 = vmatprep.mubr.msk.f32.mxu1 %vm2526_vm3, %v2527_v5 }
  0xc5   : > { %2296 = vmatmul.mubr.msk.f32.gmra.mrb[88].mxu0 %vm202_vm4, %v1834_v31  ;;  %2387 = vmatmul.mubr.msk.f32.gmra.mrb[88].mxu1 %vm202_vm4, %v1893_v32 }
  0xc6   : > { %2298 = vmatprep.mubr.msk.f32.mxu0 %vm2526_vm3, %v2527_v5  ;;  %2389 = vmatprep.mubr.msk.f32.mxu1 %vm2526_vm3, %v2527_v5 }
  0xc9   : > { %2299 = vmatmul.mubr.msk.f32.gmra.mrb[90].mxu0 %vm202_vm4, %v1835_v33  ;;  %2390 = vmatmul.mubr.msk.f32.gmra.mrb[90].mxu1 %vm202_vm4, %v1894_v34 }
  0xca   : > { %2301 = vmatprep.mubr.msk.f32.mxu0 %vm2526_vm3, %v2527_v5  ;;  %2392 = vmatprep.mubr.msk.f32.mxu1 %vm2526_vm3, %v2527_v5 }
  0xcd   : > { %2302 = vmatmul.mubr.msk.f32.gmra.mrb[92].mxu0 %vm202_vm4, %v1836_v35  ;;  %2393 = vmatmul.mubr.msk.f32.gmra.mrb[92].mxu1 %vm202_vm4, %v1895_v36 }
  0xce   : > { %2304 = vmatprep.mubr.msk.f32.mxu0 %vm2526_vm3, %v2527_v5  ;;  %2395 = vmatprep.mubr.msk.f32.mxu1 %vm2526_vm3, %v2527_v5 }
  0xd1   : > { %2305 = vmatmul.mubr.msk.f32.gmra.mrb[94].mxu0 %vm202_vm4, %v1837_v37  ;;  %2396 = vmatmul.mubr.msk.f32.gmra.mrb[94].mxu1 %vm202_vm4, %v1896_v38 }
  0xd2   : > { %2307 = vmatprep.mubr.msk.f32.mxu0 %vm2526_vm3, %v2527_v5  ;;  %2398 = vmatprep.mubr.msk.f32.mxu1 %vm2526_vm3, %v2527_v5 }
  0xd5   : > { %2308 = vmatmul.mubr.msk.f32.gmra.mrb[96].mxu0 %vm202_vm4, %v1838_v39  ;;  %2399 = vmatmul.mubr.msk.f32.gmra.mrb[96].mxu1 %vm202_vm4, %v1897_v40 }
  0xd6   : > { %2310 = vmatprep.mubr.msk.f32.mxu0 %vm2526_vm3, %v2527_v5  ;;  %2401 = vmatprep.mubr.msk.f32.mxu1 %vm2526_vm3, %v2527_v5 }
  0xd9   : > { %2311 = vmatmul.mubr.msk.f32.gmra.mrb[98].mxu0 %vm202_vm4, %v1839_v41  ;;  %2402 = vmatmul.mubr.msk.f32.gmra.mrb[98].mxu1 %vm202_vm4, %v1898_v42 }
  0xda   : > { %2313 = vmatprep.mubr.msk.f32.mxu0 %vm2526_vm3, %v2527_v5  ;;  %2404 = vmatprep.mubr.msk.f32.mxu1 %vm2526_vm3, %v2527_v5 }
  0xdd   : > { %2314 = vmatmul.mubr.msk.f32.gmra.mrb[100].mxu0 %vm202_vm4, %v1840_v43  ;;  %2405 = vmatmul.mubr.msk.f32.gmra.mrb[100].mxu1 %vm202_vm4, %v1899_v44 }
  0xde   : > { %2316 = vmatprep.mubr.msk.f32.mxu0 %vm2526_vm3, %v2527_v5  ;;  %2407 = vmatprep.mubr.msk.f32.mxu1 %vm2526_vm3, %v2527_v5 }
  0xe1   : > { %2317 = vmatmul.mubr.msk.f32.gmra.mrb[102].mxu0 %vm202_vm4, %v1841_v45  ;;  %2408 = vmatmul.mubr.msk.f32.gmra.mrb[102].mxu1 %vm202_vm4, %v1900_v46 }
  0xe2   : > { %2319 = vmatprep.mubr.msk.f32.mxu0 %vm2526_vm3, %v2527_v5  ;;  %2410 = vmatprep.mubr.msk.f32.mxu1 %vm2526_vm3, %v2527_v5 }
  0xe5   : > { %2320 = vmatmul.mubr.msk.f32.gmra.mrb[104].mxu0 %vm202_vm4, %v1842_v47  ;;  %2411 = vmatmul.mubr.msk.f32.gmra.mrb[104].mxu1 %vm202_vm4, %v1901_v48 }
  0xe6   : > { %2322 = vmatprep.mubr.msk.f32.mxu0 %vm2526_vm3, %v2527_v5  ;;  %2413 = vmatprep.mubr.msk.f32.mxu1 %vm2526_vm3, %v2527_v5 }
  0xe8   : > { %v3012_v51 = vpop.f32.mrb[0].mxu0  ;;  %v3014_v52 = vpop.f32.mrb[0].mxu1 }
  0xe9   : > { %v2070_v54 = vpop.f32.mrb[1].mxu0  ;;  %2323 = vmatmul.mubr.msk.f32.gmra.mrb[106].mxu0 %vm202_vm4, %v1843_v49  ;;  %v2161_v55 = vpop.f32.mrb[1].mxu1  ;;  %2414 = vmatmul.mubr.msk.f32.gmra.mrb[106].mxu1 %vm202_vm4, %v1902_v50 }
  0xea   : > { %2325 = vmatprep.mubr.msk.f32.mxu0 %vm2526_vm3, %v2527_v5  ;;  %2416 = vmatprep.mubr.msk.f32.mxu1 %vm2526_vm3, %v2527_v5 }
  0xec   : > { %v3026_v58 = vpop.f32.mrb[2].mxu0  ;;  %v3028_v59 = vpop.f32.mrb[2].mxu1 }
  0xed   : > { %v2073_v61 = vpop.f32.mrb[3].mxu0  ;;  %2326 = vmatmul.mubr.msk.f32.gmra.mrb[108].mxu0 %vm202_vm4, %v1844_v56  ;;  %v2164_v62 = vpop.f32.mrb[3].mxu1  ;;  %2417 = vmatmul.mubr.msk.f32.gmra.mrb[108].mxu1 %vm202_vm4, %v1903_v57 }
  0xee   : > { %2328 = vmatprep.mubr.msk.f32.mxu0 %vm2526_vm3, %v2527_v5  ;;  %2419 = vmatprep.mubr.msk.f32.mxu1 %vm2526_vm3, %v2527_v5 }
  0xf0   : > { %v3040_v1 = vpop.f32.mrb[4].mxu0  ;;  %v3042_v2 = vpop.f32.mrb[4].mxu1 }
  0xf1   : > { %v2076_v4 = vpop.f32.mrb[5].mxu0  ;;  %2329 = vmatmul.mubr.msk.f32.gmra.mrb[110].mxu0 %vm202_vm4, %v1845_v63  ;;  %v2167_v6 = vpop.f32.mrb[5].mxu1  ;;  %2420 = vmatmul.mubr.msk.f32.gmra.mrb[110].mxu1 %vm202_vm4, %v1904_v0 }
  0xf2   : > { %2331 = vmatprep.mubr.msk.f32.mxu0 %vm2526_vm3, %v2527_v5  ;;  %2422 = vmatprep.mubr.msk.f32.mxu1 %vm2526_vm3, %v2527_v5 }
  0xf4   : > { %v3054_v9 = vpop.f32.mrb[6].mxu0  ;;  %v3056_v10 = vpop.f32.mrb[6].mxu1 }
  0xf5   : > { %v2079_v12 = vpop.f32.mrb[7].mxu0  ;;  %2332 = vmatmul.mubr.msk.f32.gmra.mrb[112].mxu0 %vm202_vm4, %v1846_v7  ;;  %v2170_v13 = vpop.f32.mrb[7].mxu1  ;;  %2423 = vmatmul.mubr.msk.f32.gmra.mrb[112].mxu1 %vm202_vm4, %v1905_v8 }
  0xf6   : > { %2334 = vmatprep.mubr.msk.f32.mxu0 %vm2526_vm3, %v2527_v5  ;;  %2425 = vmatprep.mubr.msk.f32.mxu1 %vm2526_vm3, %v2527_v5 }
  0xf8   : > { %v3068_v16 = vpop.f32.mrb[8].mxu0  ;;  %v3070_v17 = vpop.f32.mrb[8].mxu1 }
  0xf9   : > { %v2082_v19 = vpop.f32.mrb[9].mxu0  ;;  %2335 = vmatmul.mubr.msk.f32.gmra.mrb[114].mxu0 %vm202_vm4, %v1847_v14  ;;  %v2173_v20 = vpop.f32.mrb[9].mxu1  ;;  %2426 = vmatmul.mubr.msk.f32.gmra.mrb[114].mxu1 %vm202_vm4, %v1906_v15 }
  0xfc   : > { %v3076_v21 = vpop.f32.mrb[10].mxu0  ;;  %v3078_v22 = vpop.f32.mrb[10].mxu1 }
  0xfd   : > { %v2085_v23 = vpop.f32.mrb[11].mxu0  ;;  %v2176_v24 = vpop.f32.mrb[11].mxu1 }
 0x100   : > { %v3082_v25 = vpop.f32.mrb[12].mxu0  ;;  %v3084_v26 = vpop.f32.mrb[12].mxu1 }
 0x101   : > { %v2088_v28 = vpop.f32.mrb[13].mxu0  ;;  %v2179_v29 = vpop.f32.mrb[13].mxu1 }
 0x104   : > { %v3088_v30 = vpop.f32.mrb[14].mxu0  ;;  %v3090_v31 = vpop.f32.mrb[14].mxu1 }
 0x105   : > { %v2091_v33 = vpop.f32.mrb[15].mxu0  ;;  %v2182_v34 = vpop.f32.mrb[15].mxu1 }
 0x108   : > { %v3094_v35 = vpop.f32.mrb[16].mxu0  ;;  %v3096_v36 = vpop.f32.mrb[16].mxu1 }
 0x109   : > { %v2094_v38 = vpop.f32.mrb[17].mxu0  ;;  %v2185_v39 = vpop.f32.mrb[17].mxu1 }
 0x10c   : > { %v3100_v40 = vpop.f32.mrb[18].mxu0  ;;  %v3102_v41 = vpop.f32.mrb[18].mxu1 }
 0x10d   : > { %v2097_v43 = vpop.f32.mrb[19].mxu0  ;;  %v2188_v44 = vpop.f32.mrb[19].mxu1 }
 0x110   : > { %v3106_v45 = vpop.f32.mrb[20].mxu0  ;;  %v3108_v46 = vpop.f32.mrb[20].mxu1 }
 0x111   : > { %v2100_v48 = vpop.f32.mrb[21].mxu0  ;;  %v2191_v49 = vpop.f32.mrb[21].mxu1 }
 0x114   : > { %v3112_v50 = vpop.f32.mrb[22].mxu0  ;;  %v3114_v54 = vpop.f32.mrb[22].mxu1 }
 0x115   : > { %v2103_v56 = vpop.f32.mrb[23].mxu0  ;;  %v2194_v57 = vpop.f32.mrb[23].mxu1 }
 0x118   : > { %v3118_v61 = vpop.f32.mrb[24].mxu0  ;;  %v3120_v62 = vpop.f32.mrb[24].mxu1 }
 0x119   : > { %v2106_v0 = vpop.f32.mrb[25].mxu0  ;;  %v2197_v4 = vpop.f32.mrb[25].mxu1 }
 0x11c   : > { %v3124_v6 = vpop.f32.mrb[26].mxu0  ;;  %v3126_v7 = vpop.f32.mrb[26].mxu1 }
 0x11d   : > { %v2109_v12 = vpop.f32.mrb[27].mxu0  ;;  %v2200_v13 = vpop.f32.mrb[27].mxu1 }
 0x120   : > { %v3130_v14 = vpop.f32.mrb[28].mxu0  ;;  %v3132_v15 = vpop.f32.mrb[28].mxu1 }
 0x121   : > { %v2112_v20 = vpop.f32.mrb[29].mxu0  ;;  %v2203_v23 = vpop.f32.mrb[29].mxu1 }
 0x124   : > { %v3136_v24 = vpop.f32.mrb[30].mxu0  ;;  %v3138_v28 = vpop.f32.mrb[30].mxu1 }
 0x125   : > { %v2115_v33 = vpop.f32.mrb[31].mxu0  ;;  %v2206_v34 = vpop.f32.mrb[31].mxu1 }
 0x128   : > { %v3142_v38 = vpop.f32.mrb[32].mxu0  ;;  %v3144_v39 = vpop.f32.mrb[32].mxu1 }
 0x129   : > { %v2118_v44 = vpop.f32.mrb[33].mxu0  ;;  %v2209_v48 = vpop.f32.mrb[33].mxu1 }
 0x12c   : > { %v3148_v49 = vpop.f32.mrb[34].mxu0  ;;  %v3150_v56 = vpop.f32.mrb[34].mxu1 }
 0x12d   : > { %v2121_v0 = vpop.f32.mrb[35].mxu0  ;;  %v2212_v4 = vpop.f32.mrb[35].mxu1 }
 0x130   : > { %v3154_v12 = vpop.f32.mrb[36].mxu0  ;;  %v3156_v13 = vpop.f32.mrb[36].mxu1 }
 0x131   : > { %v2124_v23 = vpop.f32.mrb[37].mxu0  ;;  %v2215_v33 = vpop.f32.mrb[37].mxu1 }
 0x134   : > { %v3160_v34 = vpop.f32.mrb[38].mxu0  ;;  %v3162_v44 = vpop.f32.mrb[38].mxu1 }
 0x135   : > { %v2127_v43 = vpop.f32.mrb[39].mxu0  ;;  %v2218_v57 = vpop.f32.mrb[39].mxu1 }
 0x138   : > { %v3166_v0 = vpop.f32.mrb[40].mxu0  ;;  %v3168_v4 = vpop.f32.mrb[40].mxu1 }
 0x139   : > { %v2130_v19 = vpop.f32.mrb[41].mxu0  ;;  %v2221_v20 = vpop.f32.mrb[41].mxu1 }
 0x13c   : > { %v3172_v23 = vpop.f32.mrb[42].mxu0  ;;  %v3174_v33 = vpop.f32.mrb[42].mxu1 }
 0x13d   : > { %v2133_v63 = vpop.f32.mrb[43].mxu0  ;;  %v2224_v48 = vpop.f32.mrb[43].mxu1 }
 0x140   : > { %v3178_v43 = vpop.f32.mrb[44].mxu0  ;;  %v3180_v57 = vpop.f32.mrb[44].mxu1 }
 0x141   : > { %v2136_v47 = vpop.f32.mrb[45].mxu0  ;;  %v2227_v29 = vpop.f32.mrb[45].mxu1 }
 0x144   : > { %v3184_v19 = vpop.f32.mrb[46].mxu0  ;;  %v3186_v20 = vpop.f32.mrb[46].mxu1 }
 0x145   : > { %v2139_v37 = vpop.f32.mrb[47].mxu0  ;;  %v2230_v8 = vpop.f32.mrb[47].mxu1 }
 0x148   : > { %v3190_v63 = vpop.f32.mrb[48].mxu0  ;;  %v3192_v48 = vpop.f32.mrb[48].mxu1 }
 0x149   : > { %3423 = vst [vmem:[#allocation2_spill] sm:$0xff] %v3190_v63  ;;  %3424 = vst [vmem:[#allocation3_spill] sm:$0xff] %v3192_v48  ;;  %v2142_v27 = vpop.f32.mrb[49].mxu0  ;;  %v2233_v55 = vpop.f32.mrb[49].mxu1 }
 0x14c   : > { %v3196_v47 = vpop.f32.mrb[50].mxu0  ;;  %v3198_v29 = vpop.f32.mrb[50].mxu1 }
 0x14d   : > { %3425 = vst [vmem:[#allocation4_spill] sm:$0xff] %v3196_v47  ;;  %3426 = vst [vmem:[#allocation5_spill] sm:$0xff] %v3198_v29  ;;  %v2145_v18 = vpop.f32.mrb[51].mxu0  ;;  %v2236_v42 = vpop.f32.mrb[51].mxu1 }
 0x150   : > { %v3202_v37 = vpop.f32.mrb[52].mxu0  ;;  %v3204_v8 = vpop.f32.mrb[52].mxu1 }
 0x151   : > { %3427 = vst [vmem:[#allocation6_spill] sm:$0xff] %v3202_v37  ;;  %3428 = vst [vmem:[#allocation7_spill] sm:$0xff] %v3204_v8  ;;  %v2148_v3 = vpop.f32.mrb[53].mxu0  ;;  %v2239_v32 = vpop.f32.mrb[53].mxu1  ;;  %v3433_v8 = vmax.f32 %v3012_v51, %v3014_v52 }
 0x154   : > { %v3208_v27 = vpop.f32.mrb[54].mxu0  ;;  %v3210_v55 = vpop.f32.mrb[54].mxu1 }
 0x155   : > { %3429 = vst [vmem:[#allocation8_spill] sm:$0xff] %v3208_v27  ;;  %3430 = vst [vmem:[#allocation9_spill] sm:$0xff] %v3210_v55  ;;  %v2151_v53 = vpop.f32.mrb[55].mxu0  ;;  %v2242_v5 = vpop.f32.mrb[55].mxu1 }
 0x156   : > { %v3226_v53 = vld [vmem:[%s3409_s2] ss:$0 sm:$0xff] }
 0x158   : > { %v3214_v18 = vpop.f32.mrb[56].mxu0  ;;  %v3216_v42 = vpop.f32.mrb[56].mxu1 }
 0x159   : > { %3431 = vst [vmem:[#allocation10_spill] sm:$0xff] %v3214_v18  ;;  %3432 = vst [vmem:[#allocation11_spill] sm:$0xff] %v3216_v42  ;;  %v2154_v47 = vpop.f32.mrb[57].mxu0  ;;  %v2245_v11 = vpop.f32.mrb[57].mxu1 }
 0x15a   : > { %v3434_v11 = vmax.f32 %v3026_v58, %v3028_v59 }
 0x15c   : > { %v1043_v3 = vpop.f32.mrb[58].mxu0  ;;  %v1399_v32 = vpop.f32.mrb[58].mxu1 }
 0x15d   : > { %v1187_v37 = vmax.f32 %v3433_v8, %v1043_v3  ;;  %v2252_v48 = vpop.f32.mrb[59].mxu0  ;;  %v2343_v63 = vpop.f32.mrb[59].mxu1  ;;  %v3435_v3 = vmax.f32 %v3040_v1, %v3042_v2 }
 0x15f   : > { %v1543_v5 = vmax.f32 %v1187_v37, %v1399_v32 }
 0x160   : > { %v1048_v60 = vpop.f32.mrb[60].mxu0  ;;  %v1404_v55 = vpop.f32.mrb[60].mxu1 }
 0x161   : > { %v1579_v47 = vadd.f32 %v3226_v53, %v1543_v5  ;;  %v1188_v29 = vmax.f32 %v3434_v11, %v1048_v60  ;;  %v2255_v42 = vpop.f32.mrb[61].mxu0  ;;  %v2346_v51 = vpop.f32.mrb[61].mxu1  ;;  %v3436_v60 = vmax.f32 %v3054_v9, %v3056_v10  ;;  %v3437_v9 = vmax.f32 %v3068_v16, %v3070_v17 }
 0x163   : > { %2458 = vtanh.f32 %v1579_v47  ;;  %v1544_v52 = vmax.f32 %v1188_v29, %v1404_v55 }
 0x164   : > { %v1053_v63 = vpop.f32.mrb[62].mxu0  ;;  %v1409_v48 = vpop.f32.mrb[62].mxu1 }
 0x165   : > { %v1580_v8 = vadd.f32 %v3226_v53, %v1544_v52  ;;  %v1189_v37 = vmax.f32 %v3435_v3, %v1053_v63  ;;  %v2258_v32 = vpop.f32.mrb[63].mxu0  ;;  %v2349_v18 = vpop.f32.mrb[63].mxu1 }
 0x167   : > { %2460 = vtanh.f32 %v1580_v8  ;;  %v1545_v5 = vmax.f32 %v1189_v37, %v1409_v48  ;;  %v3438_v37 = vmax.f32 %v3076_v21, %v3078_v22 }
 0x168   : > { %v1058_v27 = vpop.f32.mrb[64].mxu0  ;;  %v1414_v58 = vpop.f32.mrb[64].mxu1 }
 0x169   : > { %v1581_v59 = vadd.f32 %v3226_v53, %v1545_v5  ;;  %v1190_v29 = vmax.f32 %v3436_v60, %v1058_v27  ;;  %v2261_v55 = vpop.f32.mrb[65].mxu0  ;;  %v2352_v42 = vpop.f32.mrb[65].mxu1 }
 0x16a   : > { %v3439_v55 = vmax.f32 %v3082_v25, %v3084_v26 }
 0x16b   : > { %2462 = vtanh.f32 %v1581_v59  ;;  %v1546_v1 = vmax.f32 %v1190_v29, %v1414_v58 }
 0x16c   : > { %v1063_v2 = vpop.f32.mrb[66].mxu0  ;;  %v1419_v18 = vpop.f32.mrb[66].mxu1 }
 0x16d   : > { %v2459_v47 = vpop.eup %2458  ;;  %v1582_v11 = vadd.f32 %v3226_v53, %v1546_v1  ;;  %v1191_v10 = vmax.f32 %v3437_v9, %v1063_v2  ;;  %v2264_v27 = vpop.f32.mrb[67].mxu0  ;;  %v3440_v9 = vmax.f32 %v3088_v30, %v3090_v31 }
 0x16e   : > { %v2355_v51 = vpop.f32.mrb[67].mxu1  ;;  %1638 = vst.msk [vmem:[%s3244_s27] sm:$0xff] %vm1637_vm5, %v2459_v47 }
 0x16f   : > { %2464 = vtanh.f32 %v1582_v11  ;;  %v1547_v52 = vmax.f32 %v1191_v10, %v1419_v18 }
 0x170   : > { %v1068_v63 = vpop.f32.mrb[68].mxu0  ;;  %v1424_v48 = vpop.f32.mrb[68].mxu1 }
 0x171   : > { %v2461_v8 = vpop.eup %2460  ;;  %v1583_v3 = vadd.f32 %v3226_v53, %v1547_v52  ;;  %v1192_v32 = vmax.f32 %v3438_v37, %v1068_v63  ;;  %v2267_v5 = vpop.f32.mrb[69].mxu0 }
 0x172   : > { %v2358_v58 = vpop.f32.mrb[69].mxu1  ;;  %1639 = vst.msk [vmem:[%s3244_s27 + $0x8] sm:$0xff] %vm1637_vm5, %v2461_v8  ;;  %v3441_v8 = vmax.f32 %v3094_v35, %v3096_v36 }
 0x173   : > { %2466 = vtanh.f32 %v1583_v3  ;;  %v1548_v16 = vmax.f32 %v1192_v32, %v1424_v48 }
 0x174   : > { %v1073_v17 = vpop.f32.mrb[70].mxu0  ;;  %v1429_v59 = vpop.f32.mrb[70].mxu1 }
 0x175   : > { %v2463_v60 = vpop.eup %2462  ;;  %v1584_v29 = vadd.f32 %v3226_v53, %v1548_v16  ;;  %v1193_v42 = vmax.f32 %v3439_v55, %v1073_v17  ;;  %v2270_v1 = vpop.f32.mrb[71].mxu0  ;;  %v3442_v17 = vmax.f32 %v3100_v40, %v3102_v41 }
 0x176   : > { %v2361_v2 = vpop.f32.mrb[71].mxu1  ;;  %1640 = vst.msk [vmem:[%s3244_s27 + $0x10] sm:$0xff] %vm1637_vm5, %v2463_v60 }
 0x177   : > { %2468 = vtanh.f32 %v1584_v29  ;;  %v1549_v21 = vmax.f32 %v1193_v42, %v1429_v59  ;;  %v3443_v2 = vmax.f32 %v3106_v45, %v3108_v46 }
 0x178   : > { %v1078_v22 = vpop.f32.mrb[72].mxu0  ;;  %v1434_v18 = vpop.f32.mrb[72].mxu1 }
 0x179   : > { %v2465_v47 = vpop.eup %2464  ;;  %v1585_v11 = vadd.f32 %v3226_v53, %v1549_v21  ;;  %v1194_v10 = vmax.f32 %v3440_v9, %v1078_v22  ;;  %v2273_v27 = vpop.f32.mrb[73].mxu0 }
 0x17a   : > { %v2364_v51 = vpop.f32.mrb[73].mxu1  ;;  %1641 = vst.msk [vmem:[%s3244_s27 + $0x18] sm:$0xff] %vm1637_vm5, %v2465_v47 }
 0x17b   : > { %2470 = vtanh.f32 %v1585_v11  ;;  %v1550_v25 = vmax.f32 %v1194_v10, %v1434_v18  ;;  %v3444_v10 = vmax.f32 %v3112_v50, %v3114_v54 }
 0x17c   : > { %v1083_v26 = vpop.f32.mrb[74].mxu0  ;;  %v1439_v52 = vpop.f32.mrb[74].mxu1 }
 0x17d   : > { %v2467_v63 = vpop.eup %2466  ;;  %v1586_v48 = vadd.f32 %v3226_v53, %v1550_v25  ;;  %v1195_v3 = vmax.f32 %v3441_v8, %v1083_v26  ;;  %v2276_v37 = vpop.f32.mrb[75].mxu0 }
 0x17e   : > { %v2367_v32 = vpop.f32.mrb[75].mxu1  ;;  %1642 = vst.msk [vmem:[%s3244_s27 + $0x20] sm:$0xff] %vm1637_vm5, %v2467_v63 }
 0x17f   : > { %2472 = vtanh.f32 %v1586_v48  ;;  %v1551_v30 = vmax.f32 %v1195_v3, %v1439_v52  ;;  %v3445_v48 = vmax.f32 %v3118_v61, %v3120_v62 }
 0x180   : > { %v1088_v31 = vpop.f32.mrb[76].mxu0  ;;  %v1444_v5 = vpop.f32.mrb[76].mxu1 }
 0x181   : > { %v2469_v58 = vpop.eup %2468  ;;  %v1587_v16 = vadd.f32 %v3226_v53, %v1551_v30  ;;  %v1196_v59 = vmax.f32 %v3442_v17, %v1088_v31  ;;  %v2279_v60 = vpop.f32.mrb[77].mxu0 }
 0x182   : > { %v2370_v29 = vpop.f32.mrb[77].mxu1  ;;  %1643 = vst.msk [vmem:[%s3244_s27 + $0x28] sm:$0xff] %vm1637_vm5, %v2469_v58 }
 0x183   : > { %2474 = vtanh.f32 %v1587_v16  ;;  %v1552_v35 = vmax.f32 %v1196_v59, %v1444_v5  ;;  %v3446_v5 = vmax.f32 %v3124_v6, %v3126_v7 }
 0x184   : > { %v1093_v36 = vpop.f32.mrb[78].mxu0  ;;  %v1449_v55 = vpop.f32.mrb[78].mxu1 }
 0x185   : > { %v2471_v42 = vpop.eup %2470  ;;  %v1588_v1 = vadd.f32 %v3226_v53, %v1552_v35  ;;  %v1197_v21 = vmax.f32 %v3443_v2, %v1093_v36  ;;  %v2282_v22 = vpop.f32.mrb[79].mxu0  ;;  %v3447_v35 = vmax.f32 %v3130_v14, %v3132_v15 }
 0x186   : > { %v2373_v18 = vpop.f32.mrb[79].mxu1  ;;  %1644 = vst.msk [vmem:[%s3244_s27 + $0x30] sm:$0xff] %vm1637_vm5, %v2471_v42  ;;  %v3448_v22 = vmax.f32 %v3136_v24, %v3138_v28 }
 0x187   : > { %2476 = vtanh.f32 %v1588_v1  ;;  %v1553_v40 = vmax.f32 %v1197_v21, %v1449_v55 }
 0x188   : > { %v1098_v41 = vpop.f32.mrb[80].mxu0  ;;  %v1454_v47 = vpop.f32.mrb[80].mxu1 }
 0x189   : > { %v2473_v11 = vpop.eup %2472  ;;  %v1589_v9 = vadd.f32 %v3226_v53, %v1553_v40  ;;  %v1198_v27 = vmax.f32 %v3444_v10, %v1098_v41  ;;  %v2285_v51 = vpop.f32.mrb[81].mxu0  ;;  %v3449_v10 = vmax.f32 %v3142_v38, %v3144_v39 }
 0x18a   : > { %v2376_v25 = vpop.f32.mrb[81].mxu1  ;;  %1645 = vst.msk [vmem:[%s3244_s27 + $0x38] sm:$0xff] %vm1637_vm5, %v2473_v11 }
 0x18b   : > { %2478 = vtanh.f32 %v1589_v9  ;;  %v1554_v45 = vmax.f32 %v1198_v27, %v1454_v47 }
 0x18c   : > { %v1103_v46 = vpop.f32.mrb[82].mxu0  ;;  %v1459_v26 = vpop.f32.mrb[82].mxu1 }
 0x18d   : > { %v2475_v52 = vpop.eup %2474  ;;  %v1590_v63 = vadd.f32 %v3226_v53, %v1554_v45  ;;  %v1199_v8 = vmax.f32 %v3445_v48, %v1103_v46  ;;  %v2288_v3 = vpop.f32.mrb[83].mxu0 }
 0x18e   : > { %v2379_v37 = vpop.f32.mrb[83].mxu1  ;;  %1646 = vst.msk [vmem:[%s3244_s27 + $0x40] sm:$0xff] %vm1637_vm5, %v2475_v52  ;;  %v3450_v52 = vmax.f32 %v3148_v49, %v3150_v56 }
 0x18f   : > { %2480 = vtanh.f32 %v1590_v63  ;;  %v1555_v50 = vmax.f32 %v1199_v8, %v1459_v26 }
 0x190   : > { %v1108_v54 = vpop.f32.mrb[84].mxu0  ;;  %v1464_v32 = vpop.f32.mrb[84].mxu1 }
 0x191   : > { %v2477_v30 = vpop.eup %2476  ;;  %v1591_v31 = vadd.f32 %v3226_v53, %v1555_v50  ;;  %v1200_v58 = vmax.f32 %v3446_v5, %v1108_v54  ;;  %v2291_v16 = vpop.f32.mrb[85].mxu0  ;;  %v3451_v54 = vmax.f32 %v3154_v12, %v3156_v13 }
 0x192   : > { %v2382_v17 = vpop.f32.mrb[85].mxu1  ;;  %1647 = vst.msk [vmem:[%s3244_s27 + $0x48] sm:$0xff] %vm1637_vm5, %v2477_v30 }
 0x193   : > { %2482 = vtanh.f32 %v1591_v31  ;;  %v1556_v61 = vmax.f32 %v1200_v58, %v1464_v32  ;;  %v3452_v17 = vmax.f32 %v3160_v34, %v3162_v44 }
 0x194   : > { %v1113_v62 = vpop.f32.mrb[86].mxu0  ;;  %v1469_v59 = vpop.f32.mrb[86].mxu1 }
 0x195   : > { %v2479_v60 = vpop.eup %2478  ;;  %v1592_v29 = vadd.f32 %v3226_v53, %v1556_v61  ;;  %v1201_v36 = vmax.f32 %v3447_v35, %v1113_v62  ;;  %v2294_v55 = vpop.f32.mrb[87].mxu0 }
 0x196   : > { %v2385_v42 = vpop.f32.mrb[87].mxu1  ;;  %1648 = vst.msk [vmem:[%s3244_s27 + $0x50] sm:$0xff] %vm1637_vm5, %v2479_v60 }
 0x197   : > { %2484 = vtanh.f32 %v1592_v29  ;;  %v1557_v6 = vmax.f32 %v1201_v36, %v1469_v59  ;;  %v3453_v36 = vmax.f32 %v3166_v0, %v3168_v4 }
 0x198   : > { %v1118_v7 = vpop.f32.mrb[88].mxu0  ;;  %v1474_v1 = vpop.f32.mrb[88].mxu1 }
 0x199   : > { %v2481_v2 = vpop.eup %2480  ;;  %v1593_v21 = vadd.f32 %v3226_v53, %v1557_v6  ;;  %v1202_v18 = vmax.f32 %v3448_v22, %v1118_v7  ;;  %v2297_v40 = vpop.f32.mrb[89].mxu0 }
 0x19a   : > { %v2388_v41 = vpop.f32.mrb[89].mxu1  ;;  %1649 = vst.msk [vmem:[%s3244_s27 + $0x58] sm:$0xff] %vm1637_vm5, %v2481_v2 }
 0x19b   : > { %2486 = vtanh.f32 %v1593_v21  ;;  %v1558_v14 = vmax.f32 %v1202_v18, %v1474_v1  ;;  %v3454_v21 = vmax.f32 %v3172_v23, %v3174_v33 }
 0x19c   : > { %v1123_v15 = vpop.f32.mrb[90].mxu0  ;;  %v1479_v47 = vpop.f32.mrb[90].mxu1 }
 0x19d   : > { %v2483_v11 = vpop.eup %2482  ;;  %v1594_v9 = vadd.f32 %v3226_v53, %v1558_v14  ;;  %v1203_v27 = vmax.f32 %v3449_v10, %v1123_v15  ;;  %v2300_v51 = vpop.f32.mrb[91].mxu0 }
 0x19e   : > { %v2391_v25 = vpop.f32.mrb[91].mxu1  ;;  %1650 = vst.msk [vmem:[%s3244_s27 + $0x60] sm:$0xff] %vm1637_vm5, %v2483_v11 }
 0x19f   : > { %2488 = vtanh.f32 %v1594_v9  ;;  %v1559_v24 = vmax.f32 %v1203_v27, %v1479_v47  ;;  %v3455_v47 = vmax.f32 %v3178_v43, %v3180_v57 }
 0x1a0   : > { %v1128_v28 = vpop.f32.mrb[92].mxu0  ;;  %v1484_v45 = vpop.f32.mrb[92].mxu1 }
 0x1a1   : > { %v2485_v46 = vpop.eup %2484  ;;  %v1595_v26 = vadd.f32 %v3226_v53, %v1559_v24  ;;  %v1204_v63 = vmax.f32 %v3450_v52, %v1128_v28  ;;  %v2303_v48 = vpop.f32.mrb[93].mxu0  ;;  %v3456_v24 = vmax.f32 %v3184_v19, %v3186_v20 }
 0x1a2   : > { %v2394_v8 = vpop.f32.mrb[93].mxu1  ;;  %1651 = vst.msk [vmem:[%s3244_s27 + $0x68] sm:$0xff] %vm1637_vm5, %v2485_v46  ;;  %v3457_v48 = vld [vmem:[#allocation2_spill] sm:$0xff] }
 0x1a3   : > { %2490 = vtanh.f32 %v1595_v26  ;;  %v1560_v38 = vmax.f32 %v1204_v63, %v1484_v45  ;;  %v3458_v8 = vld [vmem:[#allocation3_spill] sm:$0xff] }
 0x1a4   : > { %v1133_v39 = vpop.f32.mrb[94].mxu0  ;;  %v1489_v3 = vpop.f32.mrb[94].mxu1 }
 0x1a5   : > { %v2487_v37 = vpop.eup %2486  ;;  %v1596_v50 = vadd.f32 %v3226_v53, %v1560_v38  ;;  %v1205_v32 = vmax.f32 %v3451_v54, %v1133_v39  ;;  %v2306_v30 = vpop.f32.mrb[95].mxu0  ;;  %v3459_v38 = vmax.f32 %v3457_v48, %v3458_v8 }
 0x1a6   : > { %v2397_v31 = vpop.f32.mrb[95].mxu1  ;;  %1652 = vst.msk [vmem:[%s3244_s27 + $0x70] sm:$0xff] %vm1637_vm5, %v2487_v37  ;;  %v3460_v30 = vld [vmem:[#allocation4_spill] sm:$0xff] }
 0x1a7   : > { %2492 = vtanh.f32 %v1596_v50  ;;  %v1561_v49 = vmax.f32 %v1205_v32, %v1489_v3  ;;  %v3461_v31 = vld [vmem:[#allocation5_spill] sm:$0xff] }
 0x1a8   : > { %v1138_v56 = vpop.f32.mrb[96].mxu0  ;;  %v1494_v5 = vpop.f32.mrb[96].mxu1 }
 0x1a9   : > { %v2489_v58 = vpop.eup %2488  ;;  %v1597_v16 = vadd.f32 %v3226_v53, %v1561_v49  ;;  %v1206_v61 = vmax.f32 %v3452_v17, %v1138_v56  ;;  %v2309_v62 = vpop.f32.mrb[97].mxu0  ;;  %v3462_v49 = vmax.f32 %v3460_v30, %v3461_v31 }
 0x1aa   : > { %v2400_v59 = vpop.f32.mrb[97].mxu1  ;;  %1653 = vst.msk [vmem:[%s3244_s27 + $0x78] sm:$0xff] %vm1637_vm5, %v2489_v58 }
 0x1ab   : > { %2494 = vtanh.f32 %v1597_v16  ;;  %v1562_v12 = vmax.f32 %v1206_v61, %v1494_v5 }
 0x1ac   : > { %v1143_v13 = vpop.f32.mrb[98].mxu0  ;;  %v1499_v60 = vpop.f32.mrb[98].mxu1 }
 0x1ad   : > { %v2491_v29 = vpop.eup %2490  ;;  %v1598_v35 = vadd.f32 %v3226_v53, %v1562_v12  ;;  %v1207_v55 = vmax.f32 %v3453_v36, %v1143_v13  ;;  %v2312_v42 = vpop.f32.mrb[99].mxu0  ;;  %v3463_v12 = vld [vmem:[#allocation6_spill] sm:$0xff]  ;;  %v3464_v13 = vld [vmem:[#allocation7_spill] sm:$0xff] }
 0x1ae   : > { %v2403_v6 = vpop.f32.mrb[99].mxu1  ;;  %1654 = vst.msk [vmem:[%s3244_s27 + $0x80] sm:$0xff] %vm1637_vm5, %v2491_v29 }
 0x1af   : > { %2496 = vtanh.f32 %v1598_v35  ;;  %v1563_v34 = vmax.f32 %v1207_v55, %v1499_v60  ;;  %v3465_v60 = vmax.f32 %v3463_v12, %v3464_v13 }
 0x1b0   : > { %v1148_v44 = vpop.f32.mrb[100].mxu0  ;;  %v1504_v7 = vpop.f32.mrb[100].mxu1 }
 0x1b1   : > { %v2493_v1 = vpop.eup %2492  ;;  %v1599_v2 = vadd.f32 %v3226_v53, %v1563_v34  ;;  %v1208_v22 = vmax.f32 %v3454_v21, %v1148_v44  ;;  %v2315_v18 = vpop.f32.mrb[101].mxu0 }
 0x1b2   : > { %v2406_v40 = vpop.f32.mrb[101].mxu1  ;;  %1655 = vst.msk [vmem:[%s3244_s27 + $0x88] sm:$0xff] %vm1637_vm5, %v2493_v1  ;;  %v3467_v1 = vld [vmem:[#allocation9_spill] sm:$0xff] }
 0x1b3   : > { %2498 = vtanh.f32 %v1599_v2  ;;  %v1564_v0 = vmax.f32 %v1208_v22, %v1504_v7  ;;  %v3466_v7 = vld [vmem:[#allocation8_spill] sm:$0xff] }
 0x1b4   : > { %v1153_v4 = vpop.f32.mrb[102].mxu0  ;;  %v1509_v41 = vpop.f32.mrb[102].mxu1  ;;  %v3468_v2 = vmax.f32 %v3466_v7, %v3467_v1 }
 0x1b5   : > { %v2495_v14 = vpop.eup %2494  ;;  %v1600_v15 = vadd.f32 %v3226_v53, %v1564_v0  ;;  %v1209_v11 = vmax.f32 %v3455_v47, %v1153_v4  ;;  %v2318_v9 = vpop.f32.mrb[103].mxu0  ;;  %v3470_v47 = vld [vmem:[#allocation11_spill] sm:$0xff] }
 0x1b6   : > { %v2409_v10 = vpop.f32.mrb[103].mxu1  ;;  %1656 = vst.msk [vmem:[%s3244_s27 + $0x90] sm:$0xff] %vm1637_vm5, %v2495_v14 }
 0x1b7   : > { %2500 = vtanh.f32 %v1600_v15  ;;  %v1565_v23 = vmax.f32 %v1209_v11, %v1509_v41  ;;  %v3469_v15 = vld [vmem:[#allocation10_spill] sm:$0xff] }
 0x1b8   : > { %v1158_v33 = vpop.f32.mrb[104].mxu0  ;;  %v1514_v27 = vpop.f32.mrb[104].mxu1  ;;  %v3471_v11 = vmax.f32 %v3469_v15, %v3470_v47 }
 0x1b9   : > { %v2497_v51 = vpop.eup %2496  ;;  %v1601_v25 = vadd.f32 %v3226_v53, %v1565_v23  ;;  %v1210_v28 = vmax.f32 %v3456_v24, %v1158_v33  ;;  %v2321_v45 = vpop.f32.mrb[105].mxu0 }
 0x1ba   : > { %v2412_v46 = vpop.f32.mrb[105].mxu1  ;;  %1657 = vst.msk [vmem:[%s3244_s27 + $0x98] sm:$0xff] %vm1637_vm5, %v2497_v51 }
 0x1bb   : > { %2502 = vtanh.f32 %v1601_v25  ;;  %v1566_v43 = vmax.f32 %v1210_v28, %v1514_v27 }
 0x1bc   : > { %v1163_v57 = vpop.f32.mrb[106].mxu0  ;;  %v1519_v26 = vpop.f32.mrb[106].mxu1 }
 0x1bd   : > { %v2499_v52 = vpop.eup %2498  ;;  %v1602_v63 = vadd.f32 %v3226_v53, %v1566_v43  ;;  %v1211_v39 = vmax.f32 %v3459_v38, %v1163_v57  ;;  %v2324_v3 = vpop.f32.mrb[107].mxu0 }
 0x1be   : > { %v2415_v37 = vpop.f32.mrb[107].mxu1  ;;  %1658 = vst.msk [vmem:[%s3244_s27 + $0xa0] sm:$0xff] %vm1637_vm5, %v2499_v52 }
 0x1bf   : > { %2504 = vtanh.f32 %v1602_v63  ;;  %v1567_v19 = vmax.f32 %v1211_v39, %v1519_v26 }
 0x1c0   : > { %v1168_v20 = vpop.f32.mrb[108].mxu0  ;;  %v1524_v50 = vpop.f32.mrb[108].mxu1 }
 0x1c1   : > { %v2501_v54 = vpop.eup %2500  ;;  %v1603_v32 = vadd.f32 %v3226_v53, %v1567_v19  ;;  %v1212_v56 = vmax.f32 %v3462_v49, %v1168_v20  ;;  %v2327_v5 = vpop.f32.mrb[109].mxu0 }
 0x1c2   : > { %v2418_v58 = vpop.f32.mrb[109].mxu1  ;;  %1659 = vst.msk [vmem:[%s3244_s27 + $0xa8] sm:$0xff] %vm1637_vm5, %v2501_v54 }
 0x1c3   : > { %2506 = vtanh.f32 %v1603_v32  ;;  %v1568_v16 = vmax.f32 %v1212_v56, %v1524_v50 }
 0x1c4   : > { %v1173_v17 = vpop.f32.mrb[110].mxu0  ;;  %v1529_v61 = vpop.f32.mrb[110].mxu1 }
 0x1c5   : > { %v2503_v62 = vpop.eup %2502  ;;  %v1604_v59 = vadd.f32 %v3226_v53, %v1568_v16  ;;  %v1213_v29 = vmax.f32 %v3465_v60, %v1173_v17  ;;  %v2330_v35 = vpop.f32.mrb[111].mxu0 }
 0x1c6   : > { %v2421_v36 = vpop.f32.mrb[111].mxu1  ;;  %1660 = vst.msk [vmem:[%s3244_s27 + $0xb0] sm:$0xff] %vm1637_vm5, %v2503_v62 }
 0x1c7   : > { %2508 = vtanh.f32 %v1604_v59  ;;  %v1569_v55 = vmax.f32 %v1213_v29, %v1529_v61 }
 0x1c8   : > { %v1178_v42 = vpop.f32.mrb[112].mxu0  ;;  %v1534_v6 = vpop.f32.mrb[112].mxu1 }
 0x1c9   : > { %v2505_v34 = vpop.eup %2504  ;;  %v1605_v44 = vadd.f32 %v3226_v53, %v1569_v55  ;;  %v1214_v21 = vmax.f32 %v3468_v2, %v1178_v42  ;;  %v2333_v22 = vpop.f32.mrb[113].mxu0 }
 0x1ca   : > { %v2424_v18 = vpop.f32.mrb[113].mxu1  ;;  %1661 = vst.msk [vmem:[%s3244_s27 + $0xb8] sm:$0xff] %vm1637_vm5, %v2505_v34 }
 0x1cb   : > { %2510 = vtanh.f32 %v1605_v44  ;;  %v1570_v40 = vmax.f32 %v1214_v21, %v1534_v6 }
 0x1cc   : > { %v1183_v0 = vpop.f32.mrb[114].mxu0  ;;  %v1539_v4 = vpop.f32.mrb[114].mxu1 }
 0x1cd   : > { %v2507_v41 = vpop.eup %2506  ;;  %v1606_v14 = vadd.f32 %v3226_v53, %v1570_v40  ;;  %v1215_v9 = vmax.f32 %v3471_v11, %v1183_v0  ;;  %v2336_v10 = vpop.f32.mrb[115].mxu0 }
 0x1ce   : > { %v2427_v23 = vpop.f32.mrb[115].mxu1  ;;  %1662 = vst.msk [vmem:[%s3244_s27 + $0xc0] sm:$0xff] %vm1637_vm5, %v2507_v41 }
 0x1cf   : > { %2512 = vtanh.f32 %v1606_v14  ;;  %v1571_v33 = vmax.f32 %v1215_v9, %v1539_v4 }
 0x1d1   : > { %v2509_v27 = vpop.eup %2508  ;;  %v1607_v51 = vadd.f32 %v3226_v53, %v1571_v33 }
 0x1d2   : > { %1663 = vst.msk [vmem:[%s3244_s27 + $0xc8] sm:$0xff] %vm1637_vm5, %v2509_v27 }
 0x1d3   : > { %2514 = vtanh.f32 %v1607_v51 }
 0x1d5   : > { %v2511_v25 = vpop.eup %2510 }
 0x1d6   : > { %1664 = vst.msk [vmem:[%s3244_s27 + $0xd0] sm:$0xff] %vm1637_vm5, %v2511_v25 }
 0x1d9   : > { %v2513_v24 = vpop.eup %2512 }
 0x1da   : > { %1665 = vst.msk [vmem:[%s3244_s27 + $0xd8] sm:$0xff] %vm1637_vm5, %v2513_v24 }
 0x1dd   : > { %v2515_v28 = vpop.eup %2514 }
 0x1de   : > { %1667 = vst.msk [vmem:[%s3244_s27 + $0xe0] sm:$0x1] %vm1666_vm6, %v2515_v28 }
 0x1df PF: > { %s13_s12 = sadd.s32 1, %s2522_s12  }
 0x1e0   : > { %p10_p4 = scmp.ge.s32.totalorder %s13_s12, 4  }
 0x1e2   :  { %12 = sbr.rel (!%p10_p4) target bundleno = 1 (0x1), region = 65 }

// kernel: cnn_net_forward.5
= control target key start
LH: loop header
LB: loop body
LE: loop exit
PB: predicated region body
PF: predicated region fallthrough
CT: control target
= control target key end

     0   :  { %v408_v3 = vmov 0.0|0.0   ;;  %vm203_vm0 = vcmask 588800   ;;  %vm277_vm1 = vcmask 80896   ;;  %s737_s1 = inlined_call_operand.vmem [shape: f32[256,200], index: 1, kind: input, shape index: {}]   ;;  %s738_s0 = inlined_call_operand.vmem [shape: f32[8,256], index: 0, kind: input, shape index: {}]   ;;  %s739_s3 = inlined_call_operand.vmem [shape: f32[200,10], index: 3, kind: input, shape index: {}]   ;;  %s740_s2 = inlined_call_operand.vmem [shape: f32[1,200], index: 2, kind: input, shape index: {}]   ;;  %s741_s4 = inlined_call_operand.vmem [shape: f32[1,10], index: 4, kind: input, shape index: {}]   ;;  %s742_s5 = inlined_call_operand.vmem [shape: f32[8,10], index: 5, kind: output, shape index: {}]  }
   0x1   :  { %v23_v0 = vld [vmem:[%s737_s1 + $0x8] sm:$0xff]  ;;  %v25_v1 = vld [vmem:[%s737_s1 + $0x18] sm:$0xff]  ;;  %v22_v2 = vld [vmem:[%s737_s1] sm:$0xff]  ;;  %362 = vmatprep.subr.bf16.mxu1 %v408_v3 }
   0x2   :  { %v298_v4 = vpack.c.bf16 %v25_v1, %v23_v0  ;;  %v24_v5 = vld [vmem:[%s737_s1 + $0x10] sm:$0xff]  ;;  %v27_v6 = vld [vmem:[%s737_s1 + $0x28] sm:$0xff]  ;;  %v29_v7 = vld [vmem:[%s737_s1 + $0x38] sm:$0xff] }
   0x3   :  { %v300_v8 = vpack.c.bf16 %v24_v5, %v22_v2  ;;  %v302_v9 = vpack.c.bf16 %v29_v7, %v27_v6  ;;  %v26_v10 = vld [vmem:[%s737_s1 + $0x20] sm:$0xff]  ;;  %v28_v11 = vld [vmem:[%s737_s1 + $0x30] sm:$0xff]  ;;  %v31_v12 = vld [vmem:[%s737_s1 + $0x48] sm:$0xff] }
   0x4   :  { %299 = vmatprep.subr.bf16.mxu0 %v298_v4  ;;  %v33_v13 = vld [vmem:[%s737_s1 + $0x58] sm:$0xff]  ;;  %v304_v14 = vpack.c.bf16 %v28_v11, %v26_v10  ;;  %v30_v16 = vld [vmem:[%s737_s1 + $0x40] sm:$0xff]  ;;  %v32_v17 = vld [vmem:[%s737_s1 + $0x50] sm:$0xff] }
   0x5   :  { %301 = vmatpush1.bf16.msra.mxu0 %v300_v8  ;;  %v306_v15 = vpack.c.bf16 %v33_v13, %v31_v12  ;;  %v35_v18 = vld [vmem:[%s737_s1 + $0x68] sm:$0xff]  ;;  %v37_v19 = vld [vmem:[%s737_s1 + $0x78] sm:$0xff]  ;;  %v308_v20 = vpack.c.bf16 %v32_v17, %v30_v16  ;;  %v34_v22 = vld [vmem:[%s737_s1 + $0x60] sm:$0xff] }
   0x6   :  { %303 = vmatprep.subr.bf16.mxu0 %v302_v9  ;;  %v310_v21 = vpack.c.bf16 %v37_v19, %v35_v18  ;;  %v36_v23 = vld [vmem:[%s737_s1 + $0x70] sm:$0xff]  ;;  %v39_v24 = vld [vmem:[%s737_s1 + $0x88] sm:$0xff]  ;;  %v41_v25 = vld [vmem:[%s737_s1 + $0x98] sm:$0xff] }
   0x7   :  { %v312_v26 = vpack.c.bf16 %v36_v23, %v34_v22  ;;  %v314_v27 = vpack.c.bf16 %v41_v25, %v39_v24  ;;  %v38_v28 = vld [vmem:[%s737_s1 + $0x80] sm:$0xff]  ;;  %v40_v29 = vld [vmem:[%s737_s1 + $0x90] sm:$0xff]  ;;  %v43_v30 = vld [vmem:[%s737_s1 + $0xa8] sm:$0xff] }
   0x8   :  { %v45_v31 = vld [vmem:[%s737_s1 + $0xb8] sm:$0xff]  ;;  %v316_v32 = vpack.c.bf16 %v40_v29, %v38_v28  ;;  %v42_v34 = vld [vmem:[%s737_s1 + $0xa0] sm:$0xff]  ;;  %v44_v35 = vld [vmem:[%s737_s1 + $0xb0] sm:$0xff] }
   0x9   :  { %305 = vmatpush1.bf16.msra.mxu0 %v304_v14  ;;  %v318_v33 = vpack.c.bf16 %v45_v31, %v43_v30  ;;  %v47_v36 = vld [vmem:[%s737_s1 + $0xc8] sm:$0xff]  ;;  %v49_v37 = vld [vmem:[%s737_s1 + $0xd8] sm:$0xff]  ;;  %v320_v38 = vpack.c.bf16 %v44_v35, %v42_v34  ;;  %v46_v39 = vld [vmem:[%s737_s1 + $0xc0] sm:$0xff] }
   0xa   :  { %307 = vmatprep.subr.bf16.mxu0 %v306_v15  ;;  %v48_v40 = vld [vmem:[%s737_s1 + $0xd0] sm:$0xff]  ;;  %v322_v41 = vpack.c.bf16 %v49_v37, %v47_v36  ;;  %v51_v42 = vld [vmem:[%s737_s1 + $0xe8] sm:$0xff]  ;;  %v53_v43 = vld [vmem:[%s737_s1 + $0xf8] sm:$0xff] }
   0xb   :  { %v21_v44 = vld [vmem:[%s738_s0 + $0x8] sm:$0xff]  ;;  %v171_v45 = vld [vmem:[%s739_s3] sm:$0xff]  ;;  %v173_v47 = vld [vmem:[%s739_s3 + $0x10] sm:$0xff]  ;;  %v324_v50 = vpack.c.bf16 %v48_v40, %v46_v39  ;;  %v326_v51 = vpack.c.bf16 %v53_v43, %v51_v42 }
   0xc   :  { %162 = vmatprep.mubr.f32.mxu0 %v21_v44  ;;  %v172_v46 = vld [vmem:[%s739_s3 + $0x8] sm:$0xff]  ;;  %v174_v49 = vld [vmem:[%s739_s3 + $0x18] sm:$0xff]  ;;  %v50_v52 = vld [vmem:[%s737_s1 + $0xe0] sm:$0xff] }
   0xd   :  { %309 = vmatpush1.bf16.msra.mxu0 %v308_v20  ;;  %v363_v48 = vpack.c.bf16 %v172_v46, %v171_v45  ;;  %v52_v53 = vld [vmem:[%s737_s1 + $0xf0] sm:$0xff]  ;;  %v55_v54 = vld [vmem:[%s737_s1 + $0x108] sm:$0xff]  ;;  %v366_v55 = vpack.c.bf16 %v174_v49, %v173_v47  ;;  %v57_v56 = vld [vmem:[%s737_s1 + $0x118] sm:$0xff] }
   0xe   :  { %311 = vmatprep.subr.bf16.mxu0 %v310_v21  ;;  %v175_v57 = vld [vmem:[%s739_s3 + $0x20] sm:$0xff]  ;;  %v176_v58 = vld [vmem:[%s739_s3 + $0x28] sm:$0xff]  ;;  %v328_v59 = vpack.c.bf16 %v52_v53, %v50_v52  ;;  %v330_v60 = vpack.c.bf16 %v57_v56, %v55_v54  ;;  %v56_v62 = vld [vmem:[%s737_s1 + $0x110] sm:$0xff] }
   0xf   :  { %364 = vmatpush1.bf16.msra.mxu1 %v363_v48  ;;  %v54_v61 = vld [vmem:[%s737_s1 + $0x100] sm:$0xff]  ;;  %v59_v63 = vld [vmem:[%s737_s1 + $0x128] sm:$0xff]  ;;  %v369_v0 = vpack.c.bf16 %v176_v58, %v175_v57  ;;  %v61_v1 = vld [vmem:[%s737_s1 + $0x138] sm:$0xff] }
  0x10   :  { %365 = vmatprep.subr.bf16.mxu1 %v408_v3  ;;  %v177_v2 = vld [vmem:[%s739_s3 + $0x30] sm:$0xff]  ;;  %v178_v4 = vld [vmem:[%s739_s3 + $0x38] sm:$0xff]  ;;  %v332_v5 = vpack.c.bf16 %v56_v62, %v54_v61  ;;  %v334_v6 = vpack.c.bf16 %v61_v1, %v59_v63  ;;  %v58_v7 = vld [vmem:[%s737_s1 + $0x120] sm:$0xff] }
  0x11   :  { %313 = vmatpush1.bf16.msra.mxu0 %v312_v26  ;;  %v60_v8 = vld [vmem:[%s737_s1 + $0x130] sm:$0xff]  ;;  %v63_v9 = vld [vmem:[%s737_s1 + $0x148] sm:$0xff]  ;;  %v372_v10 = vpack.c.bf16 %v178_v4, %v177_v2  ;;  %v65_v11 = vld [vmem:[%s737_s1 + $0x158] sm:$0xff] }
  0x12   :  { %315 = vmatprep.subr.bf16.mxu0 %v314_v27  ;;  %v179_v12 = vld [vmem:[%s739_s3 + $0x40] sm:$0xff]  ;;  %v180_v13 = vld [vmem:[%s739_s3 + $0x48] sm:$0xff]  ;;  %v336_v14 = vpack.c.bf16 %v60_v8, %v58_v7  ;;  %v338_v15 = vpack.c.bf16 %v65_v11, %v63_v9  ;;  %v64_v17 = vld [vmem:[%s737_s1 + $0x150] sm:$0xff]  ;;  %v409_v9 = vmov 0.0   ;;  %v88_v11 = vlaneseq }
  0x13   :  { %367 = vmatpush1.bf16.msra.mxu1 %v366_v55  ;;  %v62_v16 = vld [vmem:[%s737_s1 + $0x140] sm:$0xff]  ;;  %v67_v18 = vld [vmem:[%s737_s1 + $0x168] sm:$0xff]  ;;  %v375_v19 = vpack.c.bf16 %v180_v13, %v179_v12  ;;  %v69_v20 = vld [vmem:[%s737_s1 + $0x178] sm:$0xff] }
  0x14   :  { %368 = vmatprep.subr.bf16.mxu1 %v408_v3  ;;  %v181_v21 = vld [vmem:[%s739_s3 + $0x50] sm:$0xff]  ;;  %v182_v22 = vld [vmem:[%s739_s3 + $0x58] sm:$0xff]  ;;  %v340_v23 = vpack.c.bf16 %v64_v17, %v62_v16  ;;  %v342_v24 = vpack.c.bf16 %v69_v20, %v67_v18  ;;  %v66_v25 = vld [vmem:[%s737_s1 + $0x160] sm:$0xff]  ;;  %v89_v12 = vshrl.u32 %v88_v11, 7 }
  0x15   :  { %317 = vmatpush1.bf16.msra.mxu0 %v316_v32  ;;  %v68_v26 = vld [vmem:[%s737_s1 + $0x170] sm:$0xff]  ;;  %v71_v27 = vld [vmem:[%s737_s1 + $0x188] sm:$0xff]  ;;  %v378_v28 = vpack.c.bf16 %v182_v22, %v181_v21  ;;  %v73_v29 = vld [vmem:[%s737_s1 + $0x198] sm:$0xff] }
  0x16   :  { %319 = vmatprep.subr.bf16.mxu0 %v318_v33  ;;  %v183_v30 = vld [vmem:[%s739_s3 + $0x60] sm:$0xff]  ;;  %v184_v31 = vld [vmem:[%s739_s3 + $0x68] sm:$0xff]  ;;  %v344_v32 = vpack.c.bf16 %v68_v26, %v66_v25  ;;  %v346_v33 = vpack.c.bf16 %v73_v29, %v71_v27  ;;  %v72_v35 = vld [vmem:[%s737_s1 + $0x190] sm:$0xff]  ;;  %v90_v13 = vsub.s32 0, %v89_v12 }
  0x17   :  { %370 = vmatpush1.bf16.msra.mxu1 %v369_v0  ;;  %v70_v34 = vld [vmem:[%s737_s1 + $0x180] sm:$0xff]  ;;  %v75_v36 = vld [vmem:[%s737_s1 + $0x1a8] sm:$0xff]  ;;  %v381_v37 = vpack.c.bf16 %v184_v31, %v183_v30  ;;  %v185_v39 = vld [vmem:[%s739_s3 + $0x70] sm:$0xff] }
  0x18   :  { %371 = vmatprep.subr.bf16.mxu1 %v408_v3  ;;  %v186_v40 = vld [vmem:[%s739_s3 + $0x78] sm:$0xff]  ;;  %v74_v43 = vld [vmem:[%s737_s1 + $0x1a0] sm:$0xff]  ;;  %v76_v44 = vld [vmem:[%s737_s1 + $0x1b0] sm:$0xff] }
  0x19   :  { %321 = vmatpush1.bf16.msra.mxu0 %v320_v38  ;;  %v77_v38 = vld [vmem:[%s737_s1 + $0x1b8] sm:$0xff]  ;;  %v79_v45 = vld [vmem:[%s737_s1 + $0x1c8] sm:$0xff]  ;;  %v384_v46 = vpack.c.bf16 %v186_v40, %v185_v39  ;;  %v187_v48 = vld [vmem:[%s739_s3 + $0x80] sm:$0xff] }
  0x1a   :  { %323 = vmatprep.subr.bf16.mxu0 %v322_v41  ;;  %v348_v41 = vpack.c.bf16 %v72_v35, %v70_v34  ;;  %v350_v42 = vpack.c.bf16 %v77_v38, %v75_v36  ;;  %v81_v47 = vld [vmem:[%s737_s1 + $0x1d8] sm:$0xff]  ;;  %v188_v49 = vld [vmem:[%s739_s3 + $0x88] sm:$0xff]  ;;  %v78_v52 = vld [vmem:[%s737_s1 + $0x1c0] sm:$0xff] }
  0x1b   :  { %373 = vmatpush1.bf16.msra.mxu1 %v372_v10  ;;  %v80_v53 = vld [vmem:[%s737_s1 + $0x1d0] sm:$0xff]  ;;  %v387_v54 = vpack.c.bf16 %v188_v49, %v187_v48  ;;  %v83_v55 = vld [vmem:[%s737_s1 + $0x1e8] sm:$0xff]  ;;  %v85_v56 = vld [vmem:[%s737_s1 + $0x1f8] sm:$0xff] }
  0x1c   :  { %374 = vmatprep.subr.bf16.mxu1 %v408_v3  ;;  %v356_v57 = vpack.c.bf16 %v80_v53, %v78_v52  ;;  %v358_v58 = vpack.c.bf16 %v85_v56, %v83_v55  ;;  %v20_v62 = vld [vmem:[%s738_s0] sm:$0xff]  ;;  %v189_v63 = vld [vmem:[%s739_s3 + $0x90] sm:$0xff]  ;;  %v190_v0 = vld [vmem:[%s739_s3 + $0x98] sm:$0xff] }
  0x1d   :  { %325 = vmatpush1.bf16.msra.mxu0 %v324_v50  ;;  %v352_v50 = vpack.c.bf16 %v76_v44, %v74_v43  ;;  %v390_v1 = vpack.c.bf16 %v190_v0, %v189_v63  ;;  %v191_v2 = vld [vmem:[%s739_s3 + $0xa0] sm:$0xff]  ;;  %v192_v4 = vld [vmem:[%s739_s3 + $0xa8] sm:$0xff]  ;;  %v194_v7 = vld [vmem:[%s739_s3 + $0xb8] sm:$0xff] }
  0x1e   :  { %327 = vmatprep.subr.bf16.mxu0 %v326_v51  ;;  %v354_v51 = vpack.c.bf16 %v81_v47, %v79_v45  ;;  %v195_v10 = vld [vmem:[%s739_s3 + $0xc0] sm:$0xff] }
  0x1f   :  { %376 = vmatpush1.bf16.msra.mxu1 %v375_v19 }
  0x20   :  { %377 = vmatprep.subr.bf16.mxu1 %v408_v3 }
  0x21   :  { %329 = vmatpush1.bf16.msra.mxu0 %v328_v59  ;;  %v82_v59 = vld [vmem:[%s737_s1 + $0x1e0] sm:$0xff] }
  0x22   :  { %331 = vmatprep.subr.bf16.mxu0 %v330_v60  ;;  %v84_v60 = vld [vmem:[%s737_s1 + $0x1f0] sm:$0xff] }
  0x23   :  { %379 = vmatpush1.bf16.msra.mxu1 %v378_v28  ;;  %v360_v61 = vpack.c.bf16 %v84_v60, %v82_v59 }
  0x24   :  { %380 = vmatprep.subr.bf16.mxu1 %v408_v3 }
  0x25   :  { %333 = vmatpush1.bf16.msra.mxu0 %v332_v5  ;;  %v193_v5 = vld [vmem:[%s739_s3 + $0xb0] sm:$0xff] }
  0x26   :  { %335 = vmatprep.subr.bf16.mxu0 %v334_v6  ;;  %v393_v6 = vpack.c.bf16 %v192_v4, %v191_v2  ;;  %v396_v8 = vpack.c.bf16 %v194_v7, %v193_v5 }
  0x27   :  { %382 = vmatpush1.bf16.msra.mxu1 %v381_v37 }
  0x28   :  { %383 = vmatprep.subr.bf16.mxu1 %v408_v3 }
  0x29   :  { %337 = vmatpush1.bf16.msra.mxu0 %v336_v14  ;;  %v86_v14 = vld [vmem:[%s740_s2] sm:$0x3] }
  0x2a   :  { %339 = vmatprep.subr.bf16.mxu0 %v338_v15  ;;  %v94_v15 = vsub.s32 1, %v89_v12  ;;  %v91_v16 = vrot.slane %v86_v14, %v90_v13 }
  0x2b   :  { %385 = vmatpush1.bf16.msra.mxu1 %v384_v46 }
  0x2c   :  { %386 = vmatprep.subr.bf16.mxu1 %v408_v3  ;;  %v95_v17 = vrot.slane %v86_v14, %v94_v15 }
  0x2d   :  { %341 = vmatpush1.bf16.msra.mxu0 %v340_v23  ;;  %v296_v23 = vld [vmem:[%s741_s4] ss:$0 sm:$0xff] }
  0x2e   :  { %343 = vmatprep.subr.bf16.mxu0 %v342_v24 }
  0x2f   :  { %388 = vmatpush1.bf16.msra.mxu1 %v387_v54 }
  0x30   :  { %389 = vmatprep.subr.bf16.mxu1 %v408_v3 }
  0x31   :  { %345 = vmatpush1.bf16.msra.mxu0 %v344_v32 }
  0x32   :  { %347 = vmatprep.subr.bf16.mxu0 %v346_v33 }
  0x33   :  { %391 = vmatpush1.bf16.msra.mxu1 %v390_v1 }
  0x34   :  { %392 = vmatprep.subr.bf16.mxu1 %v408_v3 }
  0x35   :  { %349 = vmatpush1.bf16.msra.mxu0 %v348_v41 }
  0x36   :  { %351 = vmatprep.subr.bf16.mxu0 %v350_v42 }
  0x37   :  { %394 = vmatpush1.bf16.msra.mxu1 %v393_v6 }
  0x38   :  { %395 = vmatprep.subr.bf16.mxu1 %v408_v3 }
  0x39   :  { %353 = vmatpush1.bf16.msra.mxu0 %v352_v50 }
  0x3a   :  { %355 = vmatprep.subr.bf16.mxu0 %v354_v51 }
  0x3b   :  { %397 = vmatpush1.bf16.msra.mxu1 %v396_v8 }
  0x3c   :  { %255 = vmatprep.subr.mxu1 %v409_v9 }
  0x3d   :  { %357 = vmatpush1.bf16.msra.mxu0 %v356_v57 }
  0x3e   :  { %359 = vmatprep.subr.bf16.mxu0 %v358_v58 }
  0x3f   :  { %256 = vmatpush1.msra.mxu1 %v195_v10 }
  0x41   :  { %361 = vmatpush1.bf16.msra.mxu0 %v360_v61 }
  0x44   :  { %163 = vmatmul.mubr.f32.vlgmr.msra.gmra.mrb[0].mxu0 %v20_v62 }
 0x117   :  { %v164_v18 = vpop.f32.mrb[0].mxu0 }
 0x118   :  { %v165_v3 = vadd.f32 %v164_v18, %v91_v16  ;;  %v166_v19 = vpop.f32.mrb[1].mxu0 }
 0x119   :  { %v167_v20 = vadd.f32 %v166_v19, %v95_v17 }
 0x11b   :  { %400 = vtanh.f32 %v167_v20 }
 0x11c   :  { %402 = vtanh.f32 %v165_v3 }
 0x125   :  { %v401_v21 = vpop.eup %400 }
 0x126   :  { %v403_v22 = vpop.eup %402  ;;  %297 = vmatprep.mubr.msk.f32.mxu1 %vm203_vm0, %v401_v21 }
 0x127   :  { %272 = vmatmul.mubr.f32.vlgmr.msra.gmra.mrb[0].mxu1 %v403_v22 }
 0x1fa   :  { %v273_v24 = vpop.f32.mrb[0].mxu1 }
 0x1fb   :  { %v274_v25 = vadd.f32 %v296_v23, %v273_v24  ;;  %v275_v26 = vpop.f32.mrb[1].mxu1 }
 0x1fd   :  { %v278_v27 = vsel %vm277_vm1, %v274_v25, -inf }
 0x1fe   :  { %279 = vmax.xlane.f32.xlu0 %v278_v27 }
 0x28b   :  { %v280_v28 = vpop.xlane.xlu0 %279 }
 0x28c   :  { %v281_v29 = vsub.f32 %v274_v25, %v280_v28 }
 0x28e   :  { %v282_v30 = vmul.f32 1.442695, %v281_v29 }
 0x290   :  { %404 = vpow2.f32 %v282_v30 }
 0x29a   :  { %v405_v31 = vpop.eup %404 }
 0x29b   :  { %v284_v32 = vsel %vm277_vm1, %v405_v31, 0.0 }
 0x29c   :  { %285 = vadd.xlane.f32.xlu0 %v284_v32 }
 0x329   :  { %v286_v33 = vpop.xlane.xlu0 %285 }
 0x32a   :  { %406 = vlog2.f32 %v286_v33 }
 0x334   :  { %v407_v34 = vpop.eup %406 }
 0x335   :  { %v288_v35 = vmul.f32 0.6931472, %v407_v34 }
 0x337   :  { %v289_v36 = vadd.f32 %v288_v35, %v280_v28 }
 0x339   :  { %v290_v37 = vsub.f32 %v274_v25, %v289_v36 }
 0x33b   :  { %291 = vst.msk [vmem:[%s742_s5] sm:$0xff] %vm277_vm1, %v290_v37 }

// kernel: cnn_net_forward.4
= control target key start
LH: loop header
LB: loop body
LE: loop exit
PB: predicated region body
PF: predicated region fallthrough
CT: control target
= control target key end

     0   :  { %s6409_s12 = smov 0   ;;  %s9511_s0 = inlined_call_operand.vmem [shape: f32[2,225,64], index: 0, kind: input, shape index: {}]   ;;  %s9512_s1 = inlined_call_operand.vmem [shape: f32[7,448,16], index: 1, kind: input, shape index: {}]   ;;  %s9513_s2 = inlined_call_operand.vmem [shape: f32[1,16], index: 2, kind: input, shape index: {}]   ;;  %s9514_s3 = inlined_call_operand.vmem [shape: f32[2,4,4,16], index: 3, kind: output, shape index: {}]  }
   0x1 LB: > { %s4786_s13 = sadd.s32 4294967295, %s6385_s12   ;;  %p4790_p0 = scmp.ge.s32.totalorder %s6385_s12, 1  ;;  %s6385_s12 = sphi %s6409_s12, %s13_s12  }
   0x2   : > { %p137_p1 = scmp.lt.s32.totalorder %s6385_s12, 3 }
   0x4   : > { %p138_p2 = pnand %p4790_p0, %p137_p1 }
   0x5   : > { %p161_p3 = scmp.lt.s32.totalorder (!%p138_p2), %s4786_s13, 1  ;;  %v4810_v0 = vld [vmem:[%s9512_s1 + $0x240] sm:$0xff] (!%p138_p2)  ;;  %v4811_v1 = vld [vmem:[%s9512_s1 + $0x248] sm:$0xff] (!%p138_p2)  ;;  %v4812_v5 = vld [vmem:[%s9512_s1 + $0x250] sm:$0xff] (!%p138_p2)  ;;  %vm9523_vm0 = vcmask (!%p138_p2), 1042432   ;;  %vm9515_vm1 = vcmask (!%p138_p2), 1046528  }
   0x6   : > { %141 = sbr.rel (%p138_p2) target bundleno = 770 (0x302), region = 32  ;;  %v5677_v2 = vpack.c.bf16 (!%p138_p2), %v4811_v1, %v4810_v0  ;;  %v4794_v3 = vld [vmem:[%s9512_s1 + $0x1c0] sm:$0xff] (!%p138_p2)  ;;  %v4795_v4 = vld [vmem:[%s9512_s1 + $0x1c8] sm:$0xff] (!%p138_p2)  ;;  %v4813_v7 = vld [vmem:[%s9512_s1 + $0x258] sm:$0xff] (!%p138_p2)  ;;  %vm9522_vm2 = vcmask (!%p138_p2), 1043456   ;;  %vm9527_vm3 = vcmask (!%p138_p2), 1045504  }
   0x7   : > { %v5679_v6 = vpack.c.bf16 (!%p138_p2), %v4795_v4, %v4794_v3  ;;  %v4796_v8 = vld [vmem:[%s9512_s1 + $0x1d0] sm:$0xff] (!%p138_p2)  ;;  %v4797_v9 = vld [vmem:[%s9512_s1 + $0x1d8] sm:$0xff] (!%p138_p2)  ;;  %v5681_v10 = vpack.c.bf16 (!%p138_p2), %v4813_v7, %v4812_v5  ;;  %v4814_v11 = vld [vmem:[%s9512_s1 + $0x260] sm:$0xff] (!%p138_p2)  ;;  %vm253_vm4 = vcmask (!%p138_p2), 517120   ;;  %vm9520_vm5 = vcmask (!%p138_p2), 518144   ;;  %s6387_s21 = smov (!%p138_p2), 64  }
   0x8   : > { %5678 = vmatprep.subr.bf16.mxu0 (!%p138_p2), %v5677_v2  ;;  %v4815_v12 = vld [vmem:[%s9512_s1 + $0x268] sm:$0xff] (!%p138_p2)  ;;  %v4798_v13 = vld [vmem:[%s9512_s1 + $0x1e0] sm:$0xff] (!%p138_p2)  ;;  %v5683_v14 = vpack.c.bf16 (!%p138_p2), %v4797_v9, %v4796_v8  ;;  %v4816_v17 = vld [vmem:[%s9512_s1 + $0x270] sm:$0xff] (!%p138_p2)  ;;  %vm251_vm6 = vcmask (!%p138_p2), 523265   ;;  %vm9521_vm7 = vcmask (!%p138_p2), 523266   ;;  %vm9524_vm8 = vcmask (!%p138_p2), 523264  }
   0x9   : > { %5680 = vmatpush3.bf16.msra.mxu0 (!%p138_p2), %v5679_v6  ;;  %v4799_v15 = vld [vmem:[%s9512_s1 + $0x1e8] sm:$0xff] (!%p138_p2)  ;;  %v5685_v16 = vpack.c.bf16 (!%p138_p2), %v4815_v12, %v4814_v11  ;;  %v4817_v18 = vld [vmem:[%s9512_s1 + $0x278] sm:$0xff] (!%p138_p2)  ;;  %v4800_v37 = vld [vmem:[%s9512_s1 + $0x1f0] sm:$0xff] (!%p138_p2)  ;;  %vm9525_vm9 = vcmask (!%p138_p2), 1044480   ;;  %vm9516_vm10 = vcmask (!%p138_p2), 523267   ;;  %vm9529_vm11 = vcmask (!%p138_p2), 1040384  }
   0xa   : > { %5682 = vmatprep.subr.bf16.mxu0 (!%p138_p2), %v5681_v10  ;;  %v5687_v22 = vpack.c.bf16 (!%p138_p2), %v4799_v15, %v4798_v13  ;;  %v5689_v36 = vpack.c.bf16 (!%p138_p2), %v4817_v18, %v4816_v17  ;;  %v4801_v38 = vld [vmem:[%s9512_s1 + $0x1f8] sm:$0xff] (!%p138_p2)  ;;  %vm9519_vm12 = vcmask (!%p138_p2), 1041408   ;;  %v4818_v9 = vld [vmem:[%s9512_s1 + $0x280] sm:$0xff] (!%p138_p2)  ;;  %v4819_v11 = vld [vmem:[%s9512_s1 + $0x288] sm:$0xff] (!%p138_p2)  ;;  %vm447_vm13 = vcmask (!%p138_p2), 523268  }
   0xb   : > { %v5691_v45 = vpack.c.bf16 (!%p138_p2), %v4801_v38, %v4800_v37  ;;  %v4802_v12 = vld [vmem:[%s9512_s1 + $0x200] sm:$0xff] (!%p138_p2)  ;;  %v4803_v13 = vld [vmem:[%s9512_s1 + $0x208] sm:$0xff] (!%p138_p2)  ;;  %v4804_v37 = vld [vmem:[%s9512_s1 + $0x210] sm:$0xff] (!%p138_p2)  ;;  %vm9517_vm14 = vcmask (!%p138_p2), 519168   ;;  %vm9530_vm15 = vcmask (!%p138_p2), 523269  }
   0xc   : > { %v4805_v38 = vld [vmem:[%s9512_s1 + $0x218] sm:$0xff] (!%p138_p2) }
   0xd   : > { %s9911_s13 = smov (!%p161_p3, %s4786_s13), 1  ;;  %5684 = vmatpush3.bf16.msra.mxu0 %v5683_v14 }
   0xe   : > { %s6344_s30 = smul.u32 232, %s9911_s13  ;;  %5686 = vmatprep.subr.bf16.mxu0 %v5685_v16  ;;  %s5221_s25 = sshll.u32 %s9911_s13, 4 }
   0xf   : > { %s9473_s28 = scalar_lea.vmem %s9514_s3, %s5221_s25 }
  0x10   : > { %s6459_s16 = scalar_lea.vmem %s9511_s0, %s6344_s30 }
  0x11   : > { %v6468_v19 = vld [vmem:[%s6459_s16 + $0x17] sm:$0x7f]  ;;  %v6471_v20 = vld [vmem:[%s6459_s16 + $0xf] sm:$0xff]  ;;  %v6474_v21 = vld [vmem:[%s6459_s16 + $0x1e] sm:$0xff]  ;;  %5688 = vmatpush3.bf16.msra.mxu0 %v5687_v22 }
  0x12   : > { %257 = vrot.lane.b32.xlu0 %v6468_v19, %s6387_s21  ;;  %v302_v23 = vrot.slane %v6468_v19, 5  ;;  %255 = vrot.lane.b32.xlu1 %v6471_v20, %s6387_s21  ;;  %v301_v24 = vrot.slane %v6471_v20, 5  ;;  %v273_v25 = vrot.slane %v6468_v19, 2  ;;  %v321_v26 = vrot.slane %v6474_v21, 7  ;;  %v6485_v27 = vld [vmem:[%s6459_s16 + $0x26] sm:$0x7f] }
  0x13   : > { %334 = vst.msk [vmem:[#allocation2 + $0x48] sm:$0xfc] %vm9521_vm7, %v6474_v21  ;;  %v365_v28 = vrot.slane %v6474_v21, 4  ;;  %v336_v29 = vrot.slane %v6474_v21, 1  ;;  %v337_v30 = vrot.slane %v6485_v27, 1  ;;  %v366_v31 = vrot.slane %v6485_v27, 4  ;;  %5690 = vmatprep.subr.bf16.mxu0 %v5689_v36 }
  0x14   : > { %v6494_v32 = vld [vmem:[%s6459_s16 + $0x2d] sm:$0xff]  ;;  %335 = vst.msk [vmem:[#allocation2 + $0x68] sm:$0x7] %vm9520_vm5, %v6485_v27  ;;  %v303_v33 = vsel %vm9523_vm0, %v301_v24, %v302_v23  ;;  %v272_v34 = vrot.slane %v6471_v20, 2  ;;  %v6510_v40 = vld [vmem:[%s6459_s16 + $0x35] sm:$0x7f] }
  0x15   : > { %v431_v35 = vrot.slane %v6494_v32, 3  ;;  %307 = vst.msk [vmem:[#allocation2 + $0x58] sm:$0x3] %vm253_vm4, %v302_v23  ;;  %v367_v39 = vsel %vm9522_vm2, %v365_v28, %v366_v31  ;;  %v432_v41 = vrot.slane %v6510_v40, 3  ;;  %v6518_v42 = vld [vmem:[%s6459_s16 + $0x78] sm:$0xff]  ;;  %v338_v43 = vsel %vm9515_vm1, %v336_v29, %v337_v30  ;;  %v6529_v47 = vld [vmem:[%s6459_s16] sm:$0xff]  ;;  %5692 = vmatpush3.bf16.msra.mxu0 %v5691_v45 }
  0x16   : > { %306 = vst.msk [vmem:[#allocation2 + $0x38] sm:$0xfe] %vm251_vm6, %v303_v33  ;;  %277 = vrot.lane.b32.xlu0 %v273_v25, %s6387_s21  ;;  %324 = vrot.lane.b32.xlu1 %v321_v26, %s6387_s21  ;;  %v274_v44 = vsel %vm9527_vm3, %v272_v34, %v273_v25  ;;  %v322_v48 = vrot.slane %v6485_v27, 7  ;;  %v6538_v49 = vld [vmem:[%s6459_s16 + $0x96] sm:$0xff]  ;;  %v6543_v50 = vld [vmem:[%s6459_s16 + $0x9e] sm:$0x7f] }
  0x17   : > { %371 = vst.msk [vmem:[#allocation2 + $0x78] sm:$0x7] %vm9520_vm5, %v366_v31  ;;  %v433_v46 = vsel %vm9525_vm9, %v431_v35, %v432_v41  ;;  %844 = vst.msk [vmem:[#allocation2 + $0x188] sm:$0x7] %vm9520_vm5, %v6543_v50  ;;  %v385_v51 = vrot.slane %v6494_v32, 6  ;;  %v6553_v53 = vld [vmem:[%s6459_s16 + $0x3c] sm:$0xff]  ;;  %v5695_v31 = vpack.c.bf16 %v4803_v13, %v4802_v12 }
  0x18   : > { %370 = vst.msk [vmem:[#allocation2 + $0x58] sm:$0xfc] %vm9521_vm7, %v367_v39  ;;  %843 = vst.msk [vmem:[#allocation2 + $0x168] sm:$0xfc] %vm9521_vm7, %v6538_v49  ;;  %v323_v52 = vsel %vm9529_vm11, %v321_v26, %v322_v48  ;;  %v6556_v54 = vld [vmem:[%s6459_s16 + $0x80] sm:$0x7f] }
  0x19   : > { %701 = vst.msk [vmem:[#allocation2 + $0x120] sm:$0xff] %vm9524_vm8, %v6518_v42  ;;  %174 = vst.msk [vmem:[#allocation2] sm:$0xff] %vm9524_vm8, %v6529_v47  ;;  %v752_v55 = vrot.slane %v6518_v42, 6  ;;  %v753_v56 = vrot.slane %v6556_v54, 6  ;;  %v471_v57 = vrot.slane %v6553_v53, 7  ;;  %v6567_v59 = vld [vmem:[%s6459_s16 + $0x87] sm:$0xff] }
  0x1a   : > { %436 = vst.msk [vmem:[#allocation2 + $0x78] sm:$0xf8] %vm9516_vm10, %v433_v46  ;;  %339 = vrot.lane.b32.xlu1 %v338_v43, %s6387_s21  ;;  %275 = vrot.lane.b32.xlu0 %v274_v44, %s6387_s21  ;;  %v6570_v60 = vld [vmem:[%s6459_s16 + $0x8f] sm:$0x7f]  ;;  %v386_v61 = vrot.slane %v6510_v40, 6  ;;  %v814_v62 = vrot.slane %v6567_v59, 5 }
  0x1b   : > { %v754_v58 = vsel %vm9519_vm12, %v752_v55, %v753_v56  ;;  %v815_v63 = vrot.slane %v6570_v60, 5  ;;  %v6577_v0 = vld [vmem:[%s6459_s16 + $0x44] sm:$0x7f]  ;;  %v451_v2 = vrot.slane %v6553_v53, 5  ;;  %v234_v4 = vrot.slane %v6529_v47, 6  ;;  %v6592_v6 = vld [vmem:[%s6459_s16 + $0x4b] sm:$0xff] }
  0x1c   : > { %757 = vst.msk [vmem:[#allocation2 + $0x138] sm:$0xff] %vm9524_vm8, %v754_v58  ;;  %v6586_v3 = vld [vmem:[%s6459_s16 + $0x8] sm:$0x7f]  ;;  %v387_v5 = vsel %vm9519_vm12, %v385_v51, %v386_v61  ;;  %v472_v7 = vrot.slane %v6577_v0, 7  ;;  %v535_v14 = vrot.slane %v6592_v6, 6  ;;  %v246_v15 = vrot.slane %v6471_v20, 7 }
  0x1d   : > { %v816_v1 = vsel %vm9523_vm0, %v814_v62, %v815_v63  ;;  %820 = vst.msk [vmem:[#allocation2 + $0x178] sm:$0x3] %vm253_vm4, %v815_v63  ;;  %v235_v8 = vrot.slane %v6586_v3, 6  ;;  %v247_v16 = vrot.slane %v6468_v19, 7  ;;  %v452_v18 = vrot.slane %v6577_v0, 5  ;;  %v4820_v24 = vld [vmem:[%s9512_s1 + $0x290] sm:$0xff] }
  0x1e   : > { %405 = vrot.lane.b32.xlu1 %v6494_v32, %s6387_s21  ;;  %341 = vrot.lane.b32.xlu0 %v337_v30, %s6387_s21  ;;  %819 = vst.msk [vmem:[#allocation2 + $0x158] sm:$0xfe] %vm251_vm6, %v816_v1  ;;  %v473_v17 = vsel %vm9529_vm11, %v471_v57, %v472_v7  ;;  %v6620_v22 = vld [vmem:[%s6459_s16 + $0x53] sm:$0x7f]  ;;  %v266_v23 = vrot.slane %v6468_v19, 1  ;;  %v6630_v26 = vld [vmem:[%s6459_s16 + $0x5a] sm:$0xff]  ;;  %v5693_v30 = vpack.c.bf16 %v4819_v11, %v4818_v9 }
  0x1f   : > { %v236_v10 = vsel %vm9519_vm12, %v234_v4, %v235_v8  ;;  %v4821_v25 = vld [vmem:[%s9512_s1 + $0x298] sm:$0xff]  ;;  %v248_v28 = vsel %vm9529_vm11, %v246_v15, %v247_v16  ;;  %252 = vst.msk [vmem:[#allocation2 + $0x20] sm:$0xfe] %vm251_vm6, %v246_v15  ;;  %v312_v29 = vrot.slane %v6474_v21, 6  ;;  %v495_v33 = vrot.slane %v6553_v53, 2  ;;  %v4822_v46 = vld [vmem:[%s9512_s1 + $0x2a0] sm:$0xff] }
  0x20   : > { %239 = vst.msk [vmem:[#allocation2 + $0x18] sm:$0xff] %vm9524_vm8, %v236_v10  ;;  %v496_v34 = vrot.slane %v6577_v0, 2  ;;  %v515_v35 = vrot.slane %v6592_v6, 4  ;;  %v874_v36 = vrot.slane %v6538_v49, 4  ;;  %v536_v39 = vrot.slane %v6620_v22, 6  ;;  %v4823_v48 = vld [vmem:[%s9512_s1 + $0x2a8] sm:$0xff]  ;;  %5694 = vmatprep.subr.bf16.mxu0 %v5693_v30 }
  0x21   : > { %254 = vst.msk [vmem:[#allocation2 + $0x40] sm:$0x3] %vm253_vm4, %v248_v28  ;;  %271 = vst.msk [vmem:[#allocation2 + $0x48] sm:$0x3] %vm253_vm4, %v266_v23  ;;  %v875_v43 = vrot.slane %v6543_v50, 4  ;;  %v265_v44 = vrot.slane %v6471_v20, 1  ;;  %v5697_v45 = vpack.c.bf16 %v4821_v25, %v4820_v24  ;;  %5696 = vmatpush3.bf16.msra.mxu0 %v5695_v31  ;;  %v5699_v4 = vpack.c.bf16 %v4805_v38, %v4804_v37 }
  0x22   : > { %388 = vrot.lane.b32.xlu1 %v385_v51, %s6387_s21  ;;  %326 = vrot.lane.b32.xlu0 %v323_v52, %s6387_s21  ;;  %318 = vst.msk [vmem:[#allocation2 + $0x40] sm:$0xfc] %vm9521_vm7, %v312_v29  ;;  %v561_v51 = vrot.slane %v6592_v6, 1  ;;  %v453_v52 = vsel %vm9523_vm0, %v451_v2, %v452_v18  ;;  %v562_v55 = vrot.slane %v6620_v22, 1  ;;  %v4826_v58 = vld [vmem:[%s9512_s1 + $0x2c0] sm:$0xff]  ;;  %v4827_v61 = vld [vmem:[%s9512_s1 + $0x2c8] sm:$0xff]  ;;  %v497_v9 = vsel %vm9527_vm3, %v495_v33, %v496_v34 }
  0x23   : > { %v601_v62 = vrot.slane %v6630_v26, 5  ;;  %v6673_v63 = vld [vmem:[%s6459_s16 + $0x69] sm:$0xff]  ;;  %v876_v1 = vsel %vm9522_vm2, %v874_v36, %v875_v43  ;;  %880 = vst.msk [vmem:[#allocation2 + $0x198] sm:$0x7] %vm9520_vm5, %v875_v43  ;;  %v581_v10 = vrot.slane %v6630_v26, 3  ;;  %5698 = vmatprep.subr.bf16.mxu0 %v5697_v45  ;;  %v5701_v11 = vpack.c.bf16 %v4823_v48, %v4822_v46  ;;  %v4825_v13 = vld [vmem:[%s9512_s1 + $0x2b8] sm:$0xff] }
  0x24   : > { %v4807_v7 = vld [vmem:[%s9512_s1 + $0x228] sm:$0xff]  ;;  %879 = vst.msk [vmem:[#allocation2 + $0x178] sm:$0xfc] %vm9521_vm7, %v876_v1  ;;  %v6696_v12 = vld [vmem:[%s9512_s1 + $0x2b0] sm:$0xff]  ;;  %v537_v15 = vsel %vm9519_vm12, %v535_v14, %v536_v39  ;;  %v376_v16 = vrot.slane %v6494_v32, 5  ;;  %v5710_v18 = vpack.c.bf16 %v4827_v61, %v4826_v58  ;;  %v4829_v24 = vld [vmem:[%s9512_s1 + $0x2d8] sm:$0xff]  ;;  %v563_v25 = vsel %vm9515_vm1, %v561_v51, %v562_v55 }
  0x25   : > { %v516_v28 = vrot.slane %v6620_v22, 4  ;;  %v6720_v30 = vld [vmem:[%s6459_s16 + $0x62] sm:$0x7f]  ;;  %v6388_v33 = vmov 0.0|0.0   ;;  %5700 = vmatpush3.bf16.msra.mxu0 %v5699_v4  ;;  %v6733_v38 = vld [vmem:[%s9512_s1 + $0x230] sm:$0xff]  ;;  %v4809_v39 = vld [vmem:[%s9512_s1 + $0x238] sm:$0xff] }
  0x26   : > { %474 = vrot.lane.b32.xlu1 %v471_v57, %s6387_s21  ;;  %407 = vrot.lane.b32.xlu0 %v6510_v40, %s6387_s21  ;;  %v398_v57 = vrot.slane %v6494_v32, 7  ;;  %v6724_v36 = vld [vmem:[%s6459_s16 + $0xa5] sm:$0xff]  ;;  %382 = vst.msk [vmem:[#allocation2 + $0x60] sm:$0xf8] %vm9516_vm10, %v376_v16  ;;  %v399_v45 = vrot.slane %v6510_v40, 7  ;;  %v602_v58 = vrot.slane %v6720_v30, 5 }
  0x27   : > { %5709 = vmatprep.subr.bf16.mxu1 %v6388_v33  ;;  %v936_v43 = vrot.slane %v6724_v36, 3  ;;  %5702 = vmatprep.subr.bf16.mxu0 %v5701_v11  ;;  %500 = vst.msk [vmem:[#allocation2 + $0x98] sm:$0xf0] %vm447_vm13, %v497_v9  ;;  %482 = vst.msk [vmem:[#allocation2 + $0x90] sm:$0xf0] %vm447_vm13, %v6553_v53  ;;  %v4830_v51 = vld [vmem:[%s9512_s1 + $0x2e0] sm:$0xff]  ;;  %v517_v4 = vsel %vm9522_vm2, %v515_v35, %v516_v28 }
  0x28   : > { %403 = vst.msk [vmem:[#allocation2 + $0x68] sm:$0xf8] %vm9516_vm10, %v398_v57  ;;  %5711 = vmatpush1.bf16.msra.mxu1 %v5710_v18  ;;  %v6748_v48 = vld [vmem:[%s6459_s16 + $0xad] sm:$0x7f]  ;;  %v442_v1 = vrot.slane %v6553_v53, 4  ;;  %v528_v11 = vrot.slane %v6592_v6, 5 }
  0x29   : > { %5712 = vmatprep.subr.bf16.mxu1 %v6388_v33  ;;  %437 = vst.msk [vmem:[#allocation2 + $0x98] sm:$0xf] %vm9517_vm14, %v432_v41  ;;  %v937_v61 = vrot.slane %v6748_v48, 3  ;;  %v354_v18 = vrot.slane %v6474_v21, 3  ;;  %v6812_v28 = vld [vmem:[%s6459_s16 + $0x71] sm:$0x7f] }
  0x2a   : > { %454 = vrot.lane.b32.xlu1 %v451_v2, %s6387_s21  ;;  %390 = vrot.lane.b32.xlu0 %v387_v5, %s6387_s21  ;;  %v267_v2 = vsel %vm9515_vm1, %v265_v44, %v266_v23  ;;  %v4806_v5 = vld [vmem:[%s9512_s1 + $0x220] sm:$0xff]  ;;  %v4828_v23 = vld [vmem:[%s9512_s1 + $0x2d0] sm:$0xff]  ;;  %v464_v44 = vrot.slane %v6553_v53, 6  ;;  %448 = vst.msk [vmem:[#allocation2 + $0x80] sm:$0xf0] %vm447_vm13, %v442_v1  ;;  %vm9518_vm1 = vcmask 520192  }
  0x2b   : > { %270 = vst.msk [vmem:[#allocation2 + $0x28] sm:$0xfe] %vm251_vm6, %v267_v2  ;;  %v5703_v31 = vpack.c.bf16 %v4807_v7, %v4806_v5  ;;  %v5713_v46 = vpack.c.bf16 %v4829_v24, %v4828_v23  ;;  %v377_v2 = vrot.slane %v6510_v40, 5  ;;  %v5707_v5 = vpack.c.bf16 %v4809_v39, %v6733_v38 }
  0x2c   : > { %469 = vst.msk [vmem:[#allocation2 + $0x88] sm:$0xf0] %vm447_vm13, %v464_v44  ;;  %v400_v7 = vsel %vm9529_vm11, %v398_v57, %v399_v45  ;;  %v938_v41 = vsel %vm9525_vm9, %v936_v43, %v937_v61  ;;  %v291_v57 = vrot.slane %v6468_v19, 4  ;;  %v506_v23 = vrot.slane %v6592_v6, 3 }
  0x2d   : > { %5704 = vmatpush3.bf16.msra.mxu0 %v5703_v31  ;;  %404 = vst.msk [vmem:[#allocation2 + $0x88] sm:$0xf] %vm9517_vm14, %v400_v7  ;;  %5714 = vmatpush1.bf16.msra.mxu1 %v5713_v46  ;;  %942 = vst.msk [vmem:[#allocation2 + $0x1b8] sm:$0xf] %vm9517_vm14, %v937_v61  ;;  %v378_v9 = vsel %vm9523_vm0, %v376_v16, %v377_v2  ;;  %v4833_v16 = vld [vmem:[%s9512_s1 + $0x2f8] sm:$0xff]  ;;  %v443_v24 = vrot.slane %v6577_v0, 4 }
  0x2e   : > { %538 = vrot.lane.b32.xlu1 %v535_v14, %s6387_s21  ;;  %476 = vrot.lane.b32.xlu0 %v473_v17, %s6387_s21  ;;  %v313_v17 = vrot.slane %v6485_v27, 6  ;;  %v663_v14 = vrot.slane %v6673_v63, 4  ;;  %566 = vst.msk [vmem:[#allocation2 + $0xb8] sm:$0xe0] %vm9530_vm15, %v563_v25  ;;  %533 = vst.msk [vmem:[#allocation2 + $0xa8] sm:$0xe0] %vm9530_vm15, %v528_v11  ;;  %v603_v25 = vsel %vm9523_vm0, %v601_v62, %v602_v58 }
  0x2f   : > { %941 = vst.msk [vmem:[#allocation2 + $0x198] sm:$0xf8] %vm9516_vm10, %v938_v41  ;;  %5715 = vmatprep.subr.bf16.mxu1 %v6388_v33  ;;  %vm9528_vm10 = vcmask 523270   ;;  %v444_v38 = vsel %vm9522_vm2, %v442_v1, %v443_v24  ;;  %v355_v43 = vrot.slane %v6485_v27, 3  ;;  %v572_v45 = vrot.slane %v6630_v26, 2  ;;  %v6893_v24 = vld [vmem:[#allocation2 + $0x58] sm:$0xff] }
  0x30   : > { %v314_v37 = vsel %vm9519_vm12, %v312_v29, %v313_v17  ;;  %v5705_v29 = vpack.c.bf16 %v4825_v13, %v6696_v12  ;;  %v290_v12 = vrot.slane %v6471_v20, 4  ;;  %384 = vst.msk [vmem:[#allocation2 + $0x80] sm:$0xf] %vm9517_vm14, %v378_v9  ;;  %v465_v13 = vrot.slane %v6577_v0, 6  ;;  %v4836_v9 = vld [vmem:[%s9512_s1 + $0x310] sm:$0xff] }
  0x31   : > { %320 = vst.msk [vmem:[#allocation2 + $0x60] sm:$0x7] %vm9520_vm5, %v314_v37  ;;  %v582_v17 = vrot.slane %v6720_v30, 3  ;;  %v594_v37 = vrot.slane %v6630_v26, 4  ;;  %vm9526_vm14 = vcmask 521216   ;;  %v507_v46 = vrot.slane %v6620_v22, 3 }
  0x32   : > { %518 = vrot.lane.b32.xlu1 %v515_v35, %s6387_s21  ;;  %456 = vrot.lane.b32.xlu0 %v453_v52, %s6387_s21  ;;  %v4831_v52 = vld [vmem:[%s9512_s1 + $0x2e8] sm:$0xff]  ;;  %501 = vst.msk [vmem:[#allocation2 + $0xb8] sm:$0x1f] %vm9518_vm1, %v496_v34  ;;  %483 = vst.msk [vmem:[#allocation2 + $0xb0] sm:$0x1f] %vm9518_vm1, %v6577_v0  ;;  %v466_v31 = vsel %vm9519_vm12, %v464_v44, %v465_v13  ;;  %v292_v39 = vsel %vm9522_vm2, %v290_v12, %v291_v57  ;;  %v4834_v44 = vld [vmem:[%s9512_s1 + $0x300] sm:$0xff] }
  0x33   : > { %v5716_v35 = vpack.c.bf16 %v4831_v52, %v4830_v51  ;;  %5706 = vmatprep.subr.bf16.mxu0 %v5705_v29  ;;  %470 = vst.msk [vmem:[#allocation2 + $0xa8] sm:$0x1f] %vm9518_vm1, %v466_v31  ;;  %450 = vst.msk [vmem:[#allocation2 + $0xa0] sm:$0x1f] %vm9518_vm1, %v444_v38  ;;  %v4835_v29 = vld [vmem:[%s9512_s1 + $0x308] sm:$0xff]  ;;  %v664_v51 = vrot.slane %v6812_v28, 4  ;;  %v583_v41 = vsel %vm9525_vm9, %v581_v10, %v582_v17 }
  0x34   : > { %5708 = vmatpush3.bf16.msra.mxu0 %v5707_v5  ;;  %512 = vst.msk [vmem:[#allocation2 + $0xa0] sm:$0xe0] %vm9530_vm15, %v506_v23  ;;  %vm641_vm1 = vcmask 523271   ;;  %v656_v58 = vrot.slane %v6673_v63, 3  ;;  %v692_v61 = vrot.slane %v6673_v63, 7  ;;  %v693_v1 = vrot.slane %v6812_v28, 7 }
  0x35   : > { %5717 = vmatpush1.bf16.msra.mxu1 %v5716_v35  ;;  %630 = vst.msk [vmem:[#allocation2 + $0xd8] sm:$0xc0] %vm9528_vm10, %v6630_v26  ;;  %599 = vst.msk [vmem:[#allocation2 + $0xc8] sm:$0xc0] %vm9528_vm10, %v594_v37  ;;  %vm9533_vm12 = vcmask 522240   ;;  %v644_v2 = vrot.slane %v6673_v63, 2 }
  0x36   : > { %604 = vrot.lane.b32.xlu1 %v601_v62, %s6387_s21  ;;  %540 = vrot.lane.b32.xlu0 %v537_v15, %s6387_s21  ;;  %v4832_v15 = vld [vmem:[%s9512_s1 + $0x2f0] sm:$0xff]  ;;  %v529_v62 = vrot.slane %v6620_v22, 5  ;;  %567 = vst.msk [vmem:[#allocation2 + $0xd8] sm:$0x3f] %vm9526_vm14, %v562_v55  ;;  %v508_v55 = vsel %vm9525_vm9, %v506_v23, %v507_v46  ;;  %v595_v5 = vrot.slane %v6720_v30, 4  ;;  %v284_v7 = vrot.slane %v6468_v19, 3 }
  0x37   : > { %v5719_v34 = vpack.c.bf16 %v4833_v16, %v4832_v15  ;;  %5718 = vmatprep.subr.bf16.mxu1 %v6388_v33  ;;  %578 = vst.msk [vmem:[#allocation2 + $0xc0] sm:$0xc0] %vm9528_vm10, %v572_v45  ;;  %v4837_v35 = vld [vmem:[%s9512_s1 + $0x318] sm:$0xff]  ;;  %v283_v12 = vrot.slane %v6471_v20, 3  ;;  %v573_v13 = vrot.slane %v6720_v30, 2  ;;  %v347_v20 = vrot.slane %v6474_v21, 2 }
  0x38   : > { %v530_v52 = vsel %vm9523_vm0, %v528_v11, %v529_v62  ;;  %514 = vst.msk [vmem:[#allocation2 + $0xc0] sm:$0x3f] %vm9526_vm14, %v508_v55  ;;  %v694_v11 = vsel %vm9529_vm11, %v692_v61, %v693_v1  ;;  %v596_v15 = vsel %vm9522_vm2, %v594_v37, %v595_v5  ;;  %v348_v16 = vrot.slane %v6485_v27, 2  ;;  %v6886_v17 = vld [vmem:[%s6459_s16 + $0xb4] sm:$0xff]  ;;  %v4838_v38 = vld [vmem:[%s9512_s1 + $0x320] sm:$0xff]  ;;  %v4839_v62 = vld [vmem:[%s9512_s1 + $0x328] sm:$0xff] }
  0x39   : > { %534 = vst.msk [vmem:[#allocation2 + $0xc8] sm:$0x3f] %vm9526_vm14, %v530_v52  ;;  %5720 = vmatpush1.bf16.msra.mxu1 %v5719_v34  ;;  %v723_v19 = vrot.slane %v6518_v42, 3  ;;  %v657_v23 = vrot.slane %v6812_v28, 3  ;;  %v724_v21 = vrot.slane %v6556_v54, 3  ;;  %v5725_v31 = vpack.c.bf16 %v4837_v35, %v4836_v9  ;;  %v1186_v1 = vld [vmem:[%s9512_s1 + $0x88] sm:$0xff] }
  0x3a   : > { %584 = vrot.lane.b32.xlu1 %v581_v10, %s6387_s21  ;;  %520 = vrot.lane.b32.xlu0 %v517_v4, %s6387_s21  ;;  %v5722_v4 = vpack.c.bf16 %v4835_v29, %v4834_v44  ;;  %661 = vst.msk [vmem:[#allocation2 + $0xe8] sm:$0x80] %vm641_vm1, %v656_v58  ;;  %697 = vst.msk [vmem:[#allocation2 + $0xf8] sm:$0x80] %vm641_vm1, %v692_v61  ;;  %v356_v10 = vsel %vm9525_vm9, %v354_v18, %v355_v43  ;;  %v636_v34 = vrot.slane %v6673_v63, 1  ;;  %v1185_v61 = vld [vmem:[%s9512_s1 + $0x80] sm:$0xff] }
  0x3b   : > { %631 = vst.msk [vmem:[#allocation2 + $0xf8] sm:$0x7f] %vm9533_vm12, %v6720_v30  ;;  %5721 = vmatprep.subr.bf16.mxu1 %v6388_v33  ;;  %600 = vst.msk [vmem:[#allocation2 + $0xe8] sm:$0x7f] %vm9533_vm12, %v596_v15  ;;  %v574_v18 = vsel %vm9527_vm3, %v572_v45, %v573_v13  ;;  %v349_v37 = vsel %vm9527_vm3, %v347_v20, %v348_v16  ;;  %v716_v44 = vrot.slane %v6518_v42, 2  ;;  %v717_v29 = vrot.slane %v6556_v54, 2 }
  0x3c   : > { %698 = vst.msk [vmem:[#allocation2 + $0x118] sm:$0xff] %vm9524_vm8, %v694_v11  ;;  %v637_v45 = vrot.slane %v6812_v28, 1  ;;  %v665_v46 = vsel %vm9522_vm2, %v663_v14, %v664_v51  ;;  %v645_v52 = vrot.slane %v6812_v28, 2  ;;  %v1348_v55 = vrot.slane %v6893_v24, 1  ;;  %v4840_v9 = vld [vmem:[%s9512_s1 + $0x330] sm:$0xff]  ;;  %v4841_v35 = vld [vmem:[%s9512_s1 + $0x338] sm:$0xff] }
  0x3d   : > { %289 = vst.msk [vmem:[#allocation2 + $0x50] sm:$0x3] %vm253_vm4, %v284_v7  ;;  %5723 = vmatpush1.bf16.msra.mxu1 %v5722_v4  ;;  %v718_v4 = vsel %vm9527_vm3, %v716_v44, %v717_v29  ;;  %v413_v51 = vrot.slane %v6494_v32, 1  ;;  %v414_v5 = vrot.slane %v6510_v40, 1  ;;  %vm9538_vm2 = vcmask 519168   ;;  %v4846_v44 = vld [vmem:[%s9512_s1 + $0x360] sm:$0xff] }
  0x3e   : > { %666 = vrot.lane.b32.xlu1 %v663_v14, %s6387_s21  ;;  %606 = vrot.lane.b32.xlu0 %v603_v25, %s6387_s21  ;;  %v1228_v25 = vld [vmem:[#allocation2 + $0x38] sm:$0xfe]  ;;  %983 = vst.msk [vmem:[#allocation2 + $0x1b0] sm:$0xf0] %vm447_vm13, %v6886_v17  ;;  %vm175_vm0 = vcmask 516096   ;;  %v778_v13 = vrot.slane %v6567_v59, 1  ;;  %v725_v15 = vsel %vm9525_vm9, %v723_v19, %v724_v21 }
  0x3f   : > { %580 = vst.msk [vmem:[#allocation2 + $0xe0] sm:$0x7f] %vm9533_vm12, %v574_v18  ;;  %5724 = vmatprep.subr.bf16.mxu1 %v6388_v33  ;;  %v420_v20 = vrot.slane %v6494_v32, 2  ;;  %v4842_v19 = vld [vmem:[%s9512_s1 + $0x340] sm:$0xff]  ;;  %v706_v18 = vrot.slane %v6556_v54, 1  ;;  %v4847_v27 = vld [vmem:[%s9512_s1 + $0x368] sm:$0xff] }
  0x40   : > { %353 = vst.msk [vmem:[#allocation2 + $0x70] sm:$0x7] %vm9520_vm5, %v348_v16  ;;  %vm9536_vm5 = vcmask 1046528   ;;  %v421_v16 = vrot.slane %v6510_v40, 2  ;;  %v705_v40 = vrot.slane %v6518_v42, 1 }
  0x41   : > { %352 = vst.msk [vmem:[#allocation2 + $0x50] sm:$0xfc] %vm9521_vm7, %v349_v37  ;;  %v638_v14 = vsel %vm9536_vm5, %v636_v34, %v637_v45  ;;  %5726 = vmatpush1.bf16.msra.mxu1 %v5725_v31  ;;  %vm9537_vm7 = vmmov %vm9536_vm5  ;;  %v415_v11 = vsel %vm9536_vm5, %v413_v51, %v414_v5  ;;  %v4845_v31 = vld [vmem:[%s9512_s1 + $0x358] sm:$0xff]  ;;  %v763_v37 = vrot.slane %v6567_v59, 7  ;;  %v484_v45 = vrot.slane %v6553_v53, 1 }
  0x42   : > { %295 = vrot.lane.b32.xlu1 %v291_v57, %s6387_s21  ;;  %293 = vrot.lane.b32.xlu0 %v292_v39, %s6387_s21  ;;  %v285_v57 = vsel %vm9525_vm9, %v283_v12, %v284_v7  ;;  %v658_v39 = vsel %vm9525_vm9, %v656_v58, %v657_v23  ;;  %642 = vst.msk [vmem:[#allocation2 + $0xe0] sm:$0x80] %vm641_vm1, %v636_v34  ;;  %v1347_v58 = vrot.slane %v1228_v25, 1  ;;  %v4844_v25 = vld [vmem:[%s9512_s1 + $0x350] sm:$0xff]  ;;  %v764_v53 = vrot.slane %v6570_v60, 7 }
  0x43   : > { %288 = vst.msk [vmem:[#allocation2 + $0x30] sm:$0xfe] %vm251_vm6, %v285_v57  ;;  %v5728_v7 = vpack.c.bf16 %v4839_v62, %v4838_v38  ;;  %5727 = vmatprep.subr.bf16.mxu1 %v6388_v33  ;;  %v5745_v12 = vpack.c.bf16 %v1186_v1, %v1185_v61  ;;  %v422_v32 = vsel %vm9527_vm3, %v420_v20, %v421_v16  ;;  %v785_v38 = vrot.slane %v6567_v59, 2 }
  0x44   : > { %662 = vst.msk [vmem:[#allocation2 + $0x108] sm:$0xff] %vm9524_vm8, %v658_v39  ;;  %721 = vst.msk [vmem:[#allocation2 + $0x128] sm:$0xff] %vm9524_vm8, %v718_v4  ;;  %v786_v62 = vrot.slane %v6570_v60, 2  ;;  %v5737_v39 = vpack.c.bf16 %v4845_v31, %v4844_v25  ;;  %v547_v61 = vrot.slane %v6620_v22, 7  ;;  %v765_v4 = vsel %vm9529_vm11, %v763_v37, %v764_v53 }
  0x45   : > { %643 = vst.msk [vmem:[#allocation2 + $0x100] sm:$0xff] %vm9524_vm8, %v638_v14  ;;  %5746 = vmatprep.subr.bf16.mxu0 %v5745_v12  ;;  %5729 = vmatpush1.bf16.msra.mxu1 %v5728_v7  ;;  %v612_v51 = vrot.slane %v6630_v26, 6  ;;  %v996_v7 = vrot.slane %v6886_v17, 2  ;;  %v619_v20 = vrot.slane %v6630_v26, 7  ;;  %v203_v26 = vrot.slane %v6586_v3, 3 }
  0x46   : > { %586 = vrot.lane.b32.xlu1 %v583_v41, %s6387_s21  ;;  %357 = vrot.lane.b32.xlu0 %v356_v10, %s6387_s21  ;;  %v1349_v41 = vsel %vm9537_vm7, %v1347_v58, %v1348_v55  ;;  %419 = vst.msk [vmem:[#allocation2 + $0x90] sm:$0xf] %vm9538_vm2, %v414_v5  ;;  %vm9539_vm7 = vcmask 523267   ;;  %v779_v10 = vrot.slane %v6570_v60, 1  ;;  %vm9540_vm2 = vmmov %vm9536_vm5  ;;  %v4848_v58 = vld [vmem:[%s9512_s1 + $0x370] sm:$0xff]  ;;  %v613_v5 = vrot.slane %v6720_v30, 6 }
  0x47   : > { %4850 = vmatprep.mubr.msk.f32.mxu1 %vm9524_vm8, %v1349_v41  ;;  %418 = vst.msk [vmem:[#allocation2 + $0x70] sm:$0xf8] %vm9539_vm7, %v415_v11  ;;  %5730 = vmatprep.subr.bf16.mxu1 %v6388_v33  ;;  %vm9541_vm5 = vmmov %vm9540_vm2  ;;  %v674_v11 = vrot.slane %v6673_v63, 5  ;;  %v797_v25 = vrot.slane %v6570_v60, 3  ;;  %v796_v31 = vrot.slane %v6567_v59, 3 }
  0x48   : > { %722 = vst.msk [vmem:[#allocation2 + $0x148] sm:$0x1] %vm175_vm0, %v717_v29  ;;  %758 = vst.msk [vmem:[#allocation2 + $0x158] sm:$0x1] %vm175_vm0, %v753_v56  ;;  %v646_v56 = vsel %vm9527_vm3, %v644_v2, %v645_v52  ;;  %v780_v57 = vsel %vm9540_vm2, %v778_v13, %v779_v10  ;;  %v707_v34 = vsel %vm9541_vm5, %v705_v40, %v706_v18  ;;  %vm9544_vm5 = vcmask 520192  }
  0x49   : > { %176 = vst.msk [vmem:[#allocation2 + $0x20] sm:$0x1] %vm175_vm0, %v6586_v3  ;;  %240 = vst.msk [vmem:[#allocation2 + $0x38] sm:$0x1] %vm175_vm0, %v235_v8  ;;  %v5731_v8 = vpack.c.bf16 %v4841_v35, %v4840_v9  ;;  %v787_v29 = vsel %vm9527_vm3, %v785_v38, %v786_v62  ;;  %v5740_v52 = vpack.c.bf16 %v4847_v27, %v4846_v44  ;;  %v7047_v9 = vld [vmem:[%s6459_s16 + $0xbc] sm:$0x7f] }
  0x4a   : > { %668 = vrot.lane.b32.xlu1 %v665_v46, %s6387_s21  ;;  %647 = vrot.lane.b32.xlu0 %v644_v2, %s6387_s21  ;;  %702 = vst.msk [vmem:[#allocation2 + $0x140] sm:$0x1] %vm175_vm0, %v6556_v54  ;;  %v4843_v2 = vld [vmem:[%s9512_s1 + $0x348] sm:$0xff]  ;;  %v485_v46 = vrot.slane %v6577_v0, 1  ;;  %vm9542_vm7 = vmmov %vm9540_vm2  ;;  %vm9543_vm2 = vcmask 1041408   ;;  %v997_v35 = vrot.slane %v7047_v9, 2 }
  0x4b   : > { %784 = vst.msk [vmem:[#allocation2 + $0x168] sm:$0x3] %vm253_vm4, %v779_v10  ;;  %5732 = vmatpush1.bf16.msra.mxu1 %v5731_v8  ;;  %v5734_v23 = vpack.c.bf16 %v4843_v2, %v4842_v19  ;;  %769 = vst.msk [vmem:[#allocation2 + $0x160] sm:$0x3] %vm253_vm4, %v765_v4  ;;  %v614_v41 = vsel %vm9543_vm2, %v612_v51, %v613_v5  ;;  %v195_v13 = vrot.slane %v6586_v3, 2  ;;  %v194_v10 = vrot.slane %v6529_v47, 2 }
  0x4c   : > { %783 = vst.msk [vmem:[#allocation2 + $0x148] sm:$0xfe] %vm251_vm6, %v780_v57  ;;  %5733 = vmatprep.subr.bf16.mxu1 %v6388_v33  ;;  %768 = vst.msk [vmem:[#allocation2 + $0x140] sm:$0xfe] %vm251_vm6, %v763_v37  ;;  %v486_v0 = vsel %vm9542_vm7, %v484_v45, %v485_v46  ;;  %v998_v12 = vsel %vm9527_vm3, %v996_v7, %v997_v35  ;;  %v202_v57 = vrot.slane %v6529_v47, 3  ;;  %v734_v19 = vrot.slane %v6518_v42, 4 }
  0x4d   : > { %617 = vst.msk [vmem:[#allocation2 + $0xd0] sm:$0xc0] %vm9528_vm10, %v612_v51  ;;  %vm9545_vm7 = vmmov %vm9544_vm5  ;;  %v681_v2 = vrot.slane %v6673_v63, 6  ;;  %v180_v40 = vrot.slane %v6529_v47, 1  ;;  %vm9547_vm2 = vcmask 1043456   ;;  %v798_v37 = vsel %vm9525_vm9, %v796_v31, %v797_v25 }
  0x4e   : > { %726 = vrot.lane.b32.xlu1 %v725_v15, %s6387_s21  ;;  %649 = vrot.lane.b32.xlu0 %v646_v56, %s6387_s21  ;;  %618 = vst.msk [vmem:[#allocation2 + $0xf0] sm:$0x7f] %vm9533_vm12, %v614_v41  ;;  %v675_v15 = vrot.slane %v6812_v28, 5  ;;  %v196_v56 = vsel %vm9527_vm3, %v194_v10, %v195_v13  ;;  %v742_v38 = vrot.slane %v6556_v54, 5  ;;  %v825_v44 = vrot.slane %v6538_v49, 6 }
  0x4f   : > { %5735 = vmatpush1.bf16.msra.mxu1 %v5734_v23  ;;  %984 = vst.msk [vmem:[#allocation2 + $0x1d0] sm:$0x1f] %vm9544_vm5, %v7047_v9  ;;  %vm9548_vm5 = vcmask 1041408   ;;  %v885_v4 = vrot.slane %v6724_v36, 5  ;;  %v833_v5 = vrot.slane %v6543_v50, 7 }
  0x50   : > { %5736 = vmatprep.subr.bf16.mxu1 %v6388_v33  ;;  %1002 = vst.msk [vmem:[#allocation2 + $0x1d8] sm:$0x1f] %vm9545_vm7, %v997_v35  ;;  %vm9549_vm7 = vcmask 1046528  }
  0x51   : > { %1001 = vst.msk [vmem:[#allocation2 + $0x1b8] sm:$0xf0] %vm447_vm13, %v998_v12  ;;  %v863_v12 = vrot.slane %v6538_v49, 3 }
  0x52   : > { %423 = vrot.lane.b32.xlu1 %v422_v32, %s6387_s21  ;;  %359 = vrot.lane.b32.xlu0 %v355_v43, %s6387_s21  ;;  %v546_v43 = vrot.slane %v6592_v6, 7  ;;  %679 = vst.msk [vmem:[#allocation2 + $0xf0] sm:$0x80] %vm641_vm1, %v674_v11  ;;  %vm9546_vm1 = vcmask 1042432   ;;  %v204_v32 = vsel %vm9525_vm9, %v202_v57, %v203_v26 }
  0x53   : > { %5738 = vmatpush1.bf16.msra.mxu1 %v5737_v39  ;;  %200 = vst.msk [vmem:[#allocation2 + $0x28] sm:$0x1] %vm175_vm0, %v195_v13  ;;  %v676_v8 = vsel %vm9546_vm1, %v674_v11, %v675_v15  ;;  %v214_v39 = vrot.slane %v6529_v47, 4  ;;  %v864_v11 = vrot.slane %v6543_v50, 3  ;;  %v904_v15 = vrot.slane %v6748_v48, 7 }
  0x54   : > { %551 = vst.msk [vmem:[#allocation2 + $0xb0] sm:$0xe0] %vm9530_vm15, %v546_v43  ;;  %5739 = vmatprep.subr.bf16.mxu1 %v6388_v33  ;;  %v548_v1 = vsel %vm9529_vm11, %v546_v43, %v547_v61  ;;  %v804_v43 = vrot.slane %v6570_v60, 4 }
  0x55   : > { %552 = vst.msk [vmem:[#allocation2 + $0xd0] sm:$0x3f] %vm9526_vm14, %v548_v1  ;;  %v832_v1 = vrot.slane %v6538_v49, 7 }
  0x56   : > { %728 = vrot.lane.b32.xlu1 %v724_v21, %s6387_s21  ;;  %708 = vrot.lane.b32.xlu0 %v707_v34, %s6387_s21  ;;  %v4849_v21 = vld [vmem:[%s9512_s1 + $0x378] sm:$0xff]  ;;  %199 = vst.msk [vmem:[#allocation2 + $0x8] sm:$0xff] %vm9524_vm8, %v196_v56  ;;  %680 = vst.msk [vmem:[#allocation2 + $0x110] sm:$0xff] %vm9524_vm8, %v676_v8  ;;  %v215_v34 = vrot.slane %v6586_v3, 4  ;;  %v7163_v56 = vld [vmem:[%s6459_s16 + $0xc3] sm:$0xff] }
  0x57   : > { %5741 = vmatpush1.bf16.msra.mxu1 %v5740_v52  ;;  %v5743_v14 = vpack.c.bf16 %v4849_v21, %v4848_v58  ;;  %802 = vst.msk [vmem:[#allocation2 + $0x170] sm:$0x3] %vm253_vm4, %v797_v25  ;;  %vm9550_vm4 = vmmov %vm9546_vm1  ;;  %vm9552_vm1 = vcmask 523266   ;;  %v857_v52 = vrot.slane %v6543_v50, 2  ;;  %v856_v58 = vrot.slane %v6538_v49, 2 }
  0x58   : > { %5742 = vmatprep.subr.bf16.mxu1 %v6388_v33  ;;  %801 = vst.msk [vmem:[#allocation2 + $0x150] sm:$0xfe] %vm251_vm6, %v798_v37  ;;  %vm9551_vm6 = vmmov %vm9547_vm2  ;;  %v834_v35 = vsel %vm9529_vm11, %v832_v1, %v833_v5 }
  0x59   : > { %220 = vst.msk [vmem:[#allocation2 + $0x30] sm:$0x1] %vm175_vm0, %v215_v34  ;;  %v858_v61 = vsel %vm9527_vm3, %v856_v58, %v857_v52 }
  0x5a   : > { %425 = vrot.lane.b32.xlu1 %v421_v16, %s6387_s21  ;;  %788 = vrot.lane.b32.xlu0 %v787_v29, %s6387_s21  ;;  %v620_v16 = vrot.slane %v6720_v30, 7  ;;  %v735_v30 = vrot.slane %v6556_v54, 4  ;;  %v803_v29 = vrot.slane %v6567_v59, 4  ;;  %v216_v54 = vsel %vm9551_vm6, %v214_v39, %v215_v34  ;;  %830 = vst.msk [vmem:[#allocation2 + $0x160] sm:$0xfc] %vm9552_vm1, %v825_v44 }
  0x5b   : > { %5744 = vmatpush1.bf16.msra.mxu1 %v5743_v14  ;;  %219 = vst.msk [vmem:[#allocation2 + $0x10] sm:$0xff] %vm9524_vm8, %v216_v54  ;;  %vm9556_vm6 = vcmask 1042432   ;;  %v903_v14 = vrot.slane %v6724_v36, 7  ;;  %v926_v54 = vrot.slane %v6748_v48, 2 }
  0x5c   : > { %5777 = vmatprep.subr.bf16.mxu1 %v6388_v33  ;;  %740 = vst.msk [vmem:[#allocation2 + $0x150] sm:$0x1] %vm175_vm0, %v735_v30  ;;  %v736_v23 = vsel %vm9547_vm2, %v734_v19, %v735_v30  ;;  %vm9553_vm0 = vmmov %vm9547_vm2  ;;  %v7174_v30 = vld [vmem:[%s6459_s16 + $0xcb] sm:$0x7f] }
  0x5d   : > { %739 = vst.msk [vmem:[#allocation2 + $0x130] sm:$0xff] %vm9524_vm8, %v736_v23  ;;  %v805_v45 = vsel %vm9553_vm0, %v803_v29, %v804_v43  ;;  %vm9554_vm2 = vmmov %vm9548_vm5  ;;  %vm9558_vm0 = vcmask 523266   ;;  %v905_v8 = vsel %vm9529_vm11, %v903_v14, %v904_v15  ;;  %v972_v15 = vrot.slane %v6886_v17, 7 }
  0x5e   : > { %710 = vrot.lane.b32.xlu1 %v706_v18, %s6387_s21  ;;  %487 = vrot.lane.b32.xlu0 %v486_v0, %s6387_s21  ;;  %v181_v18 = vrot.slane %v6586_v3, 1  ;;  %861 = vst.msk [vmem:[#allocation2 + $0x170] sm:$0xfc] %vm9558_vm0, %v858_v61  ;;  %vm394_vm0 = vcmask 1048067  }
  0x62   : > { %790 = vrot.lane.b32.xlu1 %v786_v62, %s6387_s21  ;;  %770 = vrot.lane.b32.xlu0 %v6567_v59, %s6387_s21  ;;  %v741_v62 = vrot.slane %v6518_v42, 5  ;;  %v826_v42 = vrot.slane %v6543_v50, 6 }
  0x64   : > { %v743_v27 = vsel %vm9550_vm4, %v741_v62, %v742_v38  ;;  %v827_v59 = vsel %vm9554_vm2, %v825_v44, %v826_v42  ;;  %vm261_vm4 = vcmask 1048065   ;;  %vm330_vm2 = vcmask 1048066   ;;  %v1187_v44 = vld [vmem:[%s9512_s1 + $0x90] sm:$0xff] }
  0x66   : > { %553 = vrot.lane.b32.xlu1 %v6592_v6, %s6387_s21  ;;  %489 = vrot.lane.b32.xlu0 %v485_v46, %s6387_s21  ;;  %v621_v6 = vsel %vm9529_vm11, %v619_v20, %v620_v16  ;;  %v223_v46 = vrot.slane %v6586_v3, 5  ;;  %v845_v3 = vrot.slane %v6538_v49, 1  ;;  %v919_v49 = vrot.slane %v6748_v48, 1 }
  0x67   : > { %v1058_v16 = vrot.slane %v7163_v56, 1 }
  0x6a   : > { %555 = vrot.lane.b32.xlu1 %v6620_v22, %s6387_s21  ;;  %772 = vrot.lane.b32.xlu0 %v6570_v60, %s6387_s21  ;;  %v682_v22 = vrot.slane %v6812_v28, 6  ;;  %v182_v28 = vsel %vm9549_vm7, %v180_v40, %v181_v18  ;;  %v222_v60 = vrot.slane %v6529_v47, 5  ;;  %vm263_vm7 = vcmask 1041920  }
  0x6b   : > { %v846_v47 = vrot.slane %v6543_v50, 1  ;;  %v918_v50 = vrot.slane %v6724_v36, 1  ;;  %v893_v40 = vrot.slane %v6748_v48, 6 }
  0x6c   : > { %v683_v63 = vsel %vm9548_vm5, %v681_v2, %v682_v22  ;;  %vm9555_vm5 = vcmask 518144   ;;  %v224_v21 = vsel %vm9556_vm6, %v222_v60, %v223_v46  ;;  %vm9560_vm6 = vcmask 523267  }
  0x6d   : > { %831 = vst.msk [vmem:[#allocation2 + $0x180] sm:$0x7] %vm9555_vm5, %v827_v59  ;;  %vm9557_vm1 = vmmov %vm9555_vm5  ;;  %vm9559_vm5 = vcmask 1046528   ;;  %v1059_v22 = vrot.slane %v7174_v30, 1 }
  0x6e   : > { %624 = vrot.lane.b32.xlu1 %v621_v6, %s6387_s21  ;;  %622 = vrot.lane.b32.xlu0 %v619_v20, %s6387_s21  ;;  %862 = vst.msk [vmem:[#allocation2 + $0x190] sm:$0x7] %vm9557_vm1, %v857_v52  ;;  %v847_v51 = vsel %vm9559_vm5, %v845_v3, %v846_v47  ;;  %vm9561_vm1 = vmmov %vm9560_vm6  ;;  %vm332_vm5 = vcmask 1042944   ;;  %v865_v20 = vsel %vm9525_vm9, %v863_v12, %v864_v11  ;;  %vm9565_vm9 = vcmask 523267   ;;  %v1172_v3 = vld [vmem:[%s9512_s1 + $0x18] sm:$0xff] }
  0x6f   : > { %890 = vst.msk [vmem:[#allocation2 + $0x180] sm:$0xf8] %vm9560_vm6, %v885_v4  ;;  %vm9562_vm6 = vcmask 519168  }
  0x70   : > { %908 = vst.msk [vmem:[#allocation2 + $0x188] sm:$0xf8] %vm9561_vm1, %v903_v14  ;;  %vm9563_vm1 = vcmask 1046528   ;;  %vm9564_vm8 = vmmov %vm9562_vm6 }
  0x71   : > { %909 = vst.msk [vmem:[#allocation2 + $0x1a8] sm:$0xf] %vm9562_vm6, %v905_v8  ;;  %vm396_vm6 = vcmask 1043968   ;;  %v1175_v8 = vld [vmem:[%s9512_s1 + $0x30] sm:$0xff] }
  0x72   : > { %684 = vrot.lane.b32.xlu0 %v681_v2, %s6387_s21  ;;  %205 = vrot.lane.b32.xlu1 %v204_v32, %s6387_s21  ;;  %924 = vst.msk [vmem:[#allocation2 + $0x1b0] sm:$0xf] %vm9564_vm8, %v919_v49  ;;  %v892_v32 = vrot.slane %v6724_v36, 6  ;;  %vm9566_vm8 = vmmov %vm9563_vm1 }
  0x73   : > { %v1060_v23 = vsel %vm9566_vm8, %v1058_v16, %v1059_v22  ;;  %1064 = vst.msk [vmem:[#allocation2 + $0x1f8] sm:$0x3f] %vm9526_vm14, %v1059_v22  ;;  %vm9567_vm8 = vcmask 1041408   ;;  %vm9568_vm14 = vmmov %vm9563_vm1 }
  0x74   : > { %1063 = vst.msk [vmem:[#allocation2 + $0x1d8] sm:$0xe0] %vm9530_vm15, %v1060_v23  ;;  %v894_v42 = vsel %vm9567_vm8, %v892_v32, %v893_v40  ;;  %vm9535_vm8 = vcmask 1044992   ;;  %v1194_v23 = vld [vmem:[%s9512_s1 + $0xc8] sm:$0xff]  ;;  %vm9573_vm15 = vcmask 1046528  }
  0x76   : > { %686 = vrot.lane.b32.xlu1 %v683_v63, %s6387_s21  ;;  %183 = vrot.lane.b32.xlu0 %v182_v28, %s6387_s21 }
  0x7a   : > { %185 = vrot.lane.b32.xlu1 %v181_v18, %s6387_s21  ;;  %207 = vrot.lane.b32.xlu0 %v203_v26, %s6387_s21  ;;  %v920_v26 = vsel %vm9563_vm1, %v918_v50, %v919_v49  ;;  %v1169_v18 = vld [vmem:[%s9512_s1] sm:$0xff]  ;;  %v954_v50 = vrot.slane %v6886_v17, 5  ;;  %v973_v49 = vrot.slane %v7047_v9, 7 }
  0x7b   : > { %923 = vst.msk [vmem:[#allocation2 + $0x190] sm:$0xf8] %vm9565_vm9, %v920_v26  ;;  %vm460_vm9 = vcmask 1048068  }
  0x7e   : > { %746 = vrot.lane.b32.xlu1 %v742_v38, %s6387_s21  ;;  %744 = vrot.lane.b32.xlu0 %v743_v27, %s6387_s21  ;;  %v1170_v38 = vld [vmem:[%s9512_s1 + $0x8] sm:$0xff]  ;;  %v1188_v27 = vld [vmem:[%s9512_s1 + $0x98] sm:$0xff] }
  0x82   : > { %808 = vrot.lane.b32.xlu1 %v804_v43, %s6387_s21  ;;  %806 = vrot.lane.b32.xlu0 %v805_v45, %s6387_s21  ;;  %v925_v43 = vrot.slane %v6724_v36, 2  ;;  %v5747_v45 = vpack.c.bf16 %v1170_v38, %v1169_v18  ;;  %v1193_v18 = vld [vmem:[%s9512_s1 + $0xc0] sm:$0xff] }
  0x84   : > { %v258_v53 = vpop.permute.xlu0 %257  ;;  %v256_v0 = vpop.permute.xlu1 %255  ;;  %v927_v14 = vsel %vm9527_vm3, %v925_v43, %v926_v54  ;;  %vm9570_vm3 = vcmask 1042432   ;;  %v1177_v43 = vld [vmem:[%s9512_s1 + $0x40] sm:$0xff] }
  0x85   : > { %264 = vst.msk [vmem:[#allocation2 + $0x40] sm:$0x3] %vm263_vm7, %v258_v53  ;;  %v1189_v53 = vld [vmem:[%s9512_s1 + $0xa0] sm:$0xff] }
  0x86   : > { %262 = vst.msk [vmem:[#allocation2 + $0x20] sm:$0xfe] %vm261_vm4, %v256_v0  ;;  %227 = vrot.lane.b32.xlu1 %v223_v46, %s6387_s21  ;;  %225 = vrot.lane.b32.xlu0 %v224_v21, %s6387_s21  ;;  %v1171_v46 = vld [vmem:[%s9512_s1 + $0x10] sm:$0xff]  ;;  %v5749_v21 = vpack.c.bf16 %v1188_v27, %v1187_v44  ;;  %v1190_v0 = vld [vmem:[%s9512_s1 + $0xa8] sm:$0xff]  ;;  %v5761_v27 = vpack.c.bf16 %v1194_v23, %v1193_v18 }
  0x88   : > { %v278_v7 = vpop.permute.xlu0 %277  ;;  %v325_v41 = vpop.permute.xlu1 %324 }
  0x89   : > { %282 = vst.msk [vmem:[#allocation2 + $0x48] sm:$0x3] %vm263_vm7, %v278_v7 }
  0x8a   : > { %331 = vst.msk [vmem:[#allocation2 + $0x40] sm:$0xfc] %vm330_vm2, %v325_v41  ;;  %835 = vrot.lane.b32.xlu1 %v832_v1, %s6387_s21  ;;  %848 = vrot.lane.b32.xlu0 %v847_v51, %s6387_s21  ;;  %v5751_v51 = vpack.c.bf16 %v1172_v3, %v1171_v46  ;;  %v1032_v46 = vrot.slane %v7163_v56, 6 }
  0x8c   : > { %v340_v13 = vpop.permute.xlu1 %339  ;;  %v276_v10 = vpop.permute.xlu0 %275 }
  0x8d   : > { %345 = vst.msk [vmem:[#allocation2 + $0x48] sm:$0xfc] %vm330_vm2, %v340_v13  ;;  %v1225_v2 = vld [vmem:[#allocation2 + $0x20] sm:$0xfe]  ;;  %v1191_v13 = vld [vmem:[%s9512_s1 + $0xb0] sm:$0xff] }
  0x8e   : > { %281 = vst.msk [vmem:[#allocation2 + $0x28] sm:$0xfe] %vm261_vm4, %v276_v10  ;;  %837 = vrot.lane.b32.xlu1 %v834_v35, %s6387_s21  ;;  %850 = vrot.lane.b32.xlu0 %v846_v47, %s6387_s21  ;;  %v1338_v37 = vrot.slane %v1225_v2, 1  ;;  %v7224_v47 = vld [vmem:[%s6459_s16 + $0xd2] sm:$0xff]  ;;  %v5753_v35 = vpack.c.bf16 %v1190_v0, %v1189_v53 }
  0x8f   : > { %1123 = vst.msk [vmem:[#allocation2 + $0x1f8] sm:$0xc0] %vm9528_vm10, %v7224_v47  ;;  %v1192_v10 = vld [vmem:[%s9512_s1 + $0xb8] sm:$0xff]  ;;  %vm9571_vm10 = vcmask 1046528   ;;  %v1179_v0 = vld [vmem:[%s9512_s1 + $0x50] sm:$0xff] }
  0x90   : > { %v406_v6 = vpop.permute.xlu1 %405  ;;  %v342_v57 = vpop.permute.xlu0 %341 }
  0x91   : > { %411 = vst.msk [vmem:[#allocation2 + $0x68] sm:$0xf8] %vm394_vm0, %v406_v6  ;;  %v7178_v19 = vld [vmem:[#allocation2 + $0x40] sm:$0xff]  ;;  %v1176_v6 = vld [vmem:[%s9512_s1 + $0x38] sm:$0xff] }
  0x92   : > { %346 = vst.msk [vmem:[#allocation2 + $0x68] sm:$0x7] %vm332_vm5, %v342_v57  ;;  %868 = vrot.lane.b32.xlu1 %v864_v11, %s6387_s21  ;;  %866 = vrot.lane.b32.xlu0 %v865_v20, %s6387_s21  ;;  %v1339_v34 = vrot.slane %v7178_v19, 1  ;;  %v1173_v11 = vld [vmem:[%s9512_s1 + $0x20] sm:$0xff]  ;;  %v955_v57 = vrot.slane %v7047_v9, 5 }
  0x94   : > { %v389_v25 = vpop.permute.xlu1 %388  ;;  %v327_v31 = vpop.permute.xlu0 %326  ;;  %v7191_v63 = vld [vmem:[#allocation2 + $0x48] sm:$0xff]  ;;  %v1340_v52 = vsel %vm9568_vm14, %v1338_v37, %v1339_v34  ;;  %vm9569_vm14 = vmmov %vm9563_vm1  ;;  %v985_v37 = vrot.slane %v6886_v17, 1  ;;  %v956_v38 = vsel %vm9570_vm3, %v954_v50, %v955_v57  ;;  %vm9531_vm3 = vcmask 1048070  }
  0x95   : > { %v1226_v28 = vld [vmem:[#allocation2 + $0x28] sm:$0xfe]  ;;  %395 = vst.msk [vmem:[#allocation2 + $0x60] sm:$0xf8] %vm394_vm0, %v389_v25  ;;  %v1342_v39 = vrot.slane %v7191_v63, 1  ;;  %v5759_v25 = vpack.c.bf16 %v1176_v6, %v1175_v8  ;;  %v1199_v8 = vld [vmem:[%s9512_s1 + $0xf0] sm:$0xff] }
  0x96   : > { %333 = vst.msk [vmem:[#allocation2 + $0x60] sm:$0x7] %vm332_vm5, %v327_v31  ;;  %v1341_v62 = vrot.slane %v1226_v28, 1  ;;  %895 = vrot.lane.b32.xlu1 %v892_v32, %s6387_s21  ;;  %910 = vrot.lane.b32.xlu0 %v6724_v36, %s6387_s21  ;;  %v5757_v32 = vpack.c.bf16 %v1192_v10, %v1191_v13  ;;  %v974_v31 = vsel %vm9529_vm11, %v972_v15, %v973_v49  ;;  %vm9572_vm11 = vmmov %vm9571_vm10  ;;  %v1033_v13 = vrot.slane %v7174_v30, 6  ;;  %v1200_v6 = vld [vmem:[%s9512_s1 + $0xf8] sm:$0xff] }
  0x97   : > { %v1015_v10 = vrot.slane %v7174_v30, 4 }
  0x98   : > { %v1343_v29 = vsel %vm9563_vm1, %v1341_v62, %v1342_v39  ;;  %v475_v60 = vpop.permute.xlu1 %474  ;;  %v408_v59 = vpop.permute.xlu0 %407  ;;  %vm9534_vm1 = vcmask 1048069  }
  0x99   : > { %1541 = vmatprep.mubr.f32.mxu0 %v1343_v29  ;;  %v7218_v58 = vld [vmem:[#allocation2 + $0x68] sm:$0xff]  ;;  %480 = vst.msk [vmem:[#allocation2 + $0x88] sm:$0xf0] %vm460_vm9, %v475_v60 }
  0x9a   : > { %412 = vst.msk [vmem:[#allocation2 + $0x88] sm:$0xf] %vm396_vm6, %v408_v59  ;;  %1542 = vmatmul.mubr.f32.vlgmr.msra.gmra.mrb[0].mxu0 %v1340_v52  ;;  %v1352_v61 = vrot.slane %v7218_v58, 1  ;;  %912 = vrot.lane.b32.xlu0 %v6748_v48, %s6387_s21  ;;  %v1174_v48 = vld [vmem:[%s9512_s1 + $0x28] sm:$0xff] }
  0x9b   : > { %897 = vrot.lane.b32.xlu1 %v894_v42, %s6387_s21  ;;  %5748 = vmatpush3.bf16.msra.mxu0 %v5747_v45  ;;  %v5755_v16 = vpack.c.bf16 %v1174_v48, %v1173_v11  ;;  %v1178_v29 = vld [vmem:[%s9512_s1 + $0x48] sm:$0xff]  ;;  %v1195_v42 = vld [vmem:[%s9512_s1 + $0xd0] sm:$0xff]  ;;  %v1196_v45 = vld [vmem:[%s9512_s1 + $0xd8] sm:$0xff] }
  0x9c   : > { %v1353_v1 = vsel %vm9569_vm14, %v1342_v39, %v1352_v61  ;;  %v455_v5 = vpop.permute.xlu1 %454  ;;  %v391_v7 = vpop.permute.xlu0 %390  ;;  %5750 = vmatprep.subr.bf16.mxu0 %v5749_v21  ;;  %v5763_v59 = vpack.c.bf16 %v1178_v29, %v1177_v43  ;;  %v5765_v53 = vpack.c.bf16 %v1196_v45, %v1195_v42  ;;  %v1181_v48 = vld [vmem:[%s9512_s1 + $0x60] sm:$0xff]  ;;  %v1094_v43 = vrot.slane %v7224_v47, 5 }
  0x9d   : > { %1546 = vmatprep.mubr.f32.mxu0 %v1353_v1  ;;  %v7242_v41 = vld [vmem:[#allocation2 + $0x60] sm:$0xff]  ;;  %461 = vst.msk [vmem:[#allocation2 + $0x80] sm:$0xf0] %vm460_vm9, %v455_v5  ;;  %v1180_v1 = vld [vmem:[%s9512_s1 + $0x58] sm:$0xff]  ;;  %v1198_v5 = vld [vmem:[%s9512_s1 + $0xe8] sm:$0xff] }
  0x9e   : > { %397 = vst.msk [vmem:[#allocation2 + $0x80] sm:$0xf] %vm396_vm6, %v391_v7  ;;  %v1350_v12 = vrot.slane %v7242_v41, 1  ;;  %928 = vrot.lane.b32.xlu0 %v927_v14, %s6387_s21  ;;  %v1014_v7 = vrot.slane %v7163_v56, 4  ;;  %v5767_v11 = vpack.c.bf16 %v1180_v1, %v1179_v0 }
  0x9f   : > { %930 = vrot.lane.b32.xlu1 %v926_v54, %s6387_s21  ;;  %5752 = vmatpush3.bf16.msra.mxu0 %v5751_v51  ;;  %v1197_v51 = vld [vmem:[%s9512_s1 + $0xe0] sm:$0xff] }
  0xa0   : > { %v1351_v20 = vsel %vm9569_vm14, %v1339_v34, %v1350_v12  ;;  %v539_v26 = vpop.permute.xlu1 %538  ;;  %v477_v2 = vpop.permute.xlu0 %476  ;;  %5754 = vmatprep.subr.bf16.mxu0 %v5753_v35  ;;  %v986_v34 = vrot.slane %v7047_v9, 1 }
  0xa1   : > { %1547 = vmatmul.mubr.f32.gmra.mrb[2].mxu0 %v1351_v20  ;;  %v7272_v22 = vld [vmem:[#allocation2 + $0x88] sm:$0xff]  ;;  %544 = vst.msk [vmem:[#allocation2 + $0xa8] sm:$0xe0] %vm9534_vm1, %v539_v26  ;;  %v5769_v20 = vpack.c.bf16 %v1198_v5, %v1197_v51  ;;  %v7414_v51 = vld [vmem:[#allocation2 + $0x78] sm:$0xff] }
  0xa2   : > { %481 = vst.msk [vmem:[#allocation2 + $0xa8] sm:$0x1f] %vm9535_vm8, %v477_v2  ;;  %v1360_v40 = vrot.slane %v7272_v22, 1  ;;  %975 = vrot.lane.b32.xlu0 %v972_v15, %s6387_s21  ;;  %v987_v52 = vsel %vm9572_vm11, %v985_v37, %v986_v34  ;;  %vm653_vm11 = vcmask 1048071   ;;  %v1183_v37 = vld [vmem:[%s9512_s1 + $0x70] sm:$0xff] }
  0xa3   : > { %957 = vrot.lane.b32.xlu1 %v954_v50, %s6387_s21  ;;  %5756 = vmatpush3.bf16.msra.mxu0 %v5755_v16 }
  0xa4   : > { %v1361_v28 = vsel %vm9569_vm14, %v1352_v61, %v1360_v40  ;;  %v519_v62 = vpop.permute.xlu1 %518  ;;  %v457_v39 = vpop.permute.xlu0 %456  ;;  %5758 = vmatprep.subr.bf16.mxu0 %v5757_v32  ;;  %vm9532_vm14 = vcmask 1046016  }
  0xa5   : > { %1551 = vmatprep.mubr.f32.mxu0 %v1361_v28  ;;  %v7290_v44 = vld [vmem:[#allocation2 + $0x80] sm:$0xff]  ;;  %525 = vst.msk [vmem:[#allocation2 + $0xa0] sm:$0xe0] %vm9534_vm1, %v519_v62  ;;  %v5773_v28 = vpack.c.bf16 %v1200_v6, %v1199_v8 }
  0xa6   : > { %463 = vst.msk [vmem:[#allocation2 + $0xa0] sm:$0x1f] %vm9535_vm8, %v457_v39  ;;  %v1358_v54 = vrot.slane %v7290_v44, 1  ;;  %977 = vrot.lane.b32.xlu0 %v974_v31, %s6387_s21  ;;  %v4888_v62 = vld [vmem:[%s9512_s1 + $0x400] sm:$0xff]  ;;  %v4889_v39 = vld [vmem:[%s9512_s1 + $0x408] sm:$0xff] }
  0xa7   : > { %959 = vrot.lane.b32.xlu1 %v956_v38, %s6387_s21  ;;  %5760 = vmatpush3.bf16.msra.mxu0 %v5759_v25  ;;  %v5813_v36 = vpack.c.bf16 %v4889_v39, %v4888_v62 }
  0xa8   : > { %v1359_v60 = vsel %vm9571_vm10, %v1350_v12, %v1358_v54  ;;  %v605_v21 = vpop.permute.xlu1 %604  ;;  %v541_v3 = vpop.permute.xlu0 %540  ;;  %5762 = vmatprep.subr.bf16.mxu0 %v5761_v27  ;;  %v1182_v12 = vld [vmem:[%s9512_s1 + $0x68] sm:$0xff] }
  0xa9   : > { %1552 = vmatmul.mubr.f32.gmra.mrb[4].mxu0 %v1359_v60  ;;  %v7312_v61 = vld [vmem:[#allocation2 + $0xa8] sm:$0xff]  ;;  %610 = vst.msk [vmem:[#allocation2 + $0xc8] sm:$0xc0] %vm9531_vm3, %v605_v21  ;;  %v5771_v57 = vpack.c.bf16 %v1182_v12, %v1181_v48  ;;  %v1076_v60 = vrot.slane %v7224_v47, 3  ;;  %v947_v21 = vrot.slane %v6886_v17, 4  ;;  %v1201_v48 = vld [vmem:[%s9512_s1 + $0x100] sm:$0xff] }
  0xaa   : > { %545 = vst.msk [vmem:[#allocation2 + $0xc8] sm:$0x3f] %vm9532_vm14, %v541_v3  ;;  %v1368_v14 = vrot.slane %v7312_v61, 1  ;;  %988 = vrot.lane.b32.xlu0 %v987_v52, %s6387_s21  ;;  %v7426_v12 = vld [vmem:[%s6459_s16 + $0xda] sm:$0x7f] }
  0xab   : > { %1035 = vrot.lane.b32.xlu1 %v1032_v46, %s6387_s21  ;;  %5764 = vmatpush3.bf16.msra.mxu0 %v5763_v59  ;;  %v965_v59 = vrot.slane %v6886_v17, 6  ;;  %952 = vst.msk [vmem:[#allocation2 + $0x1a0] sm:$0xf0] %vm447_vm13, %v947_v21 }
  0xac   : > { %v1369_v35 = vsel %vm9571_vm10, %v1360_v40, %v1368_v14  ;;  %v585_v15 = vpop.permute.xlu1 %584  ;;  %v521_v50 = vpop.permute.xlu0 %520  ;;  %5766 = vmatprep.subr.bf16.mxu0 %v5765_v53  ;;  %vm592_vm10 = vcmask 1047040   ;;  %v6375_v40 = vld [vmem:[%s6459_s16 + $0xad] sm:$0x7f]  ;;  %1124 = vst.msk [vmem:[#allocation2 + $0x218] sm:$0x7f] %vm9533_vm12, %v7426_v12  ;;  %vm9586_vm12 = vcmask 1044480  }
  0xad   : > { %1556 = vmatprep.mubr.f32.mxu0 %v1369_v35  ;;  %v7341_v49 = vld [vmem:[#allocation2 + $0xa0] sm:$0xff]  ;;  %591 = vst.msk [vmem:[#allocation2 + $0xc0] sm:$0xc0] %vm9531_vm3, %v585_v15  ;;  %vm9574_vm3 = vcmask 1041408   ;;  %v886_v18 = vrot.slane %v6375_v40, 5 }
  0xae   : > { %527 = vst.msk [vmem:[#allocation2 + $0xc0] sm:$0x3f] %vm9532_vm14, %v521_v50  ;;  %v1366_v16 = vrot.slane %v7341_v49, 1  ;;  %990 = vrot.lane.b32.xlu0 %v986_v34, %s6387_s21  ;;  %v1034_v2 = vsel %vm9574_vm3, %v1032_v46, %v1033_v13  ;;  %vm9575_vm14 = vcmask 1043456   ;;  %v1184_v34 = vld [vmem:[%s9512_s1 + $0x78] sm:$0xff]  ;;  %vm9577_vm3 = vcmask 519168  }
  0xaf   : > { %1017 = vrot.lane.b32.xlu1 %v1014_v7, %s6387_s21  ;;  %5768 = vmatpush3.bf16.msra.mxu0 %v5767_v11  ;;  %v1016_v32 = vsel %vm9575_vm14, %v1014_v7, %v1015_v10  ;;  %vm9578_vm14 = vcmask 1046528   ;;  %970 = vst.msk [vmem:[#allocation2 + $0x1a8] sm:$0xf0] %vm447_vm13, %v965_v59  ;;  %v1356_v11 = vrot.slane %v7414_v51, 1  ;;  %v1095_v50 = vrot.slane %v7426_v12, 5 }
  0xb0   : > { %v1367_v26 = vsel %vm9573_vm15, %v1358_v54, %v1366_v16  ;;  %v667_v23 = vpop.permute.xlu1 %666  ;;  %v607_v25 = vpop.permute.xlu0 %606  ;;  %5770 = vmatprep.subr.bf16.mxu0 %v5769_v20  ;;  %vm9576_vm15 = vcmask 1042432   ;;  %v5775_v54 = vpack.c.bf16 %v1184_v34, %v1183_v37  ;;  %vm9580_vm13 = vmmov %vm9578_vm14  ;;  %v1205_v37 = vld [vmem:[%s9512_s1 + $0x120] sm:$0xff]  ;;  %v1206_v34 = vld [vmem:[%s9512_s1 + $0x128] sm:$0xff] }
  0xb1   : > { %1557 = vmatmul.mubr.f32.gmra.mrb[6].mxu0 %v1367_v26  ;;  %v7358_v31 = vld [vmem:[#allocation2 + $0xc8] sm:$0xff]  ;;  %672 = vst.msk [vmem:[#allocation2 + $0xe8] sm:$0x80] %vm653_vm11, %v667_v23  ;;  %v887_v27 = vsel %vm9576_vm15, %v885_v4, %v886_v18  ;;  %vm9579_vm15 = vmmov %vm9578_vm14  ;;  %v1357_v6 = vsel %vm9580_vm13, %v1348_v55, %v1356_v11  ;;  %v1204_v26 = vld [vmem:[%s9512_s1 + $0x118] sm:$0xff] }
  0xb2   : > { %611 = vst.msk [vmem:[#allocation2 + $0xe8] sm:$0x7f] %vm592_vm10, %v607_v25  ;;  %v1376_v38 = vrot.slane %v7358_v31, 1  ;;  %1037 = vrot.lane.b32.xlu0 %v1034_v2, %s6387_s21 }
  0xb3   : > { %1019 = vrot.lane.b32.xlu1 %v1016_v32, %s6387_s21  ;;  %891 = vst.msk [vmem:[#allocation2 + $0x1a0] sm:$0xf] %vm9577_vm3, %v887_v27  ;;  %5772 = vmatpush3.bf16.msra.mxu0 %v5771_v57  ;;  %vm189_vm3 = vcmask 1048064   ;;  %v1203_v57 = vld [vmem:[%s9512_s1 + $0x110] sm:$0xff]  ;;  %v7473_v27 = vld [vmem:[#allocation2 + $0x98] sm:$0xff] }
  0xb4   : > { %v1377_v29 = vsel %vm9578_vm14, %v1368_v14, %v1376_v38  ;;  %v296_v42 = vpop.permute.xlu1 %295  ;;  %v294_v45 = vpop.permute.xlu0 %293  ;;  %5774 = vmatprep.subr.bf16.mxu0 %v5773_v28  ;;  %v5781_v28 = vpack.c.bf16 %v1204_v26, %v1203_v57 }
  0xb5   : > { %1561 = vmatprep.mubr.f32.mxu0 %v1377_v29  ;;  %v7383_v46 = vld [vmem:[#allocation2 + $0xc0] sm:$0xff]  ;;  %300 = vst.msk [vmem:[#allocation2 + $0x50] sm:$0x3] %vm263_vm7, %v296_v42 }
  0xb6   : > { %299 = vst.msk [vmem:[#allocation2 + $0x30] sm:$0xfe] %vm261_vm4, %v294_v45  ;;  %v1374_v4 = vrot.slane %v7383_v46, 1  ;;  %1050 = vrot.lane.b32.xlu0 %v7163_v56, %s6387_s21 }
  0xb7   : > { %1097 = vrot.lane.b32.xlu1 %v1094_v43, %s6387_s21  ;;  %5776 = vmatpush3.bf16.msra.mxu0 %v5775_v54 }
  0xb8   : > { %v1375_v52 = vsel %vm9579_vm15, %v1366_v16, %v1374_v4  ;;  %v587_v3 = vpop.permute.xlu1 %586  ;;  %v358_v53 = vpop.permute.xlu0 %357  ;;  %5814 = vmatprep.subr.bf16.mxu0 %v5813_v36  ;;  %vm9581_vm15 = vcmask 1042432  }
  0xb9   : > { %1562 = vmatmul.mubr.f32.gmra.mrb[8].mxu0 %v1375_v52  ;;  %v7397_v0 = vld [vmem:[#allocation2 + $0xe8] sm:$0xff]  ;;  %593 = vst.msk [vmem:[#allocation2 + $0xe0] sm:$0x7f] %vm592_vm10, %v587_v3  ;;  %v1096_v2 = vsel %vm9581_vm15, %v1094_v43, %v1095_v50  ;;  %vm191_vm15 = vcmask 1040896   ;;  %v1364_v52 = vrot.slane %v7473_v27, 1  ;;  %v1207_v3 = vld [vmem:[%s9512_s1 + $0x130] sm:$0xff] }
  0xba   : > { %363 = vst.msk [vmem:[#allocation2 + $0x50] sm:$0xfc] %vm330_vm2, %v358_v53  ;;  %v1384_v1 = vrot.slane %v7397_v0, 1  ;;  %1052 = vrot.lane.b32.xlu0 %v7174_v30, %s6387_s21  ;;  %v1202_v30 = vld [vmem:[%s9512_s1 + $0x108] sm:$0xff]  ;;  %v1208_v53 = vld [vmem:[%s9512_s1 + $0x138] sm:$0xff] }
  0xbb   : > { %1079 = vrot.lane.b32.xlu1 %v1076_v60, %s6387_s21  ;;  %v5778_v8 = vpack.c.bf16 %v1202_v30, %v1201_v48 }
  0xbc   : > { %v1385_v14 = vsel %vm9578_vm14, %v1376_v38, %v1384_v1  ;;  %v669_v5 = vpop.permute.xlu1 %668  ;;  %v648_v7 = vpop.permute.xlu0 %647  ;;  %vm9582_vm14 = vmmov %vm9580_vm13  ;;  %vm9583_vm13 = vcmask 523264   ;;  %v1112_v38 = vrot.slane %v7224_v47, 7 }
  0xbd   : > { %1566 = vmatprep.mubr.f32.mxu0 %v1385_v14  ;;  %673 = vst.msk [vmem:[#allocation2 + $0x108] sm:$0xff] %vm189_vm3, %v669_v5  ;;  %v1227_v35 = vld [vmem:[#allocation2 + $0x30] sm:$0xfe] }
  0xbe   : > { %654 = vst.msk [vmem:[#allocation2 + $0xe0] sm:$0x80] %vm653_vm11, %v648_v7  ;;  %v1344_v20 = vrot.slane %v1227_v35, 1  ;;  %1099 = vrot.lane.b32.xlu0 %v1096_v2, %s6387_s21 }
  0xc0   : > { %v727_v13 = vpop.permute.xlu1 %726  ;;  %v650_v10 = vpop.permute.xlu0 %649 }
  0xc1   : > { %v7428_v15 = vld [vmem:[#allocation2 + $0x50] sm:$0xff]  ;;  %732 = vst.msk [vmem:[#allocation2 + $0x128] sm:$0xff] %vm189_vm3, %v727_v13  ;;  %655 = vst.msk [vmem:[#allocation2 + $0x100] sm:$0xff] %vm189_vm3, %v650_v10  ;;  %v5787_v10 = vpack.c.bf16 %v1208_v53, %v1207_v3 }
  0xc2   : > { %v1345_v16 = vrot.slane %v7428_v15, 1  ;;  %1115 = vrot.lane.b32.xlu0 %v1112_v38, %s6387_s21 }
  0xc4   : > { %v1346_v32 = vsel %vm9582_vm14, %v1344_v20, %v1345_v16  ;;  %v424_v40 = vpop.permute.xlu1 %423  ;;  %v360_v24 = vpop.permute.xlu0 %359  ;;  %v7454_v18 = vld [vmem:[#allocation2 + $0x108] sm:$0xff] }
  0xc5   : > { %1660 = vmatmul.mubr.f32.vlgmr.msra.gmra.mrb[0].mxu1 %v1346_v32  ;;  %v7452_v55 = vld [vmem:[#allocation2 + $0xe0] sm:$0xff]  ;;  %429 = vst.msk [vmem:[#allocation2 + $0x70] sm:$0xf8] %vm394_vm0, %v424_v40  ;;  %v1392_v25 = vrot.slane %v7454_v18, 1  ;;  %v1210_v20 = vld [vmem:[%s9512_s1 + $0x148] sm:$0xff]  ;;  %v1212_v32 = vld [vmem:[%s9512_s1 + $0x158] sm:$0xff] }
  0xc6   : > { %364 = vst.msk [vmem:[#allocation2 + $0x70] sm:$0x7] %vm332_vm5, %v360_v24  ;;  %v1382_v23 = vrot.slane %v7452_v55, 1  ;;  %4851 = vmatprep.mubr.msk.f32.mxu1 %vm9583_vm13, %v1357_v6  ;;  %5779 = vmatpush1.bf16.msra.mxu1 %v5778_v8  ;;  %vm9584_vm13 = vmmov %vm9582_vm14  ;;  %v7535_v24 = vld [vmem:[#allocation2 + $0xb8] sm:$0xff] }
  0xc7   : > { %5780 = vmatprep.subr.bf16.mxu1 %v6388_v33  ;;  %v1393_v39 = vsel %vm9584_vm13, %v1384_v1, %v1392_v25  ;;  %v1077_v1 = vrot.slane %v7426_v12, 3 }
  0xc8   : > { %v1383_v62 = vsel %vm9582_vm14, %v1374_v4, %v1382_v23  ;;  %v729_v43 = vpop.permute.xlu1 %728  ;;  %v709_v29 = vpop.permute.xlu0 %708  ;;  %v7475_v54 = vld [vmem:[#allocation2 + $0x100] sm:$0xff]  ;;  %v7477_v42 = vld [vmem:[#allocation2 + $0x128] sm:$0xff]  ;;  %v5784_v4 = vpack.c.bf16 %v1206_v34, %v1205_v37  ;;  %vm9585_vm14 = vmmov %vm9584_vm13 }
  0xc9   : > { %1567 = vmatmul.mubr.f32.gmra.mrb[10].mxu0 %v1383_v62  ;;  %733 = vst.msk [vmem:[#allocation2 + $0x148] sm:$0x1] %vm191_vm15, %v729_v43  ;;  %v1390_v45 = vrot.slane %v7475_v54, 1  ;;  %v1400_v36 = vrot.slane %v7477_v42, 1  ;;  %v1078_v30 = vsel %vm9586_vm12, %v1076_v60, %v1077_v1  ;;  %v1209_v60 = vld [vmem:[%s9512_s1 + $0x140] sm:$0xff]  ;;  %vm9588_vm12 = vmmov %vm9584_vm13  ;;  %v966_v62 = vrot.slane %v7047_v9, 6 }
  0xca   : > { %714 = vst.msk [vmem:[#allocation2 + $0x120] sm:$0xff] %vm189_vm3, %v709_v29  ;;  %1571 = vmatprep.mubr.f32.mxu0 %v1393_v39  ;;  %5782 = vmatpush1.bf16.msra.mxu1 %v5781_v28  ;;  %v5790_v2 = vpack.c.bf16 %v1210_v20, %v1209_v60  ;;  %v1372_v39 = vrot.slane %v7535_v24, 1  ;;  %v1213_v43 = vld [vmem:[%s9512_s1 + $0x160] sm:$0xff]  ;;  %v1214_v29 = vld [vmem:[%s9512_s1 + $0x168] sm:$0xff] }
  0xcb   : > { %5783 = vmatprep.subr.bf16.mxu1 %v6388_v33  ;;  %v1391_v14 = vsel %vm9585_vm14, %v1382_v23, %v1390_v45  ;;  %v1401_v5 = vsel %vm9584_vm13, %v1392_v25, %v1400_v36  ;;  %vm9587_vm14 = vmmov %vm9584_vm13  ;;  %1081 = vrot.lane.b32.xlu1 %v1078_v30, %s6387_s21  ;;  %vm9589_vm13 = vcmask 523264   ;;  %v7569_v30 = vld [vmem:[#allocation2 + $0xd8] sm:$0xff] }
  0xcc   : > { %v426_v7 = vpop.permute.xlu1 %425  ;;  %v789_v35 = vpop.permute.xlu0 %788  ;;  %v1365_v50 = vsel %vm9587_vm14, %v1356_v11, %v1364_v52  ;;  %vm9590_vm14 = vmmov %vm9588_vm12 }
  0xcd   : > { %1572 = vmatmul.mubr.f32.gmra.mrb[12].mxu0 %v1391_v14  ;;  %v7497_v48 = vld [vmem:[#allocation2 + $0x70] sm:$0xff]  ;;  %430 = vst.msk [vmem:[#allocation2 + $0x90] sm:$0xf] %vm396_vm6, %v426_v7  ;;  %v1216_v7 = vld [vmem:[%s9512_s1 + $0x178] sm:$0xff] }
  0xce   : > { %794 = vst.msk [vmem:[#allocation2 + $0x148] sm:$0xfe] %vm261_vm4, %v789_v35  ;;  %1576 = vmatprep.mubr.f32.mxu0 %v1401_v5  ;;  %v1354_v13 = vrot.slane %v7497_v48, 1  ;;  %5785 = vmatpush1.bf16.msra.mxu1 %v5784_v4  ;;  %v5796_v5 = vpack.c.bf16 %v1214_v29, %v1213_v43  ;;  %v7607_v29 = vld [vmem:[#allocation2 + $0xf8] sm:$0xff] }
  0xcf   : > { %5786 = vmatprep.subr.bf16.mxu1 %v6388_v33 }
  0xd0   : > { %v1355_v8 = vsel %vm9588_vm12, %v1345_v16, %v1354_v13  ;;  %v711_v6 = vpop.permute.xlu1 %710  ;;  %v488_v57 = vpop.permute.xlu0 %487  ;;  %v1211_v16 = vld [vmem:[%s9512_s1 + $0x150] sm:$0xff] }
  0xd1   : > { %1665 = vmatmul.mubr.f32.gmra.mrb[2].mxu1 %v1355_v8  ;;  %v7521_v11 = vld [vmem:[#allocation2 + $0x120] sm:$0xff]  ;;  %715 = vst.msk [vmem:[#allocation2 + $0x140] sm:$0x1] %vm191_vm15, %v711_v6  ;;  %v5793_v34 = vpack.c.bf16 %v1212_v32, %v1211_v16 }
  0xd2   : > { %493 = vst.msk [vmem:[#allocation2 + $0x90] sm:$0xf0] %vm460_vm9, %v488_v57  ;;  %v1398_v26 = vrot.slane %v7521_v11, 1  ;;  %4852 = vmatprep.mubr.msk.f32.mxu1 %vm9589_vm13, %v1365_v50  ;;  %5788 = vmatpush1.bf16.msra.mxu1 %v5787_v10  ;;  %vm9591_vm13 = vcmask 1041408  }
  0xd3   : > { %5789 = vmatprep.subr.bf16.mxu1 %v6388_v33  ;;  %v967_v4 = vsel %vm9591_vm13, %v965_v59, %v966_v62  ;;  %v1215_v59 = vld [vmem:[%s9512_s1 + $0x170] sm:$0xff]  ;;  %vm9593_vm13 = vmmov %vm9588_vm12  ;;  %v1220_v62 = vld [vmem:[%s9512_s1 + $0x198] sm:$0xff] }
  0xd4   : > { %v1399_v40 = vsel %vm9590_vm14, %v1390_v45, %v1398_v26  ;;  %v791_v23 = vpop.permute.xlu1 %790  ;;  %v771_v25 = vpop.permute.xlu0 %770  ;;  %vm9592_vm14 = vcmask 520192   ;;  %v5799_v57 = vpack.c.bf16 %v1216_v7, %v1215_v59  ;;  %v7619_v59 = vld [vmem:[#allocation2 + $0x118] sm:$0xff]  ;;  %v1221_v7 = vld [vmem:[%s9512_s1 + $0x1a0] sm:$0xff] }
  0xd5   : > { %1577 = vmatmul.mubr.f32.gmra.mrb[14].mxu0 %v1399_v40  ;;  %v1230_v28 = vld [vmem:[#allocation2 + $0x148] sm:$0xff]  ;;  %795 = vst.msk [vmem:[#allocation2 + $0x168] sm:$0x3] %vm263_vm7, %v791_v23 }
  0xd6   : > { %776 = vst.msk [vmem:[#allocation2 + $0x140] sm:$0xfe] %vm261_vm4, %v771_v25  ;;  %v1408_v37 = vrot.slane %v1230_v28, 1  ;;  %5791 = vmatpush1.bf16.msra.mxu1 %v5790_v2  ;;  %v1217_v2 = vld [vmem:[%s9512_s1 + $0x180] sm:$0xff] }
  0xd7   : > { %5792 = vmatprep.subr.bf16.mxu1 %v6388_v33  ;;  %971 = vst.msk [vmem:[#allocation2 + $0x1c8] sm:$0x1f] %vm9592_vm14, %v967_v4  ;;  %vm9594_vm14 = vcmask 1046016  }
  0xd8   : > { %v1409_v45 = vsel %vm9588_vm12, %v1400_v36, %v1408_v37  ;;  %v554_v3 = vpop.permute.xlu1 %553  ;;  %v490_v53 = vpop.permute.xlu0 %489  ;;  %v1373_v36 = vsel %vm9588_vm12, %v1364_v52, %v1372_v39  ;;  %v948_v52 = vrot.slane %v7047_v9, 4  ;;  %vm9595_vm12 = vcmask 523264   ;;  %v1218_v9 = vld [vmem:[%s9512_s1 + $0x188] sm:$0xff] }
  0xd9   : > { %1581 = vmatprep.mubr.f32.mxu0 %v1409_v45  ;;  %v7552_v1 = vld [vmem:[#allocation2 + $0x90] sm:$0xff]  ;;  %559 = vst.msk [vmem:[#allocation2 + $0xb0] sm:$0xe0] %vm9534_vm1, %v554_v3  ;;  %vm9599_vm1 = vcmask 520192   ;;  %v1007_v3 = vrot.slane %v7163_v56, 3 }
  0xda   : > { %494 = vst.msk [vmem:[#allocation2 + $0xb0] sm:$0x1f] %vm9535_vm8, %v490_v53  ;;  %v1362_v14 = vrot.slane %v7552_v1, 1  ;;  %5794 = vmatpush1.bf16.msra.mxu1 %v5793_v34  ;;  %v1025_v34 = vrot.slane %v7163_v56, 5  ;;  %vm9600_vm8 = vcmask 1048070  }
  0xdb   : > { %5795 = vmatprep.subr.bf16.mxu1 %v6388_v33 }
  0xdc   : > { %v1363_v35 = vsel %vm9593_vm13, %v1354_v13, %v1362_v14  ;;  %v556_v10 = vpop.permute.xlu1 %555  ;;  %v773_v50 = vpop.permute.xlu0 %772  ;;  %v1234_v20 = vld [vmem:[#allocation2 + $0x168] sm:$0x3]  ;;  %v1380_v13 = vrot.slane %v7569_v30, 1  ;;  %vm9596_vm13 = vcmask 1043456  }
  0xdd   : > { %1670 = vmatmul.mubr.f32.gmra.mrb[4].mxu1 %v1363_v35  ;;  %v1229_v60 = vld [vmem:[#allocation2 + $0x140] sm:$0xff]  ;;  %560 = vst.msk [vmem:[#allocation2 + $0xd0] sm:$0x3f] %vm9594_vm14, %v556_v10  ;;  %v1416_v6 = vrot.slane %v1234_v20, 1  ;;  %v949_v16 = vsel %vm9596_vm13, %v947_v21, %v948_v52  ;;  %vm9597_vm14 = vcmask 1046528   ;;  %v5802_v21 = vpack.c.bf16 %v1218_v9, %v1217_v2  ;;  %v1222_v35 = vld [vmem:[%s9512_s1 + $0x1a8] sm:$0xff] }
  0xde   : > { %777 = vst.msk [vmem:[#allocation2 + $0x160] sm:$0x3] %vm263_vm7, %v773_v50  ;;  %v1406_v8 = vrot.slane %v1229_v60, 1  ;;  %4853 = vmatprep.mubr.msk.f32.mxu1 %vm9595_vm12, %v1373_v36  ;;  %5797 = vmatpush1.bf16.msra.mxu1 %v5796_v5  ;;  %vm9598_vm12 = vmmov %vm9597_vm14  ;;  %v1388_v36 = vrot.slane %v7607_v29, 1  ;;  %v4873_v2 = vld [vmem:[%s9512_s1 + $0x388] sm:$0xff]  ;;  %v7640_v9 = vld [vmem:[#allocation2 + $0x138] sm:$0xff] }
  0xdf   : > { %5798 = vmatprep.subr.bf16.mxu1 %v6388_v33  ;;  %v1417_v40 = vsel %vm9598_vm12, %v1408_v37, %v1416_v6  ;;  %953 = vst.msk [vmem:[#allocation2 + $0x1c0] sm:$0x1f] %vm9599_vm1, %v949_v16  ;;  %vm9601_vm13 = vmmov %vm9598_vm12  ;;  %v1219_v37 = vld [vmem:[%s9512_s1 + $0x190] sm:$0xff]  ;;  %vm9602_vm1 = vcmask 523269  }
  0xe0   : > { %v1407_v32 = vsel %vm9597_vm14, %v1398_v26, %v1406_v8  ;;  %v625_v23 = vpop.permute.xlu1 %624  ;;  %v623_v25 = vpop.permute.xlu0 %622  ;;  %v1381_v26 = vsel %vm9601_vm13, %v1372_v39, %v1380_v13  ;;  %1030 = vst.msk [vmem:[#allocation2 + $0x1c8] sm:$0xe0] %vm9602_vm1, %v1025_v34  ;;  %vm9604_vm14 = vcmask 523264   ;;  %v5805_v5 = vpack.c.bf16 %v1220_v62, %v1219_v37 }
  0xe1   : > { %1582 = vmatmul.mubr.f32.gmra.mrb[16].mxu0 %v1407_v32  ;;  %v7589_v28 = vld [vmem:[#allocation2 + $0xb0] sm:$0xff]  ;;  %629 = vst.msk [vmem:[#allocation2 + $0xf0] sm:$0x7f] %vm592_vm10, %v625_v23 }
  0xe2   : > { %628 = vst.msk [vmem:[#allocation2 + $0xd0] sm:$0xc0] %vm9600_vm8, %v623_v25  ;;  %1586 = vmatprep.mubr.f32.mxu0 %v1417_v40  ;;  %v1370_v17 = vrot.slane %v7589_v28, 1  ;;  %5800 = vmatpush1.bf16.msra.mxu1 %v5799_v57  ;;  %vm9603_vm8 = vmmov %vm9598_vm12  ;;  %v4872_v57 = vld [vmem:[%s9512_s1 + $0x380] sm:$0xff]  ;;  %v1223_v32 = vld [vmem:[%s9512_s1 + $0x1b0] sm:$0xff] }
  0xe3   : > { %5801 = vmatprep.subr.bf16.mxu1 %v6388_v33  ;;  %vm9605_vm12 = vmmov %vm9602_vm1  ;;  %v1224_v40 = vld [vmem:[%s9512_s1 + $0x1b8] sm:$0xff] }
  0xe4   : > { %v1371_v43 = vsel %vm9603_vm8, %v1362_v14, %v1370_v17  ;;  %v685_v39 = vpop.permute.xlu0 %684  ;;  %v206_v45 = vpop.permute.xlu1 %205  ;;  %1012 = vst.msk [vmem:[#allocation2 + $0x1c0] sm:$0xe0] %vm9605_vm12, %v1007_v3  ;;  %vm9606_vm13 = vmmov %vm9603_vm8 }
  0xe5   : > { %1675 = vmatmul.mubr.f32.gmra.mrb[6].mxu1 %v1371_v43  ;;  %v1233_v4 = vld [vmem:[#allocation2 + $0x160] sm:$0x3]  ;;  %690 = vst.msk [vmem:[#allocation2 + $0xf0] sm:$0x80] %vm653_vm11, %v685_v39  ;;  %vm9607_vm11 = vmmov %vm9603_vm8  ;;  %v5815_v43 = vpack.c.bf16 %v4873_v2, %v4872_v57  ;;  %v1404_v39 = vrot.slane %v7640_v9, 1 }
  0xe6   : > { %211 = vst.msk [vmem:[#allocation2 + $0x8] sm:$0xff] %vm189_vm3, %v206_v45  ;;  %v1414_v53 = vrot.slane %v1233_v4, 1  ;;  %4854 = vmatprep.mubr.msk.f32.mxu1 %vm9604_vm14, %v1381_v26  ;;  %5803 = vmatpush1.bf16.msra.mxu1 %v5802_v21  ;;  %v1389_v52 = vsel %vm9607_vm11, %v1380_v13, %v1388_v36  ;;  %vm9608_vm1 = vmmov %vm9603_vm8  ;;  %v4890_v13 = vld [vmem:[%s9512_s1 + $0x410] sm:$0xff]  ;;  %v5811_v45 = vpack.c.bf16 %v1224_v40, %v1223_v32 }
  0xe7   : > { %5804 = vmatprep.subr.bf16.mxu1 %v6388_v33  ;;  %vm9609_vm8 = vmmov %vm9604_vm14 }
  0xe8   : > { %v1415_v14 = vsel %vm9606_vm13, %v1406_v8, %v1414_v53  ;;  %v687_v10 = vpop.permute.xlu1 %686  ;;  %v184_v50 = vpop.permute.xlu0 %183  ;;  %v1396_v8 = vrot.slane %v7619_v59, 1  ;;  %vm9610_vm14 = vmmov %vm9608_vm1 }
  0xe9   : > { %1587 = vmatmul.mubr.f32.gmra.mrb[18].mxu0 %v1415_v14  ;;  %v7627_v60 = vld [vmem:[#allocation2 + $0xd0] sm:$0xff]  ;;  %691 = vst.msk [vmem:[#allocation2 + $0x110] sm:$0xff] %vm189_vm3, %v687_v10  ;;  %190 = vst.msk [vmem:[#allocation2] sm:$0xff] %vm189_vm3, %v184_v50 }
  0xea   : > { %1590 = vmatprep.mubr.f32.mxu0 %v1416_v6  ;;  %v1378_v20 = vrot.slane %v7627_v60, 1  ;;  %5806 = vmatpush1.bf16.msra.mxu1 %v5805_v5  ;;  %v5808_v6 = vpack.c.bf16 %v1222_v35, %v1221_v7  ;;  %v1397_v62 = vsel %vm9610_vm14, %v1388_v36, %v1396_v8  ;;  %vm9611_vm12 = vmmov %vm9608_vm1  ;;  %v4874_v5 = vld [vmem:[%s9512_s1 + $0x390] sm:$0xff]  ;;  %v4875_v36 = vld [vmem:[%s9512_s1 + $0x398] sm:$0xff] }
  0xeb   : > { %5807 = vmatprep.subr.bf16.mxu1 %v6388_v33  ;;  %vm9612_vm13 = vmmov %vm9609_vm8 }
  0xec   : > { %v1379_v16 = vsel %vm9608_vm1, %v1370_v17, %v1378_v20  ;;  %v186_v23 = vpop.permute.xlu1 %185  ;;  %v208_v25 = vpop.permute.xlu0 %207  ;;  %v7653_v21 = vld [vmem:[#allocation2 + $0xf0] sm:$0xff]  ;;  %v4891_v17 = vld [vmem:[%s9512_s1 + $0x418] sm:$0xff]  ;;  %vm9613_vm11 = vmmov %vm9608_vm1 }
  0xed   : > { %1591 = vmatmul.mubr.f32.gmra.mrb[20].mxu0 %v1414_v53  ;;  %1680 = vmatmul.mubr.f32.gmra.mrb[8].mxu1 %v1379_v16  ;;  %v1126_v26 = vld [vmem:[#allocation2 + $0x8] sm:$0xff]  ;;  %192 = vst.msk [vmem:[#allocation2 + $0x20] sm:$0x1] %vm191_vm15, %v186_v23  ;;  %212 = vst.msk [vmem:[#allocation2 + $0x28] sm:$0x1] %vm191_vm15, %v208_v25  ;;  %v1386_v37 = vrot.slane %v7653_v21, 1  ;;  %v5817_v53 = vpack.c.bf16 %v4891_v17, %v4890_v13  ;;  %v1405_v57 = vsel %vm9613_vm11, %v1396_v8, %v1404_v39 }
  0xee   : > { %4855 = vmatprep.mubr.msk.f32.mxu1 %vm9609_vm8, %v1389_v52  ;;  %1802 = vmatprep.mubr.f32.mxu0 %v1126_v26  ;;  %v4893_v52 = vld [vmem:[%s9512_s1 + $0x428] sm:$0xff]  ;;  %v1232_v16 = vld [vmem:[#allocation2 + $0x158] sm:$0xff]  ;;  %v4876_v13 = vld [vmem:[%s9512_s1 + $0x3a0] sm:$0xff] }
  0xef   : > { %5809 = vmatpush1.bf16.msra.mxu1 %v5808_v6  ;;  %v1387_v4 = vsel %vm9611_vm12, %v1378_v20, %v1386_v37  ;;  %v4892_v20 = vld [vmem:[%s9512_s1 + $0x420] sm:$0xff]  ;;  %v5819_v6 = vpack.c.bf16 %v4875_v36, %v4874_v5  ;;  %v4877_v8 = vld [vmem:[%s9512_s1 + $0x3a8] sm:$0xff]  ;;  %v4894_v17 = vld [vmem:[%s9512_s1 + $0x430] sm:$0xff] }
  0xf0   : > { %5810 = vmatprep.subr.bf16.mxu1 %v6388_v33  ;;  %v747_v14 = vpop.permute.xlu1 %746  ;;  %v745_v7 = vpop.permute.xlu0 %744  ;;  %v1125_v35 = vld [vmem:[#allocation2] sm:$0xff]  ;;  %v7669_v10 = vld [vmem:[#allocation2 + $0x110] sm:$0xff]  ;;  %v5821_v26 = vpack.c.bf16 %v4893_v52, %v4892_v20  ;;  %v4897_v52 = vld [vmem:[%s9512_s1 + $0x448] sm:$0xff] }
  0xf1   : > { %1685 = vmatmul.mubr.f32.gmra.mrb[10].mxu1 %v1387_v4  ;;  %751 = vst.msk [vmem:[#allocation2 + $0x150] sm:$0x1] %vm191_vm15, %v747_v14  ;;  %1803 = vmatmul.mubr.f32.vlgmr.msra.gmra.mrb[22].mxu0 %v1125_v35  ;;  %v1394_v50 = vrot.slane %v7669_v10, 1  ;;  %v7706_v4 = vld [vmem:[#allocation2 + $0x178] sm:$0x3]  ;;  %v4878_v36 = vld [vmem:[%s9512_s1 + $0x3b0] sm:$0xff]  ;;  %vm9618_vm14 = vmmov %vm9608_vm1 }
  0xf2   : > { %750 = vst.msk [vmem:[#allocation2 + $0x130] sm:$0xff] %vm189_vm3, %v745_v7  ;;  %4856 = vmatprep.mubr.msk.f32.mxu1 %vm9612_vm13, %v1397_v62  ;;  %5816 = vmatpush3.bf16.msra.mxu0 %v5815_v43  ;;  %v1113_v62 = vrot.slane %v7426_v12, 7  ;;  %v1412_v43 = vrot.slane %v1232_v16, 1  ;;  %v4896_v20 = vld [vmem:[%s9512_s1 + $0x440] sm:$0xff]  ;;  %vm9619_vm12 = vmmov %vm9608_vm1 }
  0xf3   : > { %5812 = vmatpush1.bf16.msra.mxu1 %v5811_v45  ;;  %v1395_v2 = vsel %vm9608_vm1, %v1386_v37, %v1394_v50  ;;  %5818 = vmatprep.subr.bf16.mxu0 %v5817_v53  ;;  %v4895_v37 = vld [vmem:[%s9512_s1 + $0x438] sm:$0xff]  ;;  %v5823_v45 = vpack.c.bf16 %v4877_v8, %v4876_v13  ;;  %v4880_v13 = vld [vmem:[%s9512_s1 + $0x3c0] sm:$0xff]  ;;  %vm9620_vm13 = vmmov %vm9609_vm8 }
  0xf4   : > { %5845 = vmatprep.subr.bf16.mxu1 %v6388_v33  ;;  %v809_v32 = vpop.permute.xlu1 %808  ;;  %v807_v40 = vpop.permute.xlu0 %806  ;;  %v1130_v23 = vld [vmem:[#allocation2 + $0x28] sm:$0xff]  ;;  %v1129_v25 = vld [vmem:[#allocation2 + $0x20] sm:$0xff]  ;;  %v5825_v35 = vpack.c.bf16 %v4895_v37, %v4894_v17  ;;  %vm9621_vm11 = vmmov %vm9608_vm1 }
  0xf5   : > { %1690 = vmatmul.mubr.f32.gmra.mrb[12].mxu1 %v1395_v2  ;;  %813 = vst.msk [vmem:[#allocation2 + $0x170] sm:$0x3] %vm263_vm7, %v809_v32  ;;  %1807 = vmatprep.mubr.f32.mxu0 %v1130_v23  ;;  %vm9614_vm7 = vcmask 1040384   ;;  %v1420_v2 = vrot.slane %v7706_v4, 1 }
  0xf6   : > { %812 = vst.msk [vmem:[#allocation2 + $0x150] sm:$0xfe] %vm261_vm4, %v807_v40  ;;  %4857 = vmatprep.mubr.msk.f32.mxu1 %vm9609_vm8, %v1405_v57  ;;  %1808 = vmatmul.mubr.f32.gmra.mrb[24].mxu0 %v1129_v25  ;;  %v1114_v53 = vsel %vm9614_vm7, %v1112_v38, %v1113_v62  ;;  %vm9615_vm4 = vmmov %vm9608_vm1  ;;  %v5829_v25 = vpack.c.bf16 %v4897_v52, %v4896_v20  ;;  %v4884_v20 = vld [vmem:[%s9512_s1 + $0x3e0] sm:$0xff]  ;;  %v4903_v52 = vld [vmem:[%s9512_s1 + $0x478] sm:$0xff]  ;;  %vm9626_vm7 = vcmask 1044480  }
  0xf7   : > { %1812 = vmatprep.mubr.f32.mxu0 %v7191_v63  ;;  %5820 = vmatpush3.bf16.msra.mxu0 %v5819_v6  ;;  %v4879_v63 = vld [vmem:[%s9512_s1 + $0x3b8] sm:$0xff]  ;;  %v1413_v57 = vsel %vm9615_vm4, %v1404_v39, %v1412_v43  ;;  %v4881_v39 = vld [vmem:[%s9512_s1 + $0x3c8] sm:$0xff]  ;;  %v1421_v8 = vsel %vm9618_vm14, %v1412_v43, %v1420_v2  ;;  %vm9630_vm14 = vcmask 523270  }
  0xf8   : > { %v228_v5 = vpop.permute.xlu1 %227  ;;  %v226_v14 = vpop.permute.xlu0 %225  ;;  %5822 = vmatprep.subr.bf16.mxu0 %v5821_v26  ;;  %1117 = vrot.lane.b32.xlu1 %v1114_v53, %s6387_s21  ;;  %v5827_v16 = vpack.c.bf16 %v4879_v63, %v4878_v36  ;;  %v4899_v26 = vld [vmem:[%s9512_s1 + $0x458] sm:$0xff]  ;;  %v5831_v62 = vpack.c.bf16 %v4881_v39, %v4880_v13  ;;  %v4901_v43 = vld [vmem:[%s9512_s1 + $0x468] sm:$0xff] }
  0xf9   : > { %v7711_v7 = vld [vmem:[#allocation2 + $0x130] sm:$0xff]  ;;  %232 = vst.msk [vmem:[#allocation2 + $0x30] sm:$0x1] %vm191_vm15, %v228_v5  ;;  %vm9617_vm15 = vmmov %vm9609_vm8 }
  0xfa   : > { %231 = vst.msk [vmem:[#allocation2 + $0x10] sm:$0xff] %vm189_vm3, %v226_v14  ;;  %v1402_v38 = vrot.slane %v7711_v7, 1  ;;  %1813 = vmatmul.mubr.f32.gmra.mrb[26].mxu0 %v7178_v19  ;;  %vm9616_vm3 = vmmov %vm9608_vm1  ;;  %v4882_v5 = vld [vmem:[%s9512_s1 + $0x3d0] sm:$0xff] }
  0xfb   : > { %1817 = vmatprep.mubr.f32.mxu0 %v7218_v58  ;;  %5824 = vmatpush3.bf16.msra.mxu0 %v5823_v45  ;;  %vm9622_vm1 = vmmov %vm9609_vm8  ;;  %vm9625_vm8 = vcmask 521216  }
  0xfc   : > { %v1403_v6 = vsel %vm9616_vm3, %v1394_v50, %v1402_v38  ;;  %v836_v32 = vpop.permute.xlu1 %835  ;;  %v849_v40 = vpop.permute.xlu0 %848  ;;  %v1235_v23 = vld [vmem:[#allocation2 + $0x170] sm:$0x3]  ;;  %5826 = vmatprep.subr.bf16.mxu0 %v5825_v35  ;;  %vm9627_vm4 = vmmov %vm9625_vm8  ;;  %vm9628_vm3 = vcmask 523269  }
  0xfd   : > { %1695 = vmatmul.mubr.f32.gmra.mrb[14].mxu1 %v1403_v6  ;;  %v1231_v19 = vld [vmem:[#allocation2 + $0x150] sm:$0xff]  ;;  %841 = vst.msk [vmem:[#allocation2 + $0x160] sm:$0xfc] %vm330_vm2, %v836_v32  ;;  %854 = vst.msk [vmem:[#allocation2 + $0x168] sm:$0xfc] %vm330_vm2, %v849_v40  ;;  %v1418_v37 = vrot.slane %v1235_v23, 1 }
  0xfe   : > { %4858 = vmatprep.mubr.msk.f32.mxu1 %vm9617_vm15, %v1413_v57  ;;  %v1410_v58 = vrot.slane %v1231_v19, 1  ;;  %v4898_v50 = vld [vmem:[%s9512_s1 + $0x450] sm:$0xff]  ;;  %1818 = vmatmul.mubr.f32.gmra.mrb[28].mxu0 %v7242_v41  ;;  %v4883_v41 = vld [vmem:[%s9512_s1 + $0x3d8] sm:$0xff]  ;;  %v4904_v6 = vld [vmem:[%s9512_s1 + $0x480] sm:$0xff] }
  0xff   : > { %1822 = vmatprep.mubr.f32.mxu0 %v7272_v22  ;;  %5828 = vmatpush3.bf16.msra.mxu0 %v5827_v16  ;;  %v5833_v53 = vpack.c.bf16 %v4899_v26, %v4898_v50  ;;  %v4900_v22 = vld [vmem:[%s9512_s1 + $0x460] sm:$0xff]  ;;  %v5835_v35 = vpack.c.bf16 %v4883_v41, %v4882_v5  ;;  %v1128_v57 = vld [vmem:[#allocation2 + $0x18] sm:$0xff]  ;;  %v4905_v16 = vld [vmem:[%s9512_s1 + $0x488] sm:$0xff] }
 0x100   : > { %v1411_v17 = vsel %vm9619_vm12, %v1402_v38, %v1410_v58  ;;  %v838_v45 = vpop.permute.xlu1 %837  ;;  %v851_v4 = vpop.permute.xlu0 %850  ;;  %5830 = vmatprep.subr.bf16.mxu0 %v5829_v25  ;;  %v1419_v14 = vsel %vm9621_vm11, %v1410_v58, %v1418_v37  ;;  %v5837_v38 = vpack.c.bf16 %v4901_v43, %v4900_v22  ;;  %v4886_v23 = vld [vmem:[%s9512_s1 + $0x3f0] sm:$0xff]  ;;  %v4887_v25 = vld [vmem:[%s9512_s1 + $0x3f8] sm:$0xff]  ;;  %v5846_v50 = vpack.c.bf16 %v4905_v16, %v4904_v6  ;;  %v4955_v26 = vld [vmem:[%s9512_s1 + $0x5c0] sm:$0xff] }
 0x101   : > { %1700 = vmatmul.mubr.f32.gmra.mrb[16].mxu1 %v1411_v17  ;;  %842 = vst.msk [vmem:[#allocation2 + $0x180] sm:$0x7] %vm332_vm5, %v838_v45  ;;  %855 = vst.msk [vmem:[#allocation2 + $0x188] sm:$0x7] %vm332_vm5, %v851_v4  ;;  %v1127_v58 = vld [vmem:[#allocation2 + $0x10] sm:$0xff]  ;;  %v4907_v45 = vld [vmem:[%s9512_s1 + $0x498] sm:$0xff] }
 0x102   : > { %4859 = vmatprep.mubr.msk.f32.mxu1 %vm9620_vm13, %v1421_v8  ;;  %1823 = vmatmul.mubr.f32.gmra.mrb[30].mxu0 %v7290_v44  ;;  %v4885_v44 = vld [vmem:[%s9512_s1 + $0x3e8] sm:$0xff]  ;;  %vm9629_vm15 = vmmov %vm9622_vm1  ;;  %v1087_v22 = vrot.slane %v7224_v47, 4  ;;  %v1131_v43 = vld [vmem:[#allocation2 + $0x30] sm:$0xff]  ;;  %vm9635_vm11 = vcmask 1044992  }
 0x103   : > { %1827 = vmatprep.mubr.f32.mxu0 %v7312_v61  ;;  %5832 = vmatpush3.bf16.msra.mxu0 %v5831_v62  ;;  %v4902_v61 = vld [vmem:[%s9512_s1 + $0x470] sm:$0xff]  ;;  %v5839_v32 = vpack.c.bf16 %v4885_v44, %v4884_v20  ;;  %v4956_v8 = vld [vmem:[%s9512_s1 + $0x5c8] sm:$0xff]  ;;  %vm9631_vm12 = vmmov %vm9622_vm1 }
 0x104   : > { %v869_v36 = vpop.permute.xlu1 %868  ;;  %v867_v63 = vpop.permute.xlu0 %866  ;;  %5834 = vmatprep.subr.bf16.mxu0 %v5833_v53  ;;  %v5841_v19 = vpack.c.bf16 %v4903_v52, %v4902_v61  ;;  %v4906_v62 = vld [vmem:[%s9512_s1 + $0x490] sm:$0xff]  ;;  %v5843_v53 = vpack.c.bf16 %v4887_v25, %v4886_v23  ;;  %v5881_v5 = vpack.c.bf16 %v4956_v8, %v4955_v26  ;;  %1092 = vst.msk [vmem:[#allocation2 + $0x1e8] sm:$0xc0] %vm9630_vm14, %v1087_v22  ;;  %v1975_v20 = vld [vmem:[#allocation2 + $0x48] sm:$0xfc]  ;;  %v7887_v16 = vld [vmem:[#allocation2 + $0x60] sm:$0xff] }
 0x105   : > { %1705 = vmatmul.mubr.f32.gmra.mrb[18].mxu1 %v1419_v14  ;;  %873 = vst.msk [vmem:[#allocation2 + $0x190] sm:$0x7] %vm332_vm5, %v869_v36  ;;  %vm9624_vm5 = vmmov %vm9622_vm1  ;;  %v5849_v56 = vpack.c.bf16 %v4907_v45, %v4906_v62  ;;  %v6378_v36 = vld [vmem:[#allocation2 + $0x58] sm:$0xff]  ;;  %v7871_v44 = vld [vmem:[#allocation2 + $0x68] sm:$0xff] }
 0x106   : > { %872 = vst.msk [vmem:[#allocation2 + $0x170] sm:$0xfc] %vm330_vm2, %v867_v63  ;;  %4860 = vmatprep.mubr.msk.f32.mxu1 %vm9622_vm1, %v1420_v2  ;;  %1828 = vmatmul.mubr.f32.gmra.mrb[32].mxu0 %v7341_v49  ;;  %v7796_v2 = vld [vmem:[%s6459_s16 + $0xcb] sm:$0x7f]  ;;  %vm9623_vm2 = vcmask 1042432   ;;  %v2123_v6 = vrot.slane %v7871_v44, 2  ;;  %vm9634_vm13 = vmmov %vm9622_vm1 }
 0x107   : > { %v1026_v13 = vrot.slane %v7796_v2, 5  ;;  %1832 = vmatprep.mubr.f32.mxu0 %v7358_v31  ;;  %5836 = vmatpush3.bf16.msra.mxu0 %v5835_v35  ;;  %v1008_v39 = vrot.slane %v7796_v2, 3  ;;  %v1069_v35 = vrot.slane %v7224_v47, 2  ;;  %v1165_v23 = vld [vmem:[#allocation2 + $0x140] sm:$0x1]  ;;  %v4915_v26 = vld [vmem:[%s9512_s1 + $0x4d8] sm:$0xff] }
 0x108   : > { %v896_v40 = vpop.permute.xlu1 %895  ;;  %v911_v49 = vpop.permute.xlu0 %910  ;;  %5838 = vmatprep.subr.bf16.mxu0 %v5837_v38  ;;  %v4911_v38 = vld [vmem:[%s9512_s1 + $0x4b8] sm:$0xff]  ;;  %v7918_v8 = vld [vmem:[#allocation2 + $0x80] sm:$0xff]  ;;  %v7920_v45 = vld [vmem:[#allocation2 + $0xa8] sm:$0xff] }
 0x109   : > { %1709 = vmatmul.mubr.f32.gmra.mrb[20].mxu1 %v1418_v37  ;;  %v1027_v31 = vsel %vm9623_vm2, %v1025_v34, %v1026_v13  ;;  %901 = vst.msk [vmem:[#allocation2 + $0x180] sm:$0xf8] %vm394_vm0, %v896_v40  ;;  %916 = vst.msk [vmem:[#allocation2 + $0x188] sm:$0xf8] %vm394_vm0, %v911_v49  ;;  %v7821_v34 = vld [vmem:[%s6459_s16 + $0xc3] sm:$0xff]  ;;  %v1132_v37 = vld [vmem:[#allocation2 + $0x38] sm:$0xff]  ;;  %v1009_v4 = vsel %vm9626_vm7, %v1007_v3, %v1008_v39 }
 0x10a   : > { %4861 = vmatprep.mubr.msk.f32.mxu1 %vm9624_vm5, %v1128_v57  ;;  %1031 = vst.msk [vmem:[#allocation2 + $0x1e8] sm:$0x3f] %vm9625_vm8, %v1027_v31  ;;  %v1043_v17 = vrot.slane %v7821_v34, 7  ;;  %1833 = vmatmul.mubr.f32.gmra.mrb[34].mxu0 %v7383_v46  ;;  %v4909_v3 = vld [vmem:[%s9512_s1 + $0x4a8] sm:$0xff]  ;;  %v4912_v57 = vld [vmem:[%s9512_s1 + $0x4c0] sm:$0xff]  ;;  %v2120_v31 = vrot.slane %v7887_v16, 2 }
 0x10b   : > { %1837 = vmatprep.mubr.f32.mxu0 %v7397_v0  ;;  %5840 = vmatpush3.bf16.msra.mxu0 %v5839_v32  ;;  %1013 = vst.msk [vmem:[#allocation2 + $0x1e0] sm:$0x3f] %vm9627_vm4, %v1009_v4  ;;  %v4908_v0 = vld [vmem:[%s9512_s1 + $0x4a0] sm:$0xff]  ;;  %v7889_v13 = vld [vmem:[#allocation2 + $0x88] sm:$0xff]  ;;  %v4958_v39 = vld [vmem:[%s9512_s1 + $0x5d8] sm:$0xff]  ;;  %vm9637_vm2 = vcmask 1045504  }
 0x10c   : > { %1048 = vst.msk [vmem:[#allocation2 + $0x1d0] sm:$0xe0] %vm9628_vm3, %v1043_v17  ;;  %v913_v46 = vpop.permute.xlu0 %912  ;;  %5842 = vmatprep.subr.bf16.mxu0 %v5841_v19  ;;  %v5852_v63 = vpack.c.bf16 %v4909_v3, %v4908_v0  ;;  %v1974_v32 = vld [vmem:[#allocation2 + $0x40] sm:$0xfc]  ;;  %v4940_v40 = vld [vmem:[%s9512_s1 + $0x548] sm:$0xff]  ;;  %vm9638_vm5 = vmmov %vm9637_vm2  ;;  %vm9640_vm7 = vcmask 1048069  }
 0x10d   : > { %1921 = vmatmul.mubr.f32.vlgmr.msra.gmra.mrb[0].mxu1 %v1127_v58  ;;  %v898_v41 = vpop.permute.xlu1 %897  ;;  %917 = vst.msk [vmem:[#allocation2 + $0x1a8] sm:$0xf] %vm396_vm6, %v913_v46  ;;  %v4942_v46 = vld [vmem:[%s9512_s1 + $0x558] sm:$0xff]  ;;  %v4959_v3 = vld [vmem:[%s9512_s1 + $0x5e0] sm:$0xff]  ;;  %vm9641_vm4 = vmmov %vm9637_vm2 }
 0x10e   : > { %5847 = vmatpush1.bf16.msra.mxu1 %v5846_v50  ;;  %4862 = vmatprep.mubr.msk.f32.mxu1 %vm9629_vm15, %v1132_v37  ;;  %902 = vst.msk [vmem:[#allocation2 + $0x1a0] sm:$0xf] %vm396_vm6, %v898_v41  ;;  %v4914_v50 = vld [vmem:[%s9512_s1 + $0x4d0] sm:$0xff]  ;;  %v2119_v37 = vrot.slane %v1974_v32, 2  ;;  %v4943_v44 = vld [vmem:[%s9512_s1 + $0x560] sm:$0xff]  ;;  %vm9644_vm15 = vmmov %vm9640_vm7 }
 0x10f   : > { %1838 = vmatmul.mubr.f32.gmra.mrb[36].mxu0 %v7452_v55  ;;  %5848 = vmatprep.subr.bf16.mxu1 %v6388_v33  ;;  %v5861_v0 = vpack.c.bf16 %v4915_v26, %v4914_v50  ;;  %v4918_v16 = vld [vmem:[%s9512_s1 + $0x4f0] sm:$0xff]  ;;  %v4919_v32 = vld [vmem:[%s9512_s1 + $0x4f8] sm:$0xff]  ;;  %v4964_v50 = vld [vmem:[%s9512_s1 + $0x608] sm:$0xff] }
 0x110   : > { %1842 = vmatprep.mubr.f32.mxu0 %v7454_v18  ;;  %5844 = vmatpush3.bf16.msra.mxu0 %v5843_v53  ;;  %v929_v14 = vpop.permute.xlu0 %928  ;;  %v4910_v18 = vld [vmem:[%s9512_s1 + $0x4b0] sm:$0xff] }
 0x111   : > { %1926 = vmatmul.mubr.f32.gmra.mrb[2].mxu1 %v1131_v43  ;;  %5882 = vmatprep.subr.bf16.mxu0 %v5881_v5  ;;  %v931_v55 = vpop.permute.xlu1 %930  ;;  %934 = vst.msk [vmem:[#allocation2 + $0x190] sm:$0xf8] %vm394_vm0, %v929_v14  ;;  %vm9632_vm0 = vmmov %vm9630_vm14  ;;  %v5855_v52 = vpack.c.bf16 %v4911_v38, %v4910_v18  ;;  %v4941_v53 = vld [vmem:[%s9512_s1 + $0x550] sm:$0xff]  ;;  %v4960_v43 = vld [vmem:[%s9512_s1 + $0x5e8] sm:$0xff] }
 0x112   : > { %5850 = vmatpush1.bf16.msra.mxu1 %v5849_v56  ;;  %4863 = vmatprep.mubr.msk.f32.mxu1 %vm9631_vm12, %v6378_v36  ;;  %935 = vst.msk [vmem:[#allocation2 + $0x1b0] sm:$0xf] %vm396_vm6, %v931_v55  ;;  %vm9633_vm6 = vmmov %vm9622_vm1  ;;  %v2121_v56 = vsel %vm9638_vm5, %v2119_v37, %v2120_v31  ;;  %v4916_v55 = vld [vmem:[%s9512_s1 + $0x4e0] sm:$0xff]  ;;  %v4917_v36 = vld [vmem:[%s9512_s1 + $0x4e8] sm:$0xff]  ;;  %v5887_v18 = vpack.c.bf16 %v4942_v46, %v4941_v53 }
 0x113   : > { %1843 = vmatmul.mubr.f32.gmra.mrb[38].mxu0 %v7475_v54  ;;  %5851 = vmatprep.subr.bf16.mxu1 %v6388_v33  ;;  %1074 = vst.msk [vmem:[#allocation2 + $0x1e0] sm:$0xc0] %vm9632_vm0, %v1069_v35  ;;  %vm9636_vm1 = vmmov %vm9635_vm11  ;;  %v7952_v38 = vld [vmem:[#allocation2 + $0xc8] sm:$0xff]  ;;  %v4920_v37 = vld [vmem:[%s9512_s1 + $0x500] sm:$0xff] }
 0x114   : > { %1847 = vmatprep.mubr.f32.mxu0 %v7477_v42  ;;  %v976_v54 = vpop.permute.xlu0 %975  ;;  %v1166_v42 = vld [vmem:[#allocation2 + $0x148] sm:$0x1]  ;;  %vm9639_vm8 = vmmov %vm9633_vm6  ;;  %v4953_v34 = vld [vmem:[%s9512_s1 + $0x5b0] sm:$0xff] }
 0x115   : > { %1931 = vmatmul.mubr.f32.gmra.mrb[4].mxu1 %v7428_v15  ;;  %v958_v61 = vpop.permute.xlu1 %957  ;;  %981 = vst.msk [vmem:[#allocation2 + $0x1a8] sm:$0xf0] %vm460_vm9, %v976_v54  ;;  %v2122_v15 = vrot.slane %v1975_v20, 2  ;;  %v5889_v20 = vpack.c.bf16 %v4960_v43, %v4959_v3  ;;  %v4944_v54 = vld [vmem:[%s9512_s1 + $0x568] sm:$0xff]  ;;  %vm9643_vm3 = vmmov %vm9633_vm6 }
 0x116   : > { %5853 = vmatpush1.bf16.msra.mxu1 %v5852_v63  ;;  %4864 = vmatprep.mubr.msk.f32.mxu1 %vm9633_vm6, %v7414_v51  ;;  %963 = vst.msk [vmem:[#allocation2 + $0x1a0] sm:$0xf0] %vm460_vm9, %v958_v61  ;;  %v4913_v51 = vld [vmem:[%s9512_s1 + $0x4c8] sm:$0xff]  ;;  %v7950_v63 = vld [vmem:[#allocation2 + $0xa0] sm:$0xff]  ;;  %vm9645_vm14 = vmmov %vm9636_vm1 }
 0x117   : > { %1848 = vmatmul.mubr.f32.gmra.mrb[40].mxu0 %v7521_v11  ;;  %5854 = vmatprep.subr.bf16.mxu1 %v6388_v33  ;;  %v4939_v11 = vld [vmem:[%s9512_s1 + $0x540] sm:$0xff]  ;;  %v5858_v25 = vpack.c.bf16 %v4913_v51, %v4912_v57  ;;  %v2124_v58 = vsel %vm9637_vm2, %v2122_v15, %v2123_v6  ;;  %v4961_v15 = vld [vmem:[%s9512_s1 + $0x5f0] sm:$0xff]  ;;  %vm9646_vm12 = vmmov %vm9637_vm2 }
 0x118   : > { %1851 = vmatprep.mubr.f32.mxu0 %v1166_v42  ;;  %v978_v49 = vpop.permute.xlu0 %977  ;;  %v5883_v62 = vpack.c.bf16 %v4940_v40, %v4939_v11  ;;  %v5864_v42 = vpack.c.bf16 %v4917_v36, %v4916_v55  ;;  %v7982_v11 = vld [vmem:[#allocation2 + $0xc0] sm:$0xff]  ;;  %v7984_v40 = vld [vmem:[#allocation2 + $0xe8] sm:$0xff]  ;;  %vm9647_vm0 = vmmov %vm9637_vm2 }
 0x119   : > { %1936 = vmatmul.mubr.f32.gmra.mrb[6].mxu1 %v7497_v48  ;;  %v960_v19 = vpop.permute.xlu1 %959  ;;  %v4957_v48 = vld [vmem:[%s9512_s1 + $0x5d0] sm:$0xff]  ;;  %982 = vst.msk [vmem:[#allocation2 + $0x1c8] sm:$0x1f] %vm9635_vm11, %v978_v49  ;;  %v5891_v49 = vpack.c.bf16 %v4944_v54, %v4943_v44  ;;  %vm9648_vm6 = vmmov %vm9643_vm3  ;;  %v8016_v53 = vld [vmem:[#allocation2 + $0x108] sm:$0xff] }
 0x11a   : > { %5856 = vmatpush1.bf16.msra.mxu1 %v5855_v52  ;;  %4865 = vmatprep.mubr.msk.f32.mxu1 %vm9634_vm13, %v7473_v27  ;;  %964 = vst.msk [vmem:[#allocation2 + $0x1c0] sm:$0x1f] %vm9636_vm1, %v960_v19  ;;  %v2133_v27 = vrot.slane %v7889_v13, 2  ;;  %v5885_v4 = vpack.c.bf16 %v4958_v39, %v4957_v48  ;;  %vm9649_vm13 = vcmask 1046016   ;;  %vm9651_vm1 = vmmov %vm9647_vm0  ;;  %v4922_v36 = vld [vmem:[%s9512_s1 + $0x510] sm:$0xff]  ;;  %v8048_v44 = vld [vmem:[#allocation2 + $0x128] sm:$0xff] }
 0x11b   : > { %1852 = vmatmul.mubr.f32.gmra.mrb[42].mxu0 %v1165_v23  ;;  %5857 = vmatprep.subr.bf16.mxu1 %v6388_v33  ;;  %v4945_v23 = vld [vmem:[%s9512_s1 + $0x570] sm:$0xff]  ;;  %vm9650_vm11 = vmmov %vm9649_vm13 }
 0x11c   : > { %2322 = vmatprep.mubr.f32.mxu0 %v2124_v58  ;;  %v989_v5 = vpop.permute.xlu0 %988  ;;  %v2134_v14 = vsel %vm9641_vm4, %v2123_v6, %v2133_v27  ;;  %v4962_v6 = vld [vmem:[%s9512_s1 + $0x5f8] sm:$0xff]  ;;  %v5867_v58 = vpack.c.bf16 %v4919_v32, %v4918_v16  ;;  %vm9653_vm5 = vmmov %vm9643_vm3  ;;  %v4967_v16 = vld [vmem:[%s9512_s1 + $0x620] sm:$0xff] }
 0x11d   : > { %1941 = vmatmul.mubr.f32.gmra.mrb[8].mxu1 %v7552_v1  ;;  %v1036_v41 = vpop.permute.xlu1 %1035  ;;  %v2131_v1 = vrot.slane %v7918_v8, 2  ;;  %994 = vst.msk [vmem:[#allocation2 + $0x1b0] sm:$0xf0] %vm460_vm9, %v989_v5  ;;  %vm9642_vm9 = vmmov %vm9637_vm2  ;;  %v5893_v19 = vpack.c.bf16 %v4962_v6, %v4961_v15  ;;  %v4968_v32 = vld [vmem:[%s9512_s1 + $0x628] sm:$0xff] }
 0x11e   : > { %5859 = vmatpush1.bf16.msra.mxu1 %v5858_v25  ;;  %4866 = vmatprep.mubr.msk.f32.mxu1 %vm9639_vm8, %v7535_v24  ;;  %1041 = vst.msk [vmem:[#allocation2 + $0x1c8] sm:$0xe0] %vm9640_vm7, %v1036_v41  ;;  %v2141_v24 = vrot.slane %v7920_v45, 2  ;;  %v4946_v25 = vld [vmem:[%s9512_s1 + $0x578] sm:$0xff]  ;;  %v4947_v41 = vld [vmem:[%s9512_s1 + $0x580] sm:$0xff]  ;;  %vm9652_vm2 = vmmov %vm9647_vm0 }
 0x11f   : > { %2323 = vmatmul.mubr.f32.vlgmr.msra.gmra.mrb[44].mxu0 %v2121_v56  ;;  %5860 = vmatprep.subr.bf16.mxu1 %v6388_v33  ;;  %v2132_v57 = vsel %vm9642_vm9, %v2120_v31, %v2131_v1  ;;  %v5895_v46 = vpack.c.bf16 %v4946_v25, %v4945_v23  ;;  %v4948_v56 = vld [vmem:[%s9512_s1 + $0x588] sm:$0xff]  ;;  %vm9654_vm8 = vmmov %vm9640_vm7  ;;  %vm9655_vm7 = vcmask 1048070   ;;  %v8079_v25 = vld [vmem:[#allocation2 + $0x120] sm:$0xff] }
 0x120   : > { %2327 = vmatprep.mubr.f32.mxu0 %v2134_v14  ;;  %5884 = vmatpush3.bf16.msra.mxu0 %v5883_v62  ;;  %v991_v52 = vpop.permute.xlu0 %990  ;;  %v2142_v51 = vsel %vm9646_vm12, %v2133_v27, %v2141_v24  ;;  %v4963_v27 = vld [vmem:[%s9512_s1 + $0x600] sm:$0xff]  ;;  %v4921_v62 = vld [vmem:[%s9512_s1 + $0x508] sm:$0xff]  ;;  %v4965_v14 = vld [vmem:[%s9512_s1 + $0x610] sm:$0xff]  ;;  %v5899_v54 = vpack.c.bf16 %v4948_v56, %v4947_v41 }
 0x121   : > { %1946 = vmatmul.mubr.f32.gmra.mrb[10].mxu1 %v7589_v28  ;;  %5886 = vmatprep.subr.bf16.mxu0 %v5885_v4  ;;  %v1018_v61 = vpop.permute.xlu1 %1017  ;;  %v2139_v28 = vrot.slane %v7950_v63, 2  ;;  %995 = vst.msk [vmem:[#allocation2 + $0x1d0] sm:$0x1f] %vm9645_vm14, %v991_v52  ;;  %v8014_v4 = vld [vmem:[#allocation2 + $0xe0] sm:$0xff]  ;;  %v5897_v5 = vpack.c.bf16 %v4964_v50, %v4963_v27  ;;  %v5870_v43 = vpack.c.bf16 %v4921_v62, %v4920_v37  ;;  %vm9656_vm4 = vmmov %vm9647_vm0  ;;  %v8050_v52 = vld [vmem:[#allocation2 + $0x78] sm:$0xff] }
 0x122   : > { %5862 = vmatpush1.bf16.msra.mxu1 %v5861_v0  ;;  %4867 = vmatprep.mubr.msk.f32.mxu1 %vm9643_vm3, %v7569_v30  ;;  %1023 = vst.msk [vmem:[#allocation2 + $0x1c0] sm:$0xe0] %vm9644_vm15, %v1018_v61  ;;  %v2149_v30 = vrot.slane %v7952_v38, 2  ;;  %v1977_v61 = vld [vmem:[#allocation2 + $0x58] sm:$0xfc]  ;;  %vm9657_vm9 = vmmov %vm9647_vm0  ;;  %v4925_v23 = vld [vmem:[%s9512_s1 + $0x528] sm:$0xff] }
 0x123   : > { %2328 = vmatmul.mubr.f32.gmra.mrb[46].mxu0 %v2132_v57  ;;  %5863 = vmatprep.subr.bf16.mxu1 %v6388_v33  ;;  %v2140_v39 = vsel %vm9647_vm0, %v2131_v1, %v2139_v28  ;;  %vm9658_vm15 = vmmov %vm9655_vm7  ;;  %v4951_v27 = vld [vmem:[%s9512_s1 + $0x5a0] sm:$0xff]  ;;  %v4952_v50 = vld [vmem:[%s9512_s1 + $0x5a8] sm:$0xff] }
 0x124   : > { %2332 = vmatprep.mubr.f32.mxu0 %v2142_v51  ;;  %5888 = vmatpush3.bf16.msra.mxu0 %v5887_v18  ;;  %v1038_v31 = vpop.permute.xlu0 %1037  ;;  %v2150_v26 = vsel %vm9651_vm1, %v2141_v24, %v2149_v30  ;;  %v4966_v24 = vld [vmem:[%s9512_s1 + $0x618] sm:$0xff]  ;;  %vm9659_vm14 = vmmov %vm9647_vm0  ;;  %v4926_v56 = vld [vmem:[%s9512_s1 + $0x530] sm:$0xff] }
 0x125   : > { %1951 = vmatmul.mubr.f32.gmra.mrb[12].mxu1 %v7627_v60  ;;  %5890 = vmatprep.subr.bf16.mxu0 %v5889_v20  ;;  %v1020_v48 = vpop.permute.xlu1 %1019  ;;  %v2147_v60 = vrot.slane %v7982_v11, 2  ;;  %1042 = vst.msk [vmem:[#allocation2 + $0x1e8] sm:$0x3f] %vm9649_vm13, %v1038_v31  ;;  %v4923_v18 = vld [vmem:[%s9512_s1 + $0x518] sm:$0xff]  ;;  %v8046_v20 = vld [vmem:[#allocation2 + $0x100] sm:$0xff]  ;;  %v5901_v57 = vpack.c.bf16 %v4966_v24, %v4965_v14  ;;  %v2128_v31 = vrot.slane %v1977_v61, 2  ;;  %vm9660_vm12 = vmmov %vm9647_vm0 }
 0x126   : > { %5865 = vmatpush1.bf16.msra.mxu1 %v5864_v42  ;;  %4868 = vmatprep.mubr.msk.f32.mxu1 %vm9648_vm6, %v7607_v29  ;;  %1024 = vst.msk [vmem:[#allocation2 + $0x1e0] sm:$0x3f] %vm9650_vm11, %v1020_v48  ;;  %v2157_v29 = vrot.slane %v7984_v40, 2  ;;  %v4949_v42 = vld [vmem:[%s9512_s1 + $0x590] sm:$0xff]  ;;  %v5873_v51 = vpack.c.bf16 %v4923_v18, %v4922_v36  ;;  %v2129_v48 = vrot.slane %v8050_v52, 2  ;;  %vm9661_vm0 = vmmov %vm9643_vm3  ;;  %vm9664_vm11 = vcmask 1040384  }
 0x127   : > { %2333 = vmatmul.mubr.f32.gmra.mrb[48].mxu0 %v2140_v39  ;;  %5866 = vmatprep.subr.bf16.mxu1 %v6388_v33  ;;  %v2148_v3 = vsel %vm9652_vm2, %v2139_v28, %v2147_v60  ;;  %v4950_v28 = vld [vmem:[%s9512_s1 + $0x598] sm:$0xff]  ;;  %v8082_v39 = vld [vmem:[#allocation2 + $0x148] sm:$0xff]  ;;  %vm9662_vm6 = vmmov %vm9651_vm1  ;;  %vm9666_vm2 = vcmask 1046016   ;;  %v1088_v18 = vrot.slane %v7426_v12, 4 }
 0x128   : > { %2337 = vmatprep.mubr.f32.mxu0 %v2150_v26  ;;  %5892 = vmatpush3.bf16.msra.mxu0 %v5891_v49  ;;  %v1051_v0 = vpop.permute.xlu0 %1050  ;;  %v2158_v55 = vsel %vm9656_vm4, %v2149_v30, %v2157_v29  ;;  %v1168_v30 = vld [vmem:[#allocation2 + $0x158] sm:$0x1]  ;;  %v1044_v26 = vrot.slane %v7796_v2, 7  ;;  %v2181_v41 = vrot.slane %v8082_v39, 2  ;;  %vm9663_vm13 = vmmov %vm9651_vm1  ;;  %v8118_v14 = vld [vmem:[#allocation2 + $0x168] sm:$0xff]  ;;  %vm9665_vm1 = vcmask 521216  }
 0x129   : > { %1956 = vmatmul.mubr.f32.gmra.mrb[14].mxu1 %v7653_v21  ;;  %5894 = vmatprep.subr.bf16.mxu0 %v5893_v19  ;;  %v1098_v1 = vpop.permute.xlu1 %1097  ;;  %v2155_v21 = vrot.slane %v8014_v4, 2  ;;  %1056 = vst.msk [vmem:[#allocation2 + $0x1d0] sm:$0xe0] %vm9654_vm8, %v1051_v0  ;;  %v4924_v19 = vld [vmem:[%s9512_s1 + $0x520] sm:$0xff]  ;;  %v4927_v0 = vld [vmem:[%s9512_s1 + $0x538] sm:$0xff]  ;;  %vm9668_vm8 = vmmov %vm9661_vm0 }
 0x12a   : > { %5868 = vmatpush1.bf16.msra.mxu1 %v5867_v58  ;;  %4869 = vmatprep.mubr.msk.f32.mxu1 %vm9653_vm5, %v7619_v59  ;;  %1103 = vst.msk [vmem:[#allocation2 + $0x1e8] sm:$0xc0] %vm9655_vm7, %v1098_v1  ;;  %v2165_v59 = vrot.slane %v8016_v53, 2  ;;  %v5903_v58 = vpack.c.bf16 %v4950_v28, %v4949_v42  ;;  %v5876_v62 = vpack.c.bf16 %v4925_v23, %v4924_v19  ;;  %v8110_v1 = vld [vmem:[#allocation2 + $0x140] sm:$0xff]  ;;  %v8120_v24 = vld [vmem:[#allocation2 + $0x98] sm:$0xff]  ;;  %vm9667_vm5 = vmmov %vm9656_vm4 }
 0x12b   : > { %2338 = vmatmul.mubr.f32.gmra.mrb[50].mxu0 %v2148_v3  ;;  %5869 = vmatprep.subr.bf16.mxu1 %v6388_v33  ;;  %v2156_v6 = vsel %vm9657_vm9, %v2147_v60, %v2155_v21  ;;  %v5905_v60 = vpack.c.bf16 %v4968_v32, %v4967_v16  ;;  %v2130_v3 = vsel %vm9663_vm13, %v2128_v31, %v2129_v48  ;;  %v4971_v42 = vld [vmem:[%s9512_s1 + $0x640] sm:$0xff]  ;;  %vm9669_vm7 = vmmov %vm9656_vm4  ;;  %v4972_v16 = vld [vmem:[%s9512_s1 + $0x648] sm:$0xff]  ;;  %vm9670_vm4 = vcmask 1043456  }
 0x12c   : > { %2342 = vmatprep.mubr.f32.mxu0 %v2158_v55  ;;  %5896 = vmatpush3.bf16.msra.mxu0 %v5895_v46  ;;  %v2166_v49 = vsel %vm9659_vm14, %v2157_v29, %v2165_v59  ;;  %v1053_v29 = vpop.permute.xlu0 %1052  ;;  %v4969_v46 = vld [vmem:[%s9512_s1 + $0x630] sm:$0xff]  ;;  %v5907_v55 = vpack.c.bf16 %v4952_v50, %v4951_v27  ;;  %v5879_v61 = vpack.c.bf16 %v4927_v0, %v4926_v56  ;;  %v5022_v28 = vld [vmem:[%s9512_s1 + $0x780] sm:$0xff]  ;;  %v8158_v31 = vld [vmem:[#allocation2 + $0x188] sm:$0x7]  ;;  %vm9671_vm9 = vcmask 522240  }
 0x12d   : > { %1961 = vmatmul.mubr.f32.gmra.mrb[16].mxu1 %v7669_v10  ;;  %5898 = vmatprep.subr.bf16.mxu0 %v5897_v5  ;;  %v1080_v15 = vpop.permute.xlu1 %1079  ;;  %v2163_v10 = vrot.slane %v8046_v20, 2  ;;  %v4970_v5 = vld [vmem:[%s9512_s1 + $0x638] sm:$0xff]  ;;  %v8151_v32 = vld [vmem:[#allocation2 + $0x160] sm:$0xff]  ;;  %v1089_v19 = vsel %vm9670_vm4, %v1087_v22, %v1088_v18  ;;  %v1105_v50 = vrot.slane %v7224_v47, 6 }
 0x12e   : > { %5871 = vmatpush1.bf16.msra.mxu1 %v5870_v43  ;;  %4870 = vmatprep.mubr.msk.f32.mxu1 %vm9643_vm3, %v7640_v9  ;;  %1085 = vst.msk [vmem:[#allocation2 + $0x1e0] sm:$0xc0] %vm9658_vm15, %v1080_v15  ;;  %v2173_v9 = vrot.slane %v8048_v44, 2  ;;  %v1045_v43 = vsel %vm9664_vm11, %v1043_v17, %v1044_v26  ;;  %v5909_v36 = vpack.c.bf16 %v4970_v5, %v4969_v46  ;;  %v4954_v17 = vld [vmem:[%s9512_s1 + $0x5b8] sm:$0xff]  ;;  %v5023_v15 = vld [vmem:[%s9512_s1 + $0x788] sm:$0xff]  ;;  %vm9672_vm3 = vmmov %vm9667_vm5  ;;  %v2197_v5 = vrot.slane %v8158_v31, 2 }
 0x12f   : > { %2343 = vmatmul.mubr.f32.gmra.mrb[52].mxu0 %v2156_v6  ;;  %5872 = vmatprep.subr.bf16.mxu1 %v6388_v33  ;;  %v2164_v37 = vsel %vm9660_vm12, %v2155_v21, %v2163_v10  ;;  %v1167_v21 = vld [vmem:[#allocation2 + $0x150] sm:$0x1]  ;;  %1049 = vst.msk [vmem:[#allocation2 + $0x1f0] sm:$0x3f] %vm9665_vm1, %v1045_v43  ;;  %v5949_v27 = vpack.c.bf16 %v5023_v15, %v5022_v28  ;;  %vm9673_vm15 = vmmov %vm9672_vm3  ;;  %v8181_v56 = vld [vmem:[#allocation2 + $0x180] sm:$0x7] }
 0x130   : > { %2347 = vmatprep.mubr.f32.mxu0 %v2166_v49  ;;  %5900 = vmatpush3.bf16.msra.mxu0 %v5899_v54  ;;  %v2174_v2 = vsel %vm9662_vm6, %v2165_v59, %v2173_v9  ;;  %v8123_v59 = vld [vmem:[#allocation2 + $0x70] sm:$0xff]  ;;  %1057 = vst.msk [vmem:[#allocation2 + $0x1f0] sm:$0x3f] %vm9666_vm2, %v1053_v29  ;;  %v1100_v6 = vpop.permute.xlu0 %1099  ;;  %v2137_v49 = vrot.slane %v8120_v24, 2  ;;  %v5914_v29 = vpack.c.bf16 %v4972_v16, %v4971_v42  ;;  %vm9674_vm14 = vmmov %vm9672_vm3  ;;  %vm9675_vm12 = vcmask 523270   ;;  %v4975_v18 = vld [vmem:[%s9512_s1 + $0x660] sm:$0xff] }
 0x131   : > { %1966 = vmatmul.mubr.f32.gmra.mrb[22].mxu1 %v7711_v7  ;;  %5902 = vmatprep.subr.bf16.mxu0 %v5901_v57  ;;  %v2171_v7 = vrot.slane %v8079_v25, 2  ;;  %v2179_v57 = vrot.slane %v8110_v1, 2  ;;  %v2126_v23 = vrot.slane %v8123_v59, 2  ;;  %1093 = vst.msk [vmem:[#allocation2 + $0x208] sm:$0x7f] %vm9671_vm9, %v1089_v19  ;;  %vm9677_vm6 = vcmask 1048070   ;;  %vm9679_vm11 = vmmov %vm9668_vm8 }
 0x132   : > { %5874 = vmatpush1.bf16.msra.mxu1 %v5873_v51  ;;  %4871 = vmatprep.mubr.msk.f32.mxu1 %vm9661_vm0, %v1168_v30  ;;  %v2182_v51 = vsel %vm9669_vm7, %v2173_v9, %v2181_v41  ;;  %v1976_v30 = vld [vmem:[#allocation2 + $0x50] sm:$0xfc]  ;;  %v8160_v9 = vld [vmem:[#allocation2 + $0xb8] sm:$0xff]  ;;  %1104 = vst.msk [vmem:[#allocation2 + $0x208] sm:$0x7f] %vm592_vm10, %v1100_v6  ;;  %v2138_v46 = vsel %vm9674_vm14, %v2129_v48, %v2137_v49  ;;  %vm9676_vm0 = vmmov %vm9672_vm3 }
 0x133   : > { %2348 = vmatmul.mubr.f32.gmra.mrb[54].mxu0 %v2164_v37  ;;  %5875 = vmatprep.subr.bf16.mxu1 %v6388_v33  ;;  %v2172_v54 = vsel %vm9667_vm5, %v2163_v10, %v2171_v7  ;;  %v2189_v10 = vrot.slane %v8118_v14, 2  ;;  %v2180_v22 = vsel %vm9672_vm3, %v2171_v7, %v2179_v57  ;;  %v2125_v26 = vrot.slane %v1976_v30, 2  ;;  %v4974_v7 = vld [vmem:[%s9512_s1 + $0x658] sm:$0xff]  ;;  %1110 = vst.msk [vmem:[#allocation2 + $0x1f0] sm:$0xc0] %vm9675_vm12, %v1105_v50  ;;  %v8192_v43 = vld [vmem:[#allocation2 + $0xb0] sm:$0xff]  ;;  %vm9678_vm13 = vmmov %vm9676_vm0 }
 0x134   : > { %2352 = vmatprep.mubr.f32.mxu0 %v2174_v2  ;;  %5904 = vmatpush3.bf16.msra.mxu0 %v5903_v58  ;;  %v5911_v58 = vpack.c.bf16 %v4954_v17, %v4953_v34  ;;  %v2187_v37 = vrot.slane %v8151_v32, 2  ;;  %v4973_v2 = vld [vmem:[%s9512_s1 + $0x650] sm:$0xff]  ;;  %v1116_v52 = vpop.permute.xlu0 %1115  ;;  %vm9680_vm1 = vmmov %vm9676_vm0  ;;  %v2143_v28 = vrot.slane %v8192_v43, 2  ;;  %v8213_v15 = vld [vmem:[#allocation2 + $0xf8] sm:$0xff]  ;;  %vm9690_vm12 = vcmask 1044480  }
 0x135   : > { %1970 = vmatmul.mubr.f32.gmra.mrb[24].mxu1 %v1167_v21  ;;  %5906 = vmatprep.subr.bf16.mxu0 %v5905_v60  ;;  %v8163_v60 = vld [vmem:[#allocation2 + $0x90] sm:$0xff]  ;;  %v2127_v48 = vsel %vm9676_vm0, %v2125_v26, %v2126_v23  ;;  %1121 = vst.msk [vmem:[#allocation2 + $0x1f0] sm:$0xc0] %vm9677_vm6, %v1116_v52  ;;  %v1070_v21 = vrot.slane %v7426_v12, 2  ;;  %v5917_v59 = vpack.c.bf16 %v4974_v7, %v4973_v2  ;;  %vm9681_vm2 = vmmov %vm9676_vm0  ;;  %v2161_v31 = vrot.slane %v8213_v15, 2  ;;  %v8233_v26 = vld [vmem:[#allocation2 + $0x118] sm:$0xff] }
 0x136   : > { %5877 = vmatpush1.bf16.msra.mxu1 %v5876_v62  ;;  %4928 = vmatprep.mubr.msk.f32.mxu1 %vm9668_vm8, %v2130_v3  ;;  %v2190_v62 = vsel %vm9673_vm15, %v2181_v41, %v2189_v10  ;;  %v2145_v41 = vrot.slane %v8160_v9, 2  ;;  %v2135_v0 = vrot.slane %v8163_v60, 2  ;;  %v8189_v3 = vld [vmem:[#allocation2 + $0xd8] sm:$0xff]  ;;  %v2198_v34 = vsel %vm9680_vm1, %v2189_v10, %v2197_v5  ;;  %vm9682_vm5 = vmmov %vm9676_vm0  ;;  %v8216_v6 = vld [vmem:[#allocation2 + $0xd0] sm:$0xff] }
 0x137   : > { %2353 = vmatmul.mubr.f32.gmra.mrb[56].mxu0 %v2172_v54  ;;  %5878 = vmatprep.subr.bf16.mxu1 %v6388_v33  ;;  %v4976_v54 = vld [vmem:[%s9512_s1 + $0x668] sm:$0xff]  ;;  %vm9683_vm8 = vmmov %vm9676_vm0  ;;  %v4977_v19 = vld [vmem:[%s9512_s1 + $0x670] sm:$0xff]  ;;  %v2662_v52 = vrot.slane %v7920_v45, 3 }
 0x138   : > { %2357 = vmatprep.mubr.f32.mxu0 %v2182_v51  ;;  %5908 = vmatpush3.bf16.msra.mxu0 %v5907_v55  ;;  %v2188_v55 = vsel %vm9678_vm13, %v2179_v57, %v2187_v37  ;;  %v2146_v17 = vsel %vm9681_vm2, %v2137_v49, %v2145_v41  ;;  %v1071_v57 = vsel %vm9682_vm5, %v1069_v35, %v1070_v21  ;;  %vm9684_vm7 = vmmov %vm9671_vm9  ;;  %v2504_v35 = vld [vmem:[#allocation2 + $0x68] sm:$0xf8]  ;;  %v2652_v49 = vrot.slane %v7889_v13, 3  ;;  %v5024_v2 = vld [vmem:[%s9512_s1 + $0x790] sm:$0xff] }
 0x139   : > { %5910 = vmatprep.subr.bf16.mxu0 %v5909_v36  ;;  %v2195_v36 = vrot.slane %v8181_v56, 2  ;;  %v2136_v42 = vsel %vm9683_vm8, %v2126_v23, %v2135_v0  ;;  %1075 = vst.msk [vmem:[#allocation2 + $0x200] sm:$0x7f] %vm9684_vm7, %v1071_v57  ;;  %vm9685_vm4 = vmmov %vm9676_vm0  ;;  %v5920_v30 = vpack.c.bf16 %v4976_v54, %v4975_v18  ;;  %v4978_v23 = vld [vmem:[%s9512_s1 + $0x678] sm:$0xff]  ;;  %v2651_v13 = vrot.slane %v2504_v35, 3  ;;  %v8266_v45 = vld [vmem:[#allocation2 + $0x110] sm:$0xff] }
 0x13a   : > { %5880 = vmatpush1.bf16.msra.mxu1 %v5879_v61  ;;  %v2153_v61 = vrot.slane %v8189_v3, 2  ;;  %vm9686_vm9 = vmmov %vm9679_vm11  ;;  %v5025_v7 = vld [vmem:[%s9512_s1 + $0x798] sm:$0xff]  ;;  %v5008_v18 = vld [vmem:[%s9512_s1 + $0x710] sm:$0xff]  ;;  %v2670_v35 = vrot.slane %v7952_v38, 3 }
 0x13b   : > { %2358 = vmatmul.mubr.f32.gmra.mrb[58].mxu0 %v2180_v22  ;;  %5913 = vmatprep.subr.bf16.mxu1 %v6388_v33  ;;  %v2196_v10 = vsel %vm9685_vm4, %v2187_v37, %v2195_v36  ;;  %vm9687_vm3 = vmmov %vm9676_vm0  ;;  %v2503_v22 = vld [vmem:[#allocation2 + $0x60] sm:$0xf8]  ;;  %v2653_v56 = vsel %vm9690_vm12, %v2651_v13, %v2652_v49  ;;  %v5009_v54 = vld [vmem:[%s9512_s1 + $0x718] sm:$0xff] }
 0x13c   : > { %2362 = vmatprep.mubr.f32.mxu0 %v2190_v62  ;;  %5912 = vmatpush3.bf16.msra.mxu0 %v5911_v58  ;;  %v2154_v16 = vsel %vm9687_vm3, %v2145_v41, %v2153_v61  ;;  %vm9688_vm15 = vmmov %vm9676_vm0  ;;  %v5006_v37 = vld [vmem:[%s9512_s1 + $0x700] sm:$0xff]  ;;  %v5007_v62 = vld [vmem:[%s9512_s1 + $0x708] sm:$0xff]  ;;  %v2162_v41 = vsel %vm9676_vm0, %v2153_v61, %v2161_v31 }
 0x13d   : > { %2441 = vmatmul.mubr.f32.vlgmr.msra.gmra.mrb[0].mxu1 %v2127_v48  ;;  %5950 = vmatprep.subr.bf16.mxu0 %v5949_v27  ;;  %v1082_v51 = vpop.permute.xlu1 %1081  ;;  %v2144_v58 = vsel %vm9688_vm15, %v2135_v0, %v2143_v28  ;;  %v2151_v27 = vrot.slane %v8216_v6, 2  ;;  %vm9689_vm14 = vmmov %vm9686_vm9  ;;  %v4980_v48 = vld [vmem:[%s9512_s1 + $0x688] sm:$0xff]  ;;  %v2169_v0 = vrot.slane %v8233_v26, 2  ;;  %v8298_v38 = vld [vmem:[#allocation2 + $0x130] sm:$0xff] }
 0x13e   : > { %5915 = vmatpush1.bf16.msra.mxu1 %v5914_v29  ;;  %4929 = vmatprep.mubr.msk.f32.mxu1 %vm9679_vm11, %v2138_v46  ;;  %1086 = vst.msk [vmem:[#allocation2 + $0x200] sm:$0x7f] %vm592_vm10, %v1082_v51  ;;  %v8235_v29 = vld [vmem:[#allocation2 + $0xf0] sm:$0xff]  ;;  %v5923_v46 = vpack.c.bf16 %v4978_v23, %v4977_v19  ;;  %vm9691_vm6 = vmmov %vm9676_vm0  ;;  %v5027_v51 = vld [vmem:[%s9512_s1 + $0x7a8] sm:$0xff] }
 0x13f   : > { %2363 = vmatmul.mubr.f32.gmra.mrb[60].mxu0 %v2188_v55  ;;  %5916 = vmatprep.subr.bf16.mxu1 %v6388_v33  ;;  %v2152_v21 = vsel %vm9691_vm6, %v2143_v28, %v2151_v27  ;;  %v2648_v55 = vrot.slane %v2503_v22, 3  ;;  %vm9692_vm13 = vmmov %vm9686_vm9  ;;  %v5026_v28 = vld [vmem:[%s9512_s1 + $0x7a0] sm:$0xff] }
 0x140   : > { %2367 = vmatprep.mubr.f32.mxu0 %v2198_v34  ;;  %v8264_v34 = vld [vmem:[#allocation2 + $0x138] sm:$0xff]  ;;  %vm9693_vm11 = vmmov %vm9690_vm12  ;;  %v5957_v22 = vpack.c.bf16 %v5027_v51, %v5026_v28  ;;  %v5010_v13 = vld [vmem:[%s9512_s1 + $0x720] sm:$0xff] }
 0x141   : > { %2446 = vmatmul.mubr.f32.gmra.mrb[2].mxu1 %v2136_v42  ;;  %v2660_v42 = vrot.slane %v7950_v63, 3  ;;  %vm9694_vm1 = vmmov %vm9693_vm11  ;;  %v4981_v63 = vld [vmem:[%s9512_s1 + $0x690] sm:$0xff]  ;;  %v2177_v19 = vrot.slane %v8264_v34, 2  ;;  %v5031_v28 = vld [vmem:[%s9512_s1 + $0x7c8] sm:$0xff] }
 0x142   : > { %5918 = vmatpush1.bf16.msra.mxu1 %v5917_v59  ;;  %4930 = vmatprep.mubr.msk.f32.mxu1 %vm9686_vm9, %v2146_v17  ;;  %v2159_v59 = vrot.slane %v8235_v29, 2  ;;  %v5953_v17 = vpack.c.bf16 %v5025_v7, %v5024_v2  ;;  %vm9695_vm2 = vmmov %vm9676_vm0  ;;  %v5028_v2 = vld [vmem:[%s9512_s1 + $0x7b0] sm:$0xff]  ;;  %v5029_v7 = vld [vmem:[%s9512_s1 + $0x7b8] sm:$0xff] }
 0x143   : > { %2368 = vmatmul.mubr.f32.gmra.mrb[62].mxu0 %v2196_v10  ;;  %5919 = vmatprep.subr.bf16.mxu1 %v6388_v33  ;;  %v2663_v10 = vsel %vm9694_vm1, %v2652_v49, %v2662_v52  ;;  %vm9696_vm5 = vmmov %vm9676_vm0  ;;  %v2167_v49 = vrot.slane %v8266_v45, 2 }
 0x144   : > { %2371 = vmatprep.mubr.f32.mxu0 %v2197_v5  ;;  %v2649_v5 = vrot.slane %v7918_v8, 3  ;;  %v4979_v8 = vld [vmem:[%s9512_s1 + $0x680] sm:$0xff]  ;;  %v2160_v23 = vsel %vm9696_vm5, %v2151_v27, %v2159_v59  ;;  %v5011_v27 = vld [vmem:[%s9512_s1 + $0x728] sm:$0xff]  ;;  %vm9697_vm8 = vmmov %vm9686_vm9 }
 0x145   : > { %2451 = vmatmul.mubr.f32.gmra.mrb[4].mxu1 %v2144_v58  ;;  %v5926_v57 = vpack.c.bf16 %v4980_v48, %v4979_v8  ;;  %v5955_v58 = vpack.c.bf16 %v5009_v54, %v5008_v18  ;;  %vm9698_vm7 = vmmov %vm9694_vm1  ;;  %v4984_v8 = vld [vmem:[%s9512_s1 + $0x6a8] sm:$0xff] }
 0x146   : > { %5921 = vmatpush1.bf16.msra.mxu1 %v5920_v30  ;;  %4931 = vmatprep.mubr.msk.f32.mxu1 %vm9689_vm14, %v2154_v16  ;;  %v2650_v61 = vsel %vm9693_vm11, %v2648_v55, %v2649_v5  ;;  %v2170_v30 = vsel %vm9695_vm2, %v2161_v31, %v2169_v0  ;;  %v4982_v16 = vld [vmem:[%s9512_s1 + $0x698] sm:$0xff]  ;;  %vm9699_vm4 = vmmov %vm9694_vm1  ;;  %v5959_v55 = vpack.c.bf16 %v5011_v27, %v5010_v13 }
 0x147   : > { %2372 = vmatmul.mubr.f32.gmra.mrb[64].mxu0 %v2195_v36  ;;  %5922 = vmatprep.subr.bf16.mxu1 %v6388_v33  ;;  %v5951_v36 = vpack.c.bf16 %v5007_v62, %v5006_v37  ;;  %v8296_v31 = vld [vmem:[#allocation2 + $0x158] sm:$0xff]  ;;  %v2661_v37 = vsel %vm9698_vm7, %v2649_v5, %v2660_v42  ;;  %v5929_v62 = vpack.c.bf16 %v4982_v16, %v4981_v63  ;;  %vm9700_vm9 = vmmov %vm9676_vm0  ;;  %v2678_v5 = vrot.slane %v7984_v40, 3  ;;  %v8330_v40 = vld [vmem:[#allocation2 + $0x150] sm:$0xff] }
 0x148   : > { %2851 = vmatprep.mubr.f32.mxu0 %v2653_v56  ;;  %v2671_v56 = vsel %vm9699_vm4, %v2662_v52, %v2670_v35  ;;  %v2185_v48 = vrot.slane %v8296_v31, 2  ;;  %vm9701_vm3 = vmmov %vm9676_vm0  ;;  %v2175_v52 = vrot.slane %v8298_v38, 2 }
 0x149   : > { %2456 = vmatmul.mubr.f32.gmra.mrb[6].mxu1 %v2152_v21  ;;  %v2168_v21 = vsel %vm9701_vm3, %v2159_v59, %v2167_v49  ;;  %v5013_v59 = vld [vmem:[%s9512_s1 + $0x738] sm:$0xff]  ;;  %vm9702_vm15 = vmmov %vm9697_vm8 }
 0x14a   : > { %5924 = vmatpush1.bf16.msra.mxu1 %v5923_v46  ;;  %4932 = vmatprep.mubr.msk.f32.mxu1 %vm9692_vm13, %v2162_v41  ;;  %v2668_v46 = vrot.slane %v7982_v11, 3  ;;  %v2178_v41 = vsel %vm9700_vm9, %v2169_v0, %v2177_v19  ;;  %v4983_v11 = vld [vmem:[%s9512_s1 + $0x6a0] sm:$0xff]  ;;  %v8328_v0 = vld [vmem:[#allocation2 + $0x178] sm:$0xff]  ;;  %vm9703_vm14 = vmmov %vm9694_vm1 }
 0x14b   : > { %2852 = vmatmul.mubr.f32.vlgmr.msra.gmra.mrb[66].mxu0 %v2650_v61  ;;  %5925 = vmatprep.subr.bf16.mxu1 %v6388_v33  ;;  %v5932_v54 = vpack.c.bf16 %v4984_v8, %v4983_v11  ;;  %v2676_v61 = vrot.slane %v8014_v4, 3  ;;  %vm9704_vm12 = vmmov %vm9694_vm1  ;;  %v4985_v4 = vld [vmem:[%s9512_s1 + $0x6b0] sm:$0xff]  ;;  %v2193_v63 = vrot.slane %v8328_v0, 2 }
 0x14c   : > { %2856 = vmatprep.mubr.f32.mxu0 %v2663_v10  ;;  %5952 = vmatpush3.bf16.msra.mxu0 %v5951_v36  ;;  %v5961_v36 = vpack.c.bf16 %v5029_v7, %v5028_v2  ;;  %v2669_v18 = vsel %vm9703_vm14, %v2660_v42, %v2668_v46  ;;  %v2679_v51 = vsel %vm9704_vm12, %v2670_v35, %v2678_v5  ;;  %v2686_v42 = vrot.slane %v8016_v53, 3  ;;  %vm9705_vm6 = vmmov %vm9676_vm0  ;;  %v8362_v53 = vld [vmem:[#allocation2 + $0x170] sm:$0xff]  ;;  %v5033_v2 = vld [vmem:[%s9512_s1 + $0x7d8] sm:$0xff] }
 0x14d   : > { %2461 = vmatmul.mubr.f32.gmra.mrb[8].mxu1 %v2160_v23  ;;  %5954 = vmatprep.subr.bf16.mxu0 %v5953_v17  ;;  %v5012_v17 = vld [vmem:[%s9512_s1 + $0x730] sm:$0xff]  ;;  %v2186_v10 = vsel %vm9676_vm0, %v2177_v19, %v2185_v48  ;;  %v2176_v16 = vsel %vm9705_vm6, %v2167_v49, %v2175_v52  ;;  %v2183_v35 = vrot.slane %v8330_v40, 2  ;;  %v8360_v19 = vld [vmem:[#allocation2 + $0x198] sm:$0x7]  ;;  %v5015_v49 = vld [vmem:[%s9512_s1 + $0x748] sm:$0xff] }
 0x14e   : > { %5927 = vmatpush1.bf16.msra.mxu1 %v5926_v57  ;;  %4933 = vmatprep.mubr.msk.f32.mxu1 %vm9697_vm8, %v2170_v30  ;;  %v5030_v57 = vld [vmem:[%s9512_s1 + $0x7c0] sm:$0xff]  ;;  %v4986_v30 = vld [vmem:[%s9512_s1 + $0x6b8] sm:$0xff]  ;;  %v5963_v23 = vpack.c.bf16 %v5013_v59, %v5012_v17  ;;  %vm9706_vm13 = vmmov %vm9697_vm8  ;;  %v2687_v7 = vsel %vm9694_vm1, %v2678_v5, %v2686_v42  ;;  %v2201_v11 = vrot.slane %v8360_v19, 2  ;;  %v2191_v5 = vrot.slane %v8362_v53, 2 }
 0x14f   : > { %2857 = vmatmul.mubr.f32.gmra.mrb[68].mxu0 %v2661_v37  ;;  %5928 = vmatprep.subr.bf16.mxu1 %v6388_v33  ;;  %vm9707_vm11 = vmmov %vm9694_vm1  ;;  %v5935_v27 = vpack.c.bf16 %v4986_v30, %v4985_v4  ;;  %v2684_v37 = vrot.slane %v8046_v20, 3  ;;  %v4987_v20 = vld [vmem:[%s9512_s1 + $0x6c0] sm:$0xff]  ;;  %v2692_v59 = vrot.slane %v8079_v25, 3  ;;  %v4989_v25 = vld [vmem:[%s9512_s1 + $0x6d0] sm:$0xff] }
 0x150   : > { %2861 = vmatprep.mubr.f32.mxu0 %v2671_v56  ;;  %5956 = vmatpush3.bf16.msra.mxu0 %v5955_v58  ;;  %v5965_v58 = vpack.c.bf16 %v5031_v28, %v5030_v57  ;;  %v2677_v13 = vsel %vm9707_vm11, %v2668_v46, %v2676_v61  ;;  %vm9708_vm2 = vmmov %vm9676_vm0  ;;  %v2694_v46 = vrot.slane %v8048_v44, 3  ;;  %v2702_v28 = vrot.slane %v8082_v39, 3  ;;  %v2506_v30 = vld [vmem:[#allocation2 + $0x78] sm:$0xf8]  ;;  %v5018_v39 = vld [vmem:[%s9512_s1 + $0x760] sm:$0xff] }
 0x151   : > { %2466 = vmatmul.mubr.f32.gmra.mrb[10].mxu1 %v2168_v21  ;;  %5958 = vmatprep.subr.bf16.mxu0 %v5957_v22  ;;  %v5014_v22 = vld [vmem:[%s9512_s1 + $0x740] sm:$0xff]  ;;  %v2194_v56 = vsel %vm9708_vm2, %v2185_v48, %v2193_v63  ;;  %vm9709_vm5 = vmmov %vm9676_vm0  ;;  %v8392_v48 = vld [vmem:[#allocation2 + $0x190] sm:$0x7] }
 0x152   : > { %5930 = vmatpush1.bf16.msra.mxu1 %v5929_v62  ;;  %4934 = vmatprep.mubr.msk.f32.mxu1 %vm9702_vm15, %v2178_v41  ;;  %v5032_v62 = vld [vmem:[%s9512_s1 + $0x7d0] sm:$0xff]  ;;  %v4988_v41 = vld [vmem:[%s9512_s1 + $0x6c8] sm:$0xff]  ;;  %v2184_v8 = vsel %vm9709_vm5, %v2175_v52, %v2183_v35  ;;  %v5967_v21 = vpack.c.bf16 %v5015_v49, %v5014_v22  ;;  %vm9710_vm7 = vmmov %vm9694_vm1 }
 0x153   : > { %2862 = vmatmul.mubr.f32.gmra.mrb[70].mxu0 %v2669_v18  ;;  %5931 = vmatprep.subr.bf16.mxu1 %v6388_v33  ;;  %v5969_v44 = vpack.c.bf16 %v5033_v2, %v5032_v62  ;;  %v2685_v52 = vsel %vm9710_vm7, %v2676_v61, %v2684_v37  ;;  %v5938_v17 = vpack.c.bf16 %v4988_v41, %v4987_v20  ;;  %v5034_v18 = vld [vmem:[%s9512_s1 + $0x7e0] sm:$0xff]  ;;  %vm9711_vm4 = vmmov %vm9694_vm1  ;;  %v5036_v22 = vld [vmem:[%s9512_s1 + $0x7f0] sm:$0xff]  ;;  %v2657_v62 = vrot.slane %v2506_v30, 3 }
 0x154   : > { %2866 = vmatprep.mubr.f32.mxu0 %v2679_v51  ;;  %5960 = vmatpush3.bf16.msra.mxu0 %v5959_v55  ;;  %v5016_v55 = vld [vmem:[%s9512_s1 + $0x750] sm:$0xff]  ;;  %v2695_v57 = vsel %vm9711_vm4, %v2686_v42, %v2694_v46  ;;  %vm9712_vm9 = vmmov %vm9676_vm0  ;;  %v4990_v51 = vld [vmem:[%s9512_s1 + $0x6d8] sm:$0xff]  ;;  %v2199_v42 = vrot.slane %v8392_v48, 2  ;;  %v2658_v2 = vrot.slane %v8120_v24, 3  ;;  %vm9723_vm7 = vcmask 1041408  }
 0x155   : > { %2471 = vmatmul.mubr.f32.gmra.mrb[12].mxu1 %v2176_v16  ;;  %5962 = vmatprep.subr.bf16.mxu0 %v5961_v36  ;;  %v5017_v36 = vld [vmem:[%s9512_s1 + $0x758] sm:$0xff]  ;;  %v2202_v61 = vsel %vm9712_vm9, %v2193_v63, %v2201_v11  ;;  %vm9713_vm3 = vmmov %vm9676_vm0  ;;  %v5019_v16 = vld [vmem:[%s9512_s1 + $0x768] sm:$0xff]  ;;  %vm9724_vm4 = vcmask 522240  }
 0x156   : > { %5933 = vmatpush1.bf16.msra.mxu1 %v5932_v54  ;;  %4935 = vmatprep.mubr.msk.f32.mxu1 %vm9706_vm13, %v2186_v10  ;;  %v5035_v54 = vld [vmem:[%s9512_s1 + $0x7e8] sm:$0xff]  ;;  %v2192_v10 = vsel %vm9713_vm3, %v2183_v35, %v2191_v5  ;;  %v5971_v4 = vpack.c.bf16 %v5017_v36, %v5016_v55  ;;  %vm9714_vm15 = vmmov %vm9697_vm8  ;;  %v5037_v49 = vld [vmem:[%s9512_s1 + $0x7f8] sm:$0xff] }
 0x157   : > { %2867 = vmatmul.mubr.f32.gmra.mrb[72].mxu0 %v2677_v13  ;;  %5934 = vmatprep.subr.bf16.mxu1 %v6388_v33  ;;  %v5973_v63 = vpack.c.bf16 %v5035_v54, %v5034_v18  ;;  %vm9715_vm14 = vmmov %vm9694_vm1  ;;  %v5020_v20 = vld [vmem:[%s9512_s1 + $0x770] sm:$0xff]  ;;  %v5021_v41 = vld [vmem:[%s9512_s1 + $0x778] sm:$0xff] }
 0x158   : > { %2871 = vmatprep.mubr.f32.mxu0 %v2687_v7  ;;  %5964 = vmatpush3.bf16.msra.mxu0 %v5963_v23  ;;  %v2693_v35 = vsel %vm9715_vm14, %v2684_v37, %v2692_v59  ;;  %v5941_v23 = vpack.c.bf16 %v4990_v51, %v4989_v25  ;;  %vm9716_vm12 = vmmov %vm9694_vm1  ;;  %v4991_v37 = vld [vmem:[%s9512_s1 + $0x6e0] sm:$0xff]  ;;  %v2200_v7 = vsel %vm9676_vm0, %v2191_v5, %v2199_v42  ;;  %v1106_v25 = vrot.slane %v7426_v12, 6 }
 0x159   : > { %2476 = vmatmul.mubr.f32.gmra.mrb[14].mxu1 %v2184_v8  ;;  %5966 = vmatprep.subr.bf16.mxu0 %v5965_v58  ;;  %v2700_v58 = vrot.slane %v8110_v1, 3  ;;  %v2703_v13 = vsel %vm9716_vm12, %v2694_v46, %v2702_v28  ;;  %v4992_v1 = vld [vmem:[%s9512_s1 + $0x6e8] sm:$0xff]  ;;  %v5975_v46 = vpack.c.bf16 %v5019_v16, %v5018_v39  ;;  %vm9717_vm6 = vmmov %vm9697_vm8  ;;  %v5089_v48 = vld [vmem:[%s9512_s1 + $0x940] sm:$0xff]  ;;  %v2655_v12 = vrot.slane %v8163_v60, 3 }
 0x15a   : > { %5936 = vmatpush1.bf16.msra.mxu1 %v5935_v27  ;;  %4936 = vmatprep.mubr.msk.f32.mxu1 %vm9697_vm8, %v2194_v56  ;;  %v2710_v27 = vrot.slane %v8118_v14, 3  ;;  %v8449_v56 = vld [vmem:[#allocation2 + $0x188] sm:$0xff]  ;;  %v5977_v14 = vpack.c.bf16 %v5037_v49, %v5036_v22  ;;  %vm9718_vm13 = vmmov %vm9694_vm1  ;;  %v5944_v5 = vpack.c.bf16 %v4992_v1, %v4991_v37  ;;  %v8477_v36 = vld [vmem:[#allocation2 + $0x180] sm:$0xff]  ;;  %v1107_v39 = vsel %vm9723_vm7, %v1105_v50, %v1106_v25 }
 0x15b   : > { %2872 = vmatmul.mubr.f32.gmra.mrb[74].mxu0 %v2685_v52  ;;  %5937 = vmatprep.subr.bf16.mxu1 %v6388_v33  ;;  %v2701_v8 = vsel %vm9718_vm13, %v2692_v59, %v2700_v58  ;;  %vm9719_vm11 = vmmov %vm9694_vm1  ;;  %v2718_v19 = vrot.slane %v8449_v56, 3  ;;  %v2659_v52 = vsel %vm9694_vm1, %v2657_v62, %v2658_v2  ;;  %v5979_v59 = vpack.c.bf16 %v5021_v41, %v5020_v20  ;;  %v2543_v30 = vld [vmem:[#allocation2 + $0x1a0] sm:$0xf]  ;;  %v5040_v60 = vld [vmem:[%s9512_s1 + $0x810] sm:$0xff] }
 0x15c   : > { %2876 = vmatprep.mubr.f32.mxu0 %v2695_v57  ;;  %5968 = vmatpush3.bf16.msra.mxu0 %v5967_v21  ;;  %v2708_v21 = vrot.slane %v8151_v32, 3  ;;  %v2711_v55 = vsel %vm9719_vm11, %v2702_v28, %v2710_v27  ;;  %v4994_v32 = vld [vmem:[%s9512_s1 + $0x6f8] sm:$0xff]  ;;  %vm9720_vm2 = vmmov %vm9694_vm1  ;;  %v2505_v28 = vld [vmem:[#allocation2 + $0x70] sm:$0xf8]  ;;  %1111 = vst.msk [vmem:[#allocation2 + $0x210] sm:$0x7f] %vm9724_vm4, %v1107_v39 }
 0x15d   : > { %2481 = vmatmul.mubr.f32.gmra.mrb[16].mxu1 %v2192_v10  ;;  %5970 = vmatprep.subr.bf16.mxu0 %v5969_v44  ;;  %v5090_v44 = vld [vmem:[%s9512_s1 + $0x948] sm:$0xff]  ;;  %vm9721_vm5 = vmmov %vm9717_vm6  ;;  %v5041_v50 = vld [vmem:[%s9512_s1 + $0x818] sm:$0xff]  ;;  %v2674_v22 = vrot.slane %v8189_v3, 3  ;;  %v2682_v41 = vrot.slane %v8213_v15, 3  ;;  %vm9734_vm11 = vcmask 1043456  }
 0x15e   : > { %5939 = vmatpush1.bf16.msra.mxu1 %v5938_v17  ;;  %4937 = vmatprep.mubr.msk.f32.mxu1 %vm9714_vm15, %v2202_v61  ;;  %v2544_v17 = vld [vmem:[#allocation2 + $0x1a8] sm:$0xf]  ;;  %v6017_v18 = vpack.c.bf16 %v5090_v44, %v5089_v48  ;;  %v2709_v54 = vsel %vm9720_vm2, %v2700_v58, %v2708_v21  ;;  %v2716_v61 = vrot.slane %v8477_v36, 3  ;;  %vm9722_vm8 = vmmov %vm9694_vm1  ;;  %v2724_v58 = vrot.slane %v2543_v30, 3  ;;  %v3033_v3 = vld [vmem:[#allocation2 + $0x88] sm:$0xf0] }
 0x15f   : > { %2877 = vmatmul.mubr.f32.gmra.mrb[76].mxu0 %v2693_v35  ;;  %5940 = vmatprep.subr.bf16.mxu1 %v6388_v33  ;;  %v2719_v51 = vsel %vm9722_vm8, %v2710_v27, %v2718_v19  ;;  %v2726_v10 = vrot.slane %v2544_v17, 3  ;;  %vm9725_vm9 = vmmov %vm9694_vm1  ;;  %v2654_v35 = vrot.slane %v2505_v28, 3  ;;  %v2664_v27 = vrot.slane %v8192_v43, 3  ;;  %v8515_v37 = vld [vmem:[#allocation2 + $0xa8] sm:$0xff]  ;;  %v8563_v28 = vld [vmem:[#allocation2 + $0xc0] sm:$0xff] }
 0x160   : > { %2881 = vmatprep.mubr.f32.mxu0 %v2703_v13  ;;  %5972 = vmatpush3.bf16.msra.mxu0 %v5971_v4  ;;  %v5039_v4 = vld [vmem:[%s9512_s1 + $0x808] sm:$0xff]  ;;  %v2717_v16 = vsel %vm9725_vm9, %v2708_v21, %v2716_v61  ;;  %vm9726_vm3 = vmmov %vm9694_vm1  ;;  %v2672_v21 = vrot.slane %v8216_v6, 3  ;;  %v3180_v44 = vrot.slane %v3033_v3, 4  ;;  %v5091_v6 = vld [vmem:[%s9512_s1 + $0x950] sm:$0xff] }
 0x161   : > { %2486 = vmatmul.mubr.f32.gmra.mrb[26].mxu1 %v2200_v7  ;;  %5974 = vmatprep.subr.bf16.mxu0 %v5973_v63  ;;  %v2666_v63 = vrot.slane %v8160_v9, 3  ;;  %v2727_v9 = vsel %vm9726_vm3, %v2718_v19, %v2726_v10  ;;  %vm9727_vm15 = vmmov %vm9694_vm1  ;;  %v5043_v20 = vld [vmem:[%s9512_s1 + $0x828] sm:$0xff]  ;;  %v5073_v19 = vld [vmem:[%s9512_s1 + $0x8c0] sm:$0xff] }
 0x162   : > { %5942 = vmatpush1.bf16.msra.mxu1 %v5941_v23  ;;  %4938 = vmatprep.mubr.msk.f32.mxu1 %vm9717_vm6, %v2201_v11  ;;  %v4993_v11 = vld [vmem:[%s9512_s1 + $0x6f0] sm:$0xff]  ;;  %vm9728_vm14 = vmmov %vm9694_vm1  ;;  %v8536_v48 = vld [vmem:[#allocation2 + $0xc8] sm:$0xff] }
 0x163   : > { %2882 = vmatmul.mubr.f32.gmra.mrb[78].mxu0 %v2701_v8  ;;  %5943 = vmatprep.subr.bf16.mxu1 %v6388_v33  ;;  %v5947_v57 = vpack.c.bf16 %v4994_v32, %v4993_v11  ;;  %v2667_v47 = vsel %vm9727_vm15, %v2658_v2, %v2666_v63  ;;  %v2656_v13 = vsel %vm9728_vm14, %v2654_v35, %v2655_v12  ;;  %vm9729_vm12 = vmmov %vm9694_vm1  ;;  %v8532_v8 = vld [vmem:[#allocation2 + $0xa0] sm:$0xff]  ;;  %v5074_v15 = vld [vmem:[%s9512_s1 + $0x8c8] sm:$0xff] }
 0x164   : > { %2886 = vmatprep.mubr.f32.mxu0 %v2711_v55  ;;  %5976 = vmatpush3.bf16.msra.mxu0 %v5975_v46  ;;  %v2725_v62 = vsel %vm9729_vm12, %v2716_v61, %v2724_v58  ;;  %vm9730_vm0 = vmmov %vm9721_vm5  ;;  %v5985_v2 = vpack.c.bf16 %v5041_v50, %v5040_v60  ;;  %v3181_v46 = vrot.slane %v8515_v37, 4  ;;  %v3032_v55 = vld [vmem:[#allocation2 + $0x80] sm:$0xf0]  ;;  %v3178_v32 = vrot.slane %v8532_v8, 4  ;;  %v8567_v30 = vld [vmem:[#allocation2 + $0xe8] sm:$0xff] }
 0x165   : > { %2490 = vmatmul.mubr.f32.gmra.mrb[28].mxu1 %v2199_v42  ;;  %5978 = vmatprep.subr.bf16.mxu0 %v5977_v14  ;;  %v5038_v42 = vld [vmem:[%s9512_s1 + $0x800] sm:$0xff]  ;;  %vm9731_vm6 = vmmov %vm9694_vm1  ;;  %v2690_v61 = vrot.slane %v8233_v26, 3  ;;  %v5075_v39 = vld [vmem:[%s9512_s1 + $0x8d0] sm:$0xff]  ;;  %v3199_v50 = vrot.slane %v8567_v30, 4 }
 0x166   : > { %5945 = vmatpush1.bf16.msra.mxu1 %v5944_v5  ;;  %4995 = vmatprep.mubr.msk.f32.mxu1 %vm9721_vm5, %v2659_v52  ;;  %v5982_v23 = vpack.c.bf16 %v5039_v4, %v5038_v42  ;;  %v2675_v43 = vsel %vm9731_vm6, %v2666_v63, %v2674_v22  ;;  %v5042_v14 = vld [vmem:[%s9512_s1 + $0x820] sm:$0xff]  ;;  %vm9733_vm13 = vmmov %vm9730_vm0  ;;  %v5092_v52 = vld [vmem:[%s9512_s1 + $0x958] sm:$0xff]  ;;  %v3182_v17 = vsel %vm9734_vm11, %v3180_v44, %v3181_v46  ;;  %v2680_v42 = vrot.slane %v8235_v29, 3 }
 0x167   : > { %2887 = vmatmul.mubr.f32.gmra.mrb[80].mxu0 %v2709_v54  ;;  %5946 = vmatprep.subr.bf16.mxu1 %v6388_v33  ;;  %v5988_v11 = vpack.c.bf16 %v5043_v20, %v5042_v14  ;;  %v5044_v54 = vld [vmem:[%s9512_s1 + $0x830] sm:$0xff]  ;;  %vm9735_vm2 = vmmov %vm9694_vm1  ;;  %v6019_v4 = vpack.c.bf16 %v5074_v15, %v5073_v19  ;;  %v5076_v26 = vld [vmem:[%s9512_s1 + $0x8d8] sm:$0xff] }
 0x168   : > { %2891 = vmatprep.mubr.f32.mxu0 %v2719_v51  ;;  %5980 = vmatpush3.bf16.msra.mxu0 %v5979_v59  ;;  %v2683_v59 = vsel %vm9694_vm1, %v2674_v22, %v2682_v41  ;;  %v2673_v51 = vsel %vm9735_vm2, %v2664_v27, %v2672_v21  ;;  %vm9736_vm5 = vmmov %vm9730_vm0  ;;  %v5046_v22 = vld [vmem:[%s9512_s1 + $0x840] sm:$0xff]  ;;  %v5095_v14 = vld [vmem:[%s9512_s1 + $0x970] sm:$0xff] }
 0x169   : > { %6018 = vmatprep.subr.bf16.mxu0 %v6017_v18  ;;  %v3191_v18 = vrot.slane %v8536_v48, 4  ;;  %vm9737_vm8 = vmmov %vm9734_vm11  ;;  %v5077_v3 = vld [vmem:[%s9512_s1 + $0x8e0] sm:$0xff]  ;;  %v5096_v20 = vld [vmem:[%s9512_s1 + $0x978] sm:$0xff] }
 0x16a   : > { %5948 = vmatpush1.bf16.msra.mxu1 %v5947_v57  ;;  %v1118_v49 = vpop.permute.xlu1 %1117  ;;  %v5045_v57 = vld [vmem:[%s9512_s1 + $0x838] sm:$0xff]  ;;  %vm9738_vm7 = vmmov %vm9737_vm8  ;;  %v8629_v19 = vld [vmem:[#allocation2 + $0x100] sm:$0xff] }
 0x16b   : > { %2892 = vmatmul.mubr.f32.gmra.mrb[82].mxu0 %v2717_v16  ;;  %5981 = vmatprep.subr.bf16.mxu1 %v6388_v33  ;;  %1122 = vst.msk [vmem:[#allocation2 + $0x210] sm:$0x7f] %vm592_vm10, %v1118_v49  ;;  %vm9732_vm10 = vmmov %vm9694_vm1  ;;  %v5991_v35 = vpack.c.bf16 %v5045_v57, %v5044_v54  ;;  %v5047_v49 = vld [vmem:[%s9512_s1 + $0x848] sm:$0xff]  ;;  %v5049_v44 = vld [vmem:[%s9512_s1 + $0x858] sm:$0xff] }
 0x16c   : > { %2896 = vmatprep.mubr.f32.mxu0 %v2727_v9  ;;  %v2665_v5 = vsel %vm9732_vm10, %v2655_v12, %v2664_v27  ;;  %v6021_v12 = vpack.c.bf16 %v5092_v52, %v5091_v6  ;;  %v5094_v9 = vld [vmem:[%s9512_s1 + $0x968] sm:$0xff]  ;;  %vm9739_vm4 = vmmov %vm9694_vm1  ;;  %v8597_v27 = vld [vmem:[#allocation2 + $0xe0] sm:$0xff] }
 0x16d   : > { %2970 = vmatmul.mubr.f32.vlgmr.msra.gmra.mrb[0].mxu1 %v2656_v13  ;;  %v5254_v24 = vpop.f32.mrb[0].mxu0  ;;  %v2691_v60 = vsel %vm9739_vm4, %v2682_v41, %v2690_v61  ;;  %v2698_v13 = vrot.slane %v8264_v34, 3  ;;  %vm9740_vm9 = vmmov %vm9694_vm1  ;;  %v5078_v34 = vld [vmem:[%s9512_s1 + $0x8e8] sm:$0xff] }
 0x16e   : > { %5983 = vmatpush1.bf16.msra.mxu1 %v5982_v23  ;;  %v5255_v1 = vpop.f32.mrb[1].mxu0  ;;  %4996 = vmatprep.mubr.msk.f32.mxu1 %vm9730_vm0, %v2667_v47  ;;  %v3189_v23 = vrot.slane %v8563_v28, 4  ;;  %v3192_v47 = vsel %vm9738_vm7, %v3181_v46, %v3191_v18  ;;  %v2681_v37 = vsel %vm9740_vm9, %v2672_v21, %v2680_v42  ;;  %vm9741_vm3 = vmmov %vm9730_vm0  ;;  %v3197_v46 = vrot.slane %v8597_v27, 4  ;;  %v5048_v21 = vld [vmem:[%s9512_s1 + $0x850] sm:$0xff]  ;;  %v8633_v6 = vld [vmem:[#allocation2 + $0x128] sm:$0xff] }
 0x16f   : > { %v8520_v7 = vadd.f32 %v5255_v1, %v5254_v24  ;;  %2897 = vmatmul.mubr.f32.gmra.mrb[84].mxu0 %v2725_v62  ;;  %5984 = vmatprep.subr.bf16.mxu1 %v6388_v33  ;;  %v2688_v24 = vrot.slane %v8266_v45, 3  ;;  %v6023_v1 = vpack.c.bf16 %v5076_v26, %v5075_v39  ;;  %v8601_v62 = vld [vmem:[#allocation2 + $0x108] sm:$0xff]  ;;  %vm9742_vm15 = vmmov %vm9738_vm7  ;;  %v5994_v45 = vpack.c.bf16 %v5047_v49, %v5046_v22  ;;  %v8663_v26 = vld [vmem:[#allocation2 + $0x120] sm:$0xff] }
 0x170   : > { %2900 = vmatprep.mubr.f32.mxu0 %v2726_v10  ;;  %v3177_v10 = vrot.slane %v3032_v55, 4  ;;  %vm9743_vm14 = vmmov %vm9738_vm7  ;;  %v2706_v55 = vrot.slane %v8296_v31, 3  ;;  %v6027_v52 = vpack.c.bf16 %v5078_v34, %v5077_v3  ;;  %v5079_v31 = vld [vmem:[%s9512_s1 + $0x8f0] sm:$0xff]  ;;  %v5997_v57 = vpack.c.bf16 %v5049_v44, %v5048_v21  ;;  %v5053_v3 = vld [vmem:[%s9512_s1 + $0x878] sm:$0xff] }
 0x171   : > { %2975 = vmatmul.mubr.f32.gmra.mrb[2].mxu1 %v2665_v5  ;;  %v3200_v41 = vsel %vm9743_vm14, %v3191_v18, %v3199_v50  ;;  %vm9744_vm12 = vmmov %vm9694_vm1  ;;  %v3207_v5 = vrot.slane %v8601_v62, 4  ;;  %v5080_v18 = vld [vmem:[%s9512_s1 + $0x8f8] sm:$0xff]  ;;  %v2714_v39 = vrot.slane %v8328_v0, 3  ;;  %v5081_v0 = vld [vmem:[%s9512_s1 + $0x900] sm:$0xff]  ;;  %v3213_v22 = vrot.slane %v8663_v26, 4 }
 0x172   : > { %5986 = vmatpush1.bf16.msra.mxu1 %v5985_v2  ;;  %4997 = vmatprep.mubr.msk.f32.mxu1 %vm9733_vm13, %v2675_v43  ;;  %v3179_v29 = vsel %vm9737_vm8, %v3177_v10, %v3178_v32  ;;  %v3190_v43 = vsel %vm9742_vm15, %v3178_v32, %v3189_v23  ;;  %v2699_v8 = vsel %vm9744_vm12, %v2690_v61, %v2698_v13  ;;  %vm9745_vm0 = vmmov %vm9694_vm1  ;;  %v2696_v32 = vrot.slane %v8298_v38, 3  ;;  %v5099_v49 = vld [vmem:[%s9512_s1 + $0x990] sm:$0xff] }
 0x173   : > { %2901 = vmatmul.mubr.f32.gmra.mrb[86].mxu0 %v2724_v58  ;;  %5987 = vmatprep.subr.bf16.mxu1 %v6388_v33  ;;  %v5093_v58 = vld [vmem:[%s9512_s1 + $0x960] sm:$0xff]  ;;  %vm9746_vm6 = vmmov %vm9741_vm3  ;;  %v3205_v61 = vrot.slane %v8629_v19, 4  ;;  %v8705_v21 = vld [vmem:[#allocation2 + $0x190] sm:$0xff] }
 0x174   : > { %v5257_v25 = vpop.f32.mrb[2].mxu0  ;;  %3380 = vmatprep.mubr.f32.mxu0 %v3182_v17  ;;  %v6025_v2 = vpack.c.bf16 %v5094_v9, %v5093_v58  ;;  %vm9747_vm10 = vmmov %vm9738_vm7  ;;  %v6031_v58 = vpack.c.bf16 %v5080_v18, %v5079_v31  ;;  %v8669_v9 = vld [vmem:[#allocation2 + $0x198] sm:$0xff] }
 0x175   : > { %2980 = vmatmul.mubr.f32.gmra.mrb[4].mxu1 %v2673_v51  ;;  %v5258_v63 = vpop.f32.mrb[3].mxu0  ;;  %v3198_v38 = vsel %vm9747_vm10, %v3189_v23, %v3197_v46  ;;  %v5098_v51 = vld [vmem:[%s9512_s1 + $0x988] sm:$0xff]  ;;  %vm9748_vm13 = vmmov %vm9738_vm7  ;;  %v2722_v34 = vrot.slane %v8669_v9, 3 }
 0x176   : > { %v8575_v16 = vadd.f32 %v5258_v63, %v5257_v25  ;;  %5989 = vmatpush1.bf16.msra.mxu1 %v5988_v11  ;;  %4998 = vmatprep.mubr.msk.f32.mxu1 %vm9736_vm5, %v2683_v59  ;;  %v2689_v11 = vsel %vm9745_vm0, %v2680_v42, %v2688_v24  ;;  %v6029_v59 = vpack.c.bf16 %v5096_v20, %v5095_v14  ;;  %v5097_v25 = vld [vmem:[%s9512_s1 + $0x980] sm:$0xff]  ;;  %vm9749_vm11 = vmmov %vm9745_vm0  ;;  %v8667_v23 = vld [vmem:[#allocation2 + $0x148] sm:$0xff]  ;;  %v2712_v14 = vrot.slane %v8362_v53, 3 }
 0x177   : > { %3381 = vmatmul.mubr.f32.vlgmr.msra.gmra.mrb[88].mxu0 %v3179_v29  ;;  %5990 = vmatprep.subr.bf16.mxu1 %v6388_v33  ;;  %v3208_v10 = vsel %vm9748_vm13, %v3199_v50, %v3207_v5  ;;  %v2707_v42 = vsel %vm9749_vm11, %v2698_v13, %v2706_v55  ;;  %v5050_v63 = vld [vmem:[%s9512_s1 + $0x860] sm:$0xff]  ;;  %vm9750_vm1 = vmmov %vm9745_vm0  ;;  %v5100_v13 = vld [vmem:[%s9512_s1 + $0x998] sm:$0xff] }
 0x178   : > { %3385 = vmatprep.mubr.f32.mxu0 %v3192_v47  ;;  %6020 = vmatpush3.bf16.msra.mxu0 %v6019_v4  ;;  %v3215_v4 = vrot.slane %v8633_v6, 4  ;;  %v2697_v29 = vsel %vm9750_vm1, %v2688_v24, %v2696_v32  ;;  %v6033_v47 = vpack.c.bf16 %v5098_v51, %v5097_v25  ;;  %vm9751_vm2 = vmmov %vm9741_vm3  ;;  %v8701_v20 = vld [vmem:[#allocation2 + $0x168] sm:$0xff]  ;;  %v6037_v44 = vpack.c.bf16 %v5100_v13, %v5099_v49  ;;  %v5084_v53 = vld [vmem:[%s9512_s1 + $0x918] sm:$0xff] }
 0x179   : > { %2985 = vmatmul.mubr.f32.gmra.mrb[6].mxu1 %v2681_v37  ;;  %6022 = vmatprep.subr.bf16.mxu0 %v6021_v12  ;;  %v5051_v12 = vld [vmem:[%s9512_s1 + $0x868] sm:$0xff]  ;;  %vm9752_vm5 = vmmov %vm9738_vm7  ;;  %v8735_v51 = vld [vmem:[#allocation2 + $0x160] sm:$0xff] }
 0x17a   : > { %5992 = vmatpush1.bf16.msra.mxu1 %v5991_v35  ;;  %4999 = vmatprep.mubr.msk.f32.mxu1 %vm9741_vm3, %v2691_v60  ;;  %v2704_v35 = vrot.slane %v8330_v40, 3  ;;  %v5082_v60 = vld [vmem:[%s9512_s1 + $0x908] sm:$0xff]  ;;  %v3206_v40 = vsel %vm9752_vm5, %v3197_v46, %v3205_v61  ;;  %v6000_v50 = vpack.c.bf16 %v5051_v12, %v5050_v63  ;;  %vm9753_vm8 = vmmov %vm9752_vm5  ;;  %v8739_v63 = vld [vmem:[#allocation2 + $0x1b0] sm:$0xf] }
 0x17b   : > { %3386 = vmatmul.mubr.f32.gmra.mrb[90].mxu0 %v3190_v43  ;;  %5993 = vmatprep.subr.bf16.mxu1 %v6388_v33  ;;  %v3216_v37 = vsel %vm9753_vm8, %v3207_v5, %v3215_v4  ;;  %vm9754_vm7 = vmmov %vm9745_vm0  ;;  %v8697_v43 = vld [vmem:[#allocation2 + $0x140] sm:$0xff]  ;;  %v5056_v49 = vld [vmem:[%s9512_s1 + $0x890] sm:$0xff] }
 0x17c   : > { %v5260_v15 = vpop.f32.mrb[4].mxu0  ;;  %3390 = vmatprep.mubr.f32.mxu0 %v3200_v41  ;;  %6024 = vmatpush3.bf16.msra.mxu0 %v6023_v1  ;;  %v2715_v24 = vsel %vm9754_vm7, %v2706_v55, %v2714_v39  ;;  %v3223_v1 = vrot.slane %v8667_v23, 4  ;;  %vm9755_vm4 = vmmov %vm9745_vm0  ;;  %v8703_v41 = vld [vmem:[#allocation2 + $0x1b8] sm:$0xf]  ;;  %v5083_v55 = vld [vmem:[%s9512_s1 + $0x910] sm:$0xff] }
 0x17d   : > { %2990 = vmatmul.mubr.f32.gmra.mrb[8].mxu1 %v2689_v11  ;;  %v5261_v17 = vpop.f32.mrb[5].mxu0  ;;  %6026 = vmatprep.subr.bf16.mxu0 %v6025_v2  ;;  %v5052_v2 = vld [vmem:[%s9512_s1 + $0x870] sm:$0xff]  ;;  %v2705_v46 = vsel %vm9755_vm4, %v2696_v32, %v2704_v35  ;;  %vm9756_vm9 = vmmov %vm9751_vm2  ;;  %v2730_v25 = vrot.slane %v8703_v41, 3  ;;  %v5057_v13 = vld [vmem:[%s9512_s1 + $0x898] sm:$0xff] }
 0x17e   : > { %v8641_v54 = vadd.f32 %v5261_v17, %v5260_v15  ;;  %5995 = vmatpush1.bf16.msra.mxu1 %v5994_v45  ;;  %5000 = vmatprep.mubr.msk.f32.mxu1 %vm9746_vm6, %v2699_v8  ;;  %v6035_v8 = vpack.c.bf16 %v5082_v60, %v5081_v0  ;;  %vm9757_vm3 = vmmov %vm9752_vm5  ;;  %v6003_v32 = vpack.c.bf16 %v5053_v3, %v5052_v2  ;;  %v5101_v17 = vld [vmem:[%s9512_s1 + $0x9a0] sm:$0xff]  ;;  %v5103_v0 = vld [vmem:[%s9512_s1 + $0x9b0] sm:$0xff] }
 0x17f   : > { %3391 = vmatmul.mubr.f32.gmra.mrb[92].mxu0 %v3198_v38  ;;  %5996 = vmatprep.subr.bf16.mxu1 %v6388_v33  ;;  %v3214_v11 = vsel %vm9757_vm3, %v3205_v61, %v3213_v22  ;;  %vm9758_vm15 = vmmov %vm9757_vm3  ;;  %v3231_v38 = vrot.slane %v8701_v20, 4  ;;  %v5055_v61 = vld [vmem:[%s9512_s1 + $0x888] sm:$0xff]  ;;  %v5104_v60 = vld [vmem:[%s9512_s1 + $0x9b8] sm:$0xff] }
 0x180   : > { %3395 = vmatprep.mubr.f32.mxu0 %v3208_v10  ;;  %6028 = vmatpush3.bf16.msra.mxu0 %v6027_v52  ;;  %v3221_v52 = vrot.slane %v8697_v43, 4  ;;  %v3224_v31 = vsel %vm9758_vm15, %v3215_v4, %v3223_v1  ;;  %vm9759_vm14 = vmmov %vm9745_vm0  ;;  %v6039_v4 = vpack.c.bf16 %v5084_v53, %v5083_v55  ;;  %v8770_v2 = vld [vmem:[#allocation2 + $0x1a8] sm:$0xff]  ;;  %v6009_v55 = vpack.c.bf16 %v5057_v13, %v5056_v49  ;;  %v5061_v41 = vld [vmem:[%s9512_s1 + $0x8b8] sm:$0xff] }
 0x181   : > { %2995 = vmatmul.mubr.f32.gmra.mrb[10].mxu1 %v2697_v29  ;;  %6030 = vmatprep.subr.bf16.mxu0 %v6029_v59  ;;  %v5102_v59 = vld [vmem:[%s9512_s1 + $0x9a8] sm:$0xff]  ;;  %v2723_v18 = vsel %vm9759_vm14, %v2714_v39, %v2722_v34  ;;  %vm9760_vm12 = vmmov %vm9745_vm0  ;;  %v5085_v39 = vld [vmem:[%s9512_s1 + $0x920] sm:$0xff]  ;;  %v3237_v53 = vrot.slane %v8477_v36, 4 }
 0x182   : > { %5998 = vmatpush1.bf16.msra.mxu1 %v5997_v57  ;;  %5001 = vmatprep.mubr.msk.f32.mxu1 %vm9751_vm2, %v2707_v42  ;;  %v5054_v57 = vld [vmem:[%s9512_s1 + $0x880] sm:$0xff]  ;;  %v2713_v10 = vsel %vm9760_vm12, %v2704_v35, %v2712_v14  ;;  %v2720_v42 = vrot.slane %v8705_v21, 3  ;;  %v6041_v12 = vpack.c.bf16 %v5102_v59, %v5101_v17  ;;  %v5086_v29 = vld [vmem:[%s9512_s1 + $0x928] sm:$0xff]  ;;  %vm9761_vm0 = vmmov %vm9751_vm2  ;;  %v3247_v59 = vrot.slane %v8770_v2, 4 }
 0x183   : > { %3396 = vmatmul.mubr.f32.gmra.mrb[94].mxu0 %v3206_v40  ;;  %5999 = vmatprep.subr.bf16.mxu1 %v6388_v33  ;;  %vm9762_vm6 = vmmov %vm9757_vm3  ;;  %v6043_v3 = vpack.c.bf16 %v5086_v29, %v5085_v39  ;;  %v5059_v36 = vld [vmem:[%s9512_s1 + $0x8a8] sm:$0xff]  ;;  %v3034_v49 = vld [vmem:[#allocation2 + $0x90] sm:$0xf0] }
 0x184   : > { %v5263_v45 = vpop.f32.mrb[6].mxu0  ;;  %3400 = vmatprep.mubr.f32.mxu0 %v3216_v37  ;;  %6032 = vmatpush3.bf16.msra.mxu0 %v6031_v58  ;;  %v3222_v35 = vsel %vm9762_vm6, %v3213_v22, %v3221_v52  ;;  %v6006_v58 = vpack.c.bf16 %v5055_v61, %v5054_v57  ;;  %vm9763_vm10 = vmmov %vm9757_vm3  ;;  %v3239_v22 = vrot.slane %v8449_v56, 4  ;;  %v8772_v56 = vld [vmem:[#allocation2 + $0xb8] sm:$0xff]  ;;  %v5105_v13 = vld [vmem:[%s9512_s1 + $0x9c0] sm:$0xff] }
 0x185   : > { %3000 = vmatmul.mubr.f32.gmra.mrb[12].mxu1 %v2705_v46  ;;  %v5264_v5 = vpop.f32.mrb[7].mxu0  ;;  %6034 = vmatprep.subr.bf16.mxu0 %v6033_v47  ;;  %v3229_v47 = vrot.slane %v8735_v51, 4  ;;  %v3232_v40 = vsel %vm9763_vm10, %v3223_v1, %v3231_v38  ;;  %vm9764_vm13 = vmmov %vm9750_vm1  ;;  %v2728_v1 = vrot.slane %v8739_v63, 3  ;;  %v6045_v46 = vpack.c.bf16 %v5104_v60, %v5103_v0  ;;  %v3038_v0 = vld [vmem:[#allocation2 + $0xb0] sm:$0xff] }
 0x186   : > { %v8713_v15 = vadd.f32 %v5264_v5, %v5263_v45  ;;  %6001 = vmatpush1.bf16.msra.mxu1 %v6000_v50  ;;  %5002 = vmatprep.mubr.msk.f32.mxu1 %vm9756_vm9, %v2715_v24  ;;  %v2731_v50 = vsel %vm9764_vm13, %v2722_v34, %v2730_v25  ;;  %vm9765_vm11 = vmmov %vm9750_vm1  ;;  %v3035_v34 = vld [vmem:[#allocation2 + $0x98] sm:$0xf0]  ;;  %v3187_v57 = vrot.slane %v8772_v56, 4 }
 0x187   : > { %3401 = vmatmul.mubr.f32.gmra.mrb[96].mxu0 %v3214_v11  ;;  %6002 = vmatprep.subr.bf16.mxu1 %v6388_v33  ;;  %v2721_v24 = vsel %vm9765_vm11, %v2712_v14, %v2720_v42  ;;  %v5088_v14 = vld [vmem:[%s9512_s1 + $0x938] sm:$0xff]  ;;  %vm9766_vm1 = vmmov %vm9761_vm0  ;;  %v5156_v11 = vld [vmem:[%s9512_s1 + $0xb00] sm:$0xff]  ;;  %vm9781_vm11 = vcmask 1042432  }
 0x188   : > { %3405 = vmatprep.mubr.f32.mxu0 %v3224_v31  ;;  %6036 = vmatpush3.bf16.msra.mxu0 %v6035_v8  ;;  %v5087_v8 = vld [vmem:[%s9512_s1 + $0x930] sm:$0xff]  ;;  %vm9767_vm2 = vmmov %vm9757_vm3  ;;  %v8800_v31 = vld [vmem:[#allocation2 + $0x1a0] sm:$0xff] }
 0x189   : > { %3005 = vmatmul.mubr.f32.gmra.mrb[14].mxu1 %v2713_v10  ;;  %6038 = vmatprep.subr.bf16.mxu0 %v6037_v44  ;;  %v3230_v44 = vsel %vm9767_vm2, %v3221_v52, %v3229_v47  ;;  %vm9768_vm5 = vmmov %vm9767_vm2  ;;  %v5058_v52 = vld [vmem:[%s9512_s1 + $0x8a0] sm:$0xff]  ;;  %v6047_v10 = vpack.c.bf16 %v5088_v14, %v5087_v8  ;;  %v3245_v39 = vrot.slane %v8800_v31, 4  ;;  %v3562_v8 = vld [vmem:[#allocation2 + $0xa8] sm:$0xe0] }
 0x18a   : > { %6004 = vmatpush1.bf16.msra.mxu1 %v6003_v32  ;;  %5003 = vmatprep.mubr.msk.f32.mxu1 %vm9761_vm0, %v2723_v18  ;;  %v5157_v32 = vld [vmem:[%s9512_s1 + $0xb08] sm:$0xff]  ;;  %v3240_v17 = vsel %vm9768_vm5, %v3231_v38, %v3239_v22  ;;  %v3186_v18 = vrot.slane %v3035_v34, 4  ;;  %vm9769_vm8 = vmmov %vm9755_vm4  ;;  %v8833_v34 = vld [vmem:[#allocation2 + $0xd0] sm:$0xff] }
 0x18b   : > { %3406 = vmatmul.mubr.f32.gmra.mrb[98].mxu0 %v3222_v35  ;;  %6005 = vmatprep.subr.bf16.mxu1 %v6388_v33  ;;  %v2729_v61 = vsel %vm9769_vm8, %v2720_v42, %v2728_v1  ;;  %v3073_v38 = vld [vmem:[#allocation2 + $0x1c8] sm:$0x1f]  ;;  %vm9770_vm7 = vmmov %vm9761_vm0  ;;  %v5060_v35 = vld [vmem:[%s9512_s1 + $0x8b0] sm:$0xff] }
 0x18c   : > { %v5266_v37 = vpop.f32.mrb[8].mxu0  ;;  %3410 = vmatprep.mubr.f32.mxu0 %v3232_v40  ;;  %6040 = vmatpush3.bf16.msra.mxu0 %v6039_v4  ;;  %v6085_v4 = vpack.c.bf16 %v5157_v32, %v5156_v11  ;;  %vm9771_vm4 = vmmov %vm9767_vm2  ;;  %v3255_v29 = vrot.slane %v3073_v38, 4  ;;  %v6015_v40 = vpack.c.bf16 %v5061_v41, %v5060_v35  ;;  %v5141_v38 = vld [vmem:[%s9512_s1 + $0xa88] sm:$0xff]  ;;  %v3720_v35 = vrot.slane %v8567_v30, 5 }
 0x18d   : > { %3010 = vmatmul.mubr.f32.gmra.mrb[16].mxu1 %v2721_v24  ;;  %v5267_v45 = vpop.f32.mrb[9].mxu0  ;;  %6042 = vmatprep.subr.bf16.mxu0 %v6041_v12  ;;  %v3238_v63 = vsel %vm9771_vm4, %v3229_v47, %v3237_v53  ;;  %v6012_v12 = vpack.c.bf16 %v5059_v36, %v5058_v52  ;;  %vm9772_vm9 = vmmov %vm9767_vm2  ;;  %v8818_v47 = vld [vmem:[#allocation2 + $0xd8] sm:$0xff]  ;;  %v3561_v52 = vld [vmem:[#allocation2 + $0xa0] sm:$0xe0] }
 0x18e   : > { %v8780_v5 = vadd.f32 %v5267_v45, %v5266_v37  ;;  %6007 = vmatpush1.bf16.msra.mxu1 %v6006_v58  ;;  %5004 = vmatprep.mubr.msk.f32.mxu1 %vm9766_vm1, %v2731_v50  ;;  %v3248_v42 = vsel %vm9772_vm9, %v3239_v22, %v3247_v59  ;;  %vm9773_vm3 = vmmov %vm9767_vm2  ;;  %v5106_v37 = vld [vmem:[%s9512_s1 + $0x9c8] sm:$0xff]  ;;  %v3195_v24 = vrot.slane %v8818_v47, 4  ;;  %v3183_v45 = vrot.slane %v3034_v49, 4  ;;  %v8848_v36 = vld [vmem:[#allocation2 + $0x118] sm:$0xff] }
 0x18f   : > { %3411 = vmatmul.mubr.f32.gmra.mrb[100].mxu0 %v3230_v44  ;;  %6008 = vmatprep.subr.bf16.mxu1 %v6388_v33  ;;  %v3188_v58 = vsel %vm9773_vm3, %v3186_v18, %v3187_v57  ;;  %vm9774_vm15 = vmmov %vm9767_vm2  ;;  %v3710_v44 = vrot.slane %v8536_v48, 5  ;;  %v3709_v18 = vrot.slane %v3562_v8, 5  ;;  %v5110_v41 = vld [vmem:[%s9512_s1 + $0x9e8] sm:$0xff]  ;;  %v8883_v49 = vld [vmem:[#allocation2 + $0x110] sm:$0xff] }
 0x190   : > { %3415 = vmatprep.mubr.f32.mxu0 %v3240_v17  ;;  %6044 = vmatpush3.bf16.msra.mxu0 %v6043_v3  ;;  %v3246_v60 = vsel %vm9774_vm15, %v3237_v53, %v3245_v39  ;;  %vm9775_vm14 = vmmov %vm9761_vm0  ;;  %v8831_v3 = vld [vmem:[#allocation2 + $0xf8] sm:$0xff]  ;;  %v5160_v8 = vld [vmem:[%s9512_s1 + $0xb20] sm:$0xff] }
 0x191   : > { %3015 = vmatmul.mubr.f32.gmra.mrb[30].mxu1 %v2729_v61  ;;  %6046 = vmatprep.subr.bf16.mxu0 %v6045_v46  ;;  %vm9776_vm12 = vmmov %vm9767_vm2  ;;  %v6050_v46 = vpack.c.bf16 %v5106_v37, %v5105_v13  ;;  %v5108_v53 = vld [vmem:[%s9512_s1 + $0x9d8] sm:$0xff]  ;;  %v3203_v11 = vrot.slane %v8831_v3, 4  ;;  %v5140_v61 = vld [vmem:[%s9512_s1 + $0xa80] sm:$0xff] }
 0x192   : > { %6010 = vmatpush1.bf16.msra.mxu1 %v6009_v55  ;;  %5005 = vmatprep.mubr.msk.f32.mxu1 %vm9770_vm7, %v2730_v25  ;;  %v3072_v25 = vld [vmem:[#allocation2 + $0x1c0] sm:$0x1f]  ;;  %v3256_v22 = vsel %vm9776_vm12, %v3247_v59, %v3255_v29  ;;  %vm9777_vm0 = vmmov %vm9767_vm2  ;;  %v5107_v55 = vld [vmem:[%s9512_s1 + $0x9d0] sm:$0xff]  ;;  %v3193_v59 = vrot.slane %v8833_v34, 4 }
 0x193   : > { %3416 = vmatmul.mubr.f32.gmra.mrb[102].mxu0 %v3238_v63  ;;  %6011 = vmatprep.subr.bf16.mxu1 %v6388_v33  ;;  %v3253_v50 = vrot.slane %v3072_v25, 4  ;;  %vm9778_vm6 = vmmov %vm9777_vm0  ;;  %v3707_v63 = vrot.slane %v8563_v28, 5  ;;  %v5109_v28 = vld [vmem:[%s9512_s1 + $0x9e0] sm:$0xff]  ;;  %v3211_v25 = vrot.slane %v8848_v36, 4  ;;  %v5142_v37 = vld [vmem:[%s9512_s1 + $0xa90] sm:$0xff] }
 0x194   : > { %3420 = vmatprep.mubr.f32.mxu0 %v3248_v42  ;;  %6048 = vmatpush3.bf16.msra.mxu0 %v6047_v10  ;;  %v3196_v14 = vsel %vm9778_vm6, %v3187_v57, %v3195_v24  ;;  %vm9779_vm10 = vmmov %vm9777_vm0  ;;  %v8850_v57 = vld [vmem:[#allocation2 + $0xf0] sm:$0xff]  ;;  %v3711_v42 = vsel %vm9781_vm11, %v3709_v18, %v3710_v44 }
 0x195   : > { %3019 = vmatmul.mubr.f32.gmra.mrb[32].mxu1 %v2728_v1  ;;  %6086 = vmatprep.subr.bf16.mxu0 %v6085_v4  ;;  %v3184_v1 = vrot.slane %v3038_v0, 4  ;;  %v3254_v56 = vsel %vm9777_vm0, %v3245_v39, %v3253_v50  ;;  %vm9780_vm13 = vmmov %vm9766_vm1  ;;  %v6053_v4 = vpack.c.bf16 %v5108_v53, %v5107_v55  ;;  %v5159_v39 = vld [vmem:[%s9512_s1 + $0xb18] sm:$0xff] }
 0x196   : > { %6013 = vmatpush1.bf16.msra.mxu1 %v6012_v12  ;;  %5062 = vmatprep.mubr.msk.f32.mxu1 %vm9775_vm14, %v3188_v58  ;;  %v5158_v12 = vld [vmem:[%s9512_s1 + $0xb10] sm:$0xff]  ;;  %vm9782_vm1 = vmmov %vm9777_vm0 }
 0x197   : > { %3421 = vmatmul.mubr.f32.gmra.mrb[104].mxu0 %v3246_v60  ;;  %6014 = vmatprep.subr.bf16.mxu1 %v6388_v33  ;;  %v3185_v17 = vsel %vm9779_vm10, %v3183_v45, %v3184_v1  ;;  %vm9783_vm2 = vmmov %vm9777_vm0  ;;  %v3706_v60 = vrot.slane %v3561_v52, 5  ;;  %v6089_v13 = vpack.c.bf16 %v5159_v39, %v5158_v12  ;;  %v6056_v45 = vpack.c.bf16 %v5110_v41, %v5109_v28 }
 0x198   : > { %3425 = vmatprep.mubr.f32.mxu0 %v3256_v22  ;;  %v3194_v0 = vsel %vm9783_vm2, %v3184_v1, %v3193_v59  ;;  %v8881_v22 = vld [vmem:[#allocation2 + $0x138] sm:$0xff]  ;;  %vm9784_vm5 = vmmov %vm9770_vm7  ;;  %v3726_v39 = vrot.slane %v8629_v19, 5  ;;  %v5113_v19 = vld [vmem:[%s9512_s1 + $0xa00] sm:$0xff] }
 0x199   : > { %vm9785_vm8 = vmmov %vm9781_vm11  ;;  %v3219_v52 = vrot.slane %v8881_v22, 4 }
 0x19a   : > { %6016 = vmatpush1.bf16.msra.mxu1 %v6015_v40  ;;  %v3201_v40 = vrot.slane %v8850_v57, 4  ;;  %vm9786_vm7 = vmmov %vm9785_vm8 }
 0x19b   : > { %3426 = vmatmul.mubr.f32.gmra.mrb[106].mxu0 %v3254_v56  ;;  %6049 = vmatprep.subr.bf16.mxu1 %v6388_v33  ;;  %v3708_v56 = vsel %vm9785_vm8, %v3706_v60, %v3707_v63  ;;  %v3721_v55 = vsel %vm9786_vm7, %v3710_v44, %v3720_v35  ;;  %vm9787_vm4 = vmmov %vm9777_vm0  ;;  %v3209_v44 = vrot.slane %v8883_v49, 4 }
 0x19c   : > { %v5269_v32 = vpop.f32.mrb[10].mxu0  ;;  %3429 = vmatprep.mubr.f32.mxu0 %v3255_v29  ;;  %v3204_v29 = vsel %vm9782_vm1, %v3195_v24, %v3203_v11  ;;  %v5143_v24 = vld [vmem:[%s9512_s1 + $0xa98] sm:$0xff]  ;;  %v3212_v53 = vsel %vm9787_vm4, %v3203_v11, %v3211_v25  ;;  %vm9788_vm9 = vmmov %vm9777_vm0 }
 0x19d   : > { %3499 = vmatmul.mubr.f32.vlgmr.msra.gmra.mrb[0].mxu1 %v3185_v17  ;;  %v5270_v48 = vpop.f32.mrb[11].mxu0  ;;  %v5112_v17 = vld [vmem:[%s9512_s1 + $0x9f8] sm:$0xff]  ;;  %v6091_v18 = vpack.c.bf16 %v5143_v24, %v5142_v37  ;;  %vm9789_vm3 = vmmov %vm9784_vm5  ;;  %v5146_v24 = vld [vmem:[%s9512_s1 + $0xab0] sm:$0xff] }
 0x19e   : > { %v8858_v10 = vadd.f32 %v5270_v48, %v5269_v32  ;;  %6051 = vmatpush1.bf16.msra.mxu1 %v6050_v46  ;;  %5063 = vmatprep.mubr.msk.f32.mxu1 %vm9780_vm13, %v3196_v14  ;;  %v3718_v46 = vrot.slane %v8597_v27, 5  ;;  %v5161_v14 = vld [vmem:[%s9512_s1 + $0xb28] sm:$0xff]  ;;  %v3728_v32 = vrot.slane %v8601_v62, 5  ;;  %v5111_v27 = vld [vmem:[%s9512_s1 + $0x9f0] sm:$0xff]  ;;  %v3202_v48 = vsel %vm9788_vm9, %v3193_v59, %v3201_v40  ;;  %v8915_v11 = vld [vmem:[#allocation2 + $0x158] sm:$0xff] }
 0x19f   : > { %3430 = vmatmul.mubr.f32.gmra.mrb[108].mxu0 %v3253_v50  ;;  %6052 = vmatprep.subr.bf16.mxu1 %v6388_v33  ;;  %v6087_v50 = vpack.c.bf16 %v5141_v38, %v5140_v61  ;;  %v8917_v62 = vld [vmem:[#allocation2 + $0x130] sm:$0xff]  ;;  %v6093_v61 = vpack.c.bf16 %v5161_v14, %v5160_v8  ;;  %v5144_v38 = vld [vmem:[%s9512_s1 + $0xaa0] sm:$0xff]  ;;  %v5145_v59 = vld [vmem:[%s9512_s1 + $0xaa8] sm:$0xff]  ;;  %v6059_v12 = vpack.c.bf16 %v5112_v17, %v5111_v27  ;;  %v3734_v14 = vrot.slane %v8663_v26, 5 }
 0x1a0   : > { %v5272_v58 = vpop.f32.mrb[12].mxu0  ;;  %3909 = vmatprep.mubr.f32.mxu0 %v3711_v42  ;;  %vm9790_vm15 = vmmov %vm9786_vm7  ;;  %v5162_v42 = vld [vmem:[%s9512_s1 + $0xb30] sm:$0xff] }
 0x1a1   : > { %3504 = vmatmul.mubr.f32.gmra.mrb[2].mxu1 %v3194_v0  ;;  %v5273_v30 = vpop.f32.mrb[13].mxu0  ;;  %vm9791_vm14 = vmmov %vm9786_vm7  ;;  %v3227_v0 = vrot.slane %v8915_v11, 4  ;;  %v5115_v26 = vld [vmem:[%s9512_s1 + $0xa10] sm:$0xff] }
 0x1a2   : > { %v8891_v1 = vadd.f32 %v5273_v30, %v5272_v58  ;;  %6054 = vmatpush1.bf16.msra.mxu1 %v6053_v4  ;;  %5064 = vmatprep.mubr.msk.f32.mxu1 %vm9784_vm5, %v3204_v29  ;;  %v3719_v4 = vsel %vm9790_vm15, %v3707_v63, %v3718_v46  ;;  %v5163_v29 = vld [vmem:[%s9512_s1 + $0xb38] sm:$0xff]  ;;  %v3729_v28 = vsel %vm9791_vm14, %v3720_v35, %v3728_v32  ;;  %vm9792_vm12 = vmmov %vm9777_vm0  ;;  %v3736_v63 = vrot.slane %v8633_v6, 5  ;;  %v5114_v58 = vld [vmem:[%s9512_s1 + $0xa08] sm:$0xff] }
 0x1a3   : > { %3910 = vmatmul.mubr.f32.vlgmr.msra.gmra.mrb[110].mxu0 %v3708_v56  ;;  %6055 = vmatprep.subr.bf16.mxu1 %v6388_v33  ;;  %v3220_v41 = vsel %vm9792_vm12, %v3211_v25, %v3219_v52  ;;  %v3217_v35 = vrot.slane %v8917_v62, 4  ;;  %v6095_v25 = vpack.c.bf16 %v5145_v59, %v5144_v38  ;;  %v8947_v30 = vld [vmem:[#allocation2 + $0x178] sm:$0xff]  ;;  %v6097_v37 = vpack.c.bf16 %v5163_v29, %v5162_v42  ;;  %vm9793_vm6 = vmmov %vm9789_vm3  ;;  %v5148_v59 = vld [vmem:[%s9512_s1 + $0xac0] sm:$0xff] }
 0x1a4   : > { %3914 = vmatprep.mubr.f32.mxu0 %v3721_v55  ;;  %6088 = vmatpush3.bf16.msra.mxu0 %v6087_v50  ;;  %v3210_v50 = vsel %vm9777_vm0, %v3201_v40, %v3209_v44  ;;  %v5147_v40 = vld [vmem:[%s9512_s1 + $0xab8] sm:$0xff]  ;;  %vm9794_vm10 = vmmov %vm9786_vm7  ;;  %v6062_v8 = vpack.c.bf16 %v5114_v58, %v5113_v19  ;;  %v5164_v55 = vld [vmem:[%s9512_s1 + $0xb40] sm:$0xff]  ;;  %v3742_v42 = vrot.slane %v8697_v43, 5 }
 0x1a5   : > { %3509 = vmatmul.mubr.f32.gmra.mrb[4].mxu1 %v3202_v48  ;;  %6090 = vmatprep.subr.bf16.mxu0 %v6089_v13  ;;  %v8949_v13 = vld [vmem:[#allocation2 + $0x150] sm:$0xff]  ;;  %vm9795_vm13 = vmmov %vm9786_vm7  ;;  %v5116_v48 = vld [vmem:[%s9512_s1 + $0xa18] sm:$0xff]  ;;  %v6099_v38 = vpack.c.bf16 %v5147_v40, %v5146_v24  ;;  %v3750_v40 = vrot.slane %v8735_v51, 5 }
 0x1a6   : > { %6057 = vmatpush1.bf16.msra.mxu1 %v6056_v45  ;;  %5065 = vmatprep.mubr.msk.f32.mxu1 %vm9789_vm3, %v3212_v53  ;;  %v3727_v45 = vsel %vm9794_vm10, %v3718_v46, %v3726_v39  ;;  %v5165_v53 = vld [vmem:[%s9512_s1 + $0xb48] sm:$0xff]  ;;  %v3737_v27 = vsel %vm9795_vm13, %v3728_v32, %v3736_v63  ;;  %vm9796_vm11 = vmmov %vm9777_vm0  ;;  %v3744_v46 = vrot.slane %v8667_v23, 5  ;;  %v3225_v32 = vrot.slane %v8949_v13, 4  ;;  %v5166_v29 = vld [vmem:[%s9512_s1 + $0xb50] sm:$0xff] }
 0x1a7   : > { %3915 = vmatmul.mubr.f32.gmra.mrb[112].mxu0 %v3719_v4  ;;  %6058 = vmatprep.subr.bf16.mxu1 %v6388_v33  ;;  %v3228_v17 = vsel %vm9796_vm11, %v3219_v52, %v3227_v0  ;;  %vm9797_vm1 = vmmov %vm9777_vm0  ;;  %v8981_v52 = vld [vmem:[#allocation2 + $0x170] sm:$0xff]  ;;  %v6101_v23 = vpack.c.bf16 %v5165_v53, %v5164_v55  ;;  %v5149_v4 = vld [vmem:[%s9512_s1 + $0xac8] sm:$0xff] }
 0x1a8   : > { %v5275_v60 = vpop.f32.mrb[14].mxu0  ;;  %3919 = vmatprep.mubr.f32.mxu0 %v3729_v28  ;;  %6092 = vmatpush3.bf16.msra.mxu0 %v6091_v18  ;;  %v3235_v18 = vrot.slane %v8947_v30, 4  ;;  %vm9798_vm2 = vmmov %vm9789_vm3  ;;  %v5167_v28 = vld [vmem:[%s9512_s1 + $0xb58] sm:$0xff]  ;;  %v5117_v43 = vld [vmem:[%s9512_s1 + $0xa20] sm:$0xff] }
 0x1a9   : > { %3514 = vmatmul.mubr.f32.gmra.mrb[6].mxu1 %v3210_v50  ;;  %v5276_v6 = vpop.f32.mrb[15].mxu0  ;;  %6094 = vmatprep.subr.bf16.mxu0 %v6093_v61  ;;  %v3218_v61 = vsel %vm9797_vm1, %v3209_v44, %v3217_v35  ;;  %vm9799_vm5 = vmmov %vm9786_vm7  ;;  %v5118_v58 = vld [vmem:[%s9512_s1 + $0xa28] sm:$0xff]  ;;  %v5119_v51 = vld [vmem:[%s9512_s1 + $0xa30] sm:$0xff] }
 0x1aa   : > { %v8957_v56 = vadd.f32 %v5276_v6, %v5275_v60  ;;  %6060 = vmatpush1.bf16.msra.mxu1 %v6059_v12  ;;  %5066 = vmatprep.mubr.msk.f32.mxu1 %vm9793_vm6, %v3220_v41  ;;  %v3735_v44 = vsel %vm9799_vm5, %v3726_v39, %v3734_v14  ;;  %v6065_v12 = vpack.c.bf16 %v5116_v48, %v5115_v26  ;;  %vm9800_vm8 = vmmov %vm9799_vm5  ;;  %v3752_v39 = vrot.slane %v8701_v20, 5  ;;  %v9041_v26 = vld [vmem:[#allocation2 + $0x180] sm:$0xff] }
 0x1ab   : > { %3920 = vmatmul.mubr.f32.gmra.mrb[114].mxu0 %v3727_v45  ;;  %6061 = vmatprep.subr.bf16.mxu1 %v6388_v33  ;;  %v3745_v41 = vsel %vm9800_vm8, %v3736_v63, %v3744_v46  ;;  %vm9801_vm7 = vmmov %vm9777_vm0  ;;  %v3243_v60 = vrot.slane %v8669_v9, 4  ;;  %v9011_v63 = vld [vmem:[#allocation2 + $0x188] sm:$0xff]  ;;  %v6103_v20 = vpack.c.bf16 %v5149_v4, %v5148_v59  ;;  %v6105_v6 = vpack.c.bf16 %v5167_v28, %v5166_v29  ;;  %v5151_v9 = vld [vmem:[%s9512_s1 + $0xad8] sm:$0xff] }
 0x1ac   : > { %3924 = vmatprep.mubr.f32.mxu0 %v3737_v27  ;;  %6096 = vmatpush3.bf16.msra.mxu0 %v6095_v25  ;;  %v3236_v19 = vsel %vm9801_vm7, %v3227_v0, %v3235_v18  ;;  %vm9802_vm4 = vmmov %vm9777_vm0  ;;  %v3233_v25 = vrot.slane %v8981_v52, 4  ;;  %v9013_v0 = vld [vmem:[#allocation2 + $0x1b8] sm:$0xff]  ;;  %v6068_v24 = vpack.c.bf16 %v5118_v58, %v5117_v43  ;;  %v5168_v45 = vld [vmem:[%s9512_s1 + $0xb60] sm:$0xff]  ;;  %v3758_v28 = vrot.slane %v9041_v26, 5 }
 0x1ad   : > { %3519 = vmatmul.mubr.f32.gmra.mrb[8].mxu1 %v3218_v61  ;;  %6098 = vmatprep.subr.bf16.mxu0 %v6097_v37  ;;  %v3226_v50 = vsel %vm9802_vm4, %v3217_v35, %v3225_v32  ;;  %v5150_v37 = vld [vmem:[%s9512_s1 + $0xad0] sm:$0xff]  ;;  %vm9803_vm9 = vmmov %vm9798_vm2  ;;  %v5120_v27 = vld [vmem:[%s9512_s1 + $0xa38] sm:$0xff] }
 0x1ae   : > { %6063 = vmatpush1.bf16.msra.mxu1 %v6062_v8  ;;  %5067 = vmatprep.mubr.msk.f32.mxu1 %vm9798_vm2, %v3228_v17  ;;  %vm9804_vm3 = vmmov %vm9799_vm5  ;;  %v5169_v8 = vld [vmem:[%s9512_s1 + $0xb68] sm:$0xff]  ;;  %v3251_v17 = vrot.slane %v9013_v0, 4  ;;  %v9047_v59 = vld [vmem:[#allocation2 + $0x1b0] sm:$0xff]  ;;  %v6071_v29 = vpack.c.bf16 %v5120_v27, %v5119_v51 }
 0x1af   : > { %3925 = vmatmul.mubr.f32.gmra.mrb[116].mxu0 %v3735_v44  ;;  %6064 = vmatprep.subr.bf16.mxu1 %v6388_v33  ;;  %v3743_v35 = vsel %vm9804_vm3, %v3734_v14, %v3742_v42  ;;  %vm9805_vm15 = vmmov %vm9804_vm3  ;;  %v3760_v14 = vrot.slane %v9011_v63, 5  ;;  %v6109_v4 = vpack.c.bf16 %v5169_v8, %v5168_v45  ;;  %v5152_v44 = vld [vmem:[%s9512_s1 + $0xae0] sm:$0xff] }
 0x1b0   : > { %3929 = vmatprep.mubr.f32.mxu0 %v3745_v41  ;;  %6100 = vmatpush3.bf16.msra.mxu0 %v6099_v38  ;;  %v3753_v55 = vsel %vm9805_vm15, %v3744_v46, %v3752_v39  ;;  %vm9806_vm14 = vmmov %vm9777_vm0  ;;  %v3241_v46 = vrot.slane %v8705_v21, 4  ;;  %v6107_v38 = vpack.c.bf16 %v5151_v9, %v5150_v37  ;;  %v5170_v41 = vld [vmem:[%s9512_s1 + $0xb70] sm:$0xff]  ;;  %v3249_v9 = vrot.slane %v9047_v59, 4 }
 0x1b1   : > { %3524 = vmatmul.mubr.f32.gmra.mrb[10].mxu1 %v3226_v50  ;;  %6102 = vmatprep.subr.bf16.mxu0 %v6101_v23  ;;  %v3244_v53 = vsel %vm9806_vm14, %v3235_v18, %v3243_v60  ;;  %vm9807_vm12 = vmmov %vm9777_vm0  ;;  %v9045_v18 = vld [vmem:[#allocation2 + $0x1d8] sm:$0x1f]  ;;  %v5121_v50 = vld [vmem:[%s9512_s1 + $0xa40] sm:$0xff] }
 0x1b2   : > { %6066 = vmatpush1.bf16.msra.mxu1 %v6065_v12  ;;  %5068 = vmatprep.mubr.msk.f32.mxu1 %vm9803_vm9, %v3236_v19  ;;  %v3234_v61 = vsel %vm9807_vm12, %v3225_v32, %v3233_v25  ;;  %v5153_v32 = vld [vmem:[%s9512_s1 + $0xae8] sm:$0xff]  ;;  %vm9808_vm0 = vmmov %vm9798_vm2  ;;  %v5171_v19 = vld [vmem:[%s9512_s1 + $0xb78] sm:$0xff] }
 0x1b3   : > { %3930 = vmatmul.mubr.f32.gmra.mrb[118].mxu0 %v3743_v35  ;;  %6067 = vmatprep.subr.bf16.mxu1 %v6388_v33  ;;  %vm9809_vm6 = vmmov %vm9804_vm3  ;;  %v6113_v35 = vpack.c.bf16 %v5171_v19, %v5170_v41  ;;  %v5125_v41 = vld [vmem:[%s9512_s1 + $0xa60] sm:$0xff]  ;;  %v5126_v19 = vld [vmem:[%s9512_s1 + $0xa68] sm:$0xff] }
 0x1b4   : > { %v5278_v48 = vpop.f32.mrb[16].mxu0  ;;  %3934 = vmatprep.mubr.f32.mxu0 %v3753_v55  ;;  %6104 = vmatpush3.bf16.msra.mxu0 %v6103_v20  ;;  %v3751_v21 = vsel %vm9809_vm6, %v3742_v42, %v3750_v40  ;;  %vm9810_vm10 = vmmov %vm9804_vm3  ;;  %v3768_v42 = vrot.slane %v8770_v2, 5  ;;  %v5122_v20 = vld [vmem:[%s9512_s1 + $0xa48] sm:$0xff]  ;;  %v9081_v2 = vld [vmem:[#allocation2 + $0x1d0] sm:$0x1f]  ;;  %v3766_v55 = vrot.slane %v8800_v31, 5 }
 0x1b5   : > { %3529 = vmatmul.mubr.f32.gmra.mrb[12].mxu1 %v3234_v61  ;;  %v5279_v23 = vpop.f32.mrb[17].mxu0  ;;  %6106 = vmatprep.subr.bf16.mxu0 %v6105_v6  ;;  %v3761_v43 = vsel %vm9810_vm10, %v3752_v39, %v3760_v14  ;;  %vm9811_vm13 = vmmov %vm9797_vm1  ;;  %v3259_v6 = vrot.slane %v9045_v18, 4  ;;  %v9079_v39 = vld [vmem:[#allocation2 + $0x1c8] sm:$0xff]  ;;  %v6074_v8 = vpack.c.bf16 %v5122_v20, %v5121_v50  ;;  %v5123_v61 = vld [vmem:[%s9512_s1 + $0xa50] sm:$0xff] }
 0x1b6   : > { %v9055_v12 = vadd.f32 %v5279_v23, %v5278_v48  ;;  %6069 = vmatpush1.bf16.msra.mxu1 %v6068_v24  ;;  %5069 = vmatprep.mubr.msk.f32.mxu1 %vm9808_vm0, %v3244_v53  ;;  %v3252_v58 = vsel %vm9811_vm13, %v3243_v60, %v3251_v17  ;;  %vm9812_vm11 = vmmov %vm9797_vm1  ;;  %v6111_v60 = vpack.c.bf16 %v5153_v32, %v5152_v44  ;;  %v5154_v24 = vld [vmem:[%s9512_s1 + $0xaf0] sm:$0xff]  ;;  %v9092_v53 = vld [vmem:[#allocation2 + $0x1c0] sm:$0xff]  ;;  %v3776_v48 = vrot.slane %v9079_v39, 5 }
 0x1b7   : > { %3935 = vmatmul.mubr.f32.gmra.mrb[120].mxu0 %v3751_v21  ;;  %6070 = vmatprep.subr.bf16.mxu1 %v6388_v33  ;;  %v3242_v37 = vsel %vm9812_vm11, %v3233_v25, %v3241_v46  ;;  %v5155_v25 = vld [vmem:[%s9512_s1 + $0xaf8] sm:$0xff]  ;;  %vm9813_vm1 = vmmov %vm9808_vm0  ;;  %v3602_v31 = vld [vmem:[#allocation2 + $0x1e8] sm:$0x3f]  ;;  %v3774_v21 = vrot.slane %v9092_v53, 5  ;;  %vm9828_vm11 = vcmask 1041408  }
 0x1b8   : > { %3939 = vmatprep.mubr.f32.mxu0 %v3761_v43  ;;  %6108 = vmatpush3.bf16.msra.mxu0 %v6107_v38  ;;  %vm9814_vm2 = vmmov %vm9804_vm3  ;;  %v3564_v23 = vld [vmem:[#allocation2 + $0xb8] sm:$0xe0]  ;;  %v3601_v43 = vld [vmem:[#allocation2 + $0x1e0] sm:$0x3f] }
 0x1b9   : > { %3534 = vmatmul.mubr.f32.gmra.mrb[14].mxu1 %v3242_v37  ;;  %6110 = vmatprep.subr.bf16.mxu0 %v6109_v4  ;;  %v3759_v45 = vsel %vm9814_vm2, %v3750_v40, %v3758_v28  ;;  %vm9815_vm5 = vmmov %vm9814_vm2  ;;  %v5124_v40 = vld [vmem:[%s9512_s1 + $0xa58] sm:$0xff] }
 0x1ba   : > { %6072 = vmatpush1.bf16.msra.mxu1 %v6071_v29  ;;  %5070 = vmatprep.mubr.msk.f32.mxu1 %vm9813_vm1, %v3252_v58  ;;  %v3769_v51 = vsel %vm9815_vm5, %v3760_v14, %v3768_v42  ;;  %vm9816_vm8 = vmmov %vm9802_vm4  ;;  %v3257_v14 = vrot.slane %v9081_v2, 4  ;;  %v6077_v32 = vpack.c.bf16 %v5124_v40, %v5123_v61  ;;  %v3784_v29 = vrot.slane %v3602_v31, 5  ;;  %v3563_v61 = vld [vmem:[#allocation2 + $0xb0] sm:$0xe0]  ;;  %v5172_v31 = vld [vmem:[%s9512_s1 + $0xb80] sm:$0xff] }
 0x1bb   : > { %3940 = vmatmul.mubr.f32.gmra.mrb[122].mxu0 %v3759_v45  ;;  %6073 = vmatprep.subr.bf16.mxu1 %v6388_v33  ;;  %v3260_v27 = vsel %vm9816_vm8, %v3251_v17, %v3259_v6  ;;  %vm9817_vm7 = vmmov %vm9802_vm4  ;;  %v6115_v17 = vpack.c.bf16 %v5155_v25, %v5154_v24  ;;  %v3715_v58 = vrot.slane %v3564_v23, 5  ;;  %v3782_v2 = vrot.slane %v3601_v43, 5  ;;  %v4099_v23 = vld [vmem:[#allocation2 + $0x108] sm:$0xff] }
 0x1bc   : > { %v5281_v18 = vpop.f32.mrb[18].mxu0  ;;  %v3250_v38 = vsel %vm9817_vm7, %v3241_v46, %v3249_v9  ;;  %3944 = vmatprep.mubr.f32.mxu0 %v3769_v51  ;;  %6112 = vmatpush3.bf16.msra.mxu0 %v6111_v60  ;;  %vm9818_vm4 = vmmov %vm9808_vm0  ;;  %v6080_v60 = vpack.c.bf16 %v5126_v19, %v5125_v41  ;;  %v4091_v51 = vld [vmem:[#allocation2 + $0xc8] sm:$0xc0] }
 0x1bd   : > { %3539 = vmatmul.mubr.f32.gmra.mrb[16].mxu1 %v3250_v38  ;;  %v5282_v4 = vpop.f32.mrb[19].mxu0  ;;  %6114 = vmatprep.subr.bf16.mxu0 %v6113_v35  ;;  %vm9819_vm9 = vmmov %vm9814_vm2  ;;  %v5173_v18 = vld [vmem:[%s9512_s1 + $0xb88] sm:$0xff]  ;;  %v3724_v38 = vrot.slane %v8831_v3, 5 }
 0x1be   : > { %6075 = vmatpush1.bf16.msra.mxu1 %v6074_v8  ;;  %5071 = vmatprep.mubr.msk.f32.mxu1 %vm9818_vm4, %v3260_v27  ;;  %v3767_v44 = vsel %vm9819_vm9, %v3758_v28, %v3766_v55  ;;  %vm9820_vm3 = vmmov %vm9814_vm2  ;;  %v3716_v28 = vrot.slane %v8818_v47, 5  ;;  %v5127_v47 = vld [vmem:[%s9512_s1 + $0xa70] sm:$0xff]  ;;  %v9133_v27 = vld [vmem:[#allocation2 + $0xe0] sm:$0xff]  ;;  %v4238_v4 = vrot.slane %v4091_v51, 6 }
 0x1bf   : > { %3945 = vmatmul.mubr.f32.gmra.mrb[124].mxu0 %v3767_v44  ;;  %v3777_v46 = vsel %vm9820_vm3, %v3768_v42, %v3776_v48  ;;  %6076 = vmatprep.subr.bf16.mxu1 %v6388_v33  ;;  %vm9821_vm15 = vmmov %vm9817_vm7  ;;  %v4090_v44 = vld [vmem:[#allocation2 + $0xc0] sm:$0xc0]  ;;  %v4236_v41 = vrot.slane %v9133_v27, 6 }
 0x1c0   : > { %v5284_v50 = vpop.f32.mrb[20].mxu0  ;;  %v3258_v20 = vsel %vm9821_vm15, %v3249_v9, %v3257_v14  ;;  %3949 = vmatprep.mubr.f32.mxu0 %v3777_v46  ;;  %6116 = vmatpush3.bf16.msra.mxu0 %v6115_v17  ;;  %vm9822_vm14 = vmmov %vm9808_vm0  ;;  %v5128_v9 = vld [vmem:[%s9512_s1 + $0xa78] sm:$0xff]  ;;  %v6118_v46 = vpack.c.bf16 %v5173_v18, %v5172_v31 }
 0x1c1   : > { %3544 = vmatmul.mubr.f32.gmra.mrb[34].mxu1 %v3258_v20  ;;  %v5285_v42 = vpop.f32.mrb[21].mxu0  ;;  %6117 = vmatprep.subr.bf16.mxu0 %v6388_v33  ;;  %vm9823_vm12 = vmmov %vm9814_vm2  ;;  %v9158_v50 = vld [vmem:[#allocation2 + $0x100] sm:$0xff] }
 0x1c2   : > { %6078 = vmatpush1.bf16.msra.mxu1 %v6077_v32  ;;  %5072 = vmatprep.mubr.msk.f32.mxu1 %vm9822_vm14, %v3259_v6  ;;  %v3775_v37 = vsel %vm9823_vm12, %v3766_v55, %v3774_v21  ;;  %vm9824_vm0 = vmmov %vm9814_vm2  ;;  %v4095_v6 = vld [vmem:[#allocation2 + $0xe8] sm:$0xff]  ;;  %v6083_v55 = vpack.c.bf16 %v5128_v9, %v5127_v47  ;;  %v4247_v9 = vrot.slane %v9158_v50, 6 }
 0x1c3   : > { %3950 = vmatmul.mubr.f32.gmra.mrb[126].mxu0 %v3775_v37  ;;  %v3785_v35 = vsel %vm9824_vm0, %v3776_v48, %v3784_v29  ;;  %6079 = vmatprep.subr.bf16.mxu1 %v6388_v33  ;;  %vm9825_vm6 = vmmov %vm9824_vm0  ;;  %v4239_v40 = vrot.slane %v4095_v6, 6  ;;  %v4235_v37 = vrot.slane %v4090_v44, 6  ;;  %v5179_v44 = vld [vmem:[%s9512_s1 + $0xbb8] sm:$0xff] }
 0x1c4   : > { %v3717_v24 = vsel %vm9825_vm6, %v3715_v58, %v3716_v28  ;;  %3954 = vmatprep.mubr.f32.mxu0 %v3785_v35  ;;  %v5319_v25 = vpop.f32.mrb[22].mxu0  ;;  %vm9826_vm10 = vmmov %vm9824_vm0  ;;  %v3732_v58 = vrot.slane %v8848_v36, 5 }
 0x1c5   : > { %3548 = vmatmul.mubr.f32.gmra.mrb[36].mxu1 %v3257_v14  ;;  %v5320_v45 = vpop.f32.mrb[23].mxu0  ;;  %v3783_v8 = vsel %vm9826_vm10, %v3774_v21, %v3782_v2  ;;  %vm9827_vm13 = vmmov %vm9813_vm1  ;;  %v3713_v14 = vrot.slane %v8833_v34, 5  ;;  %v3712_v21 = vrot.slane %v3563_v61, 5  ;;  %v4240_v43 = vsel %vm9828_vm11, %v4238_v4, %v4239_v40  ;;  %v9185_v61 = vld [vmem:[#allocation2 + $0x148] sm:$0xff]  ;;  %v5178_v4 = vld [vmem:[%s9512_s1 + $0xbb0] sm:$0xff] }
 0x1c6   : > { %6081 = vmatpush1.bf16.msra.mxu1 %v6080_v60  ;;  %5129 = vmatprep.mubr.msk.f32.mxu1 %vm9827_vm13, %v3717_v24  ;;  %v5321_v48 = vadd.f32 %v5320_v45, %v5319_v25  ;;  %vm9829_vm1 = vmmov %vm9824_vm0  ;;  %v4249_v34 = vrot.slane %v4099_v23, 6  ;;  %v9162_v60 = vld [vmem:[#allocation2 + $0x128] sm:$0xff]  ;;  %v5176_v25 = vld [vmem:[%s9512_s1 + $0xba0] sm:$0xff] }
 0x1c7   : > { %3955 = vmatmul.mubr.f32.gmra.mrb[128].mxu0 %v3783_v8  ;;  %6082 = vmatprep.subr.bf16.mxu1 %v6388_v33  ;;  %v3725_v3 = vsel %vm9829_vm1, %v3716_v28, %v3724_v38  ;;  %vm9830_vm2 = vmmov %vm9824_vm0  ;;  %v3722_v28 = vrot.slane %v8850_v57, 5  ;;  %v5177_v45 = vld [vmem:[%s9512_s1 + $0xba8] sm:$0xff]  ;;  %v3740_v8 = vrot.slane %v8881_v22, 5 }
 0x1c8   : > { %3958 = vmatprep.mubr.f32.mxu0 %v3784_v29  ;;  %v9145_v17 = vadd.f32 %v5321_v48, %v8520_v7  ;;  %v5174_v7 = vld [vmem:[%s9512_s1 + $0xb90] sm:$0xff]  ;;  %v5175_v29 = vld [vmem:[%s9512_s1 + $0xb98] sm:$0xff]  ;;  %v3714_v42 = vsel %vm9830_vm2, %v3712_v21, %v3713_v14  ;;  %vm9831_vm5 = vmmov %vm9818_vm4  ;;  %v3730_v48 = vrot.slane %v8883_v49, 5  ;;  %v6124_v18 = vpack.c.bf16 %v5177_v45, %v5176_v25 }
 0x1c9   : > { %v5322_v32 = vpop.f32.mrb[24].mxu0  ;;  %vm9832_vm8 = vmmov %vm9828_vm11  ;;  %v6121_v47 = vpack.c.bf16 %v5175_v29, %v5174_v7  ;;  %v9205_v21 = vld [vmem:[#allocation2 + $0x140] sm:$0xff]  ;;  %v6127_v7 = vpack.c.bf16 %v5179_v44, %v5178_v4  ;;  %v4279_v44 = vrot.slane %v9041_v26, 6  ;;  %v3772_v26 = vrot.slane %v9013_v0, 5 }
 0x1ca   : > { %6084 = vmatpush1.bf16.msra.mxu1 %v6083_v55  ;;  %v5323_v19 = vpop.f32.mrb[25].mxu0  ;;  %v4237_v36 = vsel %vm9832_vm8, %v4235_v37, %v4236_v41  ;;  %vm9833_vm7 = vmmov %vm9832_vm8  ;;  %v9181_v55 = vld [vmem:[#allocation2 + $0x120] sm:$0xff]  ;;  %v4263_v29 = vrot.slane %v9205_v21, 6  ;;  %v3756_v37 = vrot.slane %v8947_v30, 5 }
 0x1cb   : > { %3959 = vmatmul.mubr.f32.gmra.mrb[130].mxu0 %v3782_v2  ;;  %6153 = vmatprep.subr.bf16.mxu1 %v6388_v33  ;;  %v5324_v20 = vadd.f32 %v5323_v19, %v5322_v32  ;;  %v4250_v6 = vsel %vm9833_vm7, %v4239_v40, %v4249_v34  ;;  %vm9834_vm4 = vmmov %vm9824_vm0  ;;  %v3748_v32 = vrot.slane %v8915_v11, 5  ;;  %v3738_v19 = vrot.slane %v8917_v62, 5 }
 0x1cc   : > { %4438 = vmatprep.mubr.f32.mxu0 %v4240_v43  ;;  %v3733_v57 = vsel %vm9834_vm4, %v3724_v38, %v3732_v58  ;;  %vm9835_vm9 = vmmov %vm9824_vm0  ;;  %v4255_v38 = vrot.slane %v9181_v55, 6  ;;  %v9209_v43 = vld [vmem:[#allocation2 + $0x168] sm:$0xff] }
 0x1cd   : > { %4028 = vmatmul.mubr.f32.vlgmr.msra.gmra.mrb[0].mxu1 %v3714_v42  ;;  %v9165_v2 = vadd.f32 %v5324_v20, %v8575_v16  ;;  %v5325_v35 = vpop.f32.mrb[26].mxu0  ;;  %v4257_v16 = vrot.slane %v9162_v60, 6  ;;  %v3723_v27 = vsel %vm9835_vm9, %v3713_v14, %v3722_v28  ;;  %vm9836_vm3 = vmmov %vm9831_vm5  ;;  %v5180_v20 = vld [vmem:[%s9512_s1 + $0xbc0] sm:$0xff]  ;;  %v5181_v42 = vld [vmem:[%s9512_s1 + $0xbc8] sm:$0xff] }
 0x1ce   : > { %6165 = vmatpush1.bf16.msra.mxu1 %v6118_v46  ;;  %5130 = vmatprep.mubr.msk.f32.mxu1 %vm9831_vm5, %v3725_v3  ;;  %v5326_v24 = vpop.f32.mrb[27].mxu0  ;;  %vm9837_vm15 = vmmov %vm9833_vm7  ;;  %v6130_v25 = vpack.c.bf16 %v5181_v42, %v5180_v20 }
 0x1cf   : > { %4439 = vmatmul.mubr.f32.vlgmr.msra.gmra.mrb[132].mxu0 %v4237_v36  ;;  %6154 = vmatprep.subr.bf16.mxu1 %v6388_v33  ;;  %v5327_v51 = vadd.f32 %v5326_v24, %v5325_v35  ;;  %v4248_v22 = vsel %vm9837_vm15, %v4236_v41, %v4247_v9  ;;  %vm9838_vm14 = vmmov %vm9833_vm7  ;;  %v3731_v41 = vsel %vm9824_vm0, %v3722_v28, %v3730_v48  ;;  %v9229_v28 = vld [vmem:[#allocation2 + $0x160] sm:$0xff] }
 0x1d0   : > { %6119 = vmatpush1.bf16.msra.mxu0 %v6118_v46  ;;  %4443 = vmatprep.mubr.f32.mxu0 %v4250_v6  ;;  %v4258_v49 = vsel %vm9838_vm14, %v4249_v34, %v4257_v16  ;;  %vm9839_vm12 = vmmov %vm9824_vm0  ;;  %v4271_v45 = vrot.slane %v9229_v28, 6 }
 0x1d1   : > { %4033 = vmatmul.mubr.f32.gmra.mrb[2].mxu1 %v3723_v27  ;;  %6120 = vmatprep.subr.bf16.mxu0 %v6388_v33  ;;  %v9189_v40 = vadd.f32 %v5327_v51, %v8641_v54  ;;  %v5328_v31 = vpop.f32.mrb[28].mxu0  ;;  %v3741_v23 = vsel %vm9839_vm12, %v3732_v58, %v3740_v8  ;;  %v4265_v54 = vrot.slane %v9185_v61, 6  ;;  %vm9840_vm6 = vmmov %vm9836_vm3  ;;  %v5182_v51 = vld [vmem:[%s9512_s1 + $0xbd0] sm:$0xff]  ;;  %v5183_v27 = vld [vmem:[%s9512_s1 + $0xbd8] sm:$0xff] }
 0x1d2   : > { %6166 = vmatpush1.bf16.msra.mxu1 %v6121_v47  ;;  %5131 = vmatprep.mubr.msk.f32.mxu1 %vm9836_vm3, %v3733_v57  ;;  %v5329_v14 = vpop.f32.mrb[29].mxu0  ;;  %vm9841_vm10 = vmmov %vm9833_vm7  ;;  %v6133_v4 = vpack.c.bf16 %v5183_v27, %v5182_v51 }
 0x1d3   : > { %4444 = vmatmul.mubr.f32.gmra.mrb[134].mxu0 %v4248_v22  ;;  %6155 = vmatprep.subr.bf16.mxu1 %v6388_v33  ;;  %v5330_v46 = vadd.f32 %v5329_v14, %v5328_v31  ;;  %v4256_v11 = vsel %vm9841_vm10, %v4247_v9, %v4255_v38  ;;  %vm9842_vm13 = vmmov %vm9833_vm7  ;;  %v9233_v9 = vld [vmem:[#allocation2 + $0x198] sm:$0xff]  ;;  %v9258_v14 = vld [vmem:[#allocation2 + $0x190] sm:$0xff] }
 0x1d4   : > { %6122 = vmatpush1.bf16.msra.mxu0 %v6121_v47  ;;  %4448 = vmatprep.mubr.f32.mxu0 %v4258_v49  ;;  %v4266_v62 = vsel %vm9842_vm13, %v4257_v16, %v4265_v54  ;;  %vm9843_vm11 = vmmov %vm9824_vm0  ;;  %v3746_v47 = vrot.slane %v8949_v13, 5 }
 0x1d5   : > { %4038 = vmatmul.mubr.f32.gmra.mrb[4].mxu1 %v3731_v41  ;;  %6123 = vmatprep.subr.bf16.mxu0 %v6388_v33  ;;  %v9213_v3 = vadd.f32 %v5330_v46, %v8713_v15  ;;  %v5331_v34 = vpop.f32.mrb[30].mxu0  ;;  %v3749_v50 = vsel %vm9843_vm11, %v3740_v8, %v3748_v32  ;;  %v4273_v15 = vrot.slane %v9209_v43, 6  ;;  %vm9844_vm1 = vmmov %vm9824_vm0  ;;  %v5184_v41 = vld [vmem:[%s9512_s1 + $0xbe0] sm:$0xff] }
 0x1d6   : > { %6167 = vmatpush1.bf16.msra.mxu1 %v6124_v18  ;;  %5132 = vmatprep.mubr.msk.f32.mxu1 %vm9840_vm6, %v3741_v23  ;;  %v5332_v58 = vpop.f32.mrb[31].mxu0  ;;  %v3739_v36 = vsel %vm9844_vm1, %v3730_v48, %v3738_v19  ;;  %vm9845_vm2 = vmmov %vm9836_vm3  ;;  %v3764_v48 = vrot.slane %v9233_v9, 5  ;;  %v9277_v43 = vld [vmem:[#allocation2 + $0x1a0] sm:$0xff] }
 0x1d7   : > { %4449 = vmatmul.mubr.f32.gmra.mrb[136].mxu0 %v4256_v11  ;;  %6156 = vmatprep.subr.bf16.mxu1 %v6388_v33  ;;  %v5333_v60 = vadd.f32 %v5332_v58, %v5331_v34  ;;  %vm9846_vm5 = vmmov %vm9833_vm7  ;;  %v4287_v20 = vrot.slane %v9277_v43, 6  ;;  %v5191_v43 = vld [vmem:[%s9512_s1 + $0xc18] sm:$0xff] }
 0x1d8   : > { %6125 = vmatpush1.bf16.msra.mxu0 %v6124_v18  ;;  %v1706_v35 = vpop.f32.mrb[18].mxu1  ;;  %4453 = vmatprep.mubr.f32.mxu0 %v4266_v62  ;;  %v4264_v16 = vsel %vm9846_vm5, %v4255_v38, %v4263_v29  ;;  %vm9847_vm8 = vmmov %vm9846_vm5  ;;  %v3754_v18 = vrot.slane %v8981_v52, 5  ;;  %v9255_v38 = vld [vmem:[#allocation2 + $0x1a8] sm:$0xff] }
 0x1d9   : > { %4043 = vmatmul.mubr.f32.gmra.mrb[6].mxu1 %v3739_v36  ;;  %v1707_v24 = vpop.f32.mrb[19].mxu1  ;;  %6126 = vmatprep.subr.bf16.mxu0 %v6388_v33  ;;  %v9237_v6 = vadd.f32 %v5333_v60, %v8780_v5  ;;  %v5334_v57 = vpop.f32.mrb[32].mxu0  ;;  %v4274_v13 = vsel %vm9847_vm8, %v4265_v54, %v4273_v15  ;;  %vm9848_vm7 = vmmov %vm9824_vm0  ;;  %v4281_v5 = vrot.slane %v9011_v63, 6  ;;  %v5186_v60 = vld [vmem:[%s9512_s1 + $0xbf0] sm:$0xff]  ;;  %v5187_v35 = vld [vmem:[%s9512_s1 + $0xbf8] sm:$0xff] }
 0x1da   : > { %6168 = vmatpush1.bf16.msra.mxu1 %v6127_v7  ;;  %5133 = vmatprep.mubr.msk.f32.mxu1 %vm9845_vm2, %v3749_v50  ;;  %v5335_v8 = vpop.f32.mrb[33].mxu0  ;;  %v3757_v55 = vsel %vm9848_vm7, %v3748_v32, %v3756_v37  ;;  %vm9849_vm4 = vmmov %vm9824_vm0 }
 0x1db   : > { %4454 = vmatmul.mubr.f32.gmra.mrb[138].mxu0 %v4264_v16  ;;  %6157 = vmatprep.subr.bf16.mxu1 %v6388_v33  ;;  %v5336_v61 = vadd.f32 %v5335_v8, %v5334_v57  ;;  %v3747_v22 = vsel %vm9849_vm4, %v3738_v19, %v3746_v47  ;;  %vm9850_vm9 = vmmov %vm9845_vm2  ;;  %v5185_v19 = vld [vmem:[%s9512_s1 + $0xbe8] sm:$0xff]  ;;  %v3770_v57 = vrot.slane %v9047_v59, 5 }
 0x1dc   : > { %6128 = vmatpush1.bf16.msra.mxu0 %v6127_v7  ;;  %v1710_v31 = vpop.f32.mrb[20].mxu1  ;;  %4458 = vmatprep.mubr.f32.mxu0 %v4274_v13  ;;  %vm9851_vm3 = vmmov %vm9846_vm5  ;;  %v3762_v7 = vrot.slane %v9258_v14, 5  ;;  %v9303_v16 = vld [vmem:[#allocation2 + $0x1e8] sm:$0xff] }
 0x1dd   : > { %4048 = vmatmul.mubr.f32.gmra.mrb[8].mxu1 %v3747_v22  ;;  %v1711_v63 = vpop.f32.mrb[21].mxu1  ;;  %6129 = vmatprep.subr.bf16.mxu0 %v6388_v33  ;;  %v9261_v49 = vadd.f32 %v5336_v61, %v8858_v10  ;;  %v5337_v23 = vpop.f32.mrb[34].mxu0  ;;  %v4272_v54 = vsel %vm9851_vm3, %v4263_v29, %v4271_v45  ;;  %vm9852_vm15 = vmmov %vm9851_vm3  ;;  %v4289_v10 = vrot.slane %v9255_v38, 6  ;;  %v9281_v29 = vld [vmem:[#allocation2 + $0x1d8] sm:$0xff]  ;;  %v5188_v61 = vld [vmem:[%s9512_s1 + $0xc00] sm:$0xff] }
 0x1de   : > { %6169 = vmatpush1.bf16.msra.mxu1 %v6130_v25  ;;  %5134 = vmatprep.mubr.msk.f32.mxu1 %vm9850_vm9, %v3757_v55  ;;  %v5338_v32 = vpop.f32.mrb[35].mxu0  ;;  %v4282_v21 = vsel %vm9852_vm15, %v4273_v15, %v4281_v5  ;;  %vm9853_vm14 = vmmov %vm9824_vm0  ;;  %v6136_v15 = vpack.c.bf16 %v5185_v19, %v5184_v41  ;;  %v3780_v36 = vrot.slane %v9281_v29, 5  ;;  %v6139_v55 = vpack.c.bf16 %v5187_v35, %v5186_v60  ;;  %v5189_v31 = vld [vmem:[%s9512_s1 + $0xc08] sm:$0xff]  ;;  %v4126_v22 = vld [vmem:[#allocation2 + $0x1e0] sm:$0xff] }
 0x1df   : > { %4459 = vmatmul.mubr.f32.gmra.mrb[140].mxu0 %v4272_v54  ;;  %6158 = vmatprep.subr.bf16.mxu1 %v6388_v33  ;;  %v3765_v46 = vsel %vm9853_vm14, %v3756_v37, %v3764_v48  ;;  %v5339_v34 = vadd.f32 %v5338_v32, %v5337_v23  ;;  %vm9854_vm12 = vmmov %vm9824_vm0  ;;  %v9329_v23 = vld [vmem:[#allocation2 + $0x208] sm:$0x7f]  ;;  %v3603_v54 = vld [vmem:[#allocation2 + $0x1f0] sm:$0x3f] }
 0x1e0   : > { %6131 = vmatpush1.bf16.msra.mxu0 %v6130_v25  ;;  %v3755_v11 = vsel %vm9854_vm12, %v3746_v47, %v3754_v18  ;;  %4463 = vmatprep.mubr.f32.mxu0 %v4282_v21  ;;  %vm9855_vm0 = vmmov %vm9845_vm2  ;;  %v9308_v25 = vld [vmem:[#allocation2 + $0x1d0] sm:$0xff]  ;;  %v6142_v21 = vpack.c.bf16 %v5189_v31, %v5188_v61  ;;  %v5192_v35 = vld [vmem:[%s9512_s1 + $0xc20] sm:$0xff] }
 0x1e1   : > { %4053 = vmatmul.mubr.f32.gmra.mrb[10].mxu1 %v3755_v11  ;;  %6132 = vmatprep.subr.bf16.mxu0 %v6388_v33  ;;  %v9285_v58 = vadd.f32 %v5339_v34, %v8891_v1  ;;  %vm9856_vm6 = vmmov %vm9851_vm3  ;;  %v4297_v1 = vrot.slane %v9079_v39, 6  ;;  %v9305_v39 = vld [vmem:[#allocation2 + $0x1f8] sm:$0x3f]  ;;  %v3778_v63 = vrot.slane %v9308_v25, 5  ;;  %v4130_v34 = vld [vmem:[#allocation2 + $0x200] sm:$0x7f] }
 0x1e2   : > { %6170 = vmatpush1.bf16.msra.mxu1 %v6133_v4  ;;  %v5340_v62 = vpop.f32.mrb[36].mxu0  ;;  %5135 = vmatprep.mubr.msk.f32.mxu1 %vm9855_vm0, %v3765_v46  ;;  %v4280_v50 = vsel %vm9856_vm6, %v4271_v45, %v4279_v44  ;;  %vm9857_vm10 = vmmov %vm9851_vm3  ;;  %v4303_v46 = vrot.slane %v4126_v22, 6  ;;  %v4101_v22 = vld [vmem:[#allocation2 + $0x118] sm:$0xff] }
 0x1e3   : > { %v5341_v42 = vpop.f32.mrb[37].mxu0  ;;  %4464 = vmatmul.mubr.f32.gmra.mrb[142].mxu0 %v4280_v50  ;;  %v4290_v37 = vsel %vm9857_vm10, %v4281_v5, %v4289_v10  ;;  %6159 = vmatprep.subr.bf16.mxu1 %v6388_v33  ;;  %vm9858_vm13 = vmmov %vm9844_vm1  ;;  %v4295_v5 = vrot.slane %v9092_v53, 6  ;;  %v3788_v53 = vrot.slane %v9305_v39, 5 }
 0x1e4   : > { %v3773_v28 = vsel %vm9858_vm13, %v3764_v48, %v3772_v26  ;;  %v5342_v47 = vadd.f32 %v5341_v42, %v5340_v62  ;;  %6134 = vmatpush1.bf16.msra.mxu0 %v6133_v4  ;;  %vm9859_vm11 = vmmov %vm9844_vm1  ;;  %4468 = vmatprep.mubr.f32.mxu0 %v4290_v37  ;;  %v9348_v62 = vld [vmem:[#allocation2 + $0x158] sm:$0xff]  ;;  %v4311_v42 = vrot.slane %v4130_v34, 6  ;;  %v4283_v34 = vrot.slane %v9258_v14, 6 }
 0x1e5   : > { %v3763_v24 = vsel %vm9859_vm11, %v3754_v18, %v3762_v7  ;;  %6135 = vmatprep.subr.bf16.mxu0 %v6388_v33  ;;  %vm9860_vm1 = vmmov %vm9855_vm0  ;;  %v4093_v37 = vld [vmem:[#allocation2 + $0xd8] sm:$0xc0]  ;;  %v4301_v14 = vrot.slane %v9281_v29, 6 }
 0x1e6   : > { %4058 = vmatmul.mubr.f32.gmra.mrb[12].mxu1 %v3763_v24  ;;  %v9311_v45 = vadd.f32 %v5342_v47, %v8957_v56  ;;  %v5343_v8 = vpop.f32.mrb[38].mxu0  ;;  %vm9861_vm2 = vmmov %vm9851_vm3  ;;  %v4305_v56 = vrot.slane %v9303_v16, 6  ;;  %v4269_v47 = vrot.slane %v9348_v62, 6  ;;  %v4277_v24 = vrot.slane %v8947_v30, 6  ;;  %v5194_v30 = vld [vmem:[%s9512_s1 + $0xc30] sm:$0xff] }
 0x1e7   : > { %6171 = vmatpush1.bf16.msra.mxu1 %v6136_v15  ;;  %5136 = vmatprep.mubr.msk.f32.mxu1 %vm9860_vm1, %v3773_v28  ;;  %v4288_v13 = vsel %vm9861_vm2, %v4279_v44, %v4287_v20  ;;  %v5344_v51 = vpop.f32.mrb[39].mxu0  ;;  %vm9862_vm5 = vmmov %vm9861_vm2  ;;  %v9353_v28 = vld [vmem:[#allocation2 + $0xf8] sm:$0xff]  ;;  %v4244_v16 = vrot.slane %v4093_v37, 6 }
 0x1e8   : > { %4469 = vmatmul.mubr.f32.gmra.mrb[144].mxu0 %v4288_v13  ;;  %v4298_v27 = vsel %vm9862_vm5, %v4289_v10, %v4297_v1  ;;  %6160 = vmatprep.subr.bf16.mxu1 %v6388_v33  ;;  %vm9863_vm8 = vmmov %vm9849_vm4  ;;  %v5345_v18 = vadd.f32 %v5344_v51, %v5343_v8  ;;  %v4245_v39 = vrot.slane %v9353_v28, 6  ;;  %v5195_v51 = vld [vmem:[%s9512_s1 + $0xc38] sm:$0xff]  ;;  %v4104_v28 = vld [vmem:[#allocation2 + $0x130] sm:$0xff] }
 0x1e9   : > { %v3781_v48 = vsel %vm9863_vm8, %v3772_v26, %v3780_v36  ;;  %6137 = vmatpush1.bf16.msra.mxu0 %v6136_v15  ;;  %vm9864_vm7 = vmmov %vm9849_vm4  ;;  %4473 = vmatprep.mubr.f32.mxu0 %v4298_v27  ;;  %v4313_v26 = vrot.slane %v9329_v23, 6  ;;  %v4285_v23 = vrot.slane %v9233_v9, 6  ;;  %v4259_v29 = vrot.slane %v4104_v28, 6 }
 0x1ea   : > { %v3771_v38 = vsel %vm9864_vm7, %v3762_v7, %v3770_v57  ;;  %6138 = vmatprep.subr.bf16.mxu0 %v6388_v33  ;;  %v9333_v4 = vadd.f32 %v5345_v18, %v9055_v12  ;;  %v5346_v44 = vpop.f32.mrb[40].mxu0  ;;  %vm9865_vm4 = vmmov %vm9855_vm0  ;;  %v5190_v12 = vld [vmem:[%s9512_s1 + $0xc10] sm:$0xff]  ;;  %v3786_v7 = vrot.slane %v3603_v54, 5 }
 0x1eb   : > { %4063 = vmatmul.mubr.f32.gmra.mrb[14].mxu1 %v3771_v38  ;;  %vm9866_vm9 = vmmov %vm9861_vm2  ;;  %v5347_v10 = vpop.f32.mrb[41].mxu0  ;;  %v9387_v38 = vld [vmem:[#allocation2 + $0x150] sm:$0xff] }
 0x1ec   : > { %6172 = vmatpush1.bf16.msra.mxu1 %v6139_v55  ;;  %5137 = vmatprep.mubr.msk.f32.mxu1 %vm9865_vm4, %v3781_v48  ;;  %v4296_v32 = vsel %vm9866_vm9, %v4287_v20, %v4295_v5  ;;  %vm9867_vm3 = vmmov %vm9861_vm2  ;;  %v6145_v20 = vpack.c.bf16 %v5191_v43, %v5190_v12  ;;  %v4092_v44 = vld [vmem:[#allocation2 + $0xd0] sm:$0xc0]  ;;  %v4267_v10 = vrot.slane %v9387_v38, 6 }
 0x1ed   : > { %4474 = vmatmul.mubr.f32.gmra.mrb[146].mxu0 %v4296_v32  ;;  %v4306_v41 = vsel %vm9867_vm3, %v4297_v1, %v4305_v56  ;;  %6161 = vmatprep.subr.bf16.mxu1 %v6388_v33  ;;  %vm9868_vm15 = vmmov %vm9864_vm7  ;;  %v4253_v32 = vrot.slane %v4101_v22, 6  ;;  %v4100_v12 = vld [vmem:[#allocation2 + $0x110] sm:$0xff] }
 0x1ee   : > { %v3789_v19 = vsel %vm9868_vm15, %v3780_v36, %v3788_v53  ;;  %6140 = vmatpush1.bf16.msra.mxu0 %v6139_v55  ;;  %vm9869_vm14 = vmmov %vm9864_vm7  ;;  %4478 = vmatprep.mubr.f32.mxu0 %v4306_v41  ;;  %v5349_v50 = vpop.f32.mrb[42].mxu0  ;;  %v5193_v36 = vld [vmem:[%s9512_s1 + $0xc28] sm:$0xff] }
 0x1ef   : > { %v3779_v11 = vsel %vm9869_vm14, %v3770_v57, %v3778_v63  ;;  %6141 = vmatprep.subr.bf16.mxu0 %v6388_v33  ;;  %vm9870_vm12 = vmmov %vm9855_vm0  ;;  %v5350_v1 = vpop.f32.mrb[43].mxu0  ;;  %v6148_v55 = vpack.c.bf16 %v5193_v36, %v5192_v35  ;;  %v4129_v35 = vld [vmem:[#allocation2 + $0x1f8] sm:$0xff] }
 0x1f0   : > { %4068 = vmatmul.mubr.f32.gmra.mrb[16].mxu1 %v3779_v11  ;;  %vm9871_vm0 = vmmov %vm9861_vm2 }
 0x1f1   : > { %6173 = vmatpush1.bf16.msra.mxu1 %v6142_v21  ;;  %5138 = vmatprep.mubr.msk.f32.mxu1 %vm9870_vm12, %v3789_v19  ;;  %v4304_v15 = vsel %vm9871_vm0, %v4295_v5, %v4303_v46  ;;  %vm9872_vm6 = vmmov %vm9871_vm0  ;;  %v4105_v19 = vld [vmem:[#allocation2 + $0x138] sm:$0xff] }
 0x1f2   : > { %4479 = vmatmul.mubr.f32.gmra.mrb[148].mxu0 %v4304_v15  ;;  %v4314_v60 = vsel %vm9872_vm6, %v4305_v56, %v4313_v26  ;;  %6162 = vmatprep.subr.bf16.mxu1 %v6388_v33  ;;  %vm9873_vm10 = vmmov %vm9864_vm7  ;;  %v5384_v8 = vpop.f32.mrb[44].mxu0 }
 0x1f3   : > { %6143 = vmatpush1.bf16.msra.mxu0 %v6142_v21  ;;  %v3787_v57 = vsel %vm9873_vm10, %v3778_v63, %v3786_v7  ;;  %4483 = vmatprep.mubr.f32.mxu0 %v4314_v60  ;;  %vm9874_vm13 = vmmov %vm9860_vm1  ;;  %v5385_v5 = vpop.f32.mrb[45].mxu0  ;;  %v4096_v63 = vld [vmem:[#allocation2 + $0xf0] sm:$0xff] }
 0x1f4   : > { %4073 = vmatmul.mubr.f32.gmra.mrb[38].mxu1 %v3787_v57  ;;  %6144 = vmatprep.subr.bf16.mxu0 %v6388_v33  ;;  %vm9875_vm11 = vmmov %vm9871_vm0  ;;  %v5386_v48 = vadd.f32 %v5385_v5, %v5384_v8  ;;  %v4242_v41 = vrot.slane %v4096_v63, 6 }
 0x1f5   : > { %6174 = vmatpush1.bf16.msra.mxu1 %v6145_v20  ;;  %5139 = vmatprep.mubr.msk.f32.mxu1 %vm9874_vm13, %v3788_v53  ;;  %v4312_v13 = vsel %vm9875_vm11, %v4303_v46, %v4311_v42  ;;  %vm9876_vm1 = vmmov %vm9871_vm0  ;;  %v6151_v53 = vpack.c.bf16 %v5195_v51, %v5194_v30  ;;  %v4133_v30 = vld [vmem:[#allocation2 + $0x218] sm:$0x7f] }
 0x1f6   : > { %4484 = vmatmul.mubr.f32.gmra.mrb[150].mxu0 %v4312_v13  ;;  %6163 = vmatprep.subr.bf16.mxu1 %v6388_v33  ;;  %v4278_v27 = vsel %vm9876_vm1, %v4269_v47, %v4277_v24  ;;  %vm9877_vm2 = vmmov %vm9871_vm0  ;;  %v9383_v61 = vadd.f32 %v9145_v17, %v5386_v48  ;;  %v5387_v31 = vpop.f32.mrb[46].mxu0  ;;  %v4275_v17 = vrot.slane %v8981_v52, 6  ;;  %v4293_v52 = vrot.slane %v9013_v0, 6  ;;  %v4128_v48 = vld [vmem:[#allocation2 + $0x1f0] sm:$0xff] }
 0x1f7   : > { %6146 = vmatpush1.bf16.msra.mxu0 %v6145_v20  ;;  %4487 = vmatprep.mubr.f32.mxu0 %v4313_v26  ;;  %v4246_v56 = vsel %vm9877_vm2, %v4244_v16, %v4245_v39  ;;  %vm9878_vm5 = vmmov %vm9865_vm4  ;;  %v5388_v18 = vpop.f32.mrb[47].mxu0  ;;  %v4251_v0 = vrot.slane %v4100_v12, 6  ;;  %v4309_v13 = vrot.slane %v4129_v35, 6 }
 0x1f8   : > { %4077 = vmatmul.mubr.f32.gmra.mrb[40].mxu1 %v3786_v7  ;;  %6147 = vmatprep.subr.bf16.mxu0 %v6388_v33  ;;  %v5389_v54 = vadd.f32 %v5388_v18, %v5387_v31  ;;  %vm9879_vm8 = vmmov %vm9865_vm4  ;;  %v4261_v7 = vrot.slane %v4105_v19, 6  ;;  %v4317_v18 = vrot.slane %v4133_v30, 6 }
 0x1f9   : > { %6175 = vmatpush1.bf16.msra.mxu1 %v6148_v55  ;;  %5200 = vmatprep.mubr.msk.f32.mxu1 %vm9878_vm5, %v4278_v27  ;;  %vm9880_vm7 = vmmov %vm9871_vm0 }
 0x1fa   : > { %4488 = vmatmul.mubr.f32.gmra.mrb[152].mxu0 %v4311_v42  ;;  %6164 = vmatprep.subr.bf16.mxu1 %v6388_v33  ;;  %v9394_v21 = vadd.f32 %v9165_v2, %v5389_v54  ;;  %v5390_v46 = vpop.f32.mrb[48].mxu0  ;;  %v4286_v26 = vsel %vm9880_vm7, %v4277_v24, %v4285_v23  ;;  %vm9881_vm4 = vmmov %vm9871_vm0  ;;  %v4241_v2 = vrot.slane %v4092_v44, 6  ;;  %v4132_v54 = vld [vmem:[#allocation2 + $0x210] sm:$0x7f] }
 0x1fb   : > { %6149 = vmatpush1.bf16.msra.mxu0 %v6148_v55  ;;  %5196 = vmatprep.mubr.msk.f32.mxu0 %vm9879_vm8, %v4246_v56  ;;  %v5391_v9 = vpop.f32.mrb[49].mxu0  ;;  %vm9882_vm9 = vmmov %vm9871_vm0 }
 0x1fc   : > { %6150 = vmatprep.subr.bf16.mxu0 %v6388_v33  ;;  %v5392_v43 = vadd.f32 %v5391_v9, %v5390_v46  ;;  %v4276_v33 = vsel %vm9881_vm4, %v4267_v10, %v4275_v17  ;;  %v4254_v11 = vsel %vm9882_vm9, %v4245_v39, %v4253_v32  ;;  %vm9883_vm3 = vmmov %vm9871_vm0 }
 0x1fd   : > { %6176 = vmatpush1.bf16.msra.mxu1 %v6151_v53  ;;  %v4243_v20 = vsel %vm9883_vm3, %v4241_v2, %v4242_v41  ;;  %vm9884_vm15 = vmmov %vm9878_vm5 }
 0x1fe   : > { %v9405_v50 = vadd.f32 %v9189_v40, %v5392_v43  ;;  %v5393_v15 = vpop.f32.mrb[50].mxu0  ;;  %vm9885_vm14 = vmmov %vm9871_vm0  ;;  %v4291_v40 = vrot.slane %v9047_v59, 6 }
 0x1ff   : > { %6152 = vmatpush1.bf16.msra.mxu0 %v6151_v53  ;;  %v5394_v42 = vpop.f32.mrb[51].mxu0  ;;  %v4294_v37 = vsel %vm9885_vm14, %v4285_v23, %v4293_v52  ;;  %vm9886_vm12 = vmmov %vm9871_vm0 }
 0x200   : > { %4577 = vmatmul.mubr.f32.vlgmr.msra.gmra.mrb[8].mxu1 %v4276_v33  ;;  %v5395_v1 = vadd.f32 %v5394_v42, %v5393_v15  ;;  %v4284_v60 = vsel %vm9886_vm12, %v4275_v17, %v4283_v34  ;;  %vm9887_vm0 = vmmov %vm9878_vm5  ;;  %v4292_v5 = vsel %vm9876_vm1, %v4283_v34, %v4291_v40 }
 0x201   : > { %5201 = vmatprep.mubr.msk.f32.mxu1 %vm9884_vm15, %v4286_v26  ;;  %vm9888_vm6 = vmmov %vm9876_vm1  ;;  %v4315_v26 = vrot.slane %v4132_v54, 6 }
 0x202   : > { %4557 = vmatmul.mubr.f32.vlgmr.msra.gmra.mrb[154].mxu0 %v4243_v20  ;;  %v4262_v36 = vsel %vm9888_vm6, %v4253_v32, %v4261_v7  ;;  %v9416_v24 = vadd.f32 %v9213_v3, %v5395_v1  ;;  %v5396_v57 = vpop.f32.mrb[52].mxu0  ;;  %vm9889_vm10 = vmmov %vm9876_vm1  ;;  %v4299_v3 = vrot.slane %v9308_v25, 6 }
 0x203   : > { %5197 = vmatprep.mubr.msk.f32.mxu0 %vm9887_vm0, %v4254_v11  ;;  %v4252_v16 = vsel %vm9889_vm10, %v4242_v41, %v4251_v0  ;;  %vm9890_vm13 = vmmov %vm9887_vm0  ;;  %v5397_v39 = vpop.f32.mrb[53].mxu0 }
 0x204   : > { %4582 = vmatmul.mubr.f32.gmra.mrb[10].mxu1 %v4284_v60  ;;  %vm9891_vm11 = vmmov %vm9876_vm1  ;;  %v5398_v55 = vadd.f32 %v5397_v39, %v5396_v57  ;;  %v1967_v59 = vpop.f32.mrb[22].mxu1 }
 0x205   : > { %5202 = vmatprep.mubr.msk.f32.mxu1 %vm9890_vm13, %v4294_v37  ;;  %v4302_v8 = vsel %vm9891_vm11, %v4293_v52, %v4301_v14  ;;  %vm9892_vm2 = vmmov %vm9887_vm0  ;;  %v1968_v51 = vpop.f32.mrb[23].mxu1  ;;  %vm9906_vm11 = vcmask 1046528  }
 0x206   : > { %4562 = vmatmul.mubr.f32.gmra.mrb[156].mxu0 %v4252_v16  ;;  %vm9893_vm5 = vmmov %vm9876_vm1  ;;  %v9428_v56 = vadd.f32 %v9237_v6, %v5398_v55  ;;  %v5399_v31 = vpop.f32.mrb[54].mxu0 }
 0x207   : > { %5198 = vmatprep.mubr.msk.f32.mxu0 %vm9892_vm2, %v4262_v36  ;;  %v4270_v27 = vsel %vm9893_vm5, %v4261_v7, %v4269_v47  ;;  %vm9894_vm8 = vmmov %vm9876_vm1  ;;  %v5400_v22 = vpop.f32.mrb[55].mxu0  ;;  %v4307_v47 = vrot.slane %v4128_v48, 6 }
 0x208   : > { %4587 = vmatmul.mubr.f32.gmra.mrb[12].mxu1 %v4292_v5  ;;  %v4260_v53 = vsel %vm9894_vm8, %v4251_v0, %v4259_v29  ;;  %vm9895_vm7 = vmmov %vm9887_vm0  ;;  %v5401_v63 = vadd.f32 %v5400_v22, %v5399_v31  ;;  %v1971_v23 = vpop.f32.mrb[24].mxu1  ;;  %vm4633_vm8 = vcmask 122880  }
 0x209   : > { %5203 = vmatprep.mubr.msk.f32.mxu1 %vm9895_vm7, %v4302_v8  ;;  %vm9896_vm4 = vmmov %vm9876_vm1  ;;  %v1972_v6 = vpop.f32.mrb[25].mxu1  ;;  %vm4647_vm7 = vcmask 129030  }
 0x20a   : > { %4567 = vmatmul.mubr.f32.gmra.mrb[158].mxu0 %v4260_v53  ;;  %v4310_v25 = vsel %vm9896_vm4, %v4301_v14, %v4309_v13  ;;  %vm9897_vm9 = vmmov %vm9876_vm1  ;;  %v6217_v17 = vadd.f32 %v9261_v49, %v5401_v63  ;;  %v5402_v44 = vpop.f32.mrb[56].mxu0  ;;  %vm4645_vm4 = vcmask 126980  }
 0x20b   : > { %v4300_v62 = vsel %vm9897_vm9, %v4291_v40, %v4299_v3  ;;  %vm9898_vm3 = vmmov %vm9887_vm0  ;;  %v5403_v46 = vpop.f32.mrb[57].mxu0  ;;  %vm4643_vm9 = vcmask 124930  }
 0x20c   : > { %5199 = vmatprep.mubr.msk.f32.mxu0 %vm9898_vm3, %v4270_v27  ;;  %4592 = vmatmul.mubr.f32.gmra.mrb[14].mxu1 %v4300_v62  ;;  %vm9899_vm15 = vmmov %vm9876_vm1  ;;  %v5404_v19 = vadd.f32 %v5403_v46, %v5402_v44 }
 0x20d   : > { %v4268_v32 = vsel %vm9899_vm15, %v4259_v29, %v4267_v10  ;;  %vm9900_vm14 = vmmov %vm9887_vm0 }
 0x20e   : > { %5204 = vmatprep.mubr.msk.f32.mxu1 %vm9900_vm14, %v4310_v25  ;;  %4572 = vmatmul.mubr.f32.gmra.mrb[160].mxu0 %v4268_v32  ;;  %vm9901_vm12 = vmmov %vm9876_vm1  ;;  %v6224_v12 = vadd.f32 %v9285_v58, %v5404_v19  ;;  %v5405_v52 = vpop.f32.mrb[58].mxu0 }
 0x20f   : > { %v4318_v41 = vsel %vm9901_vm12, %v4309_v13, %v4317_v18  ;;  %vm9902_vm0 = vmmov %vm9876_vm1  ;;  %v5406_v49 = vpop.f32.mrb[59].mxu0 }
 0x210   : > { %v4308_v9 = vsel %vm9902_vm0, %v4299_v3, %v4307_v47  ;;  %vm9903_vm6 = vmmov %vm9892_vm2  ;;  %v5407_v38 = vadd.f32 %v5406_v49, %v5405_v52 }
 0x211   : > { %4597 = vmatmul.mubr.f32.gmra.mrb[16].mxu1 %v4308_v9  ;;  %vm9904_vm10 = vmmov %vm9902_vm0 }
 0x212   : > { %5205 = vmatprep.mubr.msk.f32.mxu1 %vm9903_vm6, %v4318_v41  ;;  %v4316_v10 = vsel %vm9904_vm10, %v4307_v47, %v4315_v26  ;;  %v6231_v43 = vadd.f32 %v9311_v45, %v5407_v38  ;;  %v5408_v33 = vpop.f32.mrb[60].mxu0  ;;  %vm9905_vm13 = vmmov %vm9892_vm2 }
 0x213   : > { %v5409_v2 = vpop.f32.mrb[61].mxu0  ;;  %vm9907_vm1 = vmmov %vm9906_vm11 }
 0x214   : > { %v5410_v34 = vadd.f32 %v5409_v2, %v5408_v33  ;;  %vm9908_vm2 = vmmov %vm9907_vm1 }
 0x215   : > { %4602 = vmatmul.mubr.f32.gmra.mrb[42].mxu1 %v4316_v10  ;;  %vm9909_vm5 = vmmov %vm9907_vm1 }
 0x216   : > { %5206 = vmatprep.mubr.msk.f32.mxu1 %vm9905_vm13, %v4317_v18  ;;  %v6238_v11 = vadd.f32 %v9333_v4, %v5410_v34  ;;  %v5411_v7 = vpop.f32.mrb[62].mxu0 }
 0x217   : > { %v5412_v58 = vpop.f32.mrb[63].mxu0 }
 0x219   : > { %4606 = vmatmul.mubr.f32.gmra.mrb[44].mxu1 %v4315_v26 }
 0x21a   : > { %v5414_v15 = vpop.f32.mrb[64].mxu0 }
 0x21b   : > { %v5415_v20 = vpop.f32.mrb[65].mxu0 }
 0x21e   : > { %v5449_v0 = vpop.f32.mrb[66].mxu0 }
 0x21f   : > { %v5450_v42 = vpop.f32.mrb[67].mxu0 }
 0x220   : > { %v5451_v37 = vadd.f32 %v5450_v42, %v5449_v0 }
 0x222   : > { %v6179_v28 = vadd.f32 %v9383_v61, %v5451_v37  ;;  %v5452_v14 = vpop.f32.mrb[68].mxu0 }
 0x223   : > { %v5453_v1 = vpop.f32.mrb[69].mxu0 }
 0x224   : > { %v5454_v45 = vadd.f32 %v5453_v1, %v5452_v14 }
 0x226   : > { %v6187_v60 = vadd.f32 %v9394_v21, %v5454_v45  ;;  %v5455_v40 = vpop.f32.mrb[70].mxu0 }
 0x227   : > { %v5456_v35 = vpop.f32.mrb[71].mxu0 }
 0x228   : > { %v5457_v36 = vadd.f32 %v5456_v35, %v5455_v40 }
 0x22a   : > { %v6195_v57 = vadd.f32 %v9405_v50, %v5457_v36  ;;  %v5458_v4 = vpop.f32.mrb[72].mxu0 }
 0x22b   : > { %v5459_v16 = vpop.f32.mrb[73].mxu0 }
 0x22c   : > { %v5460_v29 = vadd.f32 %v5459_v16, %v5458_v4 }
 0x22e   : > { %v6203_v39 = vadd.f32 %v9416_v24, %v5460_v29  ;;  %v5461_v8 = vpop.f32.mrb[74].mxu0 }
 0x22f   : > { %v5462_v13 = vpop.f32.mrb[75].mxu0 }
 0x230   : > { %v5463_v55 = vadd.f32 %v5462_v13, %v5461_v8 }
 0x232   : > { %v6211_v61 = vadd.f32 %v9428_v56, %v5463_v55  ;;  %v5464_v59 = vpop.f32.mrb[76].mxu0 }
 0x233   : > { %v5465_v5 = vpop.f32.mrb[77].mxu0 }
 0x234   : > { %v2487_v3 = vpop.f32.mrb[26].mxu1  ;;  %v5466_v30 = vadd.f32 %v5465_v5, %v5464_v59 }
 0x235   : > { %v2488_v21 = vpop.f32.mrb[27].mxu1 }
 0x236   : > { %v6218_v51 = vadd.f32 %v6217_v17, %v5466_v30  ;;  %v5467_v27 = vpop.f32.mrb[78].mxu0 }
 0x237   : > { %v5468_v48 = vpop.f32.mrb[79].mxu0 }
 0x238   : > { %v2491_v31 = vpop.f32.mrb[28].mxu1  ;;  %v5469_v50 = vadd.f32 %v5468_v48, %v5467_v27 }
 0x239   : > { %v2492_v53 = vpop.f32.mrb[29].mxu1 }
 0x23a   : > { %v6225_v22 = vadd.f32 %v6224_v12, %v5469_v50  ;;  %v5470_v25 = vpop.f32.mrb[80].mxu0 }
 0x23b   : > { %v5471_v18 = vpop.f32.mrb[81].mxu0 }
 0x23c   : > { %v5472_v24 = vadd.f32 %v5471_v18, %v5470_v25 }
 0x23e   : > { %v6232_v63 = vadd.f32 %v6231_v43, %v5472_v24  ;;  %v5473_v23 = vpop.f32.mrb[82].mxu0 }
 0x23f   : > { %v5474_v62 = vpop.f32.mrb[83].mxu0 }
 0x240   : > { %v5475_v47 = vadd.f32 %v5474_v62, %v5473_v23 }
 0x242   : > { %v6239_v56 = vadd.f32 %v6238_v11, %v5475_v47  ;;  %v5476_v6 = vpop.f32.mrb[84].mxu0 }
 0x243   : > { %v5477_v54 = vpop.f32.mrb[85].mxu0 }
 0x246   : > { %v5479_v44 = vpop.f32.mrb[86].mxu0 }
 0x247   : > { %v5480_v32 = vpop.f32.mrb[87].mxu0 }
 0x24a   : > { %v5514_v46 = vpop.f32.mrb[88].mxu0 }
 0x24b   : > { %v5515_v17 = vpop.f32.mrb[89].mxu0 }
 0x24c   : > { %v5516_v41 = vadd.f32 %v5515_v17, %v5514_v46 }
 0x24e   : > { %v6180_v19 = vadd.f32 %v6179_v28, %v5516_v41  ;;  %v5517_v9 = vpop.f32.mrb[90].mxu0 }
 0x24f   : > { %v5518_v26 = vpop.f32.mrb[91].mxu0 }
 0x250   : > { %v5519_v52 = vadd.f32 %v5518_v26, %v5517_v9 }
 0x252   : > { %v6188_v12 = vadd.f32 %v6187_v60, %v5519_v52  ;;  %v5520_v49 = vpop.f32.mrb[92].mxu0 }
 0x253   : > { %v5521_v38 = vpop.f32.mrb[93].mxu0 }
 0x254   : > { %v5522_v10 = vadd.f32 %v5521_v38, %v5520_v49 }
 0x256   : > { %v6196_v43 = vadd.f32 %v6195_v57, %v5522_v10  ;;  %v5523_v33 = vpop.f32.mrb[94].mxu0 }
 0x257   : > { %v5524_v2 = vpop.f32.mrb[95].mxu0 }
 0x258   : > { %v5525_v34 = vadd.f32 %v5524_v2, %v5523_v33 }
 0x25a   : > { %v6204_v11 = vadd.f32 %v6203_v39, %v5525_v34  ;;  %v5526_v7 = vpop.f32.mrb[96].mxu0 }
 0x25b   : > { %v5527_v58 = vpop.f32.mrb[97].mxu0 }
 0x25c   : > { %v5528_v15 = vadd.f32 %v5527_v58, %v5526_v7 }
 0x25e   : > { %v6212_v20 = vadd.f32 %v6211_v61, %v5528_v15  ;;  %v5529_v0 = vpop.f32.mrb[98].mxu0 }
 0x25f   : > { %v5530_v42 = vpop.f32.mrb[99].mxu0 }
 0x260   : > { %v5531_v37 = vadd.f32 %v5530_v42, %v5529_v0 }
 0x262   : > { %v6219_v28 = vadd.f32 %v6218_v51, %v5531_v37  ;;  %v5532_v14 = vpop.f32.mrb[100].mxu0 }
 0x263   : > { %v5533_v1 = vpop.f32.mrb[101].mxu0 }
 0x264   : > { %v3016_v45 = vpop.f32.mrb[30].mxu1  ;;  %v5534_v60 = vadd.f32 %v5533_v1, %v5532_v14 }
 0x265   : > { %v3017_v40 = vpop.f32.mrb[31].mxu1 }
 0x266   : > { %v6226_v35 = vadd.f32 %v6225_v22, %v5534_v60  ;;  %v5535_v36 = vpop.f32.mrb[102].mxu0 }
 0x267   : > { %v5536_v57 = vpop.f32.mrb[103].mxu0 }
 0x268   : > { %v3020_v4 = vpop.f32.mrb[32].mxu1  ;;  %v5537_v16 = vadd.f32 %v5536_v57, %v5535_v36 }
 0x269   : > { %v3021_v29 = vpop.f32.mrb[33].mxu1 }
 0x26a   : > { %v6233_v39 = vadd.f32 %v6232_v63, %v5537_v16  ;;  %v5538_v8 = vpop.f32.mrb[104].mxu0 }
 0x26b   : > { %v5539_v13 = vpop.f32.mrb[105].mxu0 }
 0x26c   : > { %v5540_v55 = vadd.f32 %v5539_v13, %v5538_v8 }
 0x26e   : > { %v6240_v61 = vadd.f32 %v6239_v56, %v5540_v55  ;;  %v5541_v59 = vpop.f32.mrb[106].mxu0 }
 0x26f   : > { %v5542_v5 = vpop.f32.mrb[107].mxu0 }
 0x272   : > { %v5544_v3 = vpop.f32.mrb[108].mxu0 }
 0x273   : > { %v5545_v30 = vpop.f32.mrb[109].mxu0 }
 0x276   : > { %v5579_v21 = vpop.f32.mrb[110].mxu0 }
 0x277   : > { %v5580_v51 = vpop.f32.mrb[111].mxu0 }
 0x278   : > { %v5581_v27 = vadd.f32 %v5580_v51, %v5579_v21 }
 0x27a   : > { %v5582_v48 = vpop.f32.mrb[112].mxu0  ;;  %v6181_v31 = vadd.f32 %v6180_v19, %v5581_v27 }
 0x27b   : > { %v5583_v50 = vpop.f32.mrb[113].mxu0 }
 0x27c   : > { %v5584_v53 = vadd.f32 %v5583_v50, %v5582_v48 }
 0x27e   : > { %v5585_v22 = vpop.f32.mrb[114].mxu0  ;;  %v6189_v25 = vadd.f32 %v6188_v12, %v5584_v53 }
 0x27f   : > { %v5586_v18 = vpop.f32.mrb[115].mxu0 }
 0x280   : > { %v5587_v24 = vadd.f32 %v5586_v18, %v5585_v22 }
 0x282   : > { %v5588_v63 = vpop.f32.mrb[116].mxu0  ;;  %v6197_v23 = vadd.f32 %v6196_v43, %v5587_v24 }
 0x283   : > { %v5589_v62 = vpop.f32.mrb[117].mxu0 }
 0x284   : > { %v5590_v47 = vadd.f32 %v5589_v62, %v5588_v63 }
 0x286   : > { %v5591_v56 = vpop.f32.mrb[118].mxu0  ;;  %v6205_v6 = vadd.f32 %v6204_v11, %v5590_v47 }
 0x287   : > { %v5592_v54 = vpop.f32.mrb[119].mxu0 }
 0x288   : > { %v5593_v44 = vadd.f32 %v5592_v54, %v5591_v56 }
 0x28a   : > { %v6213_v32 = vadd.f32 %v6212_v20, %v5593_v44  ;;  %v5594_v46 = vpop.f32.mrb[120].mxu0 }
 0x28b   : > { %v5595_v17 = vpop.f32.mrb[121].mxu0 }
 0x28c   : > { %v5596_v41 = vadd.f32 %v5595_v17, %v5594_v46 }
 0x28e   : > { %v6220_v9 = vadd.f32 %v6219_v28, %v5596_v41  ;;  %v5597_v19 = vpop.f32.mrb[122].mxu0 }
 0x28f   : > { %v5598_v26 = vpop.f32.mrb[123].mxu0 }
 0x290   : > { %v5599_v52 = vadd.f32 %v5598_v26, %v5597_v19 }
 0x292   : > { %v6227_v49 = vadd.f32 %v6226_v35, %v5599_v52  ;;  %v5600_v12 = vpop.f32.mrb[124].mxu0 }
 0x293   : > { %v5601_v38 = vpop.f32.mrb[125].mxu0 }
 0x294   : > { %v3545_v10 = vpop.f32.mrb[34].mxu1  ;;  %v5602_v33 = vadd.f32 %v5601_v38, %v5600_v12 }
 0x295   : > { %v3546_v43 = vpop.f32.mrb[35].mxu1 }
 0x296   : > { %v6234_v2 = vadd.f32 %v6233_v39, %v5602_v33  ;;  %v5603_v34 = vpop.f32.mrb[126].mxu0 }
 0x297   : > { %v5604_v7 = vpop.f32.mrb[127].mxu0 }
 0x298   : > { %v3549_v11 = vpop.f32.mrb[36].mxu1  ;;  %v5605_v58 = vadd.f32 %v5604_v7, %v5603_v34 }
 0x299   : > { %v3550_v15 = vpop.f32.mrb[37].mxu1 }
 0x29a   : > { %v6241_v20 = vadd.f32 %v6240_v61, %v5605_v58  ;;  %v5606_v0 = vpop.f32.mrb[128].mxu0 }
 0x29b   : > { %v5607_v42 = vpop.f32.mrb[129].mxu0 }
 0x29e   : > { %v5609_v37 = vpop.f32.mrb[130].mxu0 }
 0x29f   : > { %v5610_v28 = vpop.f32.mrb[131].mxu0 }
 0x2a0   : > { %v4029_v14 = vpop.f32.mrb[0].mxu1 }
 0x2a1   : > { %v6182_v1 = vadd.f32 %v6181_v31, %v4029_v14  ;;  %v4031_v45 = vpop.f32.mrb[1].mxu1 }
 0x2a2   : > { %v5644_v60 = vpop.f32.mrb[132].mxu0 }
 0x2a3   : > { %v5645_v40 = vpop.f32.mrb[133].mxu0 }
 0x2a4   : > { %v4034_v35 = vpop.f32.mrb[2].mxu1  ;;  %v5646_v36 = vadd.f32 %v5645_v40, %v5644_v60 }
 0x2a5   : > { %v6190_v57 = vadd.f32 %v6189_v25, %v4034_v35  ;;  %v4036_v4 = vpop.f32.mrb[3].mxu1 }
 0x2a6   : > { %v5647_v16 = vpop.f32.mrb[134].mxu0  ;;  %v6183_v29 = vadd.f32 %v6182_v1, %v5646_v36 }
 0x2a7   : > { %v5648_v39 = vpop.f32.mrb[135].mxu0 }
 0x2a8   : > { %v4039_v8 = vpop.f32.mrb[4].mxu1  ;;  %v5649_v13 = vadd.f32 %v5648_v39, %v5647_v16 }
 0x2a9   : > { %v6198_v55 = vadd.f32 %v6197_v23, %v4039_v8  ;;  %v4041_v61 = vpop.f32.mrb[5].mxu1 }
 0x2aa   : > { %v5650_v59 = vpop.f32.mrb[136].mxu0  ;;  %v6191_v5 = vadd.f32 %v6190_v57, %v5649_v13  ;;  %v9458_v13 = vld [vmem:[%s9513_s2] sm:$0x1] }
 0x2ab   : > { %v5651_v3 = vpop.f32.mrb[137].mxu0 }
 0x2ac   : > { %v4044_v30 = vpop.f32.mrb[6].mxu1  ;;  %v5652_v21 = vadd.f32 %v5651_v3, %v5650_v59 }
 0x2ad   : > { %v6206_v51 = vadd.f32 %v6205_v6, %v4044_v30  ;;  %v4046_v27 = vpop.f32.mrb[7].mxu1 }
 0x2ae   : > { %v5653_v48 = vpop.f32.mrb[138].mxu0  ;;  %v6199_v31 = vadd.f32 %v6198_v55, %v5652_v21 }
 0x2af   : > { %v5654_v50 = vpop.f32.mrb[139].mxu0 }
 0x2b0   : > { %v5655_v53 = vadd.f32 %v5654_v50, %v5653_v48 }
 0x2b2   : > { %v5656_v22 = vpop.f32.mrb[140].mxu0  ;;  %v9453_v25 = vadd.f32 %v6206_v51, %v5655_v53 }
 0x2b3   : > { %v5657_v18 = vpop.f32.mrb[141].mxu0 }
 0x2b4   : > { %v5658_v24 = vadd.f32 %v5657_v18, %v5656_v22 }
 0x2b6   : > { %v5659_v63 = vpop.f32.mrb[142].mxu0  ;;  %v6214_v62 = vadd.f32 %v6213_v32, %v5658_v24 }
 0x2b7   : > { %v5660_v23 = vpop.f32.mrb[143].mxu0 }
 0x2b8   : > { %v5661_v47 = vadd.f32 %v5660_v23, %v5659_v63 }
 0x2ba   : > { %v6221_v54 = vadd.f32 %v6220_v9, %v5661_v47 }
 0x2bb   : > { %v5662_v56 = vpop.f32.mrb[144].mxu0 }
 0x2bc   : > { %v5663_v44 = vpop.f32.mrb[145].mxu0 }
 0x2bd   : > { %v5664_v46 = vadd.f32 %v5663_v44, %v5662_v56 }
 0x2bf   : > { %v6228_v6 = vadd.f32 %v6227_v49, %v5664_v46  ;;  %v4636_v49 = vlaneseq }
 0x2c0   : > { %v5665_v17 = vpop.f32.mrb[146].mxu0 }
 0x2c1   : > { %v5666_v41 = vpop.f32.mrb[147].mxu0  ;;  %v4637_v40 = vshrl.u32 %v4636_v49, 7 }
 0x2c2   : > { %v5667_v19 = vadd.f32 %v5666_v41, %v5665_v17 }
 0x2c3   : > { %v4638_v16 = vsub.s32 0, %v4637_v40 }
 0x2c4   : > { %v6235_v52 = vadd.f32 %v6234_v2, %v5667_v19 }
 0x2c5   : > { %v5668_v26 = vpop.f32.mrb[148].mxu0  ;;  %v4639_v48 = vrot.slane %v9458_v13, %v4638_v16 }
 0x2c6   : > { %v5669_v12 = vpop.f32.mrb[149].mxu0 }
 0x2c7   : > { %v4074_v38 = vpop.f32.mrb[38].mxu1  ;;  %v5670_v10 = vadd.f32 %v5669_v12, %v5668_v26 }
 0x2c8   : > { %v4075_v33 = vpop.f32.mrb[39].mxu1 }
 0x2c9   : > { %v5671_v43 = vpop.f32.mrb[150].mxu0  ;;  %v6242_v34 = vadd.f32 %v6241_v20, %v5670_v10 }
 0x2ca   : > { %v5672_v7 = vpop.f32.mrb[151].mxu0 }
 0x2cb   : > { %v4078_v32 = vpop.f32.mrb[40].mxu1 }
 0x2cc   : > { %v4079_v11 = vpop.f32.mrb[41].mxu1 }
 0x2cd   : > { %v5674_v58 = vpop.f32.mrb[152].mxu0 }
 0x2ce   : > { %v5675_v15 = vpop.f32.mrb[153].mxu0 }
 0x2d3   : > { %v4578_v9 = vpop.f32.mrb[8].mxu1 }
 0x2d4   : > { %v6215_v0 = vadd.f32 %v6214_v62, %v4578_v9  ;;  %v4580_v42 = vpop.f32.mrb[9].mxu1 }
 0x2d5   : > { %v4558_v37 = vpop.f32.mrb[154].mxu0 }
 0x2d6   : > { %v6184_v28 = vadd.f32 %v6183_v29, %v4558_v37  ;;  %v4560_v14 = vpop.f32.mrb[155].mxu0  ;;  %v4652_v22 = vrot.slane %v6215_v0, 1 }
 0x2d7   : > { %v4583_v1 = vpop.f32.mrb[10].mxu1 }
 0x2d8   : > { %v6222_v2 = vadd.f32 %v6221_v54, %v4583_v1  ;;  %v4585_v45 = vpop.f32.mrb[11].mxu1 }
 0x2d9   : > { %v4563_v60 = vpop.f32.mrb[156].mxu0 }
 0x2da   : > { %v6192_v35 = vadd.f32 %v6191_v5, %v4563_v60  ;;  %v4565_v36 = vpop.f32.mrb[157].mxu0  ;;  %v4677_v8 = vrot.slane %v6222_v2, 1 }
 0x2db   : > { %v4588_v20 = vpop.f32.mrb[12].mxu1 }
 0x2dc   : > { %v6229_v57 = vadd.f32 %v6228_v6, %v4588_v20  ;;  %v4590_v4 = vpop.f32.mrb[13].mxu1  ;;  %v4622_v59 = vrot.slane %v6192_v35, 1 }
 0x2dd   : > { %v4568_v39 = vpop.f32.mrb[158].mxu0 }
 0x2de   : > { %v4678_v29 = vrot.slane %v6229_v57, 1  ;;  %v6200_v55 = vadd.f32 %v6199_v31, %v4568_v39  ;;  %v4570_v61 = vpop.f32.mrb[159].mxu0 }
 0x2df   : > { %v4593_v3 = vpop.f32.mrb[14].mxu1 }
 0x2e0   : > { %v4679_v30 = vsel %vm9906_vm11, %v4677_v8, %v4678_v29  ;;  %v4683_v5 = vmax.f32 %v6222_v2, %v4678_v29  ;;  %v4623_v21 = vrot.slane %v6200_v55, 1  ;;  %v6236_v51 = vadd.f32 %v6235_v52, %v4593_v3  ;;  %v4595_v27 = vpop.f32.mrb[15].mxu1 }
 0x2e1   : > { %v4682_v50 = vmax.f32 %v6215_v0, %v4679_v30  ;;  %v4573_v53 = vpop.f32.mrb[160].mxu0 }
 0x2e2   : > { %v4694_v18 = vrot.slane %v4683_v5, 1  ;;  %v4624_v24 = vsel %vm9907_vm1, %v4622_v59, %v4623_v21  ;;  %v6208_v63 = vadd.f32 %v9453_v25, %v4573_v53  ;;  %v4575_v31 = vpop.f32.mrb[161].mxu0  ;;  %v4705_v7 = vrot.slane %v6236_v51, 1 }
 0x2e3   : > { %v4685_v62 = vrot.slane %v4682_v50, 1  ;;  %v4626_v23 = vmax.f32 %v6184_v28, %v4624_v24 }
 0x2e4   : > { %v4598_v47 = vpop.f32.mrb[16].mxu1  ;;  %v4696_v56 = vmax.f32 %v4683_v5, %v4694_v18  ;;  %v4651_v54 = vrot.slane %v6208_v63, 1  ;;  %v4657_v44 = vmax.f32 %v6208_v63, %v4652_v22 }
 0x2e5   : > { %v6243_v46 = vadd.f32 %v6242_v34, %v4598_v47  ;;  %v4600_v17 = vpop.f32.mrb[17].mxu1  ;;  %v4687_v6 = vmax.f32 %v4682_v50, %v4685_v62  ;;  %v4628_v41 = vrot.slane %v4626_v23, 1 }
 0x2e6   : > { %v4697_v19 = vadd.f32 %v4696_v56, %v9458_v13  ;;  %v4700_v26 = vadd.f32 %v4696_v56, %v4639_v48  ;;  %v4653_v52 = vsel %vm9908_vm2, %v4651_v54, %v4652_v22  ;;  %v4669_v12 = vrot.slane %v4657_v44, 1 }
 0x2e7   : > { %v4688_v38 = vadd.f32 %v4687_v6, %v4639_v48  ;;  %v4630_v10 = vmax.f32 %v4626_v23, %v4628_v41  ;;  %v4656_v25 = vmax.f32 %v6200_v55, %v4653_v52  ;;  %v4706_v33 = vrot.slane %v6243_v46, 1 }
 0x2e8   : > { %v4603_v43 = vpop.f32.mrb[42].mxu1  ;;  %6355 = vtanh.f32 %v4697_v19  ;;  %v4671_v32 = vmax.f32 %v4657_v44, %v4669_v12 }
 0x2e9   : > { %v4604_v11 = vpop.f32.mrb[43].mxu1  ;;  %6357 = vtanh.f32 %v4688_v38  ;;  %v4631_v34 = vadd.f32 %v4630_v10, %v9458_v13  ;;  %v4641_v58 = vadd.f32 %v4639_v48, %v4630_v10  ;;  %v4659_v15 = vrot.slane %v4656_v25, 1 }
 0x2ea   : > { %6359 = vtanh.f32 %v4700_v26  ;;  %v4672_v9 = vadd.f32 %v4671_v32, %v9458_v13  ;;  %v4707_v0 = vsel %vm9909_vm5, %v4705_v7, %v4706_v33  ;;  %v4711_v42 = vmax.f32 %v6236_v51, %v4706_v33 }
 0x2eb   : > { %6361 = vtanh.f32 %v4631_v34  ;;  %v4661_v37 = vmax.f32 %v4656_v25, %v4659_v15  ;;  %v4710_v49 = vmax.f32 %v6229_v57, %v4707_v0 }
 0x2ec   : > { %v4607_v28 = vpop.f32.mrb[44].mxu1  ;;  %6363 = vtanh.f32 %v4641_v58  ;;  %v4721_v14 = vrot.slane %v4711_v42, 1 }
 0x2ed   : > { %v4608_v1 = vpop.f32.mrb[45].mxu1  ;;  %v4662_v2 = vadd.f32 %v4661_v37, %v4639_v48  ;;  %6365 = vtanh.f32 %v4672_v9  ;;  %v4713_v45 = vrot.slane %v4710_v49, 1 }
 0x2ee   : > { %v4723_v60 = vmax.f32 %v4711_v42, %v4721_v14 }
 0x2ef   : > { %6367 = vtanh.f32 %v4662_v2  ;;  %v4715_v40 = vmax.f32 %v4710_v49, %v4713_v45 }
 0x2f0   : > { %v4724_v35 = vadd.f32 %v4723_v60, %v9458_v13  ;;  %v4727_v36 = vadd.f32 %v4723_v60, %v4639_v48 }
 0x2f1   : > { %v4716_v20 = vadd.f32 %v4715_v40, %v4639_v48 }
 0x2f2   : > { %v6356_v57 = vpop.eup %6355  ;;  %6369 = vtanh.f32 %v4724_v35 }
 0x2f3   : > { %v6358_v4 = vpop.eup %6357  ;;  %5213 = vst.msk [vmem:[%s9473_s28 + $0xa] sm:$0x1] %vm4633_vm8, %v6356_v57  ;;  %6371 = vtanh.f32 %v4716_v20 }
 0x2f4   : > { %v6360_v16 = vpop.eup %6359  ;;  %5212 = vst.msk [vmem:[%s9473_s28 + $0x3] sm:$0x40] %vm4647_vm7, %v6358_v4  ;;  %6373 = vtanh.f32 %v4727_v36 }
 0x2f5   : > { %5211 = vst.msk [vmem:[%s9473_s28 + $0x4] sm:$0x10] %vm4645_vm4, %v6358_v4  ;;  %v6362_v39 = vpop.eup %6361 }
 0x2f6   : > { %5214 = vst.msk [vmem:[%s9473_s28 + $0x9] sm:$0x4] %vm4643_vm9, %v6360_v16  ;;  %v6364_v8 = vpop.eup %6363 }
 0x2f7   : > { %4634 = vst.msk [vmem:[%s9473_s28] sm:$0x1] %vm4633_vm8, %v6362_v39  ;;  %v6366_v13 = vpop.eup %6365 }
 0x2f8   : > { %4644 = vst.msk [vmem:[%s9473_s28 - $0x1] sm:$0x4] %vm4643_vm9, %v6364_v8 }
 0x2f9   : > { %4648 = vst.msk [vmem:[%s9473_s28 - $0x3] sm:$0x40] %vm4647_vm7, %v6364_v8  ;;  %v6368_v29 = vpop.eup %6367 }
 0x2fa   : > { %4646 = vst.msk [vmem:[%s9473_s28 - $0x2] sm:$0x10] %vm4645_vm4, %v6364_v8  ;;  %5208 = vst.msk [vmem:[%s9473_s28 + $0x1] sm:$0x10] %vm4645_vm4, %v6368_v29 }
 0x2fb   : > { %5210 = vst.msk [vmem:[%s9473_s28 + $0x7] sm:$0x1] %vm4633_vm8, %v6366_v13 }
 0x2fc   : > { %5207 = vst.msk [vmem:[%s9473_s28 + $0x2] sm:$0x4] %vm4643_vm9, %v6368_v29  ;;  %v6370_v55 = vpop.eup %6369 }
 0x2fd   : > { %5209 = vst.msk [vmem:[%s9473_s28] sm:$0x40] %vm4647_vm7, %v6368_v29  ;;  %v6372_v61 = vpop.eup %6371 }
 0x2fe   : > { %5216 = vst.msk [vmem:[%s9473_s28 + $0xd] sm:$0x1] %vm4633_vm8, %v6370_v55  ;;  %v6374_v59 = vpop.eup %6373 }
 0x2ff   : > { %5215 = vst.msk [vmem:[%s9473_s28 + $0x6] sm:$0x40] %vm4647_vm7, %v6372_v61 }
 0x300   : > { %5217 = vst.msk [vmem:[%s9473_s28 + $0xc] sm:$0x4] %vm4643_vm9, %v6374_v59 }
 0x301   : > { %5218 = vst.msk [vmem:[%s9473_s28 + $0xb] sm:$0x10] %vm4645_vm4, %v6374_v59 }
 0x302 PF: > { %s13_s12 = sadd.s32 1, %s6385_s12  }
 0x303   : > { %p10_p4 = scmp.ge.s32.totalorder %s13_s12, 4  }
 0x305   :  { %12 = sbr.rel (!%p10_p4) target bundleno = 1 (0x1), region = 71 }

</bundles_post_ra>
